<compile_context>
chip_gen: v6e
topology: v6e:2x2x1
jax: 0.10.0
libtpu: 0.0.40
codegen_flags: <defaults>
</compile_context>

<pallas_src>
import numpy as np
import jax
import jax.numpy as jnp
from jax.experimental import pallas as pl
from jax.experimental.pallas import tpu as pltpu

_CHANS = [(3, 64), (64, 128), (128, 256), (256, 512)]
_CPAD = 128          # final 1x1 conv head padded 1 -> 128 output lanes (dense store)
_BN_EPS = 1e-5
_LRELU_SLOPE = 0.2
_HBM_NAMES = ("B2", "B3", "W4")   # weights streamed by manual DMA inside the kernel


# ----------------------------------------------------------------------------
# Shape bookkeeping
# ----------------------------------------------------------------------------
def _layer_dims(N, H, W):
    dims = []
    h, w = H, W
    for cin, cout in _CHANS:
        ho, wo = h // 2, w // 2
        dims.append(dict(N=N, H=h, W=w, Cin=cin, Cout=cout, Ho=ho, Wo=wo))
        h, w = ho, wo
    return dims, (h, w)                      # spatial size seen by the 1x1 head


def _live_taps(H, Ho, ksize=4, stride=2, pad=1):
    """kh taps whose selection rows are not identically zero
    (layer 3 with H=2 only has kh=1,2 alive -> half of B3/S3 is dead work)."""
    return [kh for kh in range(ksize)
            if any(0 <= stride * ho - pad + kh < H for ho in range(Ho))]


def _vmem_names(n_layers):
    names = ["x"] + [f"S{l}" for l in range(n_layers)] + ["B0", "B1", "bias0"]
    for l in range(1, n_layers):
        names += [f"gamma{l}", f"beta{l}"]
    names.append("bias4")
    return names


# ----------------------------------------------------------------------------
# One-time host-side weight preprocessing (pure data layout)
# ----------------------------------------------------------------------------
def _selection_matrix(N, H, Ho, taps, stride=2, pad=1):
    """Stacked 0/1 row-selection matrix, shape (len(taps)*N*Ho, N*H).
    Row ti*N*Ho + n*Ho + ho picks act row (n, stride*ho - pad + taps[ti]);
    an all-zero row implements the H-direction zero padding."""
    m0 = N * Ho
    S = np.zeros((len(taps) * m0, N * H), np.float32)
    for ti, kh in enumerate(taps):
        for n in range(N):
            for ho in range(Ho):
                h = stride * ho - pad + kh
                if 0 <= h < H:
                    S[ti * m0 + n * Ho + ho, n * H + h] = 1.0
    return S


def _banded_weights(wt, W, Wo, taps, stride=2, pad=1):
    """B[ti, w*Cin+ci, wo*Cout+co] = wt[co, ci, taps[ti], w - (stride*wo - pad)]
    (zero outside the band -> implements kw taps, stride and W zero-padding)."""
    Cout, Cin, KH, KW = wt.shape
    B = np.zeros((len(taps), W * Cin, Wo * Cout), np.float32)
    for ti, kh in enumerate(taps):
        for wo in range(Wo):
            for kw in range(KW):
                w = stride * wo - pad + kw
                if 0 <= w < W:
                    B[ti, w * Cin:(w + 1) * Cin, wo * Cout:(wo + 1) * Cout] = wt[:, :, kh, kw].T
    return B


def init_params(key):
    """Deterministic synthetic parameters in PyTorch layout (Cout, Cin, KH, KW)."""
    params = {}
    for l, (cin, cout) in enumerate(_CHANS):
        key, kw_, kb_ = jax.random.split(key, 3)
        w = 0.02 * jax.random.normal(kw_, (cout, cin, 4, 4), dtype=jnp.float32)
        b = 0.01 * jax.random.normal(kb_, (cout,), dtype=jnp.float32)
        gamma = jnp.ones((cout,), jnp.float32)        # BatchNorm2d affine defaults
        beta = jnp.zeros((cout,), jnp.float32)
        params[f"conv{l}"] = (w, b, gamma, beta)
    key, kw_, kb_ = jax.random.split(key, 3)
    w4 = 0.02 * jax.random.normal(kw_, (1, 512, 1, 1), dtype=jnp.float32)
    b4 = 0.01 * jax.random.normal(kb_, (1,), dtype=jnp.float32)
    params["conv4"] = (w4, b4)
    return params


def build_plan(params, N, H, W):
    """Expand conv weights into the stacked-selection / banded matrices the
    fused kernel consumes.  bf16 for matmul operands, f32 for epilogue params.
    Dead layer-3 taps are dropped here."""
    dims, (Hf, Wf) = _layer_dims(N, H, W)
    plan = {}
    for l, d in enumerate(dims):
        w, b, gamma, beta = params[f"conv{l}"]
        wt = np.asarray(w, np.float32)
        taps = _live_taps(d["H"], d["Ho"])
        plan[f"S{l}"] = jnp.asarray(
            _selection_matrix(d["N"], d["H"], d["Ho"], taps), jnp.bfloat16)
        plan[f"B{l}"] = jnp.asarray(
            _banded_weights(wt, d["W"], d["Wo"], taps), jnp.bfloat16)
        if l == 0:
            bias_tiled = np.tile(np.asarray(b, np.float32), d["Wo"])[None, :]
            plan["bias0"] = jnp.asarray(bias_tiled, jnp.float32)
        else:
            # conv bias dropped: training-mode BatchNorm cancels it exactly.
            plan[f"gamma{l}"] = jnp.asarray(np.asarray(gamma, np.float32)[None, :])
            plan[f"beta{l}"] = jnp.asarray(np.asarray(beta, np.float32)[None, :])
    # Final 1x1 conv, output channels padded 1 -> _CPAD for a lane-dense store.
    w4, b4 = params["conv4"]
    w4p = np.zeros((_CPAD, 512, 1, 1), np.float32)
    w4p[:1] = np.asarray(w4, np.float32)
    plan["W4"] = jnp.asarray(
        _banded_weights(w4p, Wf, Wf, taps=[0], stride=1, pad=0)[0], jnp.bfloat16)
    b4p = np.zeros((_CPAD,), np.float32)
    b4p[:1] = np.asarray(b4, np.float32)
    plan["bias4"] = jnp.asarray(np.tile(b4p, Wf)[None, :], jnp.float32)
    return plan


# ----------------------------------------------------------------------------
# Fused kernel: entire discriminator forward in one pallas_call
# ----------------------------------------------------------------------------
def _make_fused_kernel(dims, vmem_names):
    index = {nm: i for i, nm in enumerate(vmem_names)}
    nv = len(vmem_names)
    taps_per_layer = [_live_taps(d["H"], d["Ho"]) for d in dims]

    def kernel(*refs):
        vrefs = refs[:nv]
        b2_hbm, b3_hbm, w4_hbm, o_ref = refs[nv:nv + 4]
        b2_v, b3_v, w4_v, sems = refs[nv + 4:]

        def R(nm):
            return vrefs[index[nm]]

        # Kick off HBM->VMEM DMAs for the late-layer weights; they complete
        # while layers 0/1 compute on the VMEM-resident B0/B1.
        copies = [pltpu.make_async_copy(b2_hbm, b2_v, sems.at[0]),
                  pltpu.make_async_copy(b3_hbm, b3_v, sems.at[1]),
                  pltpu.make_async_copy(w4_hbm, w4_v, sems.at[2])]
        for cp in copies:
            cp.start()

        def conv_taps(act, s_ref, b_ref, n_taps, m_rows):
            # ONE stacked selection matmul (stride-2 H sampling + zero padding;
            # selecting bf16 values through a 0/1 matrix is exact), ONE cast,
            # then per-tap banded-weight matmuls on static row slices.
            rows = jnp.dot(s_ref[...], act, preferred_element_type=jnp.float32)
            rows = rows.astype(jnp.bfloat16)
            acc = None
            for t in range(n_taps):
                part = jnp.dot(rows[t * m_rows:(t + 1) * m_rows, :], b_ref[t],
                               preferred_element_type=jnp.float32)
                acc = part if acc is None else acc + part
            return acc                                    # f32 (N*Ho, Wo*Cout)

        def bn_lrelu(acc, d, gamma, beta):
            # Training-mode BatchNorm over (N, Ho, Wo) per channel folded into a
            # single per-channel (scale, shift).  Lane-group sums replace the
            # old P-matrix pooling matmuls (pure VPU adds, no HBM bytes).
            inv_m = 1.0 / float(d["N"] * d["Ho"] * d["Wo"])
            C, Wo = d["Cout"], d["Wo"]
            csum = jnp.sum(acc, axis=0, keepdims=True)
            csq = jnp.sum(acc * acc, axis=0, keepdims=True)
            if Wo > 1:
                csum_c, csq_c = csum[:, 0:C], csq[:, 0:C]
                for wo in range(1, Wo):
                    csum_c = csum_c + csum[:, wo * C:(wo + 1) * C]
                    csq_c = csq_c + csq[:, wo * C:(wo + 1) * C]
            else:
                csum_c, csq_c = csum, csq
            mean_c = csum_c * inv_m
            var_c = jnp.maximum(csq_c * inv_m - mean_c * mean_c, 0.0)
            inv_std = jax.lax.rsqrt(var_c + _BN_EPS)
            scale_c = gamma * inv_std
            shift_c = beta - mean_c * scale_c
            if Wo > 1:                                   # broadcast back over wo
                scale_c = jnp.concatenate([scale_c] * Wo, axis=1)
                shift_c = jnp.concatenate([shift_c] * Wo, axis=1)
            y = acc * scale_c + shift_c
            return jnp.where(y >= 0.0, y, _LRELU_SLOPE * y)

        act = R("x")[...]                                 # (N*H0, W0*Cin0) bf16

        # ---- layer 0: Conv + bias + LeakyReLU (B0 resident in VMEM) ----
        d = dims[0]
        acc = conv_taps(act, R("S0"), R("B0"), len(taps_per_layer[0]), d["N"] * d["Ho"])
        y = acc + R("bias0")[...]
        y = jnp.where(y >= 0.0, y, _LRELU_SLOPE * y)
        act = y.astype(jnp.bfloat16)

        # ---- layer 1: Conv + BN + LeakyReLU (B1 resident in VMEM) ----
        d = dims[1]
        acc = conv_taps(act, R("S1"), R("B1"), len(taps_per_layer[1]), d["N"] * d["Ho"])
        act = bn_lrelu(acc, d, R("gamma1")[...], R("beta1")[...]).astype(jnp.bfloat16)

        # ---- layer 2: Conv + BN + LeakyReLU (B2 arrives by DMA) ----
        copies[0].wait()
        d = dims[2]
        acc = conv_taps(act, R("S2"), b2_v, len(taps_per_layer[2]), d["N"] * d["Ho"])
        act = bn_lrelu(acc, d, R("gamma2")[...], R("beta2")[...]).astype(jnp.bfloat16)

        # ---- layer 3: Conv + BN + LeakyReLU (only live taps; B3 by DMA) ----
        copies[1].wait()
        d = dims[3]
        acc = conv_taps(act, R("S3"), b3_v, len(taps_per_layer[3]), d["N"] * d["Ho"])
        act = bn_lrelu(acc, d, R("gamma3")[...], R("beta3")[...]).astype(jnp.bfloat16)

        # ---- head: 1x1 conv (128-lane padded) + sigmoid ----
        copies[2].wait()
        y4 = jnp.dot(act, w4_v[...], preferred_element_type=jnp.float32) + R("bias4")[...]
        sig = pl.reciprocal(1.0 + jnp.exp(-y4), approx=True)   # EUP; clip guards ~2^-12 err
        o_ref[...] = jnp.clip(sig, 0.0, 1.0)

    return kernel


@jax.jit
def discriminator_forward(x_nchw, plan):
    N, C, H, W = x_nchw.shape
    dims, (Hf, Wf) = _layer_dims(N, H, W)
    vnames = _vmem_names(len(dims))

    # NCHW -> dense 2-D "rows x (width*channels)" layout, bf16 matmul operand.
    x_rows = jnp.transpose(x_nchw, (0, 2, 3, 1)).reshape(N * H, W * C).astype(jnp.bfloat16)
    vmem_inputs = [x_rows] + [plan[nm] for nm in vnames[1:]]
    hbm_inputs = [plan[nm] for nm in _HBM_NAMES]

    in_specs = (
        [pl.BlockSpec(a.shape, lambda i, _nd=a.ndim: (0,) * _nd) for a in vmem_inputs]
        + [pl.BlockSpec(memory_space=pl.ANY)] * len(hbm_inputs))   # manual DMA inside

    kernel = _make_fused_kernel(dims, vnames)
    out_mat = pl.pallas_call(
        kernel,
        out_shape=jax.ShapeDtypeStruct((N * Hf, Wf * _CPAD), jnp.float32),
        grid_spec=pltpu.PrefetchScalarGridSpec(
            num_scalar_prefetch=0,
            grid=(1,),
            in_specs=in_specs,
            out_specs=pl.BlockSpec((N * Hf, Wf * _CPAD), lambda i: (0, 0)),
            scratch_shapes=[
                pltpu.VMEM(plan["B2"].shape, jnp.bfloat16),   # layer-2 weights
                pltpu.VMEM(plan["B3"].shape, jnp.bfloat16),   # layer-3 weights (live taps)
                pltpu.VMEM(plan["W4"].shape, jnp.bfloat16),   # head weights
                pltpu.SemaphoreType.DMA((3,)),
            ]),
        compiler_params=pltpu.CompilerParams(
            dimension_semantics=("arbitrary",),
            vmem_limit_bytes=24 * 1024 * 1024,
        ),
    )(*vmem_inputs, *hbm_inputs)

    # (N*Hf, Wf*_CPAD) -> NCHW (N,1,Hf,Wf); only channel 0 of the padded head is real.
    out = out_mat.reshape(N, Hf, Wf, _CPAD)[:, :, :, :1]
    return jnp.transpose(out, (0, 3, 1, 2))


# ----------------------------------------------------------------------------
# Pure-JAX reference (train-mode BatchNorm semantics) for a numerical check
# ----------------------------------------------------------------------------
def _reference_forward(x, params):
    # TODO(synk): BatchNorm running-stat buffer updates (a training-time side
    # effect, not part of the forward output) are not modeled.
    def conv(h, w, b, stride, pad):
        y = jax.lax.conv_general_dilated(
            h, w, window_strides=(stride, stride),
            padding=[(pad, pad), (pad, pad)],
            dimension_numbers=("NCHW", "OIHW", "NCHW"))
        return y + b[None, :, None, None]

    def bn(h, gamma, beta):
        mean = jnp.mean(h, axis=(0, 2, 3), keepdims=True)
        var = jnp.mean((h - mean) ** 2, axis=(0, 2, 3), keepdims=True)
        hn = (h - mean) * jax.lax.rsqrt(var + _BN_EPS)
        return hn * gamma[None, :, None, None] + beta[None, :, None, None]

    def lrelu(h):
        return jnp.where(h >= 0, h, _LRELU_SLOPE * h)

    w0, b0, _, _ = params["conv0"]
    h = lrelu(conv(x, w0, b0, 2, 1))
    for l in range(1, 4):
        w, b, g, bt = params[f"conv{l}"]
        h = lrelu(bn(conv(h, w, b, 2, 1), g, bt))
    w4, b4 = params["conv4"]
    return jax.nn.sigmoid(conv(h, w4, b4, 1, 0))


if __name__ == "__main__":
    N, H, W = 2, 16, 16
    x = jax.random.normal(jax.random.PRNGKey(0), (N, 3, H, W), dtype=jnp.float32)  # NCHW
    params = init_params(jax.random.PRNGKey(1))
    plan = build_plan(params, N=N, H=H, W=W)

    y = discriminator_forward(x, plan)
    y = jax.block_until_ready(y)

    assert y.shape == (N, 1, 1, 1), y.shape
    assert bool(jnp.all(jnp.isfinite(y)))
    assert bool(jnp.all((y >= 0.0) & (y <= 1.0)))

    # Loose tolerance: bf16 matmul operands + 2-sample-per-channel BN in the
    # last stage; still catches layout / tap / BN-fold mistakes.
    y_ref = _reference_forward(x, params)
    max_diff = float(jnp.max(jnp.abs(y - y_ref)))
    assert max_diff < 0.1, f"kernel vs reference max|diff|={max_diff}"

    print("KERNEL_OK")
</pallas_src>

<mosaic_0001>
module attributes {stable_mosaic.version = 11 : i64} {
  func.func @kernel(%arg0: i32, %arg1: memref<32x48xbf16, #tpu.memory_space<vmem>>, %arg2: memref<64x32xbf16, #tpu.memory_space<vmem>>, %arg3: memref<32x16xbf16, #tpu.memory_space<vmem>>, %arg4: memref<16x8xbf16, #tpu.memory_space<vmem>>, %arg5: memref<4x4xbf16, #tpu.memory_space<vmem>>, %arg6: memref<4x48x512xbf16, #tpu.memory_space<vmem>>, %arg7: memref<4x512x512xbf16, #tpu.memory_space<vmem>>, %arg8: memref<1x512xf32, #tpu.memory_space<vmem>>, %arg9: memref<1x128xf32, #tpu.memory_space<vmem>>, %arg10: memref<1x128xf32, #tpu.memory_space<vmem>>, %arg11: memref<1x256xf32, #tpu.memory_space<vmem>>, %arg12: memref<1x256xf32, #tpu.memory_space<vmem>>, %arg13: memref<1x512xf32, #tpu.memory_space<vmem>>, %arg14: memref<1x512xf32, #tpu.memory_space<vmem>>, %arg15: memref<1x128xf32, #tpu.memory_space<vmem>>, %arg16: memref<4x512x512xbf16, #tpu.memory_space<any>>, %arg17: memref<2x512x512xbf16, #tpu.memory_space<any>>, %arg18: memref<512x128xbf16, #tpu.memory_space<any>>, %arg19: memref<2x128xf32, #tpu.memory_space<vmem>>, %arg20: memref<4x512x512xbf16, #tpu.memory_space<vmem>>, %arg21: memref<2x512x512xbf16, #tpu.memory_space<vmem>>, %arg22: memref<512x128xbf16, #tpu.memory_space<vmem>>, %arg23: memref<3x!tpu.dma_semaphore, #tpu.memory_space<semaphore_mem>>) attributes {dimension_semantics = [#tpu.dimension_semantics<arbitrary>], iteration_bounds = array<i64: 1>, scalar_prefetch = 0 : i64, scratch_operands = 4 : i64, tpu.core_type = #tpu.core_type<tc>, window_params = [{pipeline_mode = #tpu.pipeline_mode<synchronous>, transform_indices = @transform_0, window_bounds = array<i64: 32, 48>}, {pipeline_mode = #tpu.pipeline_mode<synchronous>, transform_indices = @transform_1, window_bounds = array<i64: 64, 32>}, {pipeline_mode = #tpu.pipeline_mode<synchronous>, transform_indices = @transform_2, window_bounds = array<i64: 32, 16>}, {pipeline_mode = #tpu.pipeline_mode<synchronous>, transform_indices = @transform_3, window_bounds = array<i64: 16, 8>}, {pipeline_mode = #tpu.pipeline_mode<synchronous>, transform_indices = @transform_4, window_bounds = array<i64: 4, 4>}, {pipeline_mode = #tpu.pipeline_mode<synchronous>, transform_indices = @transform_5, window_bounds = array<i64: 4, 48, 512>}, {pipeline_mode = #tpu.pipeline_mode<synchronous>, transform_indices = @transform_6, window_bounds = array<i64: 4, 512, 512>}, {pipeline_mode = #tpu.pipeline_mode<synchronous>, transform_indices = @transform_7, window_bounds = array<i64: 1, 512>}, {pipeline_mode = #tpu.pipeline_mode<synchronous>, transform_indices = @transform_8, window_bounds = array<i64: 1, 128>}, {pipeline_mode = #tpu.pipeline_mode<synchronous>, transform_indices = @transform_9, window_bounds = array<i64: 1, 128>}, {pipeline_mode = #tpu.pipeline_mode<synchronous>, transform_indices = @transform_10, window_bounds = array<i64: 1, 256>}, {pipeline_mode = #tpu.pipeline_mode<synchronous>, transform_indices = @transform_11, window_bounds = array<i64: 1, 256>}, {pipeline_mode = #tpu.pipeline_mode<synchronous>, transform_indices = @transform_12, window_bounds = array<i64: 1, 512>}, {pipeline_mode = #tpu.pipeline_mode<synchronous>, transform_indices = @transform_13, window_bounds = array<i64: 1, 512>}, {pipeline_mode = #tpu.pipeline_mode<synchronous>, transform_indices = @transform_14, window_bounds = array<i64: 1, 128>}, {}, {}, {}, {pipeline_mode = #tpu.pipeline_mode<synchronous>, transform_indices = @transform_18, window_bounds = array<i64: 2, 128>}]} {
    %c0_i32 = arith.constant 0 : i32
    %0 = tpu.memref_slice %arg23[%c0_i32] : memref<3x!tpu.dma_semaphore, #tpu.memory_space<semaphore_mem>> -> memref<1x!tpu.dma_semaphore, #tpu.memory_space<semaphore_mem>>
    %1 = tpu.memref_squeeze %0 : memref<1x!tpu.dma_semaphore, #tpu.memory_space<semaphore_mem>> -> memref<!tpu.dma_semaphore, #tpu.memory_space<semaphore_mem>>
    tpu.enqueue_dma source(%arg16 : memref<4x512x512xbf16, #tpu.memory_space<any>>) target(%arg20 : memref<4x512x512xbf16, #tpu.memory_space<vmem>>) target_semaphore(%1 : memref<!tpu.dma_semaphore, #tpu.memory_space<semaphore_mem>>)
    %c1_i32 = arith.constant 1 : i32
    %2 = tpu.memref_slice %arg23[%c1_i32] : memref<3x!tpu.dma_semaphore, #tpu.memory_space<semaphore_mem>> -> memref<1x!tpu.dma_semaphore, #tpu.memory_space<semaphore_mem>>
    %3 = tpu.memref_squeeze %2 : memref<1x!tpu.dma_semaphore, #tpu.memory_space<semaphore_mem>> -> memref<!tpu.dma_semaphore, #tpu.memory_space<semaphore_mem>>
    tpu.enqueue_dma source(%arg17 : memref<2x512x512xbf16, #tpu.memory_space<any>>) target(%arg21 : memref<2x512x512xbf16, #tpu.memory_space<vmem>>) target_semaphore(%3 : memref<!tpu.dma_semaphore, #tpu.memory_space<semaphore_mem>>)
    %c2_i32 = arith.constant 2 : i32
    %4 = tpu.memref_slice %arg23[%c2_i32] : memref<3x!tpu.dma_semaphore, #tpu.memory_space<semaphore_mem>> -> memref<1x!tpu.dma_semaphore, #tpu.memory_space<semaphore_mem>>
    %5 = tpu.memref_squeeze %4 : memref<1x!tpu.dma_semaphore, #tpu.memory_space<semaphore_mem>> -> memref<!tpu.dma_semaphore, #tpu.memory_space<semaphore_mem>>
    tpu.enqueue_dma source(%arg18 : memref<512x128xbf16, #tpu.memory_space<any>>) target(%arg22 : memref<512x128xbf16, #tpu.memory_space<vmem>>) target_semaphore(%5 : memref<!tpu.dma_semaphore, #tpu.memory_space<semaphore_mem>>)
    %c0 = arith.constant 0 : index
    %c0_0 = arith.constant 0 : index
    %6 = vector.load %arg1[%c0, %c0_0] : memref<32x48xbf16, #tpu.memory_space<vmem>>, vector<32x48xbf16>
    %c0_1 = arith.constant 0 : index
    %c0_2 = arith.constant 0 : index
    %7 = vector.load %arg2[%c0_1, %c0_2] : memref<64x32xbf16, #tpu.memory_space<vmem>>, vector<64x32xbf16>
    %cst = arith.constant dense<0.000000e+00> : vector<64x48xf32>
    %8 = tpu.matmul %7, %6, %cst {dimension_numbers = #tpu.dot_dimension_numbers<[1], [0], [0], [1], [0, 0, 1, 1], [], []>} : vector<64x32xbf16>, vector<32x48xbf16>, vector<64x48xf32> -> vector<64x48xf32>
    %9 = arith.truncf %8 : vector<64x48xf32> to vector<64x48xbf16>
    %10 = vector.extract_strided_slice %9 {offsets = [0, 0], sizes = [16, 48], strides = [1, 1]} : vector<64x48xbf16> to vector<16x48xbf16>
    %c0_3 = arith.constant 0 : index
    %c0_4 = arith.constant 0 : index
    %c0_5 = arith.constant 0 : index
    %11 = vector.load %arg6[%c0_3, %c0_4, %c0_5] : memref<4x48x512xbf16, #tpu.memory_space<vmem>>, vector<1x48x512xbf16>
    %12 = vector.shape_cast %11 : vector<1x48x512xbf16> to vector<48x512xbf16>
    %cst_6 = arith.constant dense<0.000000e+00> : vector<16x512xf32>
    %13 = tpu.matmul %10, %12, %cst_6 {dimension_numbers = #tpu.dot_dimension_numbers<[1], [0], [0], [1], [0, 0, 1, 1], [], []>} : vector<16x48xbf16>, vector<48x512xbf16>, vector<16x512xf32> -> vector<16x512xf32>
    %14 = vector.extract_strided_slice %9 {offsets = [16, 0], sizes = [16, 48], strides = [1, 1]} : vector<64x48xbf16> to vector<16x48xbf16>
    %c1 = arith.constant 1 : index
    %c0_7 = arith.constant 0 : index
    %c0_8 = arith.constant 0 : index
    %15 = vector.load %arg6[%c1, %c0_7, %c0_8] : memref<4x48x512xbf16, #tpu.memory_space<vmem>>, vector<1x48x512xbf16>
    %16 = vector.shape_cast %15 : vector<1x48x512xbf16> to vector<48x512xbf16>
    %cst_9 = arith.constant dense<0.000000e+00> : vector<16x512xf32>
    %17 = tpu.matmul %14, %16, %cst_9 {dimension_numbers = #tpu.dot_dimension_numbers<[1], [0], [0], [1], [0, 0, 1, 1], [], []>} : vector<16x48xbf16>, vector<48x512xbf16>, vector<16x512xf32> -> vector<16x512xf32>
    %18 = arith.addf %13, %17 : vector<16x512xf32>
    %19 = vector.extract_strided_slice %9 {offsets = [32, 0], sizes = [16, 48], strides = [1, 1]} : vector<64x48xbf16> to vector<16x48xbf16>
    %c2 = arith.constant 2 : index
    %c0_10 = arith.constant 0 : index
    %c0_11 = arith.constant 0 : index
    %20 = vector.load %arg6[%c2, %c0_10, %c0_11] : memref<4x48x512xbf16, #tpu.memory_space<vmem>>, vector<1x48x512xbf16>
    %21 = vector.shape_cast %20 : vector<1x48x512xbf16> to vector<48x512xbf16>
    %cst_12 = arith.constant dense<0.000000e+00> : vector<16x512xf32>
    %22 = tpu.matmul %19, %21, %cst_12 {dimension_numbers = #tpu.dot_dimension_numbers<[1], [0], [0], [1], [0, 0, 1, 1], [], []>} : vector<16x48xbf16>, vector<48x512xbf16>, vector<16x512xf32> -> vector<16x512xf32>
    %23 = arith.addf %18, %22 : vector<16x512xf32>
    %24 = vector.extract_strided_slice %9 {offsets = [48, 0], sizes = [16, 48], strides = [1, 1]} : vector<64x48xbf16> to vector<16x48xbf16>
    %c3 = arith.constant 3 : index
    %c0_13 = arith.constant 0 : index
    %c0_14 = arith.constant 0 : index
    %25 = vector.load %arg6[%c3, %c0_13, %c0_14] : memref<4x48x512xbf16, #tpu.memory_space<vmem>>, vector<1x48x512xbf16>
    %26 = vector.shape_cast %25 : vector<1x48x512xbf16> to vector<48x512xbf16>
    %cst_15 = arith.constant dense<0.000000e+00> : vector<16x512xf32>
    %27 = tpu.matmul %24, %26, %cst_15 {dimension_numbers = #tpu.dot_dimension_numbers<[1], [0], [0], [1], [0, 0, 1, 1], [], []>} : vector<16x48xbf16>, vector<48x512xbf16>, vector<16x512xf32> -> vector<16x512xf32>
    %28 = arith.addf %23, %27 : vector<16x512xf32>
    %c0_16 = arith.constant 0 : index
    %c0_17 = arith.constant 0 : index
    %29 = vector.load %arg8[%c0_16, %c0_17] : memref<1x512xf32, #tpu.memory_space<vmem>>, vector<1x512xf32>
    %30 = vector.broadcast %29 : vector<1x512xf32> to vector<16x512xf32>
    %31 = arith.addf %28, %30 : vector<16x512xf32>
    %cst_18 = arith.constant 0.000000e+00 : f32
    %32 = vector.broadcast %cst_18 : f32 to vector<16x512xf32>
    %33 = arith.cmpf oge, %31, %32 : vector<16x512xf32>
    %cst_19 = arith.constant 2.000000e-01 : f32
    %34 = vector.broadcast %cst_19 : f32 to vector<16x512xf32>
    %35 = arith.mulf %34, %31 : vector<16x512xf32>
    %36 = arith.select %33, %31, %35 : vector<16x512xi1>, vector<16x512xf32>
    %37 = arith.truncf %36 : vector<16x512xf32> to vector<16x512xbf16>
    %c0_20 = arith.constant 0 : index
    %c0_21 = arith.constant 0 : index
    %38 = vector.load %arg3[%c0_20, %c0_21] : memref<32x16xbf16, #tpu.memory_space<vmem>>, vector<32x16xbf16>
    %cst_22 = arith.constant dense<0.000000e+00> : vector<32x512xf32>
    %39 = tpu.matmul %38, %37, %cst_22 {dimension_numbers = #tpu.dot_dimension_numbers<[1], [0], [0], [1], [0, 0, 1, 1], [], []>} : vector<32x16xbf16>, vector<16x512xbf16>, vector<32x512xf32> -> vector<32x512xf32>
    %40 = arith.truncf %39 : vector<32x512xf32> to vector<32x512xbf16>
    %41 = vector.extract_strided_slice %40 {offsets = [0, 0], sizes = [8, 512], strides = [1, 1]} : vector<32x512xbf16> to vector<8x512xbf16>
    %c0_23 = arith.constant 0 : index
    %c0_24 = arith.constant 0 : index
    %c0_25 = arith.constant 0 : index
    %42 = vector.load %arg7[%c0_23, %c0_24, %c0_25] : memref<4x512x512xbf16, #tpu.memory_space<vmem>>, vector<1x512x512xbf16>
    %43 = vector.shape_cast %42 : vector<1x512x512xbf16> to vector<512x512xbf16>
    %cst_26 = arith.constant dense<0.000000e+00> : vector<8x512xf32>
    %44 = tpu.matmul %41, %43, %cst_26 {dimension_numbers = #tpu.dot_dimension_numbers<[1], [0], [0], [1], [0, 0, 1, 1], [], []>} : vector<8x512xbf16>, vector<512x512xbf16>, vector<8x512xf32> -> vector<8x512xf32>
    %45 = vector.extract_strided_slice %40 {offsets = [8, 0], sizes = [8, 512], strides = [1, 1]} : vector<32x512xbf16> to vector<8x512xbf16>
    %c1_27 = arith.constant 1 : index
    %c0_28 = arith.constant 0 : index
    %c0_29 = arith.constant 0 : index
    %46 = vector.load %arg7[%c1_27, %c0_28, %c0_29] : memref<4x512x512xbf16, #tpu.memory_space<vmem>>, vector<1x512x512xbf16>
    %47 = vector.shape_cast %46 : vector<1x512x512xbf16> to vector<512x512xbf16>
    %cst_30 = arith.constant dense<0.000000e+00> : vector<8x512xf32>
    %48 = tpu.matmul %45, %47, %cst_30 {dimension_numbers = #tpu.dot_dimension_numbers<[1], [0], [0], [1], [0, 0, 1, 1], [], []>} : vector<8x512xbf16>, vector<512x512xbf16>, vector<8x512xf32> -> vector<8x512xf32>
    %49 = arith.addf %44, %48 : vector<8x512xf32>
    %50 = vector.extract_strided_slice %40 {offsets = [16, 0], sizes = [8, 512], strides = [1, 1]} : vector<32x512xbf16> to vector<8x512xbf16>
    %c2_31 = arith.constant 2 : index
    %c0_32 = arith.constant 0 : index
    %c0_33 = arith.constant 0 : index
    %51 = vector.load %arg7[%c2_31, %c0_32, %c0_33] : memref<4x512x512xbf16, #tpu.memory_space<vmem>>, vector<1x512x512xbf16>
    %52 = vector.shape_cast %51 : vector<1x512x512xbf16> to vector<512x512xbf16>
    %cst_34 = arith.constant dense<0.000000e+00> : vector<8x512xf32>
    %53 = tpu.matmul %50, %52, %cst_34 {dimension_numbers = #tpu.dot_dimension_numbers<[1], [0], [0], [1], [0, 0, 1, 1], [], []>} : vector<8x512xbf16>, vector<512x512xbf16>, vector<8x512xf32> -> vector<8x512xf32>
    %54 = arith.addf %49, %53 : vector<8x512xf32>
    %55 = vector.extract_strided_slice %40 {offsets = [24, 0], sizes = [8, 512], strides = [1, 1]} : vector<32x512xbf16> to vector<8x512xbf16>
    %c3_35 = arith.constant 3 : index
    %c0_36 = arith.constant 0 : index
    %c0_37 = arith.constant 0 : index
    %56 = vector.load %arg7[%c3_35, %c0_36, %c0_37] : memref<4x512x512xbf16, #tpu.memory_space<vmem>>, vector<1x512x512xbf16>
    %57 = vector.shape_cast %56 : vector<1x512x512xbf16> to vector<512x512xbf16>
    %cst_38 = arith.constant dense<0.000000e+00> : vector<8x512xf32>
    %58 = tpu.matmul %55, %57, %cst_38 {dimension_numbers = #tpu.dot_dimension_numbers<[1], [0], [0], [1], [0, 0, 1, 1], [], []>} : vector<8x512xbf16>, vector<512x512xbf16>, vector<8x512xf32> -> vector<8x512xf32>
    %59 = arith.addf %54, %58 : vector<8x512xf32>
    %c0_39 = arith.constant 0 : index
    %c0_40 = arith.constant 0 : index
    %60 = vector.load %arg9[%c0_39, %c0_40] : memref<1x128xf32, #tpu.memory_space<vmem>>, vector<1x128xf32>
    %c0_41 = arith.constant 0 : index
    %c0_42 = arith.constant 0 : index
    %61 = vector.load %arg10[%c0_41, %c0_42] : memref<1x128xf32, #tpu.memory_space<vmem>>, vector<1x128xf32>
    %cst_43 = arith.constant dense<0.000000e+00> : vector<512xf32>
    %62 = vector.multi_reduction <add>, %59, %cst_43 [0] : vector<8x512xf32> to vector<512xf32>
    %63 = vector.shape_cast %62 : vector<512xf32> to vector<1x512xf32>
    %64 = arith.mulf %59, %59 : vector<8x512xf32>
    %cst_44 = arith.constant dense<0.000000e+00> : vector<512xf32>
    %65 = vector.multi_reduction <add>, %64, %cst_44 [0] : vector<8x512xf32> to vector<512xf32>
    %66 = vector.shape_cast %65 : vector<512xf32> to vector<1x512xf32>
    %67 = vector.extract_strided_slice %63 {offsets = [0, 0], sizes = [1, 128], strides = [1, 1]} : vector<1x512xf32> to vector<1x128xf32>
    %68 = vector.extract_strided_slice %66 {offsets = [0, 0], sizes = [1, 128], strides = [1, 1]} : vector<1x512xf32> to vector<1x128xf32>
    %69 = vector.extract_strided_slice %63 {offsets = [0, 128], sizes = [1, 128], strides = [1, 1]} : vector<1x512xf32> to vector<1x128xf32>
    %70 = arith.addf %67, %69 : vector<1x128xf32>
    %71 = vector.extract_strided_slice %66 {offsets = [0, 128], sizes = [1, 128], strides = [1, 1]} : vector<1x512xf32> to vector<1x128xf32>
    %72 = arith.addf %68, %71 : vector<1x128xf32>
    %73 = vector.extract_strided_slice %63 {offsets = [0, 256], sizes = [1, 128], strides = [1, 1]} : vector<1x512xf32> to vector<1x128xf32>
    %74 = arith.addf %70, %73 : vector<1x128xf32>
    %75 = vector.extract_strided_slice %66 {offsets = [0, 256], sizes = [1, 128], strides = [1, 1]} : vector<1x512xf32> to vector<1x128xf32>
    %76 = arith.addf %72, %75 : vector<1x128xf32>
    %77 = vector.extract_strided_slice %63 {offsets = [0, 384], sizes = [1, 128], strides = [1, 1]} : vector<1x512xf32> to vector<1x128xf32>
    %78 = arith.addf %74, %77 : vector<1x128xf32>
    %79 = vector.extract_strided_slice %66 {offsets = [0, 384], sizes = [1, 128], strides = [1, 1]} : vector<1x512xf32> to vector<1x128xf32>
    %80 = arith.addf %76, %79 : vector<1x128xf32>
    %cst_45 = arith.constant 3.125000e-02 : f32
    %81 = vector.broadcast %cst_45 : f32 to vector<1x128xf32>
    %82 = arith.mulf %78, %81 : vector<1x128xf32>
    %cst_46 = arith.constant 3.125000e-02 : f32
    %83 = vector.broadcast %cst_46 : f32 to vector<1x128xf32>
    %84 = arith.mulf %80, %83 : vector<1x128xf32>
    %85 = arith.mulf %82, %82 : vector<1x128xf32>
    %86 = arith.subf %84, %85 : vector<1x128xf32>
    %cst_47 = arith.constant 0.000000e+00 : f32
    %87 = vector.broadcast %cst_47 : f32 to vector<1x128xf32>
    %88 = arith.maximumf %86, %87 : vector<1x128xf32>
    %cst_48 = arith.constant 9.99999974E-6 : f32
    %89 = vector.broadcast %cst_48 : f32 to vector<1x128xf32>
    %90 = arith.addf %88, %89 : vector<1x128xf32>
    %91 = math.rsqrt %90 : vector<1x128xf32>
    %92 = arith.mulf %60, %91 : vector<1x128xf32>
    %93 = arith.mulf %82, %92 : vector<1x128xf32>
    %94 = arith.subf %61, %93 : vector<1x128xf32>
    %95 = tpu.concatenate %92, %92, %92, %92 in 1 : vector<1x128xf32>, vector<1x128xf32>, vector<1x128xf32>, vector<1x128xf32> -> vector<1x512xf32>
    %96 = tpu.concatenate %94, %94, %94, %94 in 1 : vector<1x128xf32>, vector<1x128xf32>, vector<1x128xf32>, vector<1x128xf32> -> vector<1x512xf32>
    %97 = vector.broadcast %95 : vector<1x512xf32> to vector<8x512xf32>
    %98 = arith.mulf %59, %97 : vector<8x512xf32>
    %99 = vector.broadcast %96 : vector<1x512xf32> to vector<8x512xf32>
    %100 = arith.addf %98, %99 : vector<8x512xf32>
    %cst_49 = arith.constant 0.000000e+00 : f32
    %101 = vector.broadcast %cst_49 : f32 to vector<8x512xf32>
    %102 = arith.cmpf oge, %100, %101 : vector<8x512xf32>
    %cst_50 = arith.constant 2.000000e-01 : f32
    %103 = vector.broadcast %cst_50 : f32 to vector<8x512xf32>
    %104 = arith.mulf %103, %100 : vector<8x512xf32>
    %105 = arith.select %102, %100, %104 : vector<8x512xi1>, vector<8x512xf32>
    %106 = arith.truncf %105 : vector<8x512xf32> to vector<8x512xbf16>
    %c0_i32_51 = arith.constant 0 : i32
    %107 = tpu.memref_slice %arg23[%c0_i32_51] : memref<3x!tpu.dma_semaphore, #tpu.memory_space<semaphore_mem>> -> memref<1x!tpu.dma_semaphore, #tpu.memory_space<semaphore_mem>>
    %108 = tpu.memref_squeeze %107 : memref<1x!tpu.dma_semaphore, #tpu.memory_space<semaphore_mem>> -> memref<!tpu.dma_semaphore, #tpu.memory_space<semaphore_mem>>
    tpu.wait_dma2 semaphore(%108 : memref<!tpu.dma_semaphore, #tpu.memory_space<semaphore_mem>>) src(%arg16 : memref<4x512x512xbf16, #tpu.memory_space<any>>) dst(%arg20 : memref<4x512x512xbf16, #tpu.memory_space<vmem>>)
    %c0_52 = arith.constant 0 : index
    %c0_53 = arith.constant 0 : index
    %109 = vector.load %arg4[%c0_52, %c0_53] : memref<16x8xbf16, #tpu.memory_space<vmem>>, vector<16x8xbf16>
    %cst_54 = arith.constant dense<0.000000e+00> : vector<16x512xf32>
    %110 = tpu.matmul %109, %106, %cst_54 {dimension_numbers = #tpu.dot_dimension_numbers<[1], [0], [0], [1], [0, 0, 1, 1], [], []>} : vector<16x8xbf16>, vector<8x512xbf16>, vector<16x512xf32> -> vector<16x512xf32>
    %111 = arith.truncf %110 : vector<16x512xf32> to vector<16x512xbf16>
    %112 = vector.extract_strided_slice %111 {offsets = [0, 0], sizes = [4, 512], strides = [1, 1]} : vector<16x512xbf16> to vector<4x512xbf16>
    %c0_55 = arith.constant 0 : index
    %c0_56 = arith.constant 0 : index
    %c0_57 = arith.constant 0 : index
    %113 = vector.load %arg20[%c0_55, %c0_56, %c0_57] : memref<4x512x512xbf16, #tpu.memory_space<vmem>>, vector<1x512x512xbf16>
    %114 = vector.shape_cast %113 : vector<1x512x512xbf16> to vector<512x512xbf16>
    %cst_58 = arith.constant dense<0.000000e+00> : vector<4x512xf32>
    %115 = tpu.matmul %112, %114, %cst_58 {dimension_numbers = #tpu.dot_dimension_numbers<[1], [0], [0], [1], [0, 0, 1, 1], [], []>} : vector<4x512xbf16>, vector<512x512xbf16>, vector<4x512xf32> -> vector<4x512xf32>
    %116 = vector.extract_strided_slice %111 {offsets = [4, 0], sizes = [4, 512], strides = [1, 1]} : vector<16x512xbf16> to vector<4x512xbf16>
    %c1_59 = arith.constant 1 : index
    %c0_60 = arith.constant 0 : index
    %c0_61 = arith.constant 0 : index
    %117 = vector.load %arg20[%c1_59, %c0_60, %c0_61] : memref<4x512x512xbf16, #tpu.memory_space<vmem>>, vector<1x512x512xbf16>
    %118 = vector.shape_cast %117 : vector<1x512x512xbf16> to vector<512x512xbf16>
    %cst_62 = arith.constant dense<0.000000e+00> : vector<4x512xf32>
    %119 = tpu.matmul %116, %118, %cst_62 {dimension_numbers = #tpu.dot_dimension_numbers<[1], [0], [0], [1], [0, 0, 1, 1], [], []>} : vector<4x512xbf16>, vector<512x512xbf16>, vector<4x512xf32> -> vector<4x512xf32>
    %120 = arith.addf %115, %119 : vector<4x512xf32>
    %121 = vector.extract_strided_slice %111 {offsets = [8, 0], sizes = [4, 512], strides = [1, 1]} : vector<16x512xbf16> to vector<4x512xbf16>
    %c2_63 = arith.constant 2 : index
    %c0_64 = arith.constant 0 : index
    %c0_65 = arith.constant 0 : index
    %122 = vector.load %arg20[%c2_63, %c0_64, %c0_65] : memref<4x512x512xbf16, #tpu.memory_space<vmem>>, vector<1x512x512xbf16>
    %123 = vector.shape_cast %122 : vector<1x512x512xbf16> to vector<512x512xbf16>
    %cst_66 = arith.constant dense<0.000000e+00> : vector<4x512xf32>
    %124 = tpu.matmul %121, %123, %cst_66 {dimension_numbers = #tpu.dot_dimension_numbers<[1], [0], [0], [1], [0, 0, 1, 1], [], []>} : vector<4x512xbf16>, vector<512x512xbf16>, vector<4x512xf32> -> vector<4x512xf32>
    %125 = arith.addf %120, %124 : vector<4x512xf32>
    %126 = vector.extract_strided_slice %111 {offsets = [12, 0], sizes = [4, 512], strides = [1, 1]} : vector<16x512xbf16> to vector<4x512xbf16>
    %c3_67 = arith.constant 3 : index
    %c0_68 = arith.constant 0 : index
    %c0_69 = arith.constant 0 : index
    %127 = vector.load %arg20[%c3_67, %c0_68, %c0_69] : memref<4x512x512xbf16, #tpu.memory_space<vmem>>, vector<1x512x512xbf16>
    %128 = vector.shape_cast %127 : vector<1x512x512xbf16> to vector<512x512xbf16>
    %cst_70 = arith.constant dense<0.000000e+00> : vector<4x512xf32>
    %129 = tpu.matmul %126, %128, %cst_70 {dimension_numbers = #tpu.dot_dimension_numbers<[1], [0], [0], [1], [0, 0, 1, 1], [], []>} : vector<4x512xbf16>, vector<512x512xbf16>, vector<4x512xf32> -> vector<4x512xf32>
    %130 = arith.addf %125, %129 : vector<4x512xf32>
    %c0_71 = arith.constant 0 : index
    %c0_72 = arith.constant 0 : index
    %131 = vector.load %arg11[%c0_71, %c0_72] : memref<1x256xf32, #tpu.memory_space<vmem>>, vector<1x256xf32>
    %c0_73 = arith.constant 0 : index
    %c0_74 = arith.constant 0 : index
    %132 = vector.load %arg12[%c0_73, %c0_74] : memref<1x256xf32, #tpu.memory_space<vmem>>, vector<1x256xf32>
    %cst_75 = arith.constant dense<0.000000e+00> : vector<512xf32>
    %133 = vector.multi_reduction <add>, %130, %cst_75 [0] : vector<4x512xf32> to vector<512xf32>
    %134 = vector.shape_cast %133 : vector<512xf32> to vector<1x512xf32>
    %135 = arith.mulf %130, %130 : vector<4x512xf32>
    %cst_76 = arith.constant dense<0.000000e+00> : vector<512xf32>
    %136 = vector.multi_reduction <add>, %135, %cst_76 [0] : vector<4x512xf32> to vector<512xf32>
    %137 = vector.shape_cast %136 : vector<512xf32> to vector<1x512xf32>
    %138 = vector.extract_strided_slice %134 {offsets = [0, 0], sizes = [1, 256], strides = [1, 1]} : vector<1x512xf32> to vector<1x256xf32>
    %139 = vector.extract_strided_slice %137 {offsets = [0, 0], sizes = [1, 256], strides = [1, 1]} : vector<1x512xf32> to vector<1x256xf32>
    %140 = vector.extract_strided_slice %134 {offsets = [0, 256], sizes = [1, 256], strides = [1, 1]} : vector<1x512xf32> to vector<1x256xf32>
    %141 = arith.addf %138, %140 : vector<1x256xf32>
    %142 = vector.extract_strided_slice %137 {offsets = [0, 256], sizes = [1, 256], strides = [1, 1]} : vector<1x512xf32> to vector<1x256xf32>
    %143 = arith.addf %139, %142 : vector<1x256xf32>
    %cst_77 = arith.constant 1.250000e-01 : f32
    %144 = vector.broadcast %cst_77 : f32 to vector<1x256xf32>
    %145 = arith.mulf %141, %144 : vector<1x256xf32>
    %cst_78 = arith.constant 1.250000e-01 : f32
    %146 = vector.broadcast %cst_78 : f32 to vector<1x256xf32>
    %147 = arith.mulf %143, %146 : vector<1x256xf32>
    %148 = arith.mulf %145, %145 : vector<1x256xf32>
    %149 = arith.subf %147, %148 : vector<1x256xf32>
    %cst_79 = arith.constant 0.000000e+00 : f32
    %150 = vector.broadcast %cst_79 : f32 to vector<1x256xf32>
    %151 = arith.maximumf %149, %150 : vector<1x256xf32>
    %cst_80 = arith.constant 9.99999974E-6 : f32
    %152 = vector.broadcast %cst_80 : f32 to vector<1x256xf32>
    %153 = arith.addf %151, %152 : vector<1x256xf32>
    %154 = math.rsqrt %153 : vector<1x256xf32>
    %155 = arith.mulf %131, %154 : vector<1x256xf32>
    %156 = arith.mulf %145, %155 : vector<1x256xf32>
    %157 = arith.subf %132, %156 : vector<1x256xf32>
    %158 = tpu.concatenate %155, %155 in 1 : vector<1x256xf32>, vector<1x256xf32> -> vector<1x512xf32>
    %159 = tpu.concatenate %157, %157 in 1 : vector<1x256xf32>, vector<1x256xf32> -> vector<1x512xf32>
    %160 = vector.broadcast %158 : vector<1x512xf32> to vector<4x512xf32>
    %161 = arith.mulf %130, %160 : vector<4x512xf32>
    %162 = vector.broadcast %159 : vector<1x512xf32> to vector<4x512xf32>
    %163 = arith.addf %161, %162 : vector<4x512xf32>
    %cst_81 = arith.constant 0.000000e+00 : f32
    %164 = vector.broadcast %cst_81 : f32 to vector<4x512xf32>
    %165 = arith.cmpf oge, %163, %164 : vector<4x512xf32>
    %cst_82 = arith.constant 2.000000e-01 : f32
    %166 = vector.broadcast %cst_82 : f32 to vector<4x512xf32>
    %167 = arith.mulf %166, %163 : vector<4x512xf32>
    %168 = arith.select %165, %163, %167 : vector<4x512xi1>, vector<4x512xf32>
    %169 = arith.truncf %168 : vector<4x512xf32> to vector<4x512xbf16>
    %c1_i32_83 = arith.constant 1 : i32
    %170 = tpu.memref_slice %arg23[%c1_i32_83] : memref<3x!tpu.dma_semaphore, #tpu.memory_space<semaphore_mem>> -> memref<1x!tpu.dma_semaphore, #tpu.memory_space<semaphore_mem>>
    %171 = tpu.memref_squeeze %170 : memref<1x!tpu.dma_semaphore, #tpu.memory_space<semaphore_mem>> -> memref<!tpu.dma_semaphore, #tpu.memory_space<semaphore_mem>>
    tpu.wait_dma2 semaphore(%171 : memref<!tpu.dma_semaphore, #tpu.memory_space<semaphore_mem>>) src(%arg17 : memref<2x512x512xbf16, #tpu.memory_space<any>>) dst(%arg21 : memref<2x512x512xbf16, #tpu.memory_space<vmem>>)
    %c0_84 = arith.constant 0 : index
    %c0_85 = arith.constant 0 : index
    %172 = vector.load %arg5[%c0_84, %c0_85] : memref<4x4xbf16, #tpu.memory_space<vmem>>, vector<4x4xbf16>
    %cst_86 = arith.constant dense<0.000000e+00> : vector<4x512xf32>
    %173 = tpu.matmul %172, %169, %cst_86 {dimension_numbers = #tpu.dot_dimension_numbers<[1], [0], [0], [1], [0, 0, 1, 1], [], []>} : vector<4x4xbf16>, vector<4x512xbf16>, vector<4x512xf32> -> vector<4x512xf32>
    %174 = arith.truncf %173 : vector<4x512xf32> to vector<4x512xbf16>
    %175 = vector.extract_strided_slice %174 {offsets = [0, 0], sizes = [2, 512], strides = [1, 1]} : vector<4x512xbf16> to vector<2x512xbf16>
    %c0_87 = arith.constant 0 : index
    %c0_88 = arith.constant 0 : index
    %c0_89 = arith.constant 0 : index
    %176 = vector.load %arg21[%c0_87, %c0_88, %c0_89] : memref<2x512x512xbf16, #tpu.memory_space<vmem>>, vector<1x512x512xbf16>
    %177 = vector.shape_cast %176 : vector<1x512x512xbf16> to vector<512x512xbf16>
    %cst_90 = arith.constant dense<0.000000e+00> : vector<2x512xf32>
    %178 = tpu.matmul %175, %177, %cst_90 {dimension_numbers = #tpu.dot_dimension_numbers<[1], [0], [0], [1], [0, 0, 1, 1], [], []>} : vector<2x512xbf16>, vector<512x512xbf16>, vector<2x512xf32> -> vector<2x512xf32>
    %179 = vector.extract_strided_slice %174 {offsets = [2, 0], sizes = [2, 512], strides = [1, 1]} : vector<4x512xbf16> to vector<2x512xbf16>
    %c1_91 = arith.constant 1 : index
    %c0_92 = arith.constant 0 : index
    %c0_93 = arith.constant 0 : index
    %180 = vector.load %arg21[%c1_91, %c0_92, %c0_93] : memref<2x512x512xbf16, #tpu.memory_space<vmem>>, vector<1x512x512xbf16>
    %181 = vector.shape_cast %180 : vector<1x512x512xbf16> to vector<512x512xbf16>
    %cst_94 = arith.constant dense<0.000000e+00> : vector<2x512xf32>
    %182 = tpu.matmul %179, %181, %cst_94 {dimension_numbers = #tpu.dot_dimension_numbers<[1], [0], [0], [1], [0, 0, 1, 1], [], []>} : vector<2x512xbf16>, vector<512x512xbf16>, vector<2x512xf32> -> vector<2x512xf32>
    %183 = arith.addf %178, %182 : vector<2x512xf32>
    %c0_95 = arith.constant 0 : index
    %c0_96 = arith.constant 0 : index
    %184 = vector.load %arg13[%c0_95, %c0_96] : memref<1x512xf32, #tpu.memory_space<vmem>>, vector<1x512xf32>
    %c0_97 = arith.constant 0 : index
    %c0_98 = arith.constant 0 : index
    %185 = vector.load %arg14[%c0_97, %c0_98] : memref<1x512xf32, #tpu.memory_space<vmem>>, vector<1x512xf32>
    %cst_99 = arith.constant dense<0.000000e+00> : vector<512xf32>
    %186 = vector.multi_reduction <add>, %183, %cst_99 [0] : vector<2x512xf32> to vector<512xf32>
    %187 = vector.shape_cast %186 : vector<512xf32> to vector<1x512xf32>
    %188 = arith.mulf %183, %183 : vector<2x512xf32>
    %cst_100 = arith.constant dense<0.000000e+00> : vector<512xf32>
    %189 = vector.multi_reduction <add>, %188, %cst_100 [0] : vector<2x512xf32> to vector<512xf32>
    %190 = vector.shape_cast %189 : vector<512xf32> to vector<1x512xf32>
    %cst_101 = arith.constant 5.000000e-01 : f32
    %191 = vector.broadcast %cst_101 : f32 to vector<1x512xf32>
    %192 = arith.mulf %187, %191 : vector<1x512xf32>
    %cst_102 = arith.constant 5.000000e-01 : f32
    %193 = vector.broadcast %cst_102 : f32 to vector<1x512xf32>
    %194 = arith.mulf %190, %193 : vector<1x512xf32>
    %195 = arith.mulf %192, %192 : vector<1x512xf32>
    %196 = arith.subf %194, %195 : vector<1x512xf32>
    %cst_103 = arith.constant 0.000000e+00 : f32
    %197 = vector.broadcast %cst_103 : f32 to vector<1x512xf32>
    %198 = arith.maximumf %196, %197 : vector<1x512xf32>
    %cst_104 = arith.constant 9.99999974E-6 : f32
    %199 = vector.broadcast %cst_104 : f32 to vector<1x512xf32>
    %200 = arith.addf %198, %199 : vector<1x512xf32>
    %201 = math.rsqrt %200 : vector<1x512xf32>
    %202 = arith.mulf %184, %201 : vector<1x512xf32>
    %203 = arith.mulf %192, %202 : vector<1x512xf32>
    %204 = arith.subf %185, %203 : vector<1x512xf32>
    %205 = vector.broadcast %202 : vector<1x512xf32> to vector<2x512xf32>
    %206 = arith.mulf %183, %205 : vector<2x512xf32>
    %207 = vector.broadcast %204 : vector<1x512xf32> to vector<2x512xf32>
    %208 = arith.addf %206, %207 : vector<2x512xf32>
    %cst_105 = arith.constant 0.000000e+00 : f32
    %209 = vector.broadcast %cst_105 : f32 to vector<2x512xf32>
    %210 = arith.cmpf oge, %208, %209 : vector<2x512xf32>
    %cst_106 = arith.constant 2.000000e-01 : f32
    %211 = vector.broadcast %cst_106 : f32 to vector<2x512xf32>
    %212 = arith.mulf %211, %208 : vector<2x512xf32>
    %213 = arith.select %210, %208, %212 : vector<2x512xi1>, vector<2x512xf32>
    %214 = arith.truncf %213 : vector<2x512xf32> to vector<2x512xbf16>
    %c2_i32_107 = arith.constant 2 : i32
    %215 = tpu.memref_slice %arg23[%c2_i32_107] : memref<3x!tpu.dma_semaphore, #tpu.memory_space<semaphore_mem>> -> memref<1x!tpu.dma_semaphore, #tpu.memory_space<semaphore_mem>>
    %216 = tpu.memref_squeeze %215 : memref<1x!tpu.dma_semaphore, #tpu.memory_space<semaphore_mem>> -> memref<!tpu.dma_semaphore, #tpu.memory_space<semaphore_mem>>
    tpu.wait_dma2 semaphore(%216 : memref<!tpu.dma_semaphore, #tpu.memory_space<semaphore_mem>>) src(%arg18 : memref<512x128xbf16, #tpu.memory_space<any>>) dst(%arg22 : memref<512x128xbf16, #tpu.memory_space<vmem>>)
    %c0_108 = arith.constant 0 : index
    %c0_109 = arith.constant 0 : index
    %217 = vector.load %arg22[%c0_108, %c0_109] : memref<512x128xbf16, #tpu.memory_space<vmem>>, vector<512x128xbf16>
    %cst_110 = arith.constant dense<0.000000e+00> : vector<2x128xf32>
    %218 = tpu.matmul %214, %217, %cst_110 {dimension_numbers = #tpu.dot_dimension_numbers<[1], [0], [0], [1], [0, 0, 1, 1], [], []>} : vector<2x512xbf16>, vector<512x128xbf16>, vector<2x128xf32> -> vector<2x128xf32>
    %c0_111 = arith.constant 0 : index
    %c0_112 = arith.constant 0 : index
    %219 = vector.load %arg15[%c0_111, %c0_112] : memref<1x128xf32, #tpu.memory_space<vmem>>, vector<1x128xf32>
    %220 = vector.broadcast %219 : vector<1x128xf32> to vector<2x128xf32>
    %221 = arith.addf %218, %220 : vector<2x128xf32>
    %cst_113 = arith.constant 0.000000e+00 : f32
    %222 = vector.broadcast %cst_113 : f32 to vector<2x128xf32>
    %223 = arith.subf %222, %221 : vector<2x128xf32>
    %224 = math.exp %223 : vector<2x128xf32>
    %cst_114 = arith.constant 1.000000e+00 : f32
    %225 = vector.broadcast %cst_114 : f32 to vector<2x128xf32>
    %226 = arith.addf %225, %224 : vector<2x128xf32>
    %227 = tpu.reciprocal %226 {approx = true} : vector<2x128xf32> -> vector<2x128xf32>
    %cst_115 = arith.constant 0.000000e+00 : f32
    %cst_116 = arith.constant 1.000000e+00 : f32
    %228 = vector.broadcast %cst_115 : f32 to vector<2x128xf32>
    %229 = arith.maximumf %228, %227 : vector<2x128xf32>
    %230 = vector.broadcast %cst_116 : f32 to vector<2x128xf32>
    %231 = arith.minimumf %230, %229 : vector<2x128xf32>
    %c0_117 = arith.constant 0 : index
    %c0_118 = arith.constant 0 : index
    %232 = vector.load %arg19[%c0_117, %c0_118] : memref<2x128xf32, #tpu.memory_space<vmem>>, vector<2x128xf32>
    tpu.vector_store %arg19[%c0_117, %c0_118], %231 {strides = array<i32>} : memref<2x128xf32, #tpu.memory_space<vmem>>, vector<2x128xf32>,
    return
  }
  func.func @transform_0(%arg0: i32) -> (i32, i32) {
    %c0_i32 = arith.constant 0 : i32
    %c0_i32_0 = arith.constant 0 : i32
    %c0_i32_1 = arith.constant 0 : i32
    return %c0_i32, %c0_i32_0 : i32, i32
  }
  func.func @transform_1(%arg0: i32) -> (i32, i32) {
    %c0_i32 = arith.constant 0 : i32
    %c0_i32_0 = arith.constant 0 : i32
    %c0_i32_1 = arith.constant 0 : i32
    return %c0_i32, %c0_i32_0 : i32, i32
  }
  func.func @transform_2(%arg0: i32) -> (i32, i32) {
    %c0_i32 = arith.constant 0 : i32
    %c0_i32_0 = arith.constant 0 : i32
    %c0_i32_1 = arith.constant 0 : i32
    return %c0_i32, %c0_i32_0 : i32, i32
  }
  func.func @transform_3(%arg0: i32) -> (i32, i32) {
    %c0_i32 = arith.constant 0 : i32
    %c0_i32_0 = arith.constant 0 : i32
    %c0_i32_1 = arith.constant 0 : i32
    return %c0_i32, %c0_i32_0 : i32, i32
  }
  func.func @transform_4(%arg0: i32) -> (i32, i32) {
    %c0_i32 = arith.constant 0 : i32
    %c0_i32_0 = arith.constant 0 : i32
    %c0_i32_1 = arith.constant 0 : i32
    return %c0_i32, %c0_i32_0 : i32, i32
  }
  func.func @transform_5(%arg0: i32) -> (i32, i32, i32) {
    %c0_i32 = arith.constant 0 : i32
    %c0_i32_0 = arith.constant 0 : i32
    %c0_i32_1 = arith.constant 0 : i32
    %c0_i32_2 = arith.constant 0 : i32
    return %c0_i32, %c0_i32_0, %c0_i32_1 : i32, i32, i32
  }
  func.func @transform_6(%arg0: i32) -> (i32, i32, i32) {
    %c0_i32 = arith.constant 0 : i32
    %c0_i32_0 = arith.constant 0 : i32
    %c0_i32_1 = arith.constant 0 : i32
    %c0_i32_2 = arith.constant 0 : i32
    return %c0_i32, %c0_i32_0, %c0_i32_1 : i32, i32, i32
  }
  func.func @transform_7(%arg0: i32) -> (i32, i32) {
    %c0_i32 = arith.constant 0 : i32
    %c0_i32_0 = arith.constant 0 : i32
    %c0_i32_1 = arith.constant 0 : i32
    return %c0_i32, %c0_i32_0 : i32, i32
  }
  func.func @transform_8(%arg0: i32) -> (i32, i32) {
    %c0_i32 = arith.constant 0 : i32
    %c0_i32_0 = arith.constant 0 : i32
    %c0_i32_1 = arith.constant 0 : i32
    return %c0_i32, %c0_i32_0 : i32, i32
  }
  func.func @transform_9(%arg0: i32) -> (i32, i32) {
    %c0_i32 = arith.constant 0 : i32
    %c0_i32_0 = arith.constant 0 : i32
    %c0_i32_1 = arith.constant 0 : i32
    return %c0_i32, %c0_i32_0 : i32, i32
  }
  func.func @transform_10(%arg0: i32) -> (i32, i32) {
    %c0_i32 = arith.constant 0 : i32
    %c0_i32_0 = arith.constant 0 : i32
    %c0_i32_1 = arith.constant 0 : i32
    return %c0_i32, %c0_i32_0 : i32, i32
  }
  func.func @transform_11(%arg0: i32) -> (i32, i32) {
    %c0_i32 = arith.constant 0 : i32
    %c0_i32_0 = arith.constant 0 : i32
    %c0_i32_1 = arith.constant 0 : i32
    return %c0_i32, %c0_i32_0 : i32, i32
  }
  func.func @transform_12(%arg0: i32) -> (i32, i32) {
    %c0_i32 = arith.constant 0 : i32
    %c0_i32_0 = arith.constant 0 : i32
    %c0_i32_1 = arith.constant 0 : i32
    return %c0_i32, %c0_i32_0 : i32, i32
  }
  func.func @transform_13(%arg0: i32) -> (i32, i32) {
    %c0_i32 = arith.constant 0 : i32
    %c0_i32_0 = arith.constant 0 : i32
    %c0_i32_1 = arith.constant 0 : i32
    return %c0_i32, %c0_i32_0 : i32, i32
  }
  func.func @transform_14(%arg0: i32) -> (i32, i32) {
    %c0_i32 = arith.constant 0 : i32
    %c0_i32_0 = arith.constant 0 : i32
    %c0_i32_1 = arith.constant 0 : i32
    return %c0_i32, %c0_i32_0 : i32, i32
  }
  func.func @transform_18(%arg0: i32) -> (i32, i32) {
    %c0_i32 = arith.constant 0 : i32
    %c0_i32_0 = arith.constant 0 : i32
    %c0_i32_1 = arith.constant 0 : i32
    return %c0_i32, %c0_i32_0 : i32, i32
  }
}

</mosaic_0001>

<bundles_post_ra>
// kernel: discriminator_forward.1
= control target key start
LH: loop header
LB: loop body
LE: loop exit
PB: predicated region body
PF: predicated region fallthrough
CT: control target
= control target key end

     0   :  { %s16168_s0 = inlined_call_operand.vmem [shape: bf16[32,48], index: 0, kind: input, shape index: {}]   ;;  %s16169_s1 = inlined_call_operand.vmem [shape: bf16[64,32], index: 1, kind: input, shape index: {}]   ;;  %s16170_s2 = inlined_call_operand.vmem [shape: bf16[32,16], index: 2, kind: input, shape index: {}]   ;;  %s16171_s3 = inlined_call_operand.vmem [shape: bf16[16,8], index: 3, kind: input, shape index: {}]   ;;  %s16172_s4 = inlined_call_operand.hbm [shape: bf16[4,4], index: 4, kind: input, shape index: {}]   ;;  %s16173_s5 = inlined_call_operand.hbm [shape: bf16[4,48,512], index: 5, kind: input, shape index: {}]   ;;  %s16174_s6 = inlined_call_operand.hbm [shape: bf16[4,512,512], index: 6, kind: input, shape index: {}]   ;;  %s16175_s7 = inlined_call_operand.hbm [shape: f32[1,512], index: 7, kind: input, shape index: {}]   ;;  %s16176_s8 = inlined_call_operand.hbm [shape: f32[1,128], index: 8, kind: input, shape index: {}]   ;;  %s16177_s9 = inlined_call_operand.hbm [shape: f32[1,128], index: 9, kind: input, shape index: {}]   ;;  %s16178_s10 = inlined_call_operand.hbm [shape: f32[1,256], index: 10, kind: input, shape index: {}]   ;;  %s16179_s11 = inlined_call_operand.hbm [shape: f32[1,256], index: 11, kind: input, shape index: {}]   ;;  %s16180_s12 = inlined_call_operand.hbm [shape: f32[1,512], index: 12, kind: input, shape index: {}]   ;;  %s16181_s13 = inlined_call_operand.hbm [shape: f32[1,512], index: 13, kind: input, shape index: {}]   ;;  %s16182_s14 = inlined_call_operand.hbm [shape: f32[1,128], index: 14, kind: input, shape index: {}]   ;;  %s16183_s15 = inlined_call_operand.hbm [shape: bf16[4,512,512], index: 15, kind: input, shape index: {}]   ;;  %s16184_s16 = inlined_call_operand.hbm [shape: bf16[2,512,512], index: 16, kind: input, shape index: {}]   ;;  %s16185_s17 = inlined_call_operand.hbm [shape: bf16[512,128], index: 17, kind: input, shape index: {}]   ;;  %s16186_s18 = inlined_call_operand.vmem [shape: f32[2,128], index: 18, kind: output, shape index: {}]  }
   0x1   :  { %16190 = sst [smem:[#allocation40_spill]] %s16168_s0 }
   0x2   :  { %16191 = sst [smem:[#allocation41_spill]] %s16169_s1 }
   0x3   :  { %16192 = sst [smem:[#allocation42_spill]] %s16170_s2 }
   0x4   :  { %23 = vsyncpa [#allocation7], 0 }
   0x5   :  { %24 = vsyncpa [#allocation9], 0 }
   0x6   :  { %25 = vsyncpa [#allocation12], 0 }
   0x7   :  { %26 = vsyncpa [#allocation15], 0 }
   0x8   :  { %27 = vsyncpa [#allocation18], 0 }
   0x9   :  { %28 = vsyncpa [#allocation21], 0  ;;  %s15553_s27 = smov [#allocation8]  }
   0xa   :  { %s52_s28 = sshll.u32 %s15553_s27, 4  ;;  %s53_s28 = int_to_ptr.vmem [resolvable:$true] %s52_s28 }
   0xb   :  { %s15263_s29 = scalar_lea.vmem %s53_s28, 6144  ;;  %p15268_p1 = scmp.lt.s32.totalorder %s53_s28, %s53_s28 }
   0xc   :  { %p15264_p0 = scmp.ne.s32.totalorder %s53_s28, %s15263_s29  ;;  %p15269_p2 = scmp.lt.s32.totalorder %s15263_s29, %s15263_s29 }
   0xe   :  { %p15270_p3 = por %p15269_p2, %p15268_p1 }
  0x10   :  { %p15271_p4 = pnand %p15270_p3, %p15264_p0 }
  0x12   :  { %15274 = shalt.err (!%p15271_p4)
}
  0x13   :  { %s15554_s30 = smov 256   ;;  %s15555_s0 = smov 16  }
  0x14   :  { %58 = dma.hbm_to_vmem [thread:$0]  %s16173_s5, 6144, %s53_s28, [#allocation9], %s15554_s30, %s15554_s30, %s15555_s0  }
  0x15   :  { %s15556_s20 = smov [#allocation11]   ;;  %s15557_s22 = smov [#allocation14]  }
  0x16   :  { %s77_s21 = sshll.u32 %s15556_s20, 4  ;;  %s97_s2 = sshll.u32 %s15557_s22, 4  ;;  %s78_s21 = int_to_ptr.vmem [resolvable:$true] %s77_s21  ;;  %s98_s2 = int_to_ptr.vmem [resolvable:$true] %s97_s2 }
  0x17   :  { %s15283_s23 = scalar_lea.vmem %s78_s21, 64  ;;  %p15288_p6 = scmp.lt.s32.totalorder %s78_s21, %s78_s21 }
  0x18   :  { %p15284_p5 = scmp.ne.s32.totalorder %s78_s21, %s15283_s23  ;;  %p15289_p7 = scmp.lt.s32.totalorder %s15283_s23, %s15283_s23 }
  0x1a   :  { %p15290_p8 = por %p15289_p7, %p15288_p6 }
  0x1c   :  { %p15291_p9 = pnand %p15290_p8, %p15284_p5 }
  0x1e   :  { %15294 = shalt.err (!%p15291_p9)
}
  0x1f   :  { %80 = dma.hbm_to_vmem [thread:$0]  %s16175_s7, 64, %s78_s21, [#allocation12]  }
  0x20   :  { %s15303_s26 = scalar_lea.vmem %s98_s2, 16  ;;  %s15307_s5 = scalar_lea.vmem %s98_s2, 32 }
  0x21   :  { %p15304_p10 = scmp.ne.s32.totalorder %s98_s2, %s15303_s26  ;;  %p15308_p11 = scmp.lt.s32.totalorder %s98_s2, %s98_s2 }
  0x22   :  { %p15309_p12 = scmp.lt.s32.totalorder %s15307_s5, %s15303_s26 }
  0x24   :  { %p15310_p13 = por %p15309_p12, %p15308_p11 }
  0x26   :  { %p15311_p0 = pnand %p15310_p13, %p15304_p10 }
  0x28   :  { %15314 = shalt.err (!%p15311_p0)
}
  0x29   :  { %100 = dma.hbm_to_vmem [thread:$0]  %s16177_s9, 16, %s98_s2, [#allocation15]  }
  0x2a   :  { %s15558_s29 = smov [#allocation17]   ;;  %s15559_s1 = smov [#allocation20]  }
  0x2b   :  { %s117_s19 = sshll.u32 %s15558_s29, 4  ;;  %s137_s20 = sshll.u32 %s15559_s1, 4  ;;  %s118_s19 = int_to_ptr.vmem [resolvable:$true] %s117_s19  ;;  %s138_s20 = int_to_ptr.vmem [resolvable:$true] %s137_s20 }
  0x2c   :  { %s15323_s22 = scalar_lea.vmem %s118_s19, 32  ;;  %p15328_p2 = scmp.lt.s32.totalorder %s118_s19, %s118_s19 }
  0x2d   :  { %p15324_p1 = scmp.ne.s32.totalorder %s118_s19, %s15323_s22  ;;  %p15329_p3 = scmp.lt.s32.totalorder %s15323_s22, %s15323_s22 }
  0x2f   :  { %p15330_p4 = por %p15329_p3, %p15328_p2 }
  0x31   :  { %p15331_p5 = pnand %p15330_p4, %p15324_p1 }
  0x33   :  { %15334 = shalt.err (!%p15331_p5)
}
  0x34   :  { %120 = dma.hbm_to_vmem [thread:$0]  %s16179_s11, 32, %s118_s19, [#allocation18]  }
  0x35   :  { %s15343_s23 = scalar_lea.vmem %s138_s20, 64  ;;  %p15348_p7 = scmp.lt.s32.totalorder %s138_s20, %s138_s20 }
  0x36   :  { %p15344_p6 = scmp.ne.s32.totalorder %s138_s20, %s15343_s23  ;;  %p15349_p8 = scmp.lt.s32.totalorder %s15343_s23, %s15343_s23 }
  0x38   :  { %p15350_p9 = por %p15349_p8, %p15348_p7 }
  0x3a   :  { %p15351_p10 = pnand %p15350_p9, %p15344_p6 }
  0x3c   :  { %15354 = shalt.err (!%p15351_p10)
}
  0x3d   :  { %140 = dma.hbm_to_vmem [thread:$0]  %s16181_s13, 64, %s138_s20, [#allocation21]  }
  0x3e   :  { %s15560_s24 = smov [#allocation6]   ;;  %s15561_s26 = smov [#allocation10]  }
  0x3f   :  { %s43_s25 = sshll.u32 %s15560_s24, 4  ;;  %s64_s5 = sshll.u32 %s15561_s26, 4  ;;  %s44_s25 = int_to_ptr.vmem [resolvable:$true] %s43_s25  ;;  %s65_s5 = int_to_ptr.vmem [resolvable:$true] %s64_s5 }
  0x40   :  { %s15363_s27 = scalar_lea.vmem %s44_s25, 32  ;;  %p15368_p12 = scmp.lt.s32.totalorder %s44_s25, %s44_s25 }
  0x41   :  { %p15364_p11 = scmp.ne.s32.totalorder %s44_s25, %s15363_s27  ;;  %p15369_p13 = scmp.lt.s32.totalorder %s15363_s27, %s15363_s27 }
  0x43   :  { %p15370_p0 = por %p15369_p13, %p15368_p12 }
  0x45   :  { %p15371_p1 = pnand %p15370_p0, %p15364_p11 }
  0x47   :  { %15374 = shalt.err (!%p15371_p1)
}
  0x48   :  { %46 = dma.hbm_to_vmem [thread:$0]  %s16172_s4, 32, %s44_s25, [#allocation7]  }
  0x49   :  { %s15383_s29 = scalar_lea.vmem %s65_s5, 65536  ;;  %p15388_p3 = scmp.lt.s32.totalorder %s65_s5, %s65_s5 }
  0x4a   :  { %p15384_p2 = scmp.ne.s32.totalorder %s65_s5, %s15383_s29  ;;  %p15389_p4 = scmp.lt.s32.totalorder %s15383_s29, %s15383_s29 }
  0x4c   :  { %p15390_p5 = por %p15389_p4, %p15388_p3 }
  0x4e   :  { %p15391_p6 = pnand %p15390_p5, %p15384_p2 }
  0x50   :  { %15394 = shalt.err (!%p15391_p6)
}
  0x51   :  { %70 = dma.hbm_to_vmem [thread:$0]  %s16174_s6, 65536, %s65_s5, [#allocation9], %s15554_s30, %s15554_s30, %s15555_s0  }
  0x52   :  { %s15562_s1 = smov [#allocation13]   ;;  %s15563_s22 = smov [#allocation16]  }
  0x53   :  { %s87_s20 = sshll.u32 %s15562_s1, 4  ;;  %s107_s4 = sshll.u32 %s15563_s22, 4  ;;  %s88_s20 = int_to_ptr.vmem [resolvable:$true] %s87_s20  ;;  %s108_s4 = int_to_ptr.vmem [resolvable:$true] %s107_s4 }
  0x54   :  { %s15403_s7 = scalar_lea.vmem %s88_s20, 16  ;;  %s15407_s21 = scalar_lea.vmem %s88_s20, 32 }
  0x55   :  { %p15404_p7 = scmp.ne.s32.totalorder %s88_s20, %s15403_s7  ;;  %p15408_p8 = scmp.lt.s32.totalorder %s88_s20, %s88_s20 }
  0x56   :  { %p15409_p9 = scmp.lt.s32.totalorder %s15407_s21, %s15403_s7 }
  0x58   :  { %p15410_p10 = por %p15409_p9, %p15408_p8 }
  0x5a   :  { %p15411_p11 = pnand %p15410_p10, %p15404_p7 }
  0x5c   :  { %15414 = shalt.err (!%p15411_p11)
}
  0x5d   :  { %90 = dma.hbm_to_vmem [thread:$0]  %s16176_s8, 16, %s88_s20, [#allocation12]  }
  0x5e   :  { %s15423_s2 = scalar_lea.vmem %s108_s4, 32  ;;  %p15428_p13 = scmp.lt.s32.totalorder %s108_s4, %s108_s4 }
  0x5f   :  { %p15424_p12 = scmp.ne.s32.totalorder %s108_s4, %s15423_s2  ;;  %p15429_p0 = scmp.lt.s32.totalorder %s15423_s2, %s15423_s2 }
  0x61   :  { %p15430_p1 = por %p15429_p0, %p15428_p13 }
  0x63   :  { %p15431_p2 = pnand %p15430_p1, %p15424_p12 }
  0x65   :  { %15434 = shalt.err (!%p15431_p2)
}
  0x66   :  { %110 = dma.hbm_to_vmem [thread:$0]  %s16178_s10, 32, %s108_s4, [#allocation15]  }
  0x67   :  { %s15564_s0 = smov [#allocation19]   ;;  %s15565_s25 = smov [#allocation22]  }
  0x68   :  { %s127_s24 = sshll.u32 %s15564_s0, 4  ;;  %s147_s26 = sshll.u32 %s15565_s25, 4  ;;  %s128_s24 = int_to_ptr.vmem [resolvable:$true] %s127_s24  ;;  %s148_s26 = int_to_ptr.vmem [resolvable:$true] %s147_s26 }
  0x69   :  { %s15443_s5 = scalar_lea.vmem %s128_s24, 64  ;;  %p15448_p4 = scmp.lt.s32.totalorder %s128_s24, %s128_s24 }
  0x6a   :  { %p15444_p3 = scmp.ne.s32.totalorder %s128_s24, %s15443_s5  ;;  %p15449_p5 = scmp.lt.s32.totalorder %s15443_s5, %s15443_s5 }
  0x6c   :  { %p15450_p6 = por %p15449_p5, %p15448_p4 }
  0x6e   :  { %p15451_p7 = pnand %p15450_p6, %p15444_p3 }
  0x70   :  { %15454 = shalt.err (!%p15451_p7)
}
  0x71   :  { %130 = dma.hbm_to_vmem [thread:$0]  %s16180_s12, 64, %s128_s24, [#allocation18]  }
  0x72   :  { %s15463_s11 = scalar_lea.vmem %s148_s26, 16  ;;  %s15467_s10 = scalar_lea.vmem %s148_s26, 32 }
  0x73   :  { %p15464_p8 = scmp.ne.s32.totalorder %s148_s26, %s15463_s11  ;;  %p15468_p9 = scmp.lt.s32.totalorder %s148_s26, %s148_s26 }
  0x74   :  { %p15469_p10 = scmp.lt.s32.totalorder %s15467_s10, %s15463_s11 }
  0x76   :  { %p15470_p11 = por %p15469_p10, %p15468_p9 }
  0x78   :  { %p15471_p12 = pnand %p15470_p11, %p15464_p8 }
  0x7a   :  { %15474 = shalt.err (!%p15471_p12)
}
  0x7b   :  { %150 = dma.hbm_to_vmem [thread:$0]  %s16182_s14, 16, %s148_s26, [#allocation21]  }
  0x7c   :  { %15535 = dma.done.wait [#allocation7], 32  }
  0x7d   :  { %15536 = vsyncadd [#allocation7], 4294967264 }
  0x7e   :  { %15537 = dma.done.wait [#allocation9], 71680  }
  0x7f   :  { %15538 = vsyncadd [#allocation9], 4294895616 }
  0x80   :  { %15539 = dma.done.wait [#allocation12], 80  }
  0x81   :  { %15540 = vsyncadd [#allocation12], 4294967216 }
  0x82   :  { %15541 = dma.done.wait [#allocation15], 48  }
  0x83   :  { %15542 = vsyncadd [#allocation15], 4294967248 }
  0x84   :  { %15543 = dma.done.wait [#allocation18], 96  }
  0x85   :  { %15544 = vsyncadd [#allocation18], 4294967200 }
  0x86   :  { %15545 = dma.done.wait [#allocation21], 80  }
  0x87   :  { %15546 = vsyncadd [#allocation21], 4294967216  ;;  %s16193_s19 = sld [smem:[#allocation40_spill]]  ;;  %vm264_vm0 = vcmask 261120   ;;  %v13210_v5 = vld [vmem:[#allocation8 + $0xa4] ss:$16 sps:$4 sm:$0xff]  }
  0x88   :  { %s16194_s4 = sld [smem:[#allocation41_spill]]  ;;  %v13212_v6 = vld [vmem:[#allocation8 + $0xa8] ss:$16 sps:$4 sm:$0xff]   ;;  %445 = vmatprep.subr.bf16.mxu1 %v13210_v5  ;;  %v13214_v7 = vld [vmem:[#allocation8 + $0xac] ss:$16 sps:$4 sm:$0xff]   ;;  %v15566_v20 = vmov 0  }
  0x89   :  { %v13215_v8 = vld [vmem:[#allocation8 + $0xa0] ss:$16 sps:$4 sm:$0xff]   ;;  %v13216_v9 = vld [vmem:[#allocation8 + $0x84] ss:$16 sps:$4 sm:$0xff]   ;;  %v13218_v10 = vld [vmem:[#allocation8 + $0x88] ss:$16 sps:$4 sm:$0xff]   ;;  %467 = vmatprep.mubr.bf16.mxu1 %v15566_v20 }
  0x8a   :  { %v13220_v11 = vld [vmem:[#allocation8 + $0x8c] ss:$16 sps:$4 sm:$0xff]   ;;  %446 = vmatpush1.bf16.msra.mxu1 %v13215_v8  ;;  %v13221_v12 = vld [vmem:[#allocation8 + $0x80] ss:$16 sps:$4 sm:$0xff]   ;;  %v13222_v14 = vld [vmem:[#allocation8 + $0x64] ss:$16 sps:$4 sm:$0xff]  }
  0x8b   :  { %447 = vmatprep.subr.bf16.mxu1 %v13216_v9  ;;  %v13226_v15 = vld [vmem:[#allocation8 + $0x6c] ss:$16 sps:$4 sm:$0xff]   ;;  %v13224_v16 = vld [vmem:[#allocation8 + $0x68] ss:$16 sps:$4 sm:$0xff]   ;;  %v13227_v17 = vld [vmem:[#allocation8 + $0x60] ss:$16 sps:$4 sm:$0xff]  }
  0x8c   :  { %v13230_v18 = vld [vmem:[#allocation8 + $0x44] ss:$16 sps:$4 sm:$0xff]   ;;  %v13233_v19 = vld [vmem:[#allocation8 + $0x4c] ss:$16 sps:$4 sm:$0xff]   ;;  %v13228_v23 = vld [vmem:[#allocation8 + $0x40] ss:$16 sps:$4 sm:$0xff]  }
  0x8d   :  { %v13204_v0 = vld [vmem:[%s16193_s19 + $0x8] sm:$0xff]   ;;  %v13205_v1 = vld [vmem:[%s16193_s19] sm:$0xff]   ;;  %vm431_vm1 = vcmask 392192   ;;  %s16195_s24 = sld [smem:[#allocation42_spill]]  ;;  %vm1082_vm10 = vcmask 130048   ;;  %s15567_s5 = smov [#allocation2]  }
  0x8e   :  { %13174 = vmatprep.subr.bf16.mxu0 %v13204_v0  ;;  %v13206_v2 = vld [vmem:[%s16194_s4] sm:$0xff]   ;;  %v13207_v3 = vld [vmem:[%s16194_s4 + $0x8] sm:$0xff]   ;;  %v13208_v4 = vld [vmem:[%s16194_s4 + $0x10] sm:$0xff]   ;;  %448 = vmatpush1.bf16.msra.mxu1 %v13221_v12  ;;  %s192_s8 = sshll.u32 %s15567_s5, 4  ;;  %s15568_s27 = smov [#allocation3]   ;;  %s193_s8 = int_to_ptr.vmem [resolvable:$true] %s192_s8 }
  0x8f   :  { %13175 = vmatpush3.bf16.msra.mxu0 %v13204_v0  ;;  %13178 = vmatprep.mubr.msk.bf16.mxu0 %vm264_vm0, %v13206_v2  ;;  %v13209_v13 = vld [vmem:[%s16194_s4 + $0x18] sm:$0xff]   ;;  %v13234_v29 = vld [vmem:[#allocation8 + $0x20] ss:$16 sps:$4 sm:$0xff]   ;;  %s204_s11 = sshll.u32 %s15568_s27, 4  ;;  %s15483_s10 = scalar_lea.vmem %s193_s8, 65536  ;;  %s205_s11 = int_to_ptr.vmem [resolvable:$true] %s204_s11 }
  0x90   :  { %13176 = vmatprep.subr.bf16.mxu0 %v13205_v1  ;;  %449 = vmatprep.subr.bf16.mxu1 %v13222_v14  ;;  %v13231_v24 = vld [vmem:[#allocation8 + $0x48] ss:$16 sps:$4 sm:$0xff]   ;;  %v13236_v25 = vld [vmem:[#allocation8 + $0x24] ss:$16 sps:$4 sm:$0xff]   ;;  %v13239_v26 = vld [vmem:[#allocation8 + $0x2c] ss:$16 sps:$4 sm:$0xff]   ;;  %p15484_p13 = scmp.ne.s32.totalorder %s193_s8, %s15483_s10  ;;  %p15488_p0 = scmp.lt.s32.totalorder %s193_s8, %s193_s8 }
  0x91   :  { %v13237_v30 = vld [vmem:[#allocation8 + $0x28] ss:$16 sps:$4 sm:$0xff]   ;;  %v13242_v31 = vld [vmem:[#allocation8 + $0x4] ss:$16 sps:$4 sm:$0xff]   ;;  %v13245_v32 = vld [vmem:[#allocation8 + $0xc] ss:$16 sps:$4 sm:$0xff]   ;;  %p15489_p1 = scmp.lt.s32.totalorder %s15483_s10, %s15483_s10 }
  0x92   :  { %450 = vmatpush1.bf16.msra.mxu1 %v13227_v17  ;;  %v13240_v34 = vld [vmem:[#allocation8] ss:$16 sps:$4 sm:$0xff]   ;;  %v13243_v35 = vld [vmem:[#allocation8 + $0x8] ss:$16 sps:$4 sm:$0xff]   ;;  %v13248_v36 = vld [vmem:[#allocation8 + $0x104] ss:$16 sps:$4 sm:$0xff]  }
  0x93   :  { %13177 = vmatpush3.bf16.msra.mxu0 %v13205_v1  ;;  %594 = vmatprep.subr.bf16.mxu1 %v13230_v18  ;;  %v13251_v37 = vld [vmem:[#allocation8 + $0x10c] ss:$16 sps:$4 sm:$0xff]   ;;  %v13246_v39 = vld [vmem:[#allocation8 + $0x100] ss:$16 sps:$4 sm:$0xff]   ;;  %v13249_v40 = vld [vmem:[#allocation8 + $0x108] ss:$16 sps:$4 sm:$0xff]   ;;  %p15490_p2 = por %p15489_p1, %p15488_p0 }
  0x94   :  { %488 = vmatprep.subr.bf16.mxu0 %v13214_v7  ;;  %v13254_v42 = vld [vmem:[#allocation8 + $0xe4] ss:$16 sps:$4 sm:$0xff]   ;;  %v13257_v43 = vld [vmem:[#allocation8 + $0xec] ss:$16 sps:$4 sm:$0xff]   ;;  %v13252_v45 = vld [vmem:[#allocation8 + $0xe0] ss:$16 sps:$4 sm:$0xff]  }
  0x95   :  { %v13255_v46 = vld [vmem:[#allocation8 + $0xe8] ss:$16 sps:$4 sm:$0xff]   ;;  %v13260_v47 = vld [vmem:[#allocation8 + $0xc4] ss:$16 sps:$4 sm:$0xff]   ;;  %v13263_v48 = vld [vmem:[#allocation8 + $0xcc] ss:$16 sps:$4 sm:$0xff]   ;;  %p15491_p3 = pnand %p15490_p2, %p15484_p13 }
  0x96   :  { %13179 = vmatmul.mubr.msk.bf16.vlgmr.msra.gmra.mxu0 %vm264_vm0, %v13207_v3  ;;  %v13258_v50 = vld [vmem:[#allocation8 + $0xc0] ss:$16 sps:$4 sm:$0xff]   ;;  %v13261_v51 = vld [vmem:[#allocation8 + $0xc8] ss:$16 sps:$4 sm:$0xff]   ;;  %v13266_v52 = vld [vmem:[#allocation8 + $0x164] ss:$16 sps:$4 sm:$0xff]  }
  0x97   :  { %13182 = vmatprep.mubr.msk.bf16.mxu0 %vm264_vm0, %v13208_v4  ;;  %489 = vmatpush1.bf16.msra.mxu0 %v13212_v6  ;;  %v13269_v53 = vld [vmem:[#allocation8 + $0x16c] ss:$16 sps:$4 sm:$0xff]   ;;  %v13264_v55 = vld [vmem:[#allocation8 + $0x160] ss:$16 sps:$4 sm:$0xff]   ;;  %v13267_v56 = vld [vmem:[#allocation8 + $0x168] ss:$16 sps:$4 sm:$0xff]  }
  0x98   :  { %490 = vmatprep.subr.bf16.mxu0 %v13220_v11  ;;  %v13272_v58 = vld [vmem:[#allocation8 + $0x144] ss:$16 sps:$4 sm:$0xff]   ;;  %v13275_v59 = vld [vmem:[#allocation8 + $0x14c] ss:$16 sps:$4 sm:$0xff]   ;;  %v13270_v60 = vld [vmem:[#allocation8 + $0x140] ss:$16 sps:$4 sm:$0xff]  }
  0x99   :  { %v13273_v61 = vld [vmem:[#allocation8 + $0x148] ss:$16 sps:$4 sm:$0xff]   ;;  %v13278_v62 = vld [vmem:[#allocation8 + $0x124] ss:$16 sps:$4 sm:$0xff]   ;;  %v13281_v63 = vld [vmem:[#allocation8 + $0x12c] ss:$16 sps:$4 sm:$0xff]  }
  0x9a   :  { %v13276_v0 = vld [vmem:[#allocation8 + $0x120] ss:$16 sps:$4 sm:$0xff]   ;;  %v13279_v1 = vld [vmem:[#allocation8 + $0x128] ss:$16 sps:$4 sm:$0xff]  }
  0x9b   :  { %491 = vmatpush1.bf16.msra.mxu0 %v13218_v10 }
  0x9c   :  { %492 = vmatprep.subr.bf16.mxu0 %v13226_v15 }
  0x9e   :  { %13183 = vmatmul.mubr.msk.bf16.gmra.mxu0 %vm264_vm0, %v13209_v13 }
  0x9f   :  { %493 = vmatpush1.bf16.msra.mxu0 %v13224_v16  ;;  %510 = vmatprep.mubr.bf16.mxu0 %v15566_v20 }
  0xa0   :  { %637 = vmatprep.subr.bf16.mxu0 %v13233_v19 }
 0x156   :  { %v13180_v21 = vpop.f32.mrf.mxu0 }
 0x158   :  { %v311_v22 = vpop.f32.mrf.mxu0 }
 0x15a   :  { %v13181_v27 = vpop.f32.mrf.mxu0 }
 0x15b   :  { %v343_v28 = vpack.c.bf16 %v13181_v27, %v13180_v21 }
 0x15c   :  { %v314_v33 = vpop.f32.mrf.mxu0 }
 0x15d   :  { %11749 = vmatmul.mubr.msk.bf16.vlgmr.msra.gmra.mxu1 %vm431_vm1, %v343_v28  ;;  %11750 = vmatmul.mubr.msk.bf16.vlgmr.msra.gmra.mxu0 %vm431_vm1, %v343_v28  ;;  %v342_v41 = vpack.c.bf16 %v314_v33, %v311_v22  ;;  %v1012_v22 = vlaneseq }
 0x15e   :  { %595 = vmatpush1.bf16.msra.mxu1 %v13228_v23  ;;  %638 = vmatpush1.bf16.msra.mxu0 %v13231_v24  ;;  %v13184_v38 = vpop.f32.mrf.mxu0 }
 0x15f   :  { %596 = vmatprep.subr.bf16.mxu1 %v13236_v25  ;;  %639 = vmatprep.subr.bf16.mxu0 %v13239_v26  ;;  %v15745_v25 = vshrl.u32 %v1012_v22, 7 }
 0x160   :  { %616 = vmatprep.mubr.bf16.mxu1 %v15566_v20  ;;  %659 = vmatprep.mubr.bf16.mxu0 %v15566_v20  ;;  %v327_v44 = vpop.f32.mrf.mxu0 }
 0x161   :  { %v15748_v28 = vsub.s32 0, %v15745_v25 }
 0x162   :  { %597 = vmatpush1.bf16.msra.mxu1 %v13234_v29  ;;  %640 = vmatpush1.bf16.msra.mxu0 %v13237_v30  ;;  %v13185_v49 = vpop.f32.mrf.mxu0  ;;  %v15751_v29 = vsub.s32 2, %v15745_v25 }
 0x163   :  { %598 = vmatprep.subr.bf16.mxu1 %v13242_v31  ;;  %641 = vmatprep.subr.bf16.mxu0 %v13245_v32  ;;  %v345_v2 = vpack.c.bf16 %v13185_v49, %v13184_v38  ;;  %v1010_v32 = vld [vmem:[#allocation11] sm:$0xf] }
 0x164   :  { %v330_v54 = vpop.f32.mrf.mxu0 }
 0x165   :  { %v344_v57 = vpack.c.bf16 %v330_v54, %v327_v44  ;;  %v1023_v44 = vrot.slane %v1010_v32, %v15751_v29 }
 0x166   :  { %599 = vmatpush1.bf16.msra.mxu1 %v13240_v34  ;;  %642 = vmatpush1.bf16.msra.mxu0 %v13243_v35  ;;  %v15754_v35 = vsub.s32 1, %v15745_v25 }
 0x167   :  { %756 = vmatprep.subr.bf16.mxu1 %v13248_v36  ;;  %799 = vmatprep.subr.bf16.mxu0 %v13251_v37  ;;  %v15757_v36 = vsub.s32 3, %v15745_v25 }
 0x169   :  { %11763 = vmatmul.mubr.msk.bf16.vlgmr.msra.gmra.mxu1 %vm431_vm1, %v342_v41  ;;  %11764 = vmatmul.mubr.msk.bf16.vlgmr.msra.gmra.mxu0 %vm431_vm1, %v342_v41  ;;  %v1027_v54 = vrot.slane %v1010_v32, %v15757_v36 }
 0x16a   :  { %757 = vmatpush1.bf16.msra.mxu1 %v13246_v39  ;;  %800 = vmatpush1.bf16.msra.mxu0 %v13249_v40 }
 0x16b   :  { %758 = vmatprep.subr.bf16.mxu1 %v13254_v42  ;;  %801 = vmatprep.subr.bf16.mxu0 %v13257_v43  ;;  %v1015_v42 = vrot.slane %v1010_v32, %v15748_v28 }
 0x16c   :  { %778 = vmatprep.mubr.bf16.mxu1 %v15566_v20  ;;  %821 = vmatprep.mubr.bf16.mxu0 %v15566_v20 }
 0x16e   :  { %759 = vmatpush1.bf16.msra.mxu1 %v13252_v45  ;;  %802 = vmatpush1.bf16.msra.mxu0 %v13255_v46 }
 0x16f   :  { %760 = vmatprep.subr.bf16.mxu1 %v13260_v47  ;;  %803 = vmatprep.subr.bf16.mxu0 %v13263_v48 }
 0x172   :  { %761 = vmatpush1.bf16.msra.mxu1 %v13258_v50  ;;  %804 = vmatpush1.bf16.msra.mxu0 %v13261_v51 }
 0x173   :  { %926 = vmatprep.subr.bf16.mxu1 %v13266_v52  ;;  %969 = vmatprep.subr.bf16.mxu0 %v13269_v53  ;;  %v1019_v52 = vrot.slane %v1010_v32, %v15754_v35 }
 0x175   :  { %11777 = vmatmul.mubr.msk.bf16.vlgmr.msra.gmra.mxu1 %vm431_vm1, %v344_v57  ;;  %11778 = vmatmul.mubr.msk.bf16.vlgmr.msra.gmra.mxu0 %vm431_vm1, %v344_v57 }
 0x176   :  { %927 = vmatpush1.bf16.msra.mxu1 %v13264_v55  ;;  %970 = vmatpush1.bf16.msra.mxu0 %v13267_v56 }
 0x177   :  { %928 = vmatprep.subr.bf16.mxu1 %v13272_v58  ;;  %971 = vmatprep.subr.bf16.mxu0 %v13275_v59 }
 0x178   :  { %948 = vmatprep.mubr.bf16.mxu1 %v15566_v20  ;;  %991 = vmatprep.mubr.bf16.mxu0 %v15566_v20 }
 0x17a   :  { %929 = vmatpush1.bf16.msra.mxu1 %v13270_v60  ;;  %972 = vmatpush1.bf16.msra.mxu0 %v13273_v61 }
 0x17b   :  { %930 = vmatprep.subr.bf16.mxu1 %v13278_v62  ;;  %973 = vmatprep.subr.bf16.mxu0 %v13281_v63 }
 0x17e   :  { %931 = vmatpush1.bf16.msra.mxu1 %v13276_v0  ;;  %974 = vmatpush1.bf16.msra.mxu0 %v13279_v1 }
 0x181   :  { %11791 = vmatmul.mubr.msk.bf16.vlgmr.msra.gmra.mxu1 %vm431_vm1, %v345_v2  ;;  %11792 = vmatmul.mubr.msk.bf16.vlgmr.msra.gmra.mxu0 %vm431_vm1, %v345_v2 }
 0x182   :  { %1121 = vmatprep.mubr.bf16.mxu1 %v15566_v20  ;;  %1174 = vmatprep.mubr.bf16.mxu0 %v15566_v20 }
 0x21d   :  { %v469_v3 = vpop.f32.mrf.mxu1  ;;  %v512_v4 = vpop.f32.mrf.mxu0 }
 0x21f   :  { %v471_v5 = vpop.f32.mrf.mxu1  ;;  %v514_v6 = vpop.f32.mrf.mxu0 }
 0x221   :  { %v473_v7 = vpop.f32.mrf.mxu1  ;;  %v516_v8 = vpop.f32.mrf.mxu0 }
 0x223   :  { %v475_v9 = vpop.f32.mrf.mxu1  ;;  %v518_v10 = vpop.f32.mrf.mxu0 }
 0x229   :  { %v618_v11 = vpop.f32.mrf.mxu1  ;;  %v661_v12 = vpop.f32.mrf.mxu0 }
 0x22a   :  { %v619_v30 = vadd.f32 %v618_v11, %v469_v3  ;;  %v662_v31 = vadd.f32 %v661_v12, %v512_v4 }
 0x22b   :  { %v620_v13 = vpop.f32.mrf.mxu1  ;;  %v663_v14 = vpop.f32.mrf.mxu0 }
 0x22c   :  { %v621_v37 = vadd.f32 %v620_v13, %v471_v5  ;;  %v664_v38 = vadd.f32 %v663_v14, %v514_v6 }
 0x22d   :  { %v622_v15 = vpop.f32.mrf.mxu1  ;;  %v665_v16 = vpop.f32.mrf.mxu0 }
 0x22e   :  { %v623_v49 = vadd.f32 %v622_v15, %v473_v7  ;;  %v666_v50 = vadd.f32 %v665_v16, %v516_v8 }
 0x22f   :  { %v624_v17 = vpop.f32.mrf.mxu1  ;;  %v667_v18 = vpop.f32.mrf.mxu0 }
 0x230   :  { %v625_v55 = vadd.f32 %v624_v17, %v475_v9  ;;  %v668_v56 = vadd.f32 %v667_v18, %v518_v10 }
 0x235   :  { %v780_v19 = vpop.f32.mrf.mxu1  ;;  %v823_v21 = vpop.f32.mrf.mxu0 }
 0x236   :  { %v832_v39 = vadd.f32 %v780_v19, %v619_v30  ;;  %v834_v40 = vadd.f32 %v823_v21, %v662_v31 }
 0x237   :  { %v782_v23 = vpop.f32.mrf.mxu1  ;;  %v825_v24 = vpop.f32.mrf.mxu0 }
 0x238   :  { %v833_v45 = vadd.f32 %v782_v23, %v621_v37  ;;  %v835_v46 = vadd.f32 %v825_v24, %v664_v38 }
 0x239   :  { %v784_v26 = vpop.f32.mrf.mxu1  ;;  %v827_v27 = vpop.f32.mrf.mxu0 }
 0x23a   :  { %v836_v59 = vadd.f32 %v784_v26, %v623_v49  ;;  %v838_v60 = vadd.f32 %v827_v27, %v666_v50  ;;  %v13292_v49 = vld [vmem:[#allocation10 + $0x6c0] ss:$16 sps:$4 sm:$0xff]   ;;  %v13297_v50 = vld [vmem:[#allocation10 + $0x4a4] ss:$16 sps:$4 sm:$0xff]  }
 0x23b   :  { %v786_v33 = vpop.f32.mrf.mxu1  ;;  %v829_v34 = vpop.f32.mrf.mxu0 }
 0x23c   :  { %v837_v1 = vadd.f32 %v786_v33, %v625_v55  ;;  %v839_v2 = vadd.f32 %v829_v34, %v668_v56  ;;  %v13306_v55 = vld [vmem:[#allocation10 + $0x684] ss:$16 sps:$4 sm:$0xff]   ;;  %v13301_v56 = vld [vmem:[#allocation10 + $0x480] ss:$16 sps:$4 sm:$0xff]  }
 0x241   :  { %v950_v41 = vpop.f32.mrf.mxu1  ;;  %v993_v43 = vpop.f32.mrf.mxu0 }
 0x242   :  { %v1002_v47 = vadd.f32 %v950_v41, %v832_v39  ;;  %v1004_v48 = vadd.f32 %v993_v43, %v834_v40  ;;  %v13285_v39 = vld [vmem:[#allocation10 + $0x4e4] ss:$16 sps:$4 sm:$0xff]  }
 0x243   :  { %v952_v51 = vpop.f32.mrf.mxu1  ;;  %v995_v53 = vpop.f32.mrf.mxu0  ;;  %v13288_v40 = vld [vmem:[#allocation10 + $0x6e4] ss:$16 sps:$4 sm:$0xff]  }
 0x244   :  { %v1003_v57 = vadd.f32 %v952_v51, %v833_v45  ;;  %v1005_v58 = vadd.f32 %v995_v53, %v835_v46  ;;  %v1032_v61 = vadd.f32 %v1015_v42, %v1002_v47  ;;  %v1034_v62 = vadd.f32 %v1023_v44, %v1004_v48  ;;  %v13282_v43 = vld [vmem:[%s16195_s24] sm:$0xff]  }
 0x245   :  { %v954_v63 = vpop.f32.mrf.mxu1  ;;  %v997_v0 = vpop.f32.mrf.mxu0  ;;  %v13286_v45 = vld [vmem:[#allocation10 + $0x6e0] ss:$16 sps:$4 sm:$0xff]   ;;  %v13291_v46 = vld [vmem:[#allocation10 + $0x4c4] ss:$16 sps:$4 sm:$0xff]  }
 0x246   :  { %v1033_v3 = vadd.f32 %v1019_v52, %v1003_v57  ;;  %v1035_v4 = vadd.f32 %v1027_v54, %v1005_v58  ;;  %v1006_v5 = vadd.f32 %v954_v63, %v836_v59  ;;  %v1008_v6 = vadd.f32 %v997_v0, %v838_v60  ;;  %v13294_v47 = vld [vmem:[#allocation10 + $0x6c4] ss:$16 sps:$4 sm:$0xff]   ;;  %v13289_v48 = vld [vmem:[#allocation10 + $0x4c0] ss:$16 sps:$4 sm:$0xff]  }
 0x247   :  { %v956_v7 = vpop.f32.mrf.mxu1  ;;  %v999_v8 = vpop.f32.mrf.mxu0  ;;  %vm1040_vm2 = vcmp.ge.f32.partialorder %v1032_v61, 0.0  ;;  %v1048_v9 = vmul.f32 0.2, %v1032_v61  ;;  %vm1042_vm3 = vcmp.ge.f32.partialorder %v1034_v62, 0.0  ;;  %v1050_v10 = vmul.f32 0.2, %v1034_v62 }
 0x248   :  { %v1007_v11 = vadd.f32 %v956_v7, %v837_v1  ;;  %v1009_v12 = vadd.f32 %v999_v8, %v839_v2  ;;  %v1036_v13 = vadd.f32 %v1015_v42, %v1006_v5  ;;  %v1038_v14 = vadd.f32 %v1023_v44, %v1008_v6  ;;  %v13283_v44 = vld [vmem:[#allocation10 + $0x4e0] ss:$16 sps:$4 sm:$0xff]   ;;  %v13300_v51 = vld [vmem:[#allocation10 + $0x6a4] ss:$16 sps:$4 sm:$0xff]  }
 0x249   :  { %vm1041_vm4 = vcmp.ge.f32.partialorder %v1033_v3, 0.0  ;;  %v1049_v17 = vmul.f32 0.2, %v1033_v3  ;;  %vm1043_vm5 = vcmp.ge.f32.partialorder %v1035_v4, 0.0  ;;  %v1051_v18 = vmul.f32 0.2, %v1035_v4 }
 0x24a   :  { %v1037_v15 = vadd.f32 %v1019_v52, %v1007_v11  ;;  %v1039_v16 = vadd.f32 %v1027_v54, %v1009_v12  ;;  %vm1044_vm6 = vcmp.ge.f32.partialorder %v1036_v13, 0.0  ;;  %v1052_v19 = vmul.f32 0.2, %v1036_v13  ;;  %v13295_v52 = vld [vmem:[#allocation10 + $0x4a0] ss:$16 sps:$4 sm:$0xff]  }
 0x24b   :  { %vm1046_vm7 = vcmp.ge.f32.partialorder %v1038_v14, 0.0  ;;  %v1054_v21 = vmul.f32 0.2, %v1038_v14  ;;  %v1057_v27 = vsel %vm1041_vm4, %v1033_v3, %v1049_v17  ;;  %v1059_v31 = vsel %vm1043_vm5, %v1035_v4, %v1051_v18  ;;  %v13298_v53 = vld [vmem:[#allocation10 + $0x6a0] ss:$16 sps:$4 sm:$0xff]  }
 0x24c   :  { %vm1045_vm8 = vcmp.ge.f32.partialorder %v1037_v15, 0.0  ;;  %v1053_v22 = vmul.f32 0.2, %v1037_v15  ;;  %vm1047_vm9 = vcmp.ge.f32.partialorder %v1039_v16, 0.0  ;;  %v1055_v23 = vmul.f32 0.2, %v1039_v16 }
 0x24d   :  { %v1060_v24 = vsel %vm1044_vm6, %v1036_v13, %v1052_v19  ;;  %v1062_v26 = vsel %vm1046_vm7, %v1038_v14, %v1054_v21  ;;  %v1056_v33 = vsel %vm1040_vm2, %v1032_v61, %v1048_v9  ;;  %v1058_v34 = vsel %vm1042_vm3, %v1034_v62, %v1050_v10  ;;  %v13303_v54 = vld [vmem:[#allocation10 + $0x484] ss:$16 sps:$4 sm:$0xff]   ;;  %v13304_v57 = vld [vmem:[#allocation10 + $0x680] ss:$16 sps:$4 sm:$0xff]  }
 0x24e   :  { %v1061_v30 = vsel %vm1045_vm8, %v1037_v15, %v1053_v22  ;;  %v1063_v32 = vsel %vm1047_vm9, %v1039_v16, %v1055_v23  ;;  %v1064_v41 = vpack.c.bf16 %v1060_v24, %v1056_v33  ;;  %v1066_v42 = vpack.c.bf16 %v1062_v26, %v1058_v34  ;;  %v13309_v58 = vld [vmem:[#allocation10 + $0x464] ss:$16 sps:$4 sm:$0xff]   ;;  %v13307_v60 = vld [vmem:[#allocation10 + $0x460] ss:$16 sps:$4 sm:$0xff]  }
 0x24f   :  { %v1065_v37 = vpack.c.bf16 %v1061_v30, %v1057_v27  ;;  %v1067_v38 = vpack.c.bf16 %v1063_v32, %v1059_v31  ;;  %v13312_v59 = vld [vmem:[#allocation10 + $0x664] ss:$16 sps:$4 sm:$0xff]   ;;  %v13310_v61 = vld [vmem:[#allocation10 + $0x660] ss:$16 sps:$4 sm:$0xff]  }
 0x250   :  { %v13315_v62 = vld [vmem:[#allocation10 + $0x444] ss:$16 sps:$4 sm:$0xff]   ;;  %v13313_v0 = vld [vmem:[#allocation10 + $0x440] ss:$16 sps:$4 sm:$0xff]  }
 0x251   :  { %1103 = vmatprep.subr.bf16.mxu1 %v1065_v37  ;;  %1156 = vmatprep.subr.bf16.mxu0 %v1067_v38  ;;  %v13318_v63 = vld [vmem:[#allocation10 + $0x644] ss:$16 sps:$4 sm:$0xff]   ;;  %v13316_v1 = vld [vmem:[#allocation10 + $0x640] ss:$16 sps:$4 sm:$0xff]  }
 0x252   :  { %1104 = vmatpush1.bf16.msra.mxu1 %v1064_v41  ;;  %1157 = vmatpush1.bf16.msra.mxu0 %v1066_v42  ;;  %v13321_v2 = vld [vmem:[#allocation10 + $0x424] ss:$16 sps:$4 sm:$0xff]   ;;  %v13319_v4 = vld [vmem:[#allocation10 + $0x420] ss:$16 sps:$4 sm:$0xff]  }
 0x253   :  { %2112 = vmatprep.subr.bf16.mxu1 %v13285_v39  ;;  %2153 = vmatprep.subr.bf16.mxu0 %v13288_v40  ;;  %v13324_v3 = vld [vmem:[#allocation10 + $0x624] ss:$16 sps:$4 sm:$0xff]   ;;  %v13322_v5 = vld [vmem:[#allocation10 + $0x620] ss:$16 sps:$4 sm:$0xff]  }
 0x254   :  { %v13327_v6 = vld [vmem:[#allocation10 + $0x404] ss:$16 sps:$4 sm:$0xff]   ;;  %v13325_v8 = vld [vmem:[#allocation10 + $0x400] ss:$16 sps:$4 sm:$0xff]  }
 0x255   :  { %11795 = vmatmul.mubr.msk.bf16.vlgmr.msra.gmra.mxu1 %vm1082_vm10, %v13282_v43  ;;  %11797 = vmatmul.mubr.msk.bf16.vlgmr.msra.gmra.mxu0 %vm1082_vm10, %v13282_v43  ;;  %v13330_v7 = vld [vmem:[#allocation10 + $0x604] ss:$16 sps:$4 sm:$0xff]   ;;  %v13328_v11 = vld [vmem:[#allocation10 + $0x600] ss:$16 sps:$4 sm:$0xff]  }
 0x256   :  { %2113 = vmatpush1.bf16.msra.mxu1 %v13283_v44  ;;  %2154 = vmatpush1.bf16.msra.mxu0 %v13286_v45  ;;  %v13333_v12 = vld [vmem:[#allocation10 + $0x5e4] ss:$16 sps:$4 sm:$0xff]   ;;  %v13331_v10 = vld [vmem:[#allocation10 + $0x5e0] ss:$16 sps:$4 sm:$0xff]  }
 0x257   :  { %2114 = vmatprep.subr.bf16.mxu1 %v13291_v46  ;;  %2155 = vmatprep.subr.bf16.mxu0 %v13294_v47  ;;  %v13336_v9 = vld [vmem:[#allocation10 + $0x7e4] ss:$16 sps:$4 sm:$0xff]   ;;  %v13334_v13 = vld [vmem:[#allocation10 + $0x7e0] ss:$16 sps:$4 sm:$0xff]  }
 0x258   :  { %1131 = vmatprep.mubr.bf16.mxu1 %v15566_v20  ;;  %1184 = vmatprep.mubr.bf16.mxu0 %v15566_v20  ;;  %v13339_v14 = vld [vmem:[#allocation10 + $0x5c4] ss:$16 sps:$4 sm:$0xff]   ;;  %v13337_v16 = vld [vmem:[#allocation10 + $0x5c0] ss:$16 sps:$4 sm:$0xff]  }
 0x259   :  { %v13342_v15 = vld [vmem:[#allocation10 + $0x7c4] ss:$16 sps:$4 sm:$0xff]   ;;  %v13340_v17 = vld [vmem:[#allocation10 + $0x7c0] ss:$16 sps:$4 sm:$0xff]  }
 0x25a   :  { %2115 = vmatpush1.bf16.msra.mxu1 %v13289_v48  ;;  %2156 = vmatpush1.bf16.msra.mxu0 %v13292_v49  ;;  %v13345_v18 = vld [vmem:[#allocation10 + $0x5a4] ss:$16 sps:$4 sm:$0xff]   ;;  %v13343_v21 = vld [vmem:[#allocation10 + $0x5a0] ss:$16 sps:$4 sm:$0xff]   ;;  %v13382_v49 = vld [vmem:[#allocation10 + $0x4ec] ss:$16 sps:$4 sm:$0xff]  }
 0x25b   :  { %2116 = vmatprep.subr.bf16.mxu1 %v13297_v50  ;;  %2157 = vmatprep.subr.bf16.mxu0 %v13300_v51  ;;  %v13348_v19 = vld [vmem:[#allocation10 + $0x7a4] ss:$16 sps:$4 sm:$0xff]   ;;  %v13346_v22 = vld [vmem:[#allocation10 + $0x7a0] ss:$16 sps:$4 sm:$0xff]   ;;  %v13385_v50 = vld [vmem:[#allocation10 + $0x6ec] ss:$16 sps:$4 sm:$0xff]  }
 0x25c   :  { %v13351_v23 = vld [vmem:[#allocation10 + $0x584] ss:$16 sps:$4 sm:$0xff]   ;;  %v13349_v26 = vld [vmem:[#allocation10 + $0x580] ss:$16 sps:$4 sm:$0xff]  }
 0x25d   :  { %v13354_v24 = vld [vmem:[#allocation10 + $0x784] ss:$16 sps:$4 sm:$0xff]   ;;  %v13352_v27 = vld [vmem:[#allocation10 + $0x780] ss:$16 sps:$4 sm:$0xff]  }
 0x25e   :  { %2117 = vmatpush1.bf16.msra.mxu1 %v13295_v52  ;;  %2158 = vmatpush1.bf16.msra.mxu0 %v13298_v53  ;;  %v13357_v30 = vld [vmem:[#allocation10 + $0x564] ss:$16 sps:$4 sm:$0xff]   ;;  %v13355_v32 = vld [vmem:[#allocation10 + $0x560] ss:$16 sps:$4 sm:$0xff]  }
 0x25f   :  { %2118 = vmatprep.subr.bf16.mxu1 %v13303_v54  ;;  %2159 = vmatprep.subr.bf16.mxu0 %v13306_v55  ;;  %v13360_v31 = vld [vmem:[#allocation10 + $0x764] ss:$16 sps:$4 sm:$0xff]   ;;  %v13358_v33 = vld [vmem:[#allocation10 + $0x760] ss:$16 sps:$4 sm:$0xff]  }
 0x260   :  { %v13363_v34 = vld [vmem:[#allocation10 + $0x544] ss:$16 sps:$4 sm:$0xff]   ;;  %v13361_v38 = vld [vmem:[#allocation10 + $0x540] ss:$16 sps:$4 sm:$0xff]  }
 0x261   :  { %v13366_v37 = vld [vmem:[#allocation10 + $0x744] ss:$16 sps:$4 sm:$0xff]   ;;  %v13364_v39 = vld [vmem:[#allocation10 + $0x740] ss:$16 sps:$4 sm:$0xff]  }
 0x262   :  { %2119 = vmatpush1.bf16.msra.mxu1 %v13301_v56  ;;  %2160 = vmatpush1.bf16.msra.mxu0 %v13304_v57  ;;  %v13367_v40 = vld [vmem:[%s16195_s24 + $0x8] sm:$0xff]   ;;  %v13368_v41 = vld [vmem:[#allocation10 + $0x520] ss:$16 sps:$4 sm:$0xff]  }
 0x263   :  { %2120 = vmatprep.subr.bf16.mxu1 %v13309_v58  ;;  %2161 = vmatprep.subr.bf16.mxu0 %v13312_v59  ;;  %v13370_v42 = vld [vmem:[#allocation10 + $0x524] ss:$16 sps:$4 sm:$0xff]   ;;  %v13371_v43 = vld [vmem:[#allocation10 + $0x720] ss:$16 sps:$4 sm:$0xff]  }
 0x264   :  { %11796 = vmatmul.mubr.msk.bf16.gmra.mxu1 %vm1082_vm10, %v13367_v40  ;;  %11798 = vmatmul.mubr.msk.bf16.gmra.mxu0 %vm1082_vm10, %v13367_v40  ;;  %v13373_v44 = vld [vmem:[#allocation10 + $0x724] ss:$16 sps:$4 sm:$0xff]   ;;  %v13374_v47 = vld [vmem:[#allocation10 + $0x500] ss:$16 sps:$4 sm:$0xff]   ;;  %v13433_v40 = vld [vmem:[#allocation10 + $0x7ec] ss:$16 sps:$4 sm:$0xff]  }
 0x265   :  { %v13376_v45 = vld [vmem:[#allocation10 + $0x504] ss:$16 sps:$4 sm:$0xff]   ;;  %v13377_v48 = vld [vmem:[#allocation10 + $0x700] ss:$16 sps:$4 sm:$0xff]  }
 0x266   :  { %2121 = vmatpush1.bf16.msra.mxu1 %v13307_v60  ;;  %2162 = vmatpush1.bf16.msra.mxu0 %v13310_v61  ;;  %v13379_v46 = vld [vmem:[#allocation10 + $0x704] ss:$16 sps:$4 sm:$0xff]  }
 0x267   :  { %2122 = vmatprep.subr.bf16.mxu1 %v13315_v62  ;;  %2163 = vmatprep.subr.bf16.mxu0 %v13318_v63 }
 0x26a   :  { %2123 = vmatpush1.bf16.msra.mxu1 %v13313_v0  ;;  %2164 = vmatpush1.bf16.msra.mxu0 %v13316_v1  ;;  %v13380_v1 = vld [vmem:[#allocation10 + $0x4e8] ss:$16 sps:$4 sm:$0xff]  }
 0x26b   :  { %2124 = vmatprep.subr.bf16.mxu1 %v13321_v2  ;;  %2165 = vmatprep.subr.bf16.mxu0 %v13324_v3  ;;  %v13383_v2 = vld [vmem:[#allocation10 + $0x6e8] ss:$16 sps:$4 sm:$0xff]  }
 0x26e   :  { %2125 = vmatpush1.bf16.msra.mxu1 %v13319_v4  ;;  %2166 = vmatpush1.bf16.msra.mxu0 %v13322_v5  ;;  %v13388_v5 = vld [vmem:[#allocation10 + $0x4cc] ss:$16 sps:$4 sm:$0xff]  }
 0x26f   :  { %2126 = vmatprep.subr.bf16.mxu1 %v13327_v6  ;;  %2167 = vmatprep.subr.bf16.mxu0 %v13330_v7  ;;  %v13391_v6 = vld [vmem:[#allocation10 + $0x6cc] ss:$16 sps:$4 sm:$0xff]   ;;  %v13386_v7 = vld [vmem:[#allocation10 + $0x4c8] ss:$16 sps:$4 sm:$0xff]  }
 0x272   :  { %2127 = vmatpush1.bf16.msra.mxu1 %v13325_v8  ;;  %2168 = vmatpush1.bf16.msra.mxu0 %v13328_v11  ;;  %v13389_v8 = vld [vmem:[#allocation10 + $0x6c8] ss:$16 sps:$4 sm:$0xff]   ;;  %v13394_v11 = vld [vmem:[#allocation10 + $0x4ac] ss:$16 sps:$4 sm:$0xff]  }
 0x273   :  { %2128 = vmatprep.subr.bf16.mxu1 %v13333_v12  ;;  %2169 = vmatprep.subr.bf16.mxu0 %v13336_v9  ;;  %v13397_v12 = vld [vmem:[#allocation10 + $0x6ac] ss:$16 sps:$4 sm:$0xff]   ;;  %v13392_v9 = vld [vmem:[#allocation10 + $0x4a8] ss:$16 sps:$4 sm:$0xff]  }
 0x276   :  { %2129 = vmatpush2.bf16.msra.mxu1 %v13331_v10  ;;  %2170 = vmatpush2.bf16.msra.mxu0 %v13334_v13  ;;  %v13395_v10 = vld [vmem:[#allocation10 + $0x6a8] ss:$16 sps:$4 sm:$0xff]   ;;  %v13400_v13 = vld [vmem:[#allocation10 + $0x48c] ss:$16 sps:$4 sm:$0xff]  }
 0x277   :  { %2130 = vmatprep.subr.bf16.mxu1 %v13339_v14  ;;  %2171 = vmatprep.subr.bf16.mxu0 %v13342_v15  ;;  %v13403_v14 = vld [vmem:[#allocation10 + $0x68c] ss:$16 sps:$4 sm:$0xff]   ;;  %v13398_v15 = vld [vmem:[#allocation10 + $0x488] ss:$16 sps:$4 sm:$0xff]  }
 0x27a   :  { %2131 = vmatpush2.bf16.msra.mxu1 %v13337_v16  ;;  %2172 = vmatpush2.bf16.msra.mxu0 %v13340_v17  ;;  %v13401_v16 = vld [vmem:[#allocation10 + $0x688] ss:$16 sps:$4 sm:$0xff]   ;;  %v13406_v17 = vld [vmem:[#allocation10 + $0x46c] ss:$16 sps:$4 sm:$0xff]  }
 0x27b   :  { %2132 = vmatprep.subr.bf16.mxu1 %v13345_v18  ;;  %2173 = vmatprep.subr.bf16.mxu0 %v13348_v19  ;;  %v13409_v18 = vld [vmem:[#allocation10 + $0x66c] ss:$16 sps:$4 sm:$0xff]   ;;  %v13404_v19 = vld [vmem:[#allocation10 + $0x468] ss:$16 sps:$4 sm:$0xff]  }
 0x27e   :  { %2133 = vmatpush2.bf16.msra.mxu1 %v13343_v21  ;;  %2174 = vmatpush2.bf16.msra.mxu0 %v13346_v22  ;;  %v13407_v21 = vld [vmem:[#allocation10 + $0x668] ss:$16 sps:$4 sm:$0xff]   ;;  %v13412_v22 = vld [vmem:[#allocation10 + $0x44c] ss:$16 sps:$4 sm:$0xff]  }
 0x27f   :  { %2134 = vmatprep.subr.bf16.mxu1 %v13351_v23  ;;  %2175 = vmatprep.subr.bf16.mxu0 %v13354_v24  ;;  %v13415_v23 = vld [vmem:[#allocation10 + $0x64c] ss:$16 sps:$4 sm:$0xff]   ;;  %v13410_v24 = vld [vmem:[#allocation10 + $0x448] ss:$16 sps:$4 sm:$0xff]  }
 0x282   :  { %2135 = vmatpush2.bf16.msra.mxu1 %v13349_v26  ;;  %2176 = vmatpush2.bf16.msra.mxu0 %v13352_v27  ;;  %v13413_v26 = vld [vmem:[#allocation10 + $0x648] ss:$16 sps:$4 sm:$0xff]   ;;  %v13418_v27 = vld [vmem:[#allocation10 + $0x42c] ss:$16 sps:$4 sm:$0xff]  }
 0x283   :  { %2136 = vmatprep.subr.bf16.mxu1 %v13357_v30  ;;  %2177 = vmatprep.subr.bf16.mxu0 %v13360_v31  ;;  %v13421_v30 = vld [vmem:[#allocation10 + $0x62c] ss:$16 sps:$4 sm:$0xff]   ;;  %v13416_v31 = vld [vmem:[#allocation10 + $0x428] ss:$16 sps:$4 sm:$0xff]  }
 0x286   :  { %2137 = vmatpush2.bf16.msra.mxu1 %v13355_v32  ;;  %2178 = vmatpush2.bf16.msra.mxu0 %v13358_v33  ;;  %v13419_v32 = vld [vmem:[#allocation10 + $0x628] ss:$16 sps:$4 sm:$0xff]   ;;  %v13424_v33 = vld [vmem:[#allocation10 + $0x40c] ss:$16 sps:$4 sm:$0xff]  }
 0x287   :  { %2138 = vmatprep.subr.bf16.mxu1 %v13363_v34  ;;  %2179 = vmatprep.subr.bf16.mxu0 %v13366_v37  ;;  %v13427_v34 = vld [vmem:[#allocation10 + $0x60c] ss:$16 sps:$4 sm:$0xff]   ;;  %v13422_v37 = vld [vmem:[#allocation10 + $0x408] ss:$16 sps:$4 sm:$0xff]  }
 0x28a   :  { %2139 = vmatpush2.bf16.msra.mxu1 %v13361_v38  ;;  %2180 = vmatpush2.bf16.msra.mxu0 %v13364_v39  ;;  %v13425_v38 = vld [vmem:[#allocation10 + $0x608] ss:$16 sps:$4 sm:$0xff]   ;;  %v13430_v39 = vld [vmem:[#allocation10 + $0x5ec] ss:$16 sps:$4 sm:$0xff]  }
 0x28b   :  { %2140 = vmatprep.subr.bf16.mxu1 %v13370_v42  ;;  %2181 = vmatprep.subr.bf16.mxu0 %v13373_v44  ;;  %v13431_v42 = vld [vmem:[#allocation10 + $0x7e8] ss:$16 sps:$4 sm:$0xff]   ;;  %v13439_v44 = vld [vmem:[#allocation10 + $0x7cc] ss:$16 sps:$4 sm:$0xff]  }
 0x28e   :  { %2141 = vmatpush2.bf16.msra.mxu1 %v13368_v41  ;;  %2182 = vmatpush2.bf16.msra.mxu0 %v13371_v43  ;;  %v13428_v41 = vld [vmem:[#allocation10 + $0x5e8] ss:$16 sps:$4 sm:$0xff]   ;;  %v13436_v43 = vld [vmem:[#allocation10 + $0x5cc] ss:$16 sps:$4 sm:$0xff]  }
 0x28f   :  { %2142 = vmatprep.subr.bf16.mxu1 %v13376_v45  ;;  %2183 = vmatprep.subr.bf16.mxu0 %v13379_v46  ;;  %v13434_v45 = vld [vmem:[#allocation10 + $0x5c8] ss:$16 sps:$4 sm:$0xff]  }
 0x290   :  { %v13437_v46 = vld [vmem:[#allocation10 + $0x7c8] ss:$16 sps:$4 sm:$0xff]  }
 0x292   :  { %2143 = vmatpush2.bf16.msra.mxu1 %v13374_v47  ;;  %2184 = vmatpush2.bf16.msra.mxu0 %v13377_v48  ;;  %v13442_v47 = vld [vmem:[#allocation10 + $0x5ac] ss:$16 sps:$4 sm:$0xff]  }
 0x293   :  { %2194 = vmatprep.subr.bf16.mxu1 %v13382_v49  ;;  %2235 = vmatprep.subr.bf16.mxu0 %v13385_v50  ;;  %v13445_v48 = vld [vmem:[#allocation10 + $0x7ac] ss:$16 sps:$4 sm:$0xff]   ;;  %v13440_v49 = vld [vmem:[#allocation10 + $0x5a8] ss:$16 sps:$4 sm:$0xff]  }
 0x294   :  { %v13443_v50 = vld [vmem:[#allocation10 + $0x7a8] ss:$16 sps:$4 sm:$0xff]  }
 0x315   :  { %v1123_v51 = vpop.f32.mrf.mxu1  ;;  %v1176_v52 = vpop.f32.mrf.mxu0 }
 0x317   :  { %v1125_v53 = vpop.f32.mrf.mxu1  ;;  %v1178_v54 = vpop.f32.mrf.mxu0 }
 0x319   :  { %v1127_v55 = vpop.f32.mrf.mxu1  ;;  %v1180_v56 = vpop.f32.mrf.mxu0 }
 0x31a   :  { %v15777_v57 = vpack.c.bf16 %v1127_v55, %v1123_v51  ;;  %v15779_v58 = vpack.c.bf16 %v1180_v56, %v1176_v52  ;;  %v13448_v51 = vld [vmem:[#allocation10 + $0x58c] ss:$16 sps:$4 sm:$0xff]  }
 0x31b   :  { %v1129_v59 = vpop.f32.mrf.mxu1  ;;  %v1182_v60 = vpop.f32.mrf.mxu0  ;;  %v13451_v52 = vld [vmem:[#allocation10 + $0x78c] ss:$16 sps:$4 sm:$0xff]  }
 0x31c   :  { %v15781_v61 = vpack.c.bf16 %v1129_v59, %v1125_v53  ;;  %v15783_v62 = vpack.c.bf16 %v1182_v60, %v1178_v54  ;;  %v1464_v3 = vrot.slane %v15777_v57, 4  ;;  %v1466_v4 = vrot.slane %v15779_v58, 4  ;;  %v13446_v53 = vld [vmem:[#allocation10 + $0x588] ss:$16 sps:$4 sm:$0xff]   ;;  %v13454_v55 = vld [vmem:[#allocation10 + $0x56c] ss:$16 sps:$4 sm:$0xff]  }
 0x31d   :  { %v13449_v54 = vld [vmem:[#allocation10 + $0x788] ss:$16 sps:$4 sm:$0xff]   ;;  %v13457_v56 = vld [vmem:[#allocation10 + $0x76c] ss:$16 sps:$4 sm:$0xff]  }
 0x31e   :  { %v1465_v63 = vrot.slane %v15781_v61, 4  ;;  %v1467_v0 = vrot.slane %v15783_v62, 4  ;;  %v13452_v59 = vld [vmem:[#allocation10 + $0x568] ss:$16 sps:$4 sm:$0xff]  }
 0x31f   :  { %v13455_v60 = vld [vmem:[#allocation10 + $0x768] ss:$16 sps:$4 sm:$0xff]  }
 0x320   :  { %2144 = vmatprep.mubr.bf16.mxu1 %v1465_v63  ;;  %2185 = vmatprep.mubr.bf16.mxu0 %v1467_v0 }
 0x321   :  { %2145 = vmatmul.mubr.bf16.vlgmr.msra.gmra.mxu1 %v1464_v3  ;;  %2186 = vmatmul.mubr.bf16.vlgmr.msra.gmra.mxu0 %v1466_v4 }
 0x322   :  { %2195 = vmatpush1.bf16.msra.mxu1 %v13380_v1  ;;  %2236 = vmatpush1.bf16.msra.mxu0 %v13383_v2  ;;  %v13458_v1 = vld [vmem:[#allocation10 + $0x548] ss:$16 sps:$4 sm:$0xff]  }
 0x323   :  { %2226 = vmatprep.mubr.bf16.mxu1 %v1465_v63  ;;  %2267 = vmatprep.mubr.bf16.mxu0 %v1467_v0  ;;  %v13460_v63 = vld [vmem:[#allocation10 + $0x54c] ss:$16 sps:$4 sm:$0xff]   ;;  %v13461_v2 = vld [vmem:[#allocation10 + $0x748] ss:$16 sps:$4 sm:$0xff]  }
 0x324   :  { %2196 = vmatprep.subr.bf16.mxu1 %v13388_v5  ;;  %2237 = vmatprep.subr.bf16.mxu0 %v13391_v6  ;;  %v13463_v0 = vld [vmem:[#allocation10 + $0x74c] ss:$16 sps:$4 sm:$0xff]  }
 0x325   :  { %v13466_v5 = vld [vmem:[#allocation10 + $0x52c] ss:$16 sps:$4 sm:$0xff]  }
 0x326   :  { %2197 = vmatpush1.bf16.msra.mxu1 %v13386_v7  ;;  %2238 = vmatpush1.bf16.msra.mxu0 %v13389_v8  ;;  %v13469_v6 = vld [vmem:[#allocation10 + $0x72c] ss:$16 sps:$4 sm:$0xff]   ;;  %v13464_v7 = vld [vmem:[#allocation10 + $0x528] ss:$16 sps:$4 sm:$0xff]  }
 0x327   :  { %2198 = vmatprep.subr.bf16.mxu1 %v13394_v11  ;;  %2239 = vmatprep.subr.bf16.mxu0 %v13397_v12  ;;  %v13467_v8 = vld [vmem:[#allocation10 + $0x728] ss:$16 sps:$4 sm:$0xff]   ;;  %v1133_v11 = vpop.f32.mrf.mxu1  ;;  %v1186_v12 = vpop.f32.mrf.mxu0 }
 0x32a   :  { %2199 = vmatpush1.bf16.msra.mxu1 %v13392_v9  ;;  %2240 = vmatpush1.bf16.msra.mxu0 %v13395_v10  ;;  %v13472_v9 = vld [vmem:[#allocation10 + $0x50c] ss:$16 sps:$4 sm:$0xff]  }
 0x32b   :  { %2200 = vmatprep.subr.bf16.mxu1 %v13400_v13  ;;  %2241 = vmatprep.subr.bf16.mxu0 %v13403_v14  ;;  %v13475_v10 = vld [vmem:[#allocation10 + $0x70c] ss:$16 sps:$4 sm:$0xff]   ;;  %v15793_v13 = vpop.f32.mrf.mxu1  ;;  %v15795_v14 = vpop.f32.mrf.mxu0 }
 0x32e   :  { %2201 = vmatpush1.bf16.msra.mxu1 %v13398_v15  ;;  %2242 = vmatpush1.bf16.msra.mxu0 %v13401_v16  ;;  %v13470_v15 = vld [vmem:[#allocation10 + $0x508] ss:$16 sps:$4 sm:$0xff]  }
 0x32f   :  { %2202 = vmatprep.subr.bf16.mxu1 %v13406_v17  ;;  %2243 = vmatprep.subr.bf16.mxu0 %v13409_v18  ;;  %v13473_v16 = vld [vmem:[#allocation10 + $0x708] ss:$16 sps:$4 sm:$0xff]   ;;  %v1137_v17 = vpop.f32.mrf.mxu1  ;;  %v1190_v18 = vpop.f32.mrf.mxu0 }
 0x332   :  { %2203 = vmatpush1.bf16.msra.mxu1 %v13404_v19  ;;  %2244 = vmatpush1.bf16.msra.mxu0 %v13407_v21  ;;  %v13478_v19 = vld [vmem:[#allocation10 + $0xe4] ss:$16 sps:$4 sm:$0xff]  }
 0x333   :  { %2204 = vmatprep.subr.bf16.mxu1 %v13412_v22  ;;  %2245 = vmatprep.subr.bf16.mxu0 %v13415_v23  ;;  %v13481_v21 = vld [vmem:[#allocation10 + $0x2e4] ss:$16 sps:$4 sm:$0xff]   ;;  %v15797_v22 = vpack.c.bf16 %v1137_v17, %v1133_v11  ;;  %v15799_v23 = vpack.c.bf16 %v1190_v18, %v1186_v12  ;;  %v13536_v11 = vld [vmem:[#allocation10 + $0x1a0] ss:$16 sps:$4 sm:$0xff]  }
 0x334   :  { %v13539_v12 = vld [vmem:[#allocation10 + $0x3a0] ss:$16 sps:$4 sm:$0xff]   ;;  %v13550_v17 = vld [vmem:[#allocation10 + $0x164] ss:$16 sps:$4 sm:$0xff]  }
 0x335   :  { %v13553_v18 = vld [vmem:[#allocation10 + $0x364] ss:$16 sps:$4 sm:$0xff]  }
 0x336   :  { %2205 = vmatpush1.bf16.msra.mxu1 %v13410_v24  ;;  %2246 = vmatpush1.bf16.msra.mxu0 %v13413_v26  ;;  %v13476_v24 = vld [vmem:[#allocation10 + $0xe0] ss:$16 sps:$4 sm:$0xff]  }
 0x337   :  { %2206 = vmatprep.subr.bf16.mxu1 %v13418_v27  ;;  %2247 = vmatprep.subr.bf16.mxu0 %v13421_v30  ;;  %v13479_v26 = vld [vmem:[#allocation10 + $0x2e0] ss:$16 sps:$4 sm:$0xff]   ;;  %v13484_v27 = vld [vmem:[#allocation10 + $0xc4] ss:$16 sps:$4 sm:$0xff]  }
 0x338   :  { %v13487_v30 = vld [vmem:[#allocation10 + $0x2c4] ss:$16 sps:$4 sm:$0xff]  }
 0x33a   :  { %2207 = vmatpush1.bf16.msra.mxu1 %v13416_v31  ;;  %2248 = vmatpush1.bf16.msra.mxu0 %v13419_v32  ;;  %v13482_v31 = vld [vmem:[#allocation10 + $0xc0] ss:$16 sps:$4 sm:$0xff]  }
 0x33b   :  { %2208 = vmatprep.subr.bf16.mxu1 %v13424_v33  ;;  %2249 = vmatprep.subr.bf16.mxu0 %v13427_v34  ;;  %v13485_v32 = vld [vmem:[#allocation10 + $0x2c0] ss:$16 sps:$4 sm:$0xff]   ;;  %v13490_v33 = vld [vmem:[#allocation10 + $0xa4] ss:$16 sps:$4 sm:$0xff]  }
 0x33c   :  { %v13493_v34 = vld [vmem:[#allocation10 + $0x2a4] ss:$16 sps:$4 sm:$0xff]  }
 0x33e   :  { %2209 = vmatpush1.bf16.msra.mxu1 %v13422_v37  ;;  %2250 = vmatpush1.bf16.msra.mxu0 %v13425_v38  ;;  %v13488_v37 = vld [vmem:[#allocation10 + $0xa0] ss:$16 sps:$4 sm:$0xff]   ;;  %v13496_v38 = vld [vmem:[#allocation10 + $0x84] ss:$16 sps:$4 sm:$0xff]  }
 0x33f   :  { %2210 = vmatprep.subr.bf16.mxu1 %v13430_v39  ;;  %2251 = vmatprep.subr.bf16.mxu0 %v13433_v40  ;;  %v13494_v39 = vld [vmem:[#allocation10 + $0x80] ss:$16 sps:$4 sm:$0xff]  }
 0x340   :  { %v13497_v40 = vld [vmem:[#allocation10 + $0x280] ss:$16 sps:$4 sm:$0xff]  }
 0x342   :  { %2211 = vmatpush2.bf16.msra.mxu1 %v13428_v41  ;;  %2252 = vmatpush2.bf16.msra.mxu0 %v13431_v42  ;;  %v13502_v41 = vld [vmem:[#allocation10 + $0x64] ss:$16 sps:$4 sm:$0xff]  }
 0x343   :  { %2212 = vmatprep.subr.bf16.mxu1 %v13436_v43  ;;  %2253 = vmatprep.subr.bf16.mxu0 %v13439_v44  ;;  %v13505_v42 = vld [vmem:[#allocation10 + $0x264] ss:$16 sps:$4 sm:$0xff]   ;;  %v13500_v43 = vld [vmem:[#allocation10 + $0x60] ss:$16 sps:$4 sm:$0xff]  }
 0x344   :  { %v13503_v44 = vld [vmem:[#allocation10 + $0x260] ss:$16 sps:$4 sm:$0xff]  }
 0x346   :  { %2213 = vmatpush2.bf16.msra.mxu1 %v13434_v45  ;;  %2254 = vmatpush2.bf16.msra.mxu0 %v13437_v46  ;;  %v13508_v45 = vld [vmem:[#allocation10 + $0x44] ss:$16 sps:$4 sm:$0xff]  }
 0x347   :  { %2214 = vmatprep.subr.bf16.mxu1 %v13442_v47  ;;  %2255 = vmatprep.subr.bf16.mxu0 %v13445_v48  ;;  %v13511_v46 = vld [vmem:[#allocation10 + $0x244] ss:$16 sps:$4 sm:$0xff]   ;;  %v13506_v47 = vld [vmem:[#allocation10 + $0x40] ss:$16 sps:$4 sm:$0xff]  }
 0x348   :  { %v13509_v48 = vld [vmem:[#allocation10 + $0x240] ss:$16 sps:$4 sm:$0xff]  }
 0x34a   :  { %2215 = vmatpush2.bf16.msra.mxu1 %v13440_v49  ;;  %2256 = vmatpush2.bf16.msra.mxu0 %v13443_v50  ;;  %v13514_v49 = vld [vmem:[#allocation10 + $0x24] ss:$16 sps:$4 sm:$0xff]  }
 0x34b   :  { %2216 = vmatprep.subr.bf16.mxu1 %v13448_v51  ;;  %2257 = vmatprep.subr.bf16.mxu0 %v13451_v52  ;;  %v13517_v50 = vld [vmem:[#allocation10 + $0x224] ss:$16 sps:$4 sm:$0xff]   ;;  %v13512_v51 = vld [vmem:[#allocation10 + $0x20] ss:$16 sps:$4 sm:$0xff]  }
 0x34c   :  { %v13515_v52 = vld [vmem:[#allocation10 + $0x220] ss:$16 sps:$4 sm:$0xff]  }
 0x34e   :  { %2217 = vmatpush2.bf16.msra.mxu1 %v13446_v53  ;;  %2258 = vmatpush2.bf16.msra.mxu0 %v13449_v54  ;;  %v13520_v53 = vld [vmem:[#allocation10 + $0x4] ss:$16 sps:$4 sm:$0xff]  }
 0x34f   :  { %2218 = vmatprep.subr.bf16.mxu1 %v13454_v55  ;;  %2259 = vmatprep.subr.bf16.mxu0 %v13457_v56  ;;  %v13523_v54 = vld [vmem:[#allocation10 + $0x204] ss:$16 sps:$4 sm:$0xff]   ;;  %v13518_v55 = vld [vmem:[#allocation10] ss:$16 sps:$4 sm:$0xff]  }
 0x350   :  { %v13521_v56 = vld [vmem:[#allocation10 + $0x200] ss:$16 sps:$4 sm:$0xff]  }
 0x352   :  { %2219 = vmatpush2.bf16.msra.mxu1 %v13452_v59  ;;  %2260 = vmatpush2.bf16.msra.mxu0 %v13455_v60  ;;  %v13526_v59 = vld [vmem:[#allocation10 + $0x1e4] ss:$16 sps:$4 sm:$0xff]  }
 0x353   :  { %2220 = vmatprep.subr.bf16.mxu1 %v13460_v63  ;;  %2261 = vmatprep.subr.bf16.mxu0 %v13463_v0  ;;  %v13529_v60 = vld [vmem:[#allocation10 + $0x3e4] ss:$16 sps:$4 sm:$0xff]   ;;  %v13524_v63 = vld [vmem:[#allocation10 + $0x1e0] ss:$16 sps:$4 sm:$0xff]  }
 0x354   :  { %v13527_v0 = vld [vmem:[#allocation10 + $0x3e0] ss:$16 sps:$4 sm:$0xff]  }
 0x356   :  { %2221 = vmatpush2.bf16.msra.mxu1 %v13458_v1  ;;  %2262 = vmatpush2.bf16.msra.mxu0 %v13461_v2  ;;  %v13532_v1 = vld [vmem:[#allocation10 + $0x1c4] ss:$16 sps:$4 sm:$0xff]  }
 0x357   :  { %2222 = vmatprep.subr.bf16.mxu1 %v13466_v5  ;;  %2263 = vmatprep.subr.bf16.mxu0 %v13469_v6  ;;  %v13535_v2 = vld [vmem:[#allocation10 + $0x3c4] ss:$16 sps:$4 sm:$0xff]   ;;  %v13530_v5 = vld [vmem:[#allocation10 + $0x1c0] ss:$16 sps:$4 sm:$0xff]  }
 0x358   :  { %v13533_v6 = vld [vmem:[#allocation10 + $0x3c0] ss:$16 sps:$4 sm:$0xff]  }
 0x35a   :  { %2223 = vmatpush2.bf16.msra.mxu1 %v13464_v7  ;;  %2264 = vmatpush2.bf16.msra.mxu0 %v13467_v8  ;;  %v13538_v7 = vld [vmem:[#allocation10 + $0x1a4] ss:$16 sps:$4 sm:$0xff]  }
 0x35b   :  { %2224 = vmatprep.subr.bf16.mxu1 %v13472_v9  ;;  %2265 = vmatprep.subr.bf16.mxu0 %v13475_v10  ;;  %v13541_v8 = vld [vmem:[#allocation10 + $0x3a4] ss:$16 sps:$4 sm:$0xff]  }
 0x35c   :  { %v13544_v9 = vld [vmem:[#allocation10 + $0x184] ss:$16 sps:$4 sm:$0xff]  }
 0x35d   :  { %v13547_v10 = vld [vmem:[#allocation10 + $0x384] ss:$16 sps:$4 sm:$0xff]  }
 0x35e   :  { %2225 = vmatpush2.bf16.msra.mxu1 %v13470_v15  ;;  %2266 = vmatpush2.bf16.msra.mxu0 %v13473_v16  ;;  %v13542_v15 = vld [vmem:[#allocation10 + $0x180] ss:$16 sps:$4 sm:$0xff]  }
 0x35f   :  { %2916 = vmatprep.subr.bf16.mxu1 %v13478_v19  ;;  %2957 = vmatprep.subr.bf16.mxu0 %v13481_v21  ;;  %v13545_v16 = vld [vmem:[#allocation10 + $0x380] ss:$16 sps:$4 sm:$0xff]  }
 0x360   :  { %v13548_v19 = vld [vmem:[#allocation10 + $0x160] ss:$16 sps:$4 sm:$0xff]  }
 0x361   :  { %2227 = vmatmul.mubr.bf16.vlgmr.msra.gmra.mxu1 %v1464_v3  ;;  %2268 = vmatmul.mubr.bf16.vlgmr.msra.gmra.mxu0 %v1466_v4  ;;  %v13491_v3 = vld [vmem:[#allocation10 + $0x2a0] ss:$16 sps:$4 sm:$0xff]   ;;  %v13499_v4 = vld [vmem:[#allocation10 + $0x284] ss:$16 sps:$4 sm:$0xff]  }
 0x362   :  { %2917 = vmatpush1.bf16.msra.mxu1 %v13476_v24  ;;  %2948 = vmatprep.mubr.bf16.mxu1 %v15781_v61  ;;  %v13551_v21 = vld [vmem:[#allocation10 + $0x360] ss:$16 sps:$4 sm:$0xff]   ;;  %v13556_v24 = vld [vmem:[#allocation10 + $0x144] ss:$16 sps:$4 sm:$0xff]  }
 0x363   :  { %2958 = vmatpush1.bf16.msra.mxu0 %v13479_v26  ;;  %2989 = vmatprep.mubr.bf16.mxu0 %v15783_v62  ;;  %v13559_v26 = vld [vmem:[#allocation10 + $0x344] ss:$16 sps:$4 sm:$0xff]  }
 0x364   :  { %2918 = vmatprep.subr.bf16.mxu1 %v13484_v27  ;;  %2959 = vmatprep.subr.bf16.mxu0 %v13487_v30  ;;  %v13554_v27 = vld [vmem:[#allocation10 + $0x140] ss:$16 sps:$4 sm:$0xff]  }
 0x365   :  { %v13557_v30 = vld [vmem:[#allocation10 + $0x340] ss:$16 sps:$4 sm:$0xff]  }
 0x366   :  { %2919 = vmatpush1.bf16.msra.mxu1 %v13482_v31  ;;  %v13562_v31 = vld [vmem:[#allocation10 + $0x124] ss:$16 sps:$4 sm:$0xff]  }
 0x367   :  { %2960 = vmatpush1.bf16.msra.mxu0 %v13485_v32  ;;  %2920 = vmatprep.subr.bf16.mxu1 %v13490_v33  ;;  %v13565_v32 = vld [vmem:[#allocation10 + $0x324] ss:$16 sps:$4 sm:$0xff]   ;;  %v13560_v33 = vld [vmem:[#allocation10 + $0x120] ss:$16 sps:$4 sm:$0xff]  }
 0x368   :  { %2961 = vmatprep.subr.bf16.mxu0 %v13493_v34  ;;  %v13563_v34 = vld [vmem:[#allocation10 + $0x320] ss:$16 sps:$4 sm:$0xff]  }
 0x36a   :  { %2921 = vmatpush1.bf16.msra.mxu1 %v13488_v37  ;;  %v13568_v37 = vld [vmem:[#allocation10 + $0x104] ss:$16 sps:$4 sm:$0xff]  }
 0x36b   :  { %2962 = vmatpush1.bf16.msra.mxu0 %v13491_v3  ;;  %2922 = vmatprep.subr.bf16.mxu1 %v13496_v38  ;;  %v13571_v3 = vld [vmem:[#allocation10 + $0x304] ss:$16 sps:$4 sm:$0xff]   ;;  %v13566_v38 = vld [vmem:[#allocation10 + $0x100] ss:$16 sps:$4 sm:$0xff]  }
 0x36c   :  { %2963 = vmatprep.subr.bf16.mxu0 %v13499_v4  ;;  %v13569_v4 = vld [vmem:[#allocation10 + $0x300] ss:$16 sps:$4 sm:$0xff]  }
 0x36e   :  { %2923 = vmatpush1.bf16.msra.mxu1 %v13494_v39  ;;  %v13574_v39 = vld [vmem:[#allocation10 + $0xec] ss:$16 sps:$4 sm:$0xff]  }
 0x36f   :  { %2964 = vmatpush1.bf16.msra.mxu0 %v13497_v40  ;;  %2924 = vmatprep.subr.bf16.mxu1 %v13502_v41  ;;  %v13577_v40 = vld [vmem:[#allocation10 + $0x2ec] ss:$16 sps:$4 sm:$0xff]   ;;  %v13572_v41 = vld [vmem:[#allocation10 + $0xe8] ss:$16 sps:$4 sm:$0xff]  }
 0x370   :  { %2965 = vmatprep.subr.bf16.mxu0 %v13505_v42  ;;  %v13575_v42 = vld [vmem:[#allocation10 + $0x2e8] ss:$16 sps:$4 sm:$0xff]  }
 0x372   :  { %2925 = vmatpush1.bf16.msra.mxu1 %v13500_v43  ;;  %v13580_v43 = vld [vmem:[#allocation10 + $0xcc] ss:$16 sps:$4 sm:$0xff]  }
 0x373   :  { %2966 = vmatpush1.bf16.msra.mxu0 %v13503_v44  ;;  %2926 = vmatprep.subr.bf16.mxu1 %v13508_v45  ;;  %v13583_v44 = vld [vmem:[#allocation10 + $0x2cc] ss:$16 sps:$4 sm:$0xff]   ;;  %v13578_v45 = vld [vmem:[#allocation10 + $0xc8] ss:$16 sps:$4 sm:$0xff]  }
 0x374   :  { %2967 = vmatprep.subr.bf16.mxu0 %v13511_v46  ;;  %v13581_v46 = vld [vmem:[#allocation10 + $0x2c8] ss:$16 sps:$4 sm:$0xff]  }
 0x376   :  { %2927 = vmatpush1.bf16.msra.mxu1 %v13506_v47  ;;  %v13586_v47 = vld [vmem:[#allocation10 + $0xac] ss:$16 sps:$4 sm:$0xff]  }
 0x377   :  { %2968 = vmatpush1.bf16.msra.mxu0 %v13509_v48  ;;  %2928 = vmatprep.subr.bf16.mxu1 %v13514_v49  ;;  %v13589_v48 = vld [vmem:[#allocation10 + $0x2ac] ss:$16 sps:$4 sm:$0xff]   ;;  %v13584_v49 = vld [vmem:[#allocation10 + $0xa8] ss:$16 sps:$4 sm:$0xff]  }
 0x378   :  { %2969 = vmatprep.subr.bf16.mxu0 %v13517_v50  ;;  %v13587_v50 = vld [vmem:[#allocation10 + $0x2a8] ss:$16 sps:$4 sm:$0xff]  }
 0x37a   :  { %2929 = vmatpush1.bf16.msra.mxu1 %v13512_v51  ;;  %v13592_v51 = vld [vmem:[#allocation10 + $0x8c] ss:$16 sps:$4 sm:$0xff]  }
 0x37b   :  { %2970 = vmatpush1.bf16.msra.mxu0 %v13515_v52  ;;  %2930 = vmatprep.subr.bf16.mxu1 %v13520_v53  ;;  %v13595_v52 = vld [vmem:[#allocation10 + $0x28c] ss:$16 sps:$4 sm:$0xff]   ;;  %v13590_v53 = vld [vmem:[#allocation10 + $0x88] ss:$16 sps:$4 sm:$0xff]  }
 0x37c   :  { %2971 = vmatprep.subr.bf16.mxu0 %v13523_v54  ;;  %v13598_v54 = vld [vmem:[#allocation10 + $0x6c] ss:$16 sps:$4 sm:$0xff]  }
 0x37e   :  { %2931 = vmatpush1.bf16.msra.mxu1 %v13518_v55  ;;  %v13601_v55 = vld [vmem:[#allocation10 + $0x26c] ss:$16 sps:$4 sm:$0xff]  }
 0x37f   :  { %2972 = vmatpush1.bf16.msra.mxu0 %v13521_v56  ;;  %2932 = vmatprep.subr.bf16.mxu1 %v13526_v59  ;;  %v13599_v56 = vld [vmem:[#allocation10 + $0x268] ss:$16 sps:$4 sm:$0xff]   ;;  %v13604_v59 = vld [vmem:[#allocation10 + $0x4c] ss:$16 sps:$4 sm:$0xff]  }
 0x380   :  { %2973 = vmatprep.subr.bf16.mxu0 %v13529_v60  ;;  %v13607_v60 = vld [vmem:[#allocation10 + $0x24c] ss:$16 sps:$4 sm:$0xff]  }
 0x382   :  { %2933 = vmatpush2.bf16.msra.mxu1 %v13524_v63  ;;  %v13602_v63 = vld [vmem:[#allocation10 + $0x48] ss:$16 sps:$4 sm:$0xff]  }
 0x383   :  { %2974 = vmatpush2.bf16.msra.mxu0 %v13527_v0  ;;  %2934 = vmatprep.subr.bf16.mxu1 %v13532_v1  ;;  %v13605_v0 = vld [vmem:[#allocation10 + $0x248] ss:$16 sps:$4 sm:$0xff]   ;;  %v13610_v1 = vld [vmem:[#allocation10 + $0x2c] ss:$16 sps:$4 sm:$0xff]  }
 0x384   :  { %2975 = vmatprep.subr.bf16.mxu0 %v13535_v2  ;;  %v13613_v2 = vld [vmem:[#allocation10 + $0x22c] ss:$16 sps:$4 sm:$0xff]  }
 0x386   :  { %2935 = vmatpush2.bf16.msra.mxu1 %v13530_v5  ;;  %v13608_v5 = vld [vmem:[#allocation10 + $0x28] ss:$16 sps:$4 sm:$0xff]  }
 0x387   :  { %2976 = vmatpush2.bf16.msra.mxu0 %v13533_v6  ;;  %2936 = vmatprep.subr.bf16.mxu1 %v13538_v7  ;;  %v13611_v6 = vld [vmem:[#allocation10 + $0x228] ss:$16 sps:$4 sm:$0xff]   ;;  %v13616_v7 = vld [vmem:[#allocation10 + $0xc] ss:$16 sps:$4 sm:$0xff]  }
 0x388   :  { %2977 = vmatprep.subr.bf16.mxu0 %v13541_v8  ;;  %v13619_v8 = vld [vmem:[#allocation10 + $0x20c] ss:$16 sps:$4 sm:$0xff]  }
 0x38a   :  { %2937 = vmatpush2.bf16.msra.mxu1 %v13536_v11  ;;  %v13614_v11 = vld [vmem:[#allocation10 + $0x8] ss:$16 sps:$4 sm:$0xff]  }
 0x38b   :  { %2978 = vmatpush2.bf16.msra.mxu0 %v13539_v12  ;;  %2938 = vmatprep.subr.bf16.mxu1 %v13544_v9  ;;  %v13617_v12 = vld [vmem:[#allocation10 + $0x208] ss:$16 sps:$4 sm:$0xff]   ;;  %v13622_v9 = vld [vmem:[#allocation10 + $0x1ec] ss:$16 sps:$4 sm:$0xff]  }
 0x38c   :  { %2979 = vmatprep.subr.bf16.mxu0 %v13547_v10  ;;  %v13625_v10 = vld [vmem:[#allocation10 + $0x3ec] ss:$16 sps:$4 sm:$0xff]  }
 0x38e   :  { %2939 = vmatpush2.bf16.msra.mxu1 %v13542_v15  ;;  %v13620_v15 = vld [vmem:[#allocation10 + $0x1e8] ss:$16 sps:$4 sm:$0xff]  }
 0x38f   :  { %2980 = vmatpush2.bf16.msra.mxu0 %v13545_v16  ;;  %2940 = vmatprep.subr.bf16.mxu1 %v13550_v17  ;;  %v13623_v16 = vld [vmem:[#allocation10 + $0x3e8] ss:$16 sps:$4 sm:$0xff]   ;;  %v13628_v17 = vld [vmem:[#allocation10 + $0x1cc] ss:$16 sps:$4 sm:$0xff]  }
 0x390   :  { %2981 = vmatprep.subr.bf16.mxu0 %v13553_v18  ;;  %v13631_v18 = vld [vmem:[#allocation10 + $0x3cc] ss:$16 sps:$4 sm:$0xff]  }
 0x392   :  { %2941 = vmatpush2.bf16.msra.mxu1 %v13548_v19  ;;  %v13626_v19 = vld [vmem:[#allocation10 + $0x1c8] ss:$16 sps:$4 sm:$0xff]  }
 0x393   :  { %2982 = vmatpush2.bf16.msra.mxu0 %v13551_v21  ;;  %2942 = vmatprep.subr.bf16.mxu1 %v13556_v24  ;;  %v13629_v21 = vld [vmem:[#allocation10 + $0x3c8] ss:$16 sps:$4 sm:$0xff]   ;;  %v13634_v24 = vld [vmem:[#allocation10 + $0x1ac] ss:$16 sps:$4 sm:$0xff]  }
 0x394   :  { %2983 = vmatprep.subr.bf16.mxu0 %v13559_v26  ;;  %v13637_v26 = vld [vmem:[#allocation10 + $0x3ac] ss:$16 sps:$4 sm:$0xff]  }
 0x396   :  { %2943 = vmatpush2.bf16.msra.mxu1 %v13554_v27  ;;  %v13632_v27 = vld [vmem:[#allocation10 + $0x1a8] ss:$16 sps:$4 sm:$0xff]  }
 0x397   :  { %2984 = vmatpush2.bf16.msra.mxu0 %v13557_v30  ;;  %2944 = vmatprep.subr.bf16.mxu1 %v13562_v31  ;;  %v13635_v30 = vld [vmem:[#allocation10 + $0x3a8] ss:$16 sps:$4 sm:$0xff]   ;;  %v13640_v31 = vld [vmem:[#allocation10 + $0x18c] ss:$16 sps:$4 sm:$0xff]  }
 0x398   :  { %2985 = vmatprep.subr.bf16.mxu0 %v13565_v32  ;;  %v13643_v32 = vld [vmem:[#allocation10 + $0x38c] ss:$16 sps:$4 sm:$0xff]  }
 0x39a   :  { %2945 = vmatpush2.bf16.msra.mxu1 %v13560_v33  ;;  %v13638_v33 = vld [vmem:[#allocation10 + $0x188] ss:$16 sps:$4 sm:$0xff]  }
 0x39b   :  { %2986 = vmatpush2.bf16.msra.mxu0 %v13563_v34  ;;  %2946 = vmatprep.subr.bf16.mxu1 %v13568_v37  ;;  %v13641_v34 = vld [vmem:[#allocation10 + $0x388] ss:$16 sps:$4 sm:$0xff]   ;;  %v13646_v37 = vld [vmem:[#allocation10 + $0x16c] ss:$16 sps:$4 sm:$0xff]  }
 0x39c   :  { %2987 = vmatprep.subr.bf16.mxu0 %v13571_v3  ;;  %v13649_v3 = vld [vmem:[#allocation10 + $0x36c] ss:$16 sps:$4 sm:$0xff]  }
 0x39e   :  { %2947 = vmatpush2.bf16.msra.mxu1 %v13566_v38  ;;  %v13644_v38 = vld [vmem:[#allocation10 + $0x168] ss:$16 sps:$4 sm:$0xff]  }
 0x39f   :  { %2988 = vmatpush2.bf16.msra.mxu0 %v13569_v4  ;;  %2998 = vmatprep.subr.bf16.mxu1 %v13574_v39  ;;  %v13647_v4 = vld [vmem:[#allocation10 + $0x368] ss:$16 sps:$4 sm:$0xff]   ;;  %v13652_v39 = vld [vmem:[#allocation10 + $0x14c] ss:$16 sps:$4 sm:$0xff]  }
 0x3a0   :  { %3039 = vmatprep.subr.bf16.mxu0 %v13577_v40  ;;  %v13655_v40 = vld [vmem:[#allocation10 + $0x34c] ss:$16 sps:$4 sm:$0xff]  }
 0x3a1   :  { %2949 = vmatmul.mubr.bf16.vlgmr.msra.gmra.mxu1 %v15777_v57 }
 0x3a2   :  { %2990 = vmatmul.mubr.bf16.vlgmr.msra.gmra.mxu0 %v15779_v58  ;;  %2999 = vmatpush1.bf16.msra.mxu1 %v13572_v41  ;;  %v13650_v41 = vld [vmem:[#allocation10 + $0x148] ss:$16 sps:$4 sm:$0xff]  }
 0x3a3   :  { %3030 = vmatprep.mubr.bf16.mxu1 %v15781_v61  ;;  %3040 = vmatpush1.bf16.msra.mxu0 %v13575_v42  ;;  %v13593_v61 = vld [vmem:[#allocation10 + $0x288] ss:$16 sps:$4 sm:$0xff]  }
 0x3a4   :  { %3071 = vmatprep.mubr.bf16.mxu0 %v15783_v62  ;;  %3000 = vmatprep.subr.bf16.mxu1 %v13580_v43  ;;  %v13596_v62 = vld [vmem:[#allocation10 + $0x68] ss:$16 sps:$4 sm:$0xff]   ;;  %v13658_v43 = vld [vmem:[#allocation10 + $0x12c] ss:$16 sps:$4 sm:$0xff]  }
 0x3a5   :  { %3041 = vmatprep.subr.bf16.mxu0 %v13583_v44  ;;  %v13653_v42 = vld [vmem:[#allocation10 + $0x348] ss:$16 sps:$4 sm:$0xff]   ;;  %v13661_v44 = vld [vmem:[#allocation10 + $0x32c] ss:$16 sps:$4 sm:$0xff]  }
 0x3a6   :  { %3001 = vmatpush1.bf16.msra.mxu1 %v13578_v45  ;;  %v13656_v45 = vld [vmem:[#allocation10 + $0x128] ss:$16 sps:$4 sm:$0xff]  }
 0x3a7   :  { %3042 = vmatpush1.bf16.msra.mxu0 %v13581_v46  ;;  %3002 = vmatprep.subr.bf16.mxu1 %v13586_v47  ;;  %v13659_v46 = vld [vmem:[#allocation10 + $0x328] ss:$16 sps:$4 sm:$0xff]   ;;  %v13664_v47 = vld [vmem:[#allocation10 + $0x10c] ss:$16 sps:$4 sm:$0xff]  }
 0x3a8   :  { %3043 = vmatprep.subr.bf16.mxu0 %v13589_v48  ;;  %v13667_v48 = vld [vmem:[#allocation10 + $0x30c] ss:$16 sps:$4 sm:$0xff]  }
 0x3aa   :  { %3003 = vmatpush1.bf16.msra.mxu1 %v13584_v49  ;;  %v13662_v49 = vld [vmem:[#allocation10 + $0x108] ss:$16 sps:$4 sm:$0xff]  }
 0x3ab   :  { %3044 = vmatpush1.bf16.msra.mxu0 %v13587_v50  ;;  %3004 = vmatprep.subr.bf16.mxu1 %v13592_v51  ;;  %v13665_v50 = vld [vmem:[#allocation10 + $0x308] ss:$16 sps:$4 sm:$0xff]   ;;  %v13670_v51 = vld [vmem:[#allocation10 + $0x8e4] ss:$16 sps:$4 sm:$0xff]  }
 0x3ac   :  { %3045 = vmatprep.subr.bf16.mxu0 %v13595_v52  ;;  %v13673_v52 = vld [vmem:[#allocation10 + $0xae4] ss:$16 sps:$4 sm:$0xff]  }
 0x3ae   :  { %3005 = vmatpush1.bf16.msra.mxu1 %v13590_v53  ;;  %v1139_v53 = vpop.f32.mrf.mxu1 }
 0x3af   :  { %3046 = vmatpush1.bf16.msra.mxu0 %v13593_v61  ;;  %3006 = vmatprep.subr.bf16.mxu1 %v13598_v54  ;;  %v13668_v61 = vld [vmem:[#allocation10 + $0x8e0] ss:$16 sps:$4 sm:$0xff]   ;;  %v1192_v54 = vpop.f32.mrf.mxu0 }
 0x3b0   :  { %3047 = vmatprep.subr.bf16.mxu0 %v13601_v55  ;;  %v13671_v55 = vld [vmem:[#allocation10 + $0xae0] ss:$16 sps:$4 sm:$0xff]  }
 0x3b2   :  { %3007 = vmatpush1.bf16.msra.mxu1 %v13596_v62  ;;  %v13676_v62 = vld [vmem:[#allocation10 + $0x8c4] ss:$16 sps:$4 sm:$0xff]  }
 0x3b3   :  { %3048 = vmatpush1.bf16.msra.mxu0 %v13599_v56  ;;  %3008 = vmatprep.subr.bf16.mxu1 %v13604_v59  ;;  %v15812_v56 = vpack.c.bf16 %v1139_v53, %v15793_v13  ;;  %v13736_v53 = vld [vmem:[#allocation10 + $0x984] ss:$16 sps:$4 sm:$0xff]  }
 0x3b4   :  { %3049 = vmatprep.subr.bf16.mxu0 %v13607_v60 }
 0x3b6   :  { %3009 = vmatpush1.bf16.msra.mxu1 %v13602_v63  ;;  %v13679_v63 = vld [vmem:[#allocation10 + $0xac4] ss:$16 sps:$4 sm:$0xff]  }
 0x3b7   :  { %3050 = vmatpush1.bf16.msra.mxu0 %v13605_v0  ;;  %3010 = vmatprep.subr.bf16.mxu1 %v13610_v1  ;;  %v15816_v0 = vpack.c.bf16 %v1192_v54, %v15795_v14  ;;  %v13685_v14 = vld [vmem:[#allocation10 + $0xaa4] ss:$16 sps:$4 sm:$0xff]   ;;  %v13734_v54 = vld [vmem:[#allocation10 + $0x980] ss:$16 sps:$4 sm:$0xff]  }
 0x3b8   :  { %3051 = vmatprep.subr.bf16.mxu0 %v13613_v2  ;;  %v13674_v2 = vld [vmem:[#allocation10 + $0x8c0] ss:$16 sps:$4 sm:$0xff]  }
 0x3ba   :  { %3011 = vmatpush1.bf16.msra.mxu1 %v13608_v5 }
 0x3bb   :  { %3052 = vmatpush1.bf16.msra.mxu0 %v13611_v6  ;;  %3012 = vmatprep.subr.bf16.mxu1 %v13616_v7  ;;  %v13677_v6 = vld [vmem:[#allocation10 + $0xac0] ss:$16 sps:$4 sm:$0xff]   ;;  %v13682_v7 = vld [vmem:[#allocation10 + $0x8a4] ss:$16 sps:$4 sm:$0xff]  }
 0x3bc   :  { %3053 = vmatprep.subr.bf16.mxu0 %v13619_v8 }
 0x3be   :  { %3013 = vmatpush1.bf16.msra.mxu1 %v13614_v11  ;;  %v13680_v11 = vld [vmem:[#allocation10 + $0x8a0] ss:$16 sps:$4 sm:$0xff]  }
 0x3bf   :  { %3054 = vmatpush1.bf16.msra.mxu0 %v13617_v12  ;;  %3014 = vmatprep.subr.bf16.mxu1 %v13622_v9 }
 0x3c0   :  { %3055 = vmatprep.subr.bf16.mxu0 %v13625_v10  ;;  %v13683_v10 = vld [vmem:[#allocation10 + $0xaa0] ss:$16 sps:$4 sm:$0xff]  }
 0x3c2   :  { %3015 = vmatpush2.bf16.msra.mxu1 %v13620_v15  ;;  %v13688_v15 = vld [vmem:[#allocation10 + $0x884] ss:$16 sps:$4 sm:$0xff]  }
 0x3c3   :  { %3056 = vmatpush2.bf16.msra.mxu0 %v13623_v16  ;;  %3016 = vmatprep.subr.bf16.mxu1 %v13628_v17  ;;  %v13691_v16 = vld [vmem:[#allocation10 + $0xa84] ss:$16 sps:$4 sm:$0xff]   ;;  %v13686_v17 = vld [vmem:[#allocation10 + $0x880] ss:$16 sps:$4 sm:$0xff]  }
 0x3c4   :  { %3057 = vmatprep.subr.bf16.mxu0 %v13631_v18  ;;  %v13689_v18 = vld [vmem:[#allocation10 + $0xa80] ss:$16 sps:$4 sm:$0xff]  }
 0x3c6   :  { %3017 = vmatpush2.bf16.msra.mxu1 %v13626_v19  ;;  %v13694_v19 = vld [vmem:[#allocation10 + $0x864] ss:$16 sps:$4 sm:$0xff]  }
 0x3c7   :  { %3058 = vmatpush2.bf16.msra.mxu0 %v13629_v21  ;;  %3018 = vmatprep.subr.bf16.mxu1 %v13634_v24  ;;  %v13697_v21 = vld [vmem:[#allocation10 + $0xa64] ss:$16 sps:$4 sm:$0xff]   ;;  %v13692_v24 = vld [vmem:[#allocation10 + $0x860] ss:$16 sps:$4 sm:$0xff]  }
 0x3c8   :  { %3059 = vmatprep.subr.bf16.mxu0 %v13637_v26  ;;  %v13695_v26 = vld [vmem:[#allocation10 + $0xa60] ss:$16 sps:$4 sm:$0xff]  }
 0x3ca   :  { %3019 = vmatpush2.bf16.msra.mxu1 %v13632_v27  ;;  %v13700_v27 = vld [vmem:[#allocation10 + $0x844] ss:$16 sps:$4 sm:$0xff]  }
 0x3cb   :  { %3060 = vmatpush2.bf16.msra.mxu0 %v13635_v30  ;;  %3020 = vmatprep.subr.bf16.mxu1 %v13640_v31  ;;  %v13703_v30 = vld [vmem:[#allocation10 + $0xa44] ss:$16 sps:$4 sm:$0xff]   ;;  %v13698_v31 = vld [vmem:[#allocation10 + $0x840] ss:$16 sps:$4 sm:$0xff]  }
 0x3cc   :  { %3061 = vmatprep.subr.bf16.mxu0 %v13643_v32  ;;  %v13701_v32 = vld [vmem:[#allocation10 + $0xa40] ss:$16 sps:$4 sm:$0xff]  }
 0x3ce   :  { %3021 = vmatpush2.bf16.msra.mxu1 %v13638_v33  ;;  %v13706_v33 = vld [vmem:[#allocation10 + $0x824] ss:$16 sps:$4 sm:$0xff]  }
 0x3cf   :  { %3062 = vmatpush2.bf16.msra.mxu0 %v13641_v34  ;;  %3022 = vmatprep.subr.bf16.mxu1 %v13646_v37  ;;  %v13709_v34 = vld [vmem:[#allocation10 + $0xa24] ss:$16 sps:$4 sm:$0xff]   ;;  %v13704_v37 = vld [vmem:[#allocation10 + $0x820] ss:$16 sps:$4 sm:$0xff]  }
 0x3d0   :  { %3063 = vmatprep.subr.bf16.mxu0 %v13649_v3  ;;  %v13707_v3 = vld [vmem:[#allocation10 + $0xa20] ss:$16 sps:$4 sm:$0xff]  }
 0x3d2   :  { %3023 = vmatpush2.bf16.msra.mxu1 %v13644_v38  ;;  %v13712_v38 = vld [vmem:[#allocation10 + $0x804] ss:$16 sps:$4 sm:$0xff]  }
 0x3d3   :  { %3064 = vmatpush2.bf16.msra.mxu0 %v13647_v4  ;;  %3024 = vmatprep.subr.bf16.mxu1 %v13652_v39  ;;  %v13715_v4 = vld [vmem:[#allocation10 + $0xa04] ss:$16 sps:$4 sm:$0xff]   ;;  %v13710_v39 = vld [vmem:[#allocation10 + $0x800] ss:$16 sps:$4 sm:$0xff]  }
 0x3d4   :  { %3065 = vmatprep.subr.bf16.mxu0 %v13655_v40  ;;  %v13713_v40 = vld [vmem:[#allocation10 + $0xa00] ss:$16 sps:$4 sm:$0xff]  }
 0x3d6   :  { %3025 = vmatpush2.bf16.msra.mxu1 %v13650_v41  ;;  %v13718_v41 = vld [vmem:[#allocation10 + $0x9e4] ss:$16 sps:$4 sm:$0xff]  }
 0x3d7   :  { %3066 = vmatpush2.bf16.msra.mxu0 %v13653_v42  ;;  %3026 = vmatprep.subr.bf16.mxu1 %v13658_v43  ;;  %v13721_v42 = vld [vmem:[#allocation10 + $0xbe4] ss:$16 sps:$4 sm:$0xff]   ;;  %v13716_v43 = vld [vmem:[#allocation10 + $0x9e0] ss:$16 sps:$4 sm:$0xff]  }
 0x3d8   :  { %3067 = vmatprep.subr.bf16.mxu0 %v13661_v44  ;;  %v13719_v44 = vld [vmem:[#allocation10 + $0xbe0] ss:$16 sps:$4 sm:$0xff]  }
 0x3da   :  { %3027 = vmatpush2.bf16.msra.mxu1 %v13656_v45  ;;  %v13724_v45 = vld [vmem:[#allocation10 + $0x9c4] ss:$16 sps:$4 sm:$0xff]  }
 0x3db   :  { %3068 = vmatpush2.bf16.msra.mxu0 %v13659_v46  ;;  %3028 = vmatprep.subr.bf16.mxu1 %v13664_v47  ;;  %v13727_v46 = vld [vmem:[#allocation10 + $0xbc4] ss:$16 sps:$4 sm:$0xff]   ;;  %v13722_v47 = vld [vmem:[#allocation10 + $0x9c0] ss:$16 sps:$4 sm:$0xff]  }
 0x3dc   :  { %3069 = vmatprep.subr.bf16.mxu0 %v13667_v48  ;;  %v13725_v48 = vld [vmem:[#allocation10 + $0xbc0] ss:$16 sps:$4 sm:$0xff]  }
 0x3de   :  { %3029 = vmatpush2.bf16.msra.mxu1 %v13662_v49  ;;  %v13730_v49 = vld [vmem:[#allocation10 + $0x9a4] ss:$16 sps:$4 sm:$0xff]  }
 0x3df   :  { %3070 = vmatpush2.bf16.msra.mxu0 %v13665_v50  ;;  %3849 = vmatprep.subr.bf16.mxu1 %v13670_v51  ;;  %v13733_v50 = vld [vmem:[#allocation10 + $0xba4] ss:$16 sps:$4 sm:$0xff]   ;;  %v13728_v51 = vld [vmem:[#allocation10 + $0x9a0] ss:$16 sps:$4 sm:$0xff]  }
 0x3e0   :  { %3890 = vmatprep.subr.bf16.mxu0 %v13673_v52  ;;  %v13731_v52 = vld [vmem:[#allocation10 + $0xba0] ss:$16 sps:$4 sm:$0xff]  }
 0x3e1   :  { %3031 = vmatmul.mubr.bf16.vlgmr.msra.gmra.mxu1 %v15777_v57  ;;  %v2146_v59 = vpop.f32.mrf.mxu1  ;;  %v2187_v60 = vpop.f32.mrf.mxu0 }
 0x3e2   :  { %3072 = vmatmul.mubr.bf16.vlgmr.msra.gmra.mxu0 %v15779_v58  ;;  %v15819_v1 = vadd.f32 %v2187_v60, %v2146_v59  ;;  %3850 = vmatpush1.bf16.msra.mxu1 %v13668_v61  ;;  %v13739_v61 = vld [vmem:[#allocation10 + $0xb84] ss:$16 sps:$4 sm:$0xff]   ;;  %v13740_v60 = vld [vmem:[#allocation10 + $0x960] ss:$16 sps:$4 sm:$0xff]  }
 0x3e3   :  { %3881 = vmatprep.mubr.bf16.mxu1 %v15812_v56  ;;  %3891 = vmatpush1.bf16.msra.mxu0 %v13671_v55  ;;  %v2148_v5 = vpop.f32.mrf.mxu1  ;;  %v2189_v13 = vpop.f32.mrf.mxu0  ;;  %v13737_v55 = vld [vmem:[#allocation10 + $0xb80] ss:$16 sps:$4 sm:$0xff]   ;;  %v13745_v59 = vld [vmem:[#allocation10 + $0xb64] ss:$16 sps:$4 sm:$0xff]  }
 0x3e4   :  { %3922 = vmatprep.mubr.bf16.mxu0 %v15816_v0  ;;  %v15823_v57 = vadd.f32 %v2189_v13, %v2148_v5  ;;  %3851 = vmatprep.subr.bf16.mxu1 %v13676_v62  ;;  %v13742_v62 = vld [vmem:[#allocation10 + $0x964] ss:$16 sps:$4 sm:$0xff]   ;;  %v13746_v13 = vld [vmem:[#allocation10 + $0x940] ss:$16 sps:$4 sm:$0xff]  }
 0x3e5   :  { %3892 = vmatprep.subr.bf16.mxu0 %v13679_v63  ;;  %v2150_v8 = vpop.f32.mrf.mxu1  ;;  %v2191_v58 = vpop.f32.mrf.mxu0  ;;  %v13743_v63 = vld [vmem:[#allocation10 + $0xb60] ss:$16 sps:$4 sm:$0xff]   ;;  %v13751_v5 = vld [vmem:[#allocation10 + $0xb44] ss:$16 sps:$4 sm:$0xff]  }
 0x3e6   :  { %3852 = vmatpush1.bf16.msra.mxu1 %v13674_v2  ;;  %v13748_v2 = vld [vmem:[#allocation10 + $0x944] ss:$16 sps:$4 sm:$0xff]   ;;  %v13752_v8 = vld [vmem:[#allocation10 + $0x920] ss:$16 sps:$4 sm:$0xff]  }
 0x3e7   :  { %3893 = vmatpush1.bf16.msra.mxu0 %v13677_v6  ;;  %v2151_v12 = vpop.f32.mrf.mxu1  ;;  %v2192_v9 = vpop.f32.mrf.mxu0  ;;  %3853 = vmatprep.subr.bf16.mxu1 %v13682_v7  ;;  %v13749_v6 = vld [vmem:[#allocation10 + $0xb40] ss:$16 sps:$4 sm:$0xff]   ;;  %v13754_v7 = vld [vmem:[#allocation10 + $0x924] ss:$16 sps:$4 sm:$0xff]  }
 0x3e8   :  { %3894 = vmatprep.subr.bf16.mxu0 %v13685_v14  ;;  %v13757_v14 = vld [vmem:[#allocation10 + $0xb24] ss:$16 sps:$4 sm:$0xff]   ;;  %v13755_v58 = vld [vmem:[#allocation10 + $0xb20] ss:$16 sps:$4 sm:$0xff]  }
 0x3e9   :  { %v13763_v12 = vld [vmem:[#allocation10 + $0xb04] ss:$16 sps:$4 sm:$0xff]   ;;  %v13758_v9 = vld [vmem:[#allocation10 + $0x900] ss:$16 sps:$4 sm:$0xff]  }
 0x3ea   :  { %3854 = vmatpush1.bf16.msra.mxu1 %v13680_v11  ;;  %v13760_v11 = vld [vmem:[#allocation10 + $0x904] ss:$16 sps:$4 sm:$0xff]  }
 0x3eb   :  { %3895 = vmatpush1.bf16.msra.mxu0 %v13683_v10  ;;  %3855 = vmatprep.subr.bf16.mxu1 %v13688_v15  ;;  %v13761_v10 = vld [vmem:[#allocation10 + $0xb00] ss:$16 sps:$4 sm:$0xff]   ;;  %v13766_v15 = vld [vmem:[#allocation10 + $0x8ec] ss:$16 sps:$4 sm:$0xff]  }
 0x3ec   :  { %3896 = vmatprep.subr.bf16.mxu0 %v13691_v16  ;;  %v13769_v16 = vld [vmem:[#allocation10 + $0xaec] ss:$16 sps:$4 sm:$0xff]  }
 0x3ee   :  { %3856 = vmatpush1.bf16.msra.mxu1 %v13686_v17  ;;  %v13764_v17 = vld [vmem:[#allocation10 + $0x8e8] ss:$16 sps:$4 sm:$0xff]  }
 0x3ef   :  { %3897 = vmatpush1.bf16.msra.mxu0 %v13689_v18  ;;  %3857 = vmatprep.subr.bf16.mxu1 %v13694_v19  ;;  %v13767_v18 = vld [vmem:[#allocation10 + $0xae8] ss:$16 sps:$4 sm:$0xff]   ;;  %v13772_v19 = vld [vmem:[#allocation10 + $0x8cc] ss:$16 sps:$4 sm:$0xff]  }
 0x3f0   :  { %3898 = vmatprep.subr.bf16.mxu0 %v13697_v21 }
 0x3f2   :  { %3858 = vmatpush1.bf16.msra.mxu1 %v13692_v24 }
 0x3f3   :  { %3899 = vmatpush1.bf16.msra.mxu0 %v13695_v26  ;;  %3859 = vmatprep.subr.bf16.mxu1 %v13700_v27  ;;  %v13775_v26 = vld [vmem:[#allocation10 + $0xacc] ss:$16 sps:$4 sm:$0xff]  }
 0x3f4   :  { %3900 = vmatprep.subr.bf16.mxu0 %v13703_v30  ;;  %v13770_v30 = vld [vmem:[#allocation10 + $0x8c8] ss:$16 sps:$4 sm:$0xff]  }
 0x3f6   :  { %3860 = vmatpush1.bf16.msra.mxu1 %v13698_v31 }
 0x3f7   :  { %3901 = vmatpush1.bf16.msra.mxu0 %v13701_v32  ;;  %3861 = vmatprep.subr.bf16.mxu1 %v13706_v33  ;;  %v13773_v33 = vld [vmem:[#allocation10 + $0xac8] ss:$16 sps:$4 sm:$0xff]  }
 0x3f8   :  { %3902 = vmatprep.subr.bf16.mxu0 %v13709_v34  ;;  %v13778_v34 = vld [vmem:[#allocation10 + $0x8ac] ss:$16 sps:$4 sm:$0xff]  }
 0x3fa   :  { %3862 = vmatpush1.bf16.msra.mxu1 %v13704_v37 }
 0x3fb   :  { %3903 = vmatpush1.bf16.msra.mxu0 %v13707_v3  ;;  %3863 = vmatprep.subr.bf16.mxu1 %v13712_v38  ;;  %v13781_v3 = vld [vmem:[#allocation10 + $0xaac] ss:$16 sps:$4 sm:$0xff]  }
 0x3fc   :  { %3904 = vmatprep.subr.bf16.mxu0 %v13715_v4 }
 0x3fe   :  { %3864 = vmatpush1.bf16.msra.mxu1 %v13710_v39  ;;  %v13776_v39 = vld [vmem:[#allocation10 + $0x8a8] ss:$16 sps:$4 sm:$0xff]  }
 0x3ff   :  { %3905 = vmatpush1.bf16.msra.mxu0 %v13713_v40  ;;  %3865 = vmatprep.subr.bf16.mxu1 %v13718_v41 }
 0x400   :  { %3906 = vmatprep.subr.bf16.mxu0 %v13721_v42  ;;  %v13779_v42 = vld [vmem:[#allocation10 + $0xaa8] ss:$16 sps:$4 sm:$0xff]  }
 0x402   :  { %3866 = vmatpush2.bf16.msra.mxu1 %v13716_v43  ;;  %v13784_v43 = vld [vmem:[#allocation10 + $0x88c] ss:$16 sps:$4 sm:$0xff]  }
 0x403   :  { %3907 = vmatpush2.bf16.msra.mxu0 %v13719_v44  ;;  %3867 = vmatprep.subr.bf16.mxu1 %v13724_v45  ;;  %v13787_v44 = vld [vmem:[#allocation10 + $0xa8c] ss:$16 sps:$4 sm:$0xff]   ;;  %v13782_v45 = vld [vmem:[#allocation10 + $0x888] ss:$16 sps:$4 sm:$0xff]  }
 0x404   :  { %3908 = vmatprep.subr.bf16.mxu0 %v13727_v46  ;;  %v13785_v46 = vld [vmem:[#allocation10 + $0xa88] ss:$16 sps:$4 sm:$0xff]  }
 0x406   :  { %3868 = vmatpush2.bf16.msra.mxu1 %v13722_v47  ;;  %v13790_v47 = vld [vmem:[#allocation10 + $0x86c] ss:$16 sps:$4 sm:$0xff]  }
 0x407   :  { %3909 = vmatpush2.bf16.msra.mxu0 %v13725_v48  ;;  %3869 = vmatprep.subr.bf16.mxu1 %v13730_v49  ;;  %v13793_v48 = vld [vmem:[#allocation10 + $0xa6c] ss:$16 sps:$4 sm:$0xff]   ;;  %v13788_v49 = vld [vmem:[#allocation10 + $0x868] ss:$16 sps:$4 sm:$0xff]  }
 0x408   :  { %3910 = vmatprep.subr.bf16.mxu0 %v13733_v50  ;;  %v13791_v50 = vld [vmem:[#allocation10 + $0xa68] ss:$16 sps:$4 sm:$0xff]  }
 0x40a   :  { %3870 = vmatpush2.bf16.msra.mxu1 %v13728_v51  ;;  %v13796_v51 = vld [vmem:[#allocation10 + $0x84c] ss:$16 sps:$4 sm:$0xff]  }
 0x40b   :  { %3911 = vmatpush2.bf16.msra.mxu0 %v13731_v52  ;;  %3871 = vmatprep.subr.bf16.mxu1 %v13736_v53  ;;  %v13799_v52 = vld [vmem:[#allocation10 + $0xa4c] ss:$16 sps:$4 sm:$0xff]   ;;  %v13794_v53 = vld [vmem:[#allocation10 + $0x848] ss:$16 sps:$4 sm:$0xff]  }
 0x40c   :  { %3912 = vmatprep.subr.bf16.mxu0 %v13739_v61  ;;  %v13797_v61 = vld [vmem:[#allocation10 + $0xa48] ss:$16 sps:$4 sm:$0xff]  }
 0x40e   :  { %3872 = vmatpush2.bf16.msra.mxu1 %v13734_v54  ;;  %v13802_v54 = vld [vmem:[#allocation10 + $0x82c] ss:$16 sps:$4 sm:$0xff]  }
 0x40f   :  { %3913 = vmatpush2.bf16.msra.mxu0 %v13737_v55  ;;  %3873 = vmatprep.subr.bf16.mxu1 %v13742_v62  ;;  %v13805_v55 = vld [vmem:[#allocation10 + $0xa2c] ss:$16 sps:$4 sm:$0xff]   ;;  %v13800_v62 = vld [vmem:[#allocation10 + $0x828] ss:$16 sps:$4 sm:$0xff]  }
 0x410   :  { %3914 = vmatprep.subr.bf16.mxu0 %v13745_v59  ;;  %v13803_v59 = vld [vmem:[#allocation10 + $0xa28] ss:$16 sps:$4 sm:$0xff]  }
 0x412   :  { %3874 = vmatpush2.bf16.msra.mxu1 %v13740_v60  ;;  %v13808_v60 = vld [vmem:[#allocation10 + $0x80c] ss:$16 sps:$4 sm:$0xff]  }
 0x413   :  { %3915 = vmatpush2.bf16.msra.mxu0 %v13743_v63  ;;  %3875 = vmatprep.subr.bf16.mxu1 %v13748_v2  ;;  %v13811_v63 = vld [vmem:[#allocation10 + $0xa0c] ss:$16 sps:$4 sm:$0xff]   ;;  %v13806_v2 = vld [vmem:[#allocation10 + $0x808] ss:$16 sps:$4 sm:$0xff]  }
 0x414   :  { %3916 = vmatprep.subr.bf16.mxu0 %v13751_v5  ;;  %v13809_v5 = vld [vmem:[#allocation10 + $0xa08] ss:$16 sps:$4 sm:$0xff]  }
 0x416   :  { %3876 = vmatpush2.bf16.msra.mxu1 %v13746_v13  ;;  %v13814_v13 = vld [vmem:[#allocation10 + $0x9ec] ss:$16 sps:$4 sm:$0xff]  }
 0x417   :  { %3917 = vmatpush2.bf16.msra.mxu0 %v13749_v6  ;;  %3877 = vmatprep.subr.bf16.mxu1 %v13754_v7  ;;  %v13817_v6 = vld [vmem:[#allocation10 + $0xbec] ss:$16 sps:$4 sm:$0xff]   ;;  %v13812_v7 = vld [vmem:[#allocation10 + $0x9e8] ss:$16 sps:$4 sm:$0xff]  }
 0x418   :  { %3918 = vmatprep.subr.bf16.mxu0 %v13757_v14  ;;  %v13815_v14 = vld [vmem:[#allocation10 + $0xbe8] ss:$16 sps:$4 sm:$0xff]  }
 0x41a   :  { %3878 = vmatpush2.bf16.msra.mxu1 %v13752_v8  ;;  %v13820_v8 = vld [vmem:[#allocation10 + $0x9cc] ss:$16 sps:$4 sm:$0xff]  }
 0x41b   :  { %3919 = vmatpush2.bf16.msra.mxu0 %v13755_v58  ;;  %3879 = vmatprep.subr.bf16.mxu1 %v13760_v11  ;;  %v13823_v58 = vld [vmem:[#allocation10 + $0xbcc] ss:$16 sps:$4 sm:$0xff]   ;;  %v13818_v11 = vld [vmem:[#allocation10 + $0x9c8] ss:$16 sps:$4 sm:$0xff]  }
 0x41c   :  { %3920 = vmatprep.subr.bf16.mxu0 %v13763_v12  ;;  %v13821_v12 = vld [vmem:[#allocation10 + $0xbc8] ss:$16 sps:$4 sm:$0xff]  }
 0x41e   :  { %3880 = vmatpush2.bf16.msra.mxu1 %v13758_v9  ;;  %v13826_v9 = vld [vmem:[#allocation10 + $0x9ac] ss:$16 sps:$4 sm:$0xff]  }
 0x41f   :  { %3921 = vmatpush2.bf16.msra.mxu0 %v13761_v10  ;;  %3931 = vmatprep.subr.bf16.mxu1 %v13766_v15  ;;  %v13829_v10 = vld [vmem:[#allocation10 + $0xbac] ss:$16 sps:$4 sm:$0xff]   ;;  %v13824_v15 = vld [vmem:[#allocation10 + $0x9a8] ss:$16 sps:$4 sm:$0xff]  }
 0x420   :  { %3972 = vmatprep.subr.bf16.mxu0 %v13769_v16  ;;  %v13827_v16 = vld [vmem:[#allocation10 + $0xba8] ss:$16 sps:$4 sm:$0xff]  }
 0x421   :  { %v2228_v21 = vpop.f32.mrf.mxu1  ;;  %v2269_v24 = vpop.f32.mrf.mxu0  ;;  %3882 = vmatmul.mubr.bf16.vlgmr.msra.gmra.mxu1 %v15797_v22 }
 0x422   :  { %v15826_v27 = vadd.f32 %v2269_v24, %v2228_v21  ;;  %3923 = vmatmul.mubr.bf16.vlgmr.msra.gmra.mxu0 %v15799_v23  ;;  %3932 = vmatpush1.bf16.msra.mxu1 %v13764_v17  ;;  %v13832_v17 = vld [vmem:[#allocation10 + $0x98c] ss:$16 sps:$4 sm:$0xff]   ;;  %v13833_v21 = vld [vmem:[#allocation10 + $0xb88] ss:$16 sps:$4 sm:$0xff]  }
 0x423   :  { %3963 = vmatprep.mubr.bf16.mxu1 %v15812_v56  ;;  %3973 = vmatpush1.bf16.msra.mxu0 %v13767_v18  ;;  %v2230_v31 = vpop.f32.mrf.mxu1  ;;  %v2271_v32 = vpop.f32.mrf.mxu0  ;;  %v13835_v18 = vld [vmem:[#allocation10 + $0xb8c] ss:$16 sps:$4 sm:$0xff]  }
 0x424   :  { %4004 = vmatprep.mubr.bf16.mxu0 %v15816_v0  ;;  %v15831_v37 = vadd.f32 %v2271_v32, %v2230_v31  ;;  %3933 = vmatprep.subr.bf16.mxu1 %v13772_v19  ;;  %v13830_v19 = vld [vmem:[#allocation10 + $0x988] ss:$16 sps:$4 sm:$0xff]   ;;  %v13838_v24 = vld [vmem:[#allocation10 + $0x96c] ss:$16 sps:$4 sm:$0xff]  }
 0x425   :  { %v2232_v38 = vpop.f32.mrf.mxu1  ;;  %v2273_v4 = vpop.f32.mrf.mxu0  ;;  %3974 = vmatprep.subr.bf16.mxu0 %v13775_v26  ;;  %v13841_v26 = vld [vmem:[#allocation10 + $0xb6c] ss:$16 sps:$4 sm:$0xff]   ;;  %v13839_v31 = vld [vmem:[#allocation10 + $0xb68] ss:$16 sps:$4 sm:$0xff]  }
 0x426   :  { %3934 = vmatpush1.bf16.msra.mxu1 %v13770_v30  ;;  %v13836_v30 = vld [vmem:[#allocation10 + $0x968] ss:$16 sps:$4 sm:$0xff]   ;;  %v13844_v32 = vld [vmem:[#allocation10 + $0x94c] ss:$16 sps:$4 sm:$0xff]  }
 0x427   :  { %3975 = vmatpush1.bf16.msra.mxu0 %v13773_v33  ;;  %v2233_v40 = vpop.f32.mrf.mxu1  ;;  %v2274_v41 = vpop.f32.mrf.mxu0  ;;  %3935 = vmatprep.subr.bf16.mxu1 %v13778_v34  ;;  %v13847_v33 = vld [vmem:[#allocation10 + $0xb4c] ss:$16 sps:$4 sm:$0xff]   ;;  %v13842_v34 = vld [vmem:[#allocation10 + $0x948] ss:$16 sps:$4 sm:$0xff]  }
 0x428   :  { %3976 = vmatprep.subr.bf16.mxu0 %v13781_v3  ;;  %v13845_v3 = vld [vmem:[#allocation10 + $0xb48] ss:$16 sps:$4 sm:$0xff]   ;;  %v13850_v38 = vld [vmem:[#allocation10 + $0x92c] ss:$16 sps:$4 sm:$0xff]  }
 0x429   :  { %v13853_v4 = vld [vmem:[#allocation10 + $0xb2c] ss:$16 sps:$4 sm:$0xff]   ;;  %v13851_v40 = vld [vmem:[#allocation10 + $0xb28] ss:$16 sps:$4 sm:$0xff]  }
 0x42a   :  { %3936 = vmatpush1.bf16.msra.mxu1 %v13776_v39  ;;  %v13848_v39 = vld [vmem:[#allocation10 + $0x928] ss:$16 sps:$4 sm:$0xff]   ;;  %v13856_v41 = vld [vmem:[#allocation10 + $0x90c] ss:$16 sps:$4 sm:$0xff]  }
 0x42b   :  { %3977 = vmatpush1.bf16.msra.mxu0 %v13779_v42  ;;  %3937 = vmatprep.subr.bf16.mxu1 %v13784_v43  ;;  %v13859_v42 = vld [vmem:[#allocation10 + $0xb0c] ss:$16 sps:$4 sm:$0xff]   ;;  %v13854_v43 = vld [vmem:[#allocation10 + $0x908] ss:$16 sps:$4 sm:$0xff]  }
 0x42c   :  { %3978 = vmatprep.subr.bf16.mxu0 %v13787_v44  ;;  %v13857_v44 = vld [vmem:[#allocation10 + $0xb08] ss:$16 sps:$4 sm:$0xff]  }
 0x42e   :  { %3938 = vmatpush1.bf16.msra.mxu1 %v13782_v45  ;;  %v13862_v45 = vld [vmem:[#allocation10 + $0xce4] ss:$16 sps:$4 sm:$0xff]  }
 0x42f   :  { %3979 = vmatpush1.bf16.msra.mxu0 %v13785_v46  ;;  %3939 = vmatprep.subr.bf16.mxu1 %v13790_v47  ;;  %v13865_v46 = vld [vmem:[#allocation10 + $0xee4] ss:$16 sps:$4 sm:$0xff]   ;;  %v13860_v47 = vld [vmem:[#allocation10 + $0xce0] ss:$16 sps:$4 sm:$0xff]  }
 0x430   :  { %3980 = vmatprep.subr.bf16.mxu0 %v13793_v48  ;;  %v13863_v48 = vld [vmem:[#allocation10 + $0xee0] ss:$16 sps:$4 sm:$0xff]  }
 0x432   :  { %3940 = vmatpush1.bf16.msra.mxu1 %v13788_v49  ;;  %v13868_v49 = vld [vmem:[#allocation10 + $0xcc4] ss:$16 sps:$4 sm:$0xff]  }
 0x433   :  { %3981 = vmatpush1.bf16.msra.mxu0 %v13791_v50  ;;  %3941 = vmatprep.subr.bf16.mxu1 %v13796_v51  ;;  %v4151_v51 = vrot.slane %v15812_v56, 4 }
 0x434   :  { %3982 = vmatprep.subr.bf16.mxu0 %v13799_v52  ;;  %v13871_v52 = vld [vmem:[#allocation10 + $0xec4] ss:$16 sps:$4 sm:$0xff]  }
 0x436   :  { %3942 = vmatpush1.bf16.msra.mxu1 %v13794_v53 }
 0x437   :  { %3983 = vmatpush1.bf16.msra.mxu0 %v13797_v61  ;;  %3943 = vmatprep.subr.bf16.mxu1 %v13802_v54  ;;  %v4153_v54 = vrot.slane %v15816_v0, 4  ;;  %v13979_v0 = vld [vmem:[#allocation10 + $0xe8c] ss:$16 sps:$4 sm:$0xff]  }
 0x438   :  { %3984 = vmatprep.subr.bf16.mxu0 %v13805_v55  ;;  %v13866_v55 = vld [vmem:[#allocation10 + $0xcc0] ss:$16 sps:$4 sm:$0xff]  }
 0x43a   :  { %3944 = vmatpush1.bf16.msra.mxu1 %v13800_v62 }
 0x43b   :  { %3985 = vmatpush1.bf16.msra.mxu0 %v13803_v59  ;;  %3945 = vmatprep.subr.bf16.mxu1 %v13808_v60  ;;  %v13869_v59 = vld [vmem:[#allocation10 + $0xec0] ss:$16 sps:$4 sm:$0xff]   ;;  %v13874_v60 = vld [vmem:[#allocation10 + $0xca4] ss:$16 sps:$4 sm:$0xff]  }
 0x43c   :  { %3986 = vmatprep.subr.bf16.mxu0 %v13811_v63 }
 0x43e   :  { %3946 = vmatpush1.bf16.msra.mxu1 %v13806_v2 }
 0x43f   :  { %3987 = vmatpush1.bf16.msra.mxu0 %v13809_v5  ;;  %3947 = vmatprep.subr.bf16.mxu1 %v13814_v13  ;;  %v13877_v5 = vld [vmem:[#allocation10 + $0xea4] ss:$16 sps:$4 sm:$0xff]  }
 0x440   :  { %3988 = vmatprep.subr.bf16.mxu0 %v13817_v6 }
 0x442   :  { %3948 = vmatpush2.bf16.msra.mxu1 %v13812_v7 }
 0x443   :  { %3989 = vmatpush2.bf16.msra.mxu0 %v13815_v14  ;;  %3949 = vmatprep.subr.bf16.mxu1 %v13820_v8  ;;  %v13872_v14 = vld [vmem:[#allocation10 + $0xca0] ss:$16 sps:$4 sm:$0xff]  }
 0x444   :  { %3990 = vmatprep.subr.bf16.mxu0 %v13823_v58  ;;  %v13875_v58 = vld [vmem:[#allocation10 + $0xea0] ss:$16 sps:$4 sm:$0xff]  }
 0x446   :  { %3950 = vmatpush2.bf16.msra.mxu1 %v13818_v11  ;;  %v13880_v11 = vld [vmem:[#allocation10 + $0xc84] ss:$16 sps:$4 sm:$0xff]  }
 0x447   :  { %3991 = vmatpush2.bf16.msra.mxu0 %v13821_v12  ;;  %3951 = vmatprep.subr.bf16.mxu1 %v13826_v9  ;;  %v13883_v9 = vld [vmem:[#allocation10 + $0xe84] ss:$16 sps:$4 sm:$0xff]  }
 0x448   :  { %3992 = vmatprep.subr.bf16.mxu0 %v13829_v10  ;;  %v13881_v10 = vld [vmem:[#allocation10 + $0xe80] ss:$16 sps:$4 sm:$0xff]  }
 0x44a   :  { %3952 = vmatpush2.bf16.msra.mxu1 %v13824_v15  ;;  %v13886_v15 = vld [vmem:[#allocation10 + $0xc64] ss:$16 sps:$4 sm:$0xff]  }
 0x44b   :  { %3993 = vmatpush2.bf16.msra.mxu0 %v13827_v16  ;;  %3953 = vmatprep.subr.bf16.mxu1 %v13832_v17  ;;  %v13889_v16 = vld [vmem:[#allocation10 + $0xe64] ss:$16 sps:$4 sm:$0xff]   ;;  %v13884_v17 = vld [vmem:[#allocation10 + $0xc60] ss:$16 sps:$4 sm:$0xff]  }
 0x44c   :  { %3994 = vmatprep.subr.bf16.mxu0 %v13835_v18  ;;  %v13887_v18 = vld [vmem:[#allocation10 + $0xe60] ss:$16 sps:$4 sm:$0xff]  }
 0x44e   :  { %3954 = vmatpush2.bf16.msra.mxu1 %v13830_v19  ;;  %v13892_v19 = vld [vmem:[#allocation10 + $0xc44] ss:$16 sps:$4 sm:$0xff]  }
 0x44f   :  { %3995 = vmatpush2.bf16.msra.mxu0 %v13833_v21  ;;  %3955 = vmatprep.subr.bf16.mxu1 %v13838_v24  ;;  %v13895_v21 = vld [vmem:[#allocation10 + $0xe44] ss:$16 sps:$4 sm:$0xff]   ;;  %v13890_v24 = vld [vmem:[#allocation10 + $0xc40] ss:$16 sps:$4 sm:$0xff]  }
 0x450   :  { %3996 = vmatprep.subr.bf16.mxu0 %v13841_v26  ;;  %v13893_v26 = vld [vmem:[#allocation10 + $0xe40] ss:$16 sps:$4 sm:$0xff]  }
 0x452   :  { %3956 = vmatpush2.bf16.msra.mxu1 %v13836_v30  ;;  %v13898_v30 = vld [vmem:[#allocation10 + $0xc24] ss:$16 sps:$4 sm:$0xff]  }
 0x453   :  { %3997 = vmatpush2.bf16.msra.mxu0 %v13839_v31  ;;  %3957 = vmatprep.subr.bf16.mxu1 %v13844_v32  ;;  %v13901_v31 = vld [vmem:[#allocation10 + $0xe24] ss:$16 sps:$4 sm:$0xff]   ;;  %v13896_v32 = vld [vmem:[#allocation10 + $0xc20] ss:$16 sps:$4 sm:$0xff]  }
 0x454   :  { %3998 = vmatprep.subr.bf16.mxu0 %v13847_v33  ;;  %v13899_v33 = vld [vmem:[#allocation10 + $0xe20] ss:$16 sps:$4 sm:$0xff]  }
 0x456   :  { %3958 = vmatpush2.bf16.msra.mxu1 %v13842_v34  ;;  %v13904_v34 = vld [vmem:[#allocation10 + $0xc04] ss:$16 sps:$4 sm:$0xff]  }
 0x457   :  { %3999 = vmatpush2.bf16.msra.mxu0 %v13845_v3  ;;  %3959 = vmatprep.subr.bf16.mxu1 %v13850_v38  ;;  %v13907_v3 = vld [vmem:[#allocation10 + $0xe04] ss:$16 sps:$4 sm:$0xff]   ;;  %v13902_v38 = vld [vmem:[#allocation10 + $0xc00] ss:$16 sps:$4 sm:$0xff]  }
 0x458   :  { %4000 = vmatprep.subr.bf16.mxu0 %v13853_v4  ;;  %v13905_v4 = vld [vmem:[#allocation10 + $0xe00] ss:$16 sps:$4 sm:$0xff]  }
 0x45a   :  { %3960 = vmatpush2.bf16.msra.mxu1 %v13848_v39  ;;  %v13910_v39 = vld [vmem:[#allocation10 + $0xde4] ss:$16 sps:$4 sm:$0xff]  }
 0x45b   :  { %4001 = vmatpush2.bf16.msra.mxu0 %v13851_v40  ;;  %3961 = vmatprep.subr.bf16.mxu1 %v13856_v41  ;;  %v13913_v40 = vld [vmem:[#allocation10 + $0xfe4] ss:$16 sps:$4 sm:$0xff]   ;;  %v13908_v41 = vld [vmem:[#allocation10 + $0xde0] ss:$16 sps:$4 sm:$0xff]  }
 0x45c   :  { %4002 = vmatprep.subr.bf16.mxu0 %v13859_v42  ;;  %v13911_v42 = vld [vmem:[#allocation10 + $0xfe0] ss:$16 sps:$4 sm:$0xff]  }
 0x45e   :  { %3962 = vmatpush2.bf16.msra.mxu1 %v13854_v43  ;;  %v13916_v43 = vld [vmem:[#allocation10 + $0xdc4] ss:$16 sps:$4 sm:$0xff]  }
 0x45f   :  { %4003 = vmatpush2.bf16.msra.mxu0 %v13857_v44  ;;  %4798 = vmatprep.subr.bf16.mxu1 %v13862_v45  ;;  %v13919_v44 = vld [vmem:[#allocation10 + $0xfc4] ss:$16 sps:$4 sm:$0xff]   ;;  %v13914_v45 = vld [vmem:[#allocation10 + $0xdc0] ss:$16 sps:$4 sm:$0xff]  }
 0x460   :  { %4839 = vmatprep.subr.bf16.mxu0 %v13865_v46  ;;  %v13917_v46 = vld [vmem:[#allocation10 + $0xfc0] ss:$16 sps:$4 sm:$0xff]  }
 0x461   :  { %v2950_v50 = vpop.f32.mrf.mxu1  ;;  %3964 = vmatmul.mubr.bf16.vlgmr.msra.gmra.mxu1 %v15797_v22 }
 0x462   :  { %v2951_v53 = vadd.f32 %v2950_v50, %v15819_v1  ;;  %v2991_v61 = vpop.f32.mrf.mxu0  ;;  %4005 = vmatmul.mubr.bf16.vlgmr.msra.gmra.mxu0 %v15799_v23  ;;  %4799 = vmatpush1.bf16.msra.mxu1 %v13860_v47  ;;  %v13922_v47 = vld [vmem:[#allocation10 + $0xda4] ss:$16 sps:$4 sm:$0xff]   ;;  %v13923_v50 = vld [vmem:[#allocation10 + $0xfa0] ss:$16 sps:$4 sm:$0xff]  }
 0x463   :  { %4830 = vmatprep.mubr.bf16.mxu1 %v4151_v51  ;;  %4840 = vmatpush1.bf16.msra.mxu0 %v13863_v48  ;;  %v2952_v62 = vpop.f32.mrf.mxu1  ;;  %v13925_v48 = vld [vmem:[#allocation10 + $0xfa4] ss:$16 sps:$4 sm:$0xff]  }
 0x464   :  { %v15840_v63 = vadd.f32 %v2991_v61, %v2951_v53  ;;  %4871 = vmatprep.mubr.bf16.mxu0 %v4153_v54  ;;  %v2953_v1 = vadd.f32 %v2952_v62, %v15823_v57  ;;  %v2993_v2 = vpop.f32.mrf.mxu0  ;;  %4800 = vmatprep.subr.bf16.mxu1 %v13868_v49  ;;  %v13878_v57 = vld [vmem:[#allocation10 + $0xc80] ss:$16 sps:$4 sm:$0xff]   ;;  %v13931_v53 = vld [vmem:[#allocation10 + $0xf84] ss:$16 sps:$4 sm:$0xff]  }
 0x465   :  { %v2954_v13 = vpop.f32.mrf.mxu1  ;;  %4841 = vmatprep.subr.bf16.mxu0 %v13871_v52  ;;  %v13920_v49 = vld [vmem:[#allocation10 + $0xda0] ss:$16 sps:$4 sm:$0xff]   ;;  %v13928_v52 = vld [vmem:[#allocation10 + $0xd84] ss:$16 sps:$4 sm:$0xff]  }
 0x466   :  { %v15845_v6 = vadd.f32 %v2993_v2, %v2953_v1  ;;  %v2995_v7 = vpop.f32.mrf.mxu0  ;;  %4801 = vmatpush1.bf16.msra.mxu1 %v13866_v55  ;;  %v13926_v61 = vld [vmem:[#allocation10 + $0xd80] ss:$16 sps:$4 sm:$0xff]   ;;  %v13934_v62 = vld [vmem:[#allocation10 + $0xd64] ss:$16 sps:$4 sm:$0xff]  }
 0x467   :  { %4842 = vmatpush1.bf16.msra.mxu0 %v13869_v59  ;;  %v2955_v8 = vpop.f32.mrf.mxu1  ;;  %4802 = vmatprep.subr.bf16.mxu1 %v13874_v60  ;;  %v13929_v55 = vld [vmem:[#allocation10 + $0xf80] ss:$16 sps:$4 sm:$0xff]   ;;  %v13937_v59 = vld [vmem:[#allocation10 + $0xf64] ss:$16 sps:$4 sm:$0xff]  }
 0x468   :  { %v2996_v12 = vpop.f32.mrf.mxu0  ;;  %4843 = vmatprep.subr.bf16.mxu0 %v13877_v5  ;;  %v13932_v60 = vld [vmem:[#allocation10 + $0xd60] ss:$16 sps:$4 sm:$0xff]   ;;  %v13940_v2 = vld [vmem:[#allocation10 + $0xd44] ss:$16 sps:$4 sm:$0xff]  }
 0x469   :  { %v13935_v1 = vld [vmem:[#allocation10 + $0xf60] ss:$16 sps:$4 sm:$0xff]   ;;  %v13943_v5 = vld [vmem:[#allocation10 + $0xf44] ss:$16 sps:$4 sm:$0xff]  }
 0x46a   :  { %4803 = vmatpush1.bf16.msra.mxu1 %v13872_v14  ;;  %v13938_v13 = vld [vmem:[#allocation10 + $0xd40] ss:$16 sps:$4 sm:$0xff]   ;;  %v13946_v14 = vld [vmem:[#allocation10 + $0xd24] ss:$16 sps:$4 sm:$0xff]  }
 0x46b   :  { %4844 = vmatpush1.bf16.msra.mxu0 %v13875_v58  ;;  %4804 = vmatprep.subr.bf16.mxu1 %v13880_v11  ;;  %v13941_v7 = vld [vmem:[#allocation10 + $0xf40] ss:$16 sps:$4 sm:$0xff]   ;;  %v13949_v8 = vld [vmem:[#allocation10 + $0xf24] ss:$16 sps:$4 sm:$0xff]  }
 0x46c   :  { %4845 = vmatprep.subr.bf16.mxu0 %v13883_v9  ;;  %v13944_v58 = vld [vmem:[#allocation10 + $0xd20] ss:$16 sps:$4 sm:$0xff]   ;;  %v13952_v12 = vld [vmem:[#allocation10 + $0xd04] ss:$16 sps:$4 sm:$0xff]  }
 0x46d   :  { %v13947_v11 = vld [vmem:[#allocation10 + $0xf20] ss:$16 sps:$4 sm:$0xff]   ;;  %v13955_v9 = vld [vmem:[#allocation10 + $0xf04] ss:$16 sps:$4 sm:$0xff]  }
 0x46e   :  { %4805 = vmatpush1.bf16.msra.mxu1 %v13878_v57  ;;  %v13950_v57 = vld [vmem:[#allocation10 + $0xd00] ss:$16 sps:$4 sm:$0xff]  }
 0x46f   :  { %4846 = vmatpush1.bf16.msra.mxu0 %v13881_v10  ;;  %4806 = vmatprep.subr.bf16.mxu1 %v13886_v15  ;;  %v13953_v10 = vld [vmem:[#allocation10 + $0xf00] ss:$16 sps:$4 sm:$0xff]   ;;  %v13958_v15 = vld [vmem:[#allocation10 + $0xcec] ss:$16 sps:$4 sm:$0xff]  }
 0x470   :  { %4847 = vmatprep.subr.bf16.mxu0 %v13889_v16  ;;  %v13961_v16 = vld [vmem:[#allocation10 + $0xeec] ss:$16 sps:$4 sm:$0xff]  }
 0x472   :  { %4807 = vmatpush1.bf16.msra.mxu1 %v13884_v17  ;;  %v13956_v17 = vld [vmem:[#allocation10 + $0xce8] ss:$16 sps:$4 sm:$0xff]  }
 0x473   :  { %4848 = vmatpush1.bf16.msra.mxu0 %v13887_v18  ;;  %4808 = vmatprep.subr.bf16.mxu1 %v13892_v19  ;;  %v4150_v18 = vrot.slane %v15797_v22, 4  ;;  %v13959_v19 = vld [vmem:[#allocation10 + $0xee8] ss:$16 sps:$4 sm:$0xff]  }
 0x474   :  { %4849 = vmatprep.subr.bf16.mxu0 %v13895_v21  ;;  %v4152_v21 = vrot.slane %v15799_v23, 4 }
 0x476   :  { %4809 = vmatpush1.bf16.msra.mxu1 %v13890_v24  ;;  %v13964_v24 = vld [vmem:[#allocation10 + $0xccc] ss:$16 sps:$4 sm:$0xff]  }
 0x477   :  { %4850 = vmatpush1.bf16.msra.mxu0 %v13893_v26  ;;  %4810 = vmatprep.subr.bf16.mxu1 %v13898_v30  ;;  %v13967_v30 = vld [vmem:[#allocation10 + $0xecc] ss:$16 sps:$4 sm:$0xff]  }
 0x478   :  { %4851 = vmatprep.subr.bf16.mxu0 %v13901_v31 }
 0x47a   :  { %4811 = vmatpush1.bf16.msra.mxu1 %v13896_v32 }
 0x47b   :  { %4852 = vmatpush1.bf16.msra.mxu0 %v13899_v33  ;;  %4812 = vmatprep.subr.bf16.mxu1 %v13904_v34  ;;  %v13962_v33 = vld [vmem:[#allocation10 + $0xcc8] ss:$16 sps:$4 sm:$0xff]  }
 0x47c   :  { %4853 = vmatprep.subr.bf16.mxu0 %v13907_v3  ;;  %v13965_v3 = vld [vmem:[#allocation10 + $0xec8] ss:$16 sps:$4 sm:$0xff]  }
 0x47e   :  { %4813 = vmatpush1.bf16.msra.mxu1 %v13902_v38  ;;  %v13970_v38 = vld [vmem:[#allocation10 + $0xcac] ss:$16 sps:$4 sm:$0xff]  }
 0x47f   :  { %4854 = vmatpush1.bf16.msra.mxu0 %v13905_v4  ;;  %4814 = vmatprep.subr.bf16.mxu1 %v13910_v39 }
 0x480   :  { %4855 = vmatprep.subr.bf16.mxu0 %v13913_v40  ;;  %v13973_v40 = vld [vmem:[#allocation10 + $0xeac] ss:$16 sps:$4 sm:$0xff]  }
 0x482   :  { %4815 = vmatpush2.bf16.msra.mxu1 %v13908_v41 }
 0x483   :  { %4856 = vmatpush2.bf16.msra.mxu0 %v13911_v42  ;;  %4816 = vmatprep.subr.bf16.mxu1 %v13916_v43 }
 0x484   :  { %4857 = vmatprep.subr.bf16.mxu0 %v13919_v44  ;;  %v13971_v44 = vld [vmem:[#allocation10 + $0xea8] ss:$16 sps:$4 sm:$0xff]  }
 0x486   :  { %4817 = vmatpush2.bf16.msra.mxu1 %v13914_v45  ;;  %v13976_v45 = vld [vmem:[#allocation10 + $0xc8c] ss:$16 sps:$4 sm:$0xff]  }
 0x487   :  { %4858 = vmatpush2.bf16.msra.mxu0 %v13917_v46  ;;  %4818 = vmatprep.subr.bf16.mxu1 %v13922_v47  ;;  %v13982_v47 = vld [vmem:[#allocation10 + $0xc6c] ss:$16 sps:$4 sm:$0xff]  }
 0x488   :  { %4859 = vmatprep.subr.bf16.mxu0 %v13925_v48  ;;  %v13985_v48 = vld [vmem:[#allocation10 + $0xe6c] ss:$16 sps:$4 sm:$0xff]  }
 0x48a   :  { %4819 = vmatpush2.bf16.msra.mxu1 %v13920_v49  ;;  %v13980_v49 = vld [vmem:[#allocation10 + $0xc68] ss:$16 sps:$4 sm:$0xff]  }
 0x48b   :  { %4860 = vmatpush2.bf16.msra.mxu0 %v13923_v50  ;;  %4820 = vmatprep.subr.bf16.mxu1 %v13928_v52  ;;  %v13983_v50 = vld [vmem:[#allocation10 + $0xe68] ss:$16 sps:$4 sm:$0xff]   ;;  %v13988_v52 = vld [vmem:[#allocation10 + $0xc4c] ss:$16 sps:$4 sm:$0xff]  }
 0x48c   :  { %4861 = vmatprep.subr.bf16.mxu0 %v13931_v53  ;;  %v13991_v53 = vld [vmem:[#allocation10 + $0xe4c] ss:$16 sps:$4 sm:$0xff]  }
 0x48e   :  { %4821 = vmatpush2.bf16.msra.mxu1 %v13926_v61  ;;  %v13986_v61 = vld [vmem:[#allocation10 + $0xc48] ss:$16 sps:$4 sm:$0xff]  }
 0x48f   :  { %4862 = vmatpush2.bf16.msra.mxu0 %v13929_v55  ;;  %4822 = vmatprep.subr.bf16.mxu1 %v13934_v62  ;;  %v13989_v55 = vld [vmem:[#allocation10 + $0xe48] ss:$16 sps:$4 sm:$0xff]   ;;  %v13994_v62 = vld [vmem:[#allocation10 + $0xc2c] ss:$16 sps:$4 sm:$0xff]  }
 0x490   :  { %4863 = vmatprep.subr.bf16.mxu0 %v13937_v59  ;;  %v13997_v59 = vld [vmem:[#allocation10 + $0xe2c] ss:$16 sps:$4 sm:$0xff]  }
 0x492   :  { %4823 = vmatpush2.bf16.msra.mxu1 %v13932_v60  ;;  %v13992_v60 = vld [vmem:[#allocation10 + $0xc28] ss:$16 sps:$4 sm:$0xff]  }
 0x493   :  { %4864 = vmatpush2.bf16.msra.mxu0 %v13935_v1  ;;  %4824 = vmatprep.subr.bf16.mxu1 %v13940_v2  ;;  %v13995_v1 = vld [vmem:[#allocation10 + $0xe28] ss:$16 sps:$4 sm:$0xff]   ;;  %v14000_v2 = vld [vmem:[#allocation10 + $0xc0c] ss:$16 sps:$4 sm:$0xff]  }
 0x494   :  { %4865 = vmatprep.subr.bf16.mxu0 %v13943_v5  ;;  %v14003_v5 = vld [vmem:[#allocation10 + $0xe0c] ss:$16 sps:$4 sm:$0xff]  }
 0x496   :  { %4825 = vmatpush2.bf16.msra.mxu1 %v13938_v13  ;;  %v13998_v13 = vld [vmem:[#allocation10 + $0xc08] ss:$16 sps:$4 sm:$0xff]  }
 0x497   :  { %4866 = vmatpush2.bf16.msra.mxu0 %v13941_v7  ;;  %4826 = vmatprep.subr.bf16.mxu1 %v13946_v14  ;;  %v14001_v7 = vld [vmem:[#allocation10 + $0xe08] ss:$16 sps:$4 sm:$0xff]   ;;  %v14006_v14 = vld [vmem:[#allocation10 + $0xdec] ss:$16 sps:$4 sm:$0xff]  }
 0x498   :  { %4867 = vmatprep.subr.bf16.mxu0 %v13949_v8  ;;  %v14009_v8 = vld [vmem:[#allocation10 + $0xfec] ss:$16 sps:$4 sm:$0xff]  }
 0x49a   :  { %4827 = vmatpush2.bf16.msra.mxu1 %v13944_v58  ;;  %v14004_v58 = vld [vmem:[#allocation10 + $0xde8] ss:$16 sps:$4 sm:$0xff]  }
 0x49b   :  { %4868 = vmatpush2.bf16.msra.mxu0 %v13947_v11  ;;  %4828 = vmatprep.subr.bf16.mxu1 %v13952_v12  ;;  %v14007_v11 = vld [vmem:[#allocation10 + $0xfe8] ss:$16 sps:$4 sm:$0xff]   ;;  %v14012_v12 = vld [vmem:[#allocation10 + $0xdcc] ss:$16 sps:$4 sm:$0xff]  }
 0x49c   :  { %4869 = vmatprep.subr.bf16.mxu0 %v13955_v9  ;;  %v14015_v9 = vld [vmem:[#allocation10 + $0xfcc] ss:$16 sps:$4 sm:$0xff]  }
 0x49e   :  { %4829 = vmatpush2.bf16.msra.mxu1 %v13950_v57  ;;  %v14010_v57 = vld [vmem:[#allocation10 + $0xdc8] ss:$16 sps:$4 sm:$0xff]  }
 0x49f   :  { %4870 = vmatpush2.bf16.msra.mxu0 %v13953_v10  ;;  %4880 = vmatprep.subr.bf16.mxu1 %v13958_v15  ;;  %v14013_v10 = vld [vmem:[#allocation10 + $0xfc8] ss:$16 sps:$4 sm:$0xff]   ;;  %v14018_v15 = vld [vmem:[#allocation10 + $0xdac] ss:$16 sps:$4 sm:$0xff]  }
 0x4a0   :  { %4921 = vmatprep.subr.bf16.mxu0 %v13961_v16  ;;  %v14021_v16 = vld [vmem:[#allocation10 + $0xfac] ss:$16 sps:$4 sm:$0xff]  }
 0x4a1   :  { %v3032_v26 = vpop.f32.mrf.mxu1  ;;  %4831 = vmatmul.mubr.bf16.vlgmr.msra.gmra.mxu1 %v4150_v18 }
 0x4a2   :  { %v3033_v31 = vadd.f32 %v3032_v26, %v15826_v27  ;;  %v3073_v32 = vpop.f32.mrf.mxu0  ;;  %4872 = vmatmul.mubr.bf16.vlgmr.msra.gmra.mxu0 %v4152_v21  ;;  %4881 = vmatpush1.bf16.msra.mxu1 %v13956_v17  ;;  %v14016_v17 = vld [vmem:[#allocation10 + $0xda8] ss:$16 sps:$4 sm:$0xff]   ;;  %v14027_v26 = vld [vmem:[#allocation10 + $0xf8c] ss:$16 sps:$4 sm:$0xff]  }
 0x4a3   :  { %4912 = vmatprep.mubr.bf16.mxu1 %v4151_v51  ;;  %4922 = vmatpush1.bf16.msra.mxu0 %v13959_v19  ;;  %v3034_v34 = vpop.f32.mrf.mxu1  ;;  %v13968_v51 = vld [vmem:[#allocation10 + $0xca8] ss:$16 sps:$4 sm:$0xff]  }
 0x4a4   :  { %v15856_v4 = vadd.f32 %v3073_v32, %v3033_v31  ;;  %4953 = vmatprep.mubr.bf16.mxu0 %v4153_v54  ;;  %v3035_v27 = vadd.f32 %v3034_v34, %v15831_v37  ;;  %v3075_v39 = vpop.f32.mrf.mxu0  ;;  %4882 = vmatprep.subr.bf16.mxu1 %v13964_v24  ;;  %v13974_v37 = vld [vmem:[#allocation10 + $0xc88] ss:$16 sps:$4 sm:$0xff]   ;;  %v14024_v24 = vld [vmem:[#allocation10 + $0xd8c] ss:$16 sps:$4 sm:$0xff]  }
 0x4a5   :  { %v3036_v41 = vpop.f32.mrf.mxu1  ;;  %4923 = vmatprep.subr.bf16.mxu0 %v13967_v30  ;;  %v13977_v54 = vld [vmem:[#allocation10 + $0xe88] ss:$16 sps:$4 sm:$0xff]   ;;  %v14030_v32 = vld [vmem:[#allocation10 + $0xd6c] ss:$16 sps:$4 sm:$0xff]  }
 0x4a6   :  { %v15861_v42 = vadd.f32 %v3075_v39, %v3035_v27  ;;  %v3077_v56 = vpop.f32.mrf.mxu0  ;;  %4883 = vmatpush1.bf16.msra.mxu1 %v13962_v33  ;;  %v14019_v19 = vld [vmem:[#allocation10 + $0xfa8] ss:$16 sps:$4 sm:$0xff]   ;;  %v14033_v33 = vld [vmem:[#allocation10 + $0xf6c] ss:$16 sps:$4 sm:$0xff]  }
 0x4a7   :  { %4924 = vmatpush1.bf16.msra.mxu0 %v13965_v3  ;;  %v3037_v43 = vpop.f32.mrf.mxu1  ;;  %4884 = vmatprep.subr.bf16.mxu1 %v13970_v38  ;;  %v14022_v30 = vld [vmem:[#allocation10 + $0xd88] ss:$16 sps:$4 sm:$0xff]   ;;  %v14036_v38 = vld [vmem:[#allocation10 + $0xd4c] ss:$16 sps:$4 sm:$0xff]  }
 0x4a8   :  { %v3078_v46 = vpop.f32.mrf.mxu0  ;;  %4925 = vmatprep.subr.bf16.mxu0 %v13973_v40  ;;  %v14025_v31 = vld [vmem:[#allocation10 + $0xf88] ss:$16 sps:$4 sm:$0xff]   ;;  %v14039_v27 = vld [vmem:[#allocation10 + $0xf4c] ss:$16 sps:$4 sm:$0xff]  }
 0x4a9   :  { %v14028_v34 = vld [vmem:[#allocation10 + $0xd68] ss:$16 sps:$4 sm:$0xff]   ;;  %v14042_v41 = vld [vmem:[#allocation10 + $0xd2c] ss:$16 sps:$4 sm:$0xff]  }
 0x4aa   :  { %4885 = vmatpush1.bf16.msra.mxu1 %v13968_v51  ;;  %v14031_v3 = vld [vmem:[#allocation10 + $0xf68] ss:$16 sps:$4 sm:$0xff]   ;;  %v14045_v56 = vld [vmem:[#allocation10 + $0xf2c] ss:$16 sps:$4 sm:$0xff]  }
 0x4ab   :  { %4926 = vmatpush1.bf16.msra.mxu0 %v13971_v44  ;;  %4886 = vmatprep.subr.bf16.mxu1 %v13976_v45  ;;  %v14034_v39 = vld [vmem:[#allocation10 + $0xd48] ss:$16 sps:$4 sm:$0xff]   ;;  %v14048_v44 = vld [vmem:[#allocation10 + $0xd0c] ss:$16 sps:$4 sm:$0xff]  }
 0x4ac   :  { %4927 = vmatprep.subr.bf16.mxu0 %v13979_v0  ;;  %v14037_v40 = vld [vmem:[#allocation10 + $0xf48] ss:$16 sps:$4 sm:$0xff]   ;;  %v14051_v45 = vld [vmem:[#allocation10 + $0xf0c] ss:$16 sps:$4 sm:$0xff]  }
 0x4ad   :  { %v14040_v51 = vld [vmem:[#allocation10 + $0xd28] ss:$16 sps:$4 sm:$0xff]  }
 0x4ae   :  { %4887 = vmatpush1.bf16.msra.mxu1 %v13974_v37  ;;  %v14043_v43 = vld [vmem:[#allocation10 + $0xf28] ss:$16 sps:$4 sm:$0xff]  }
 0x4af   :  { %4928 = vmatpush1.bf16.msra.mxu0 %v13977_v54  ;;  %4888 = vmatprep.subr.bf16.mxu1 %v13982_v47  ;;  %v14046_v46 = vld [vmem:[#allocation10 + $0xd08] ss:$16 sps:$4 sm:$0xff]  }
 0x4b0   :  { %4929 = vmatprep.subr.bf16.mxu0 %v13985_v48  ;;  %v14049_v0 = vld [vmem:[#allocation10 + $0xf08] ss:$16 sps:$4 sm:$0xff]  }
 0x4b2   :  { %4889 = vmatpush1.bf16.msra.mxu1 %v13980_v49 }
 0x4b3   :  { %4930 = vmatpush1.bf16.msra.mxu0 %v13983_v50  ;;  %4890 = vmatprep.subr.bf16.mxu1 %v13988_v52 }
 0x4b4   :  { %4931 = vmatprep.subr.bf16.mxu0 %v13991_v53 }
 0x4b6   :  { %4891 = vmatpush1.bf16.msra.mxu1 %v13986_v61 }
 0x4b7   :  { %4932 = vmatpush1.bf16.msra.mxu0 %v13989_v55  ;;  %4892 = vmatprep.subr.bf16.mxu1 %v13994_v62 }
 0x4b8   :  { %4933 = vmatprep.subr.bf16.mxu0 %v13997_v59 }
 0x4ba   :  { %4893 = vmatpush1.bf16.msra.mxu1 %v13992_v60 }
 0x4bb   :  { %4934 = vmatpush1.bf16.msra.mxu0 %v13995_v1  ;;  %4894 = vmatprep.subr.bf16.mxu1 %v14000_v2 }
 0x4bc   :  { %4935 = vmatprep.subr.bf16.mxu0 %v14003_v5 }
 0x4be   :  { %4895 = vmatpush1.bf16.msra.mxu1 %v13998_v13 }
 0x4bf   :  { %4936 = vmatpush1.bf16.msra.mxu0 %v14001_v7  ;;  %4896 = vmatprep.subr.bf16.mxu1 %v14006_v14 }
 0x4c0   :  { %4937 = vmatprep.subr.bf16.mxu0 %v14009_v8 }
 0x4c2   :  { %4897 = vmatpush2.bf16.msra.mxu1 %v14004_v58 }
 0x4c3   :  { %4938 = vmatpush2.bf16.msra.mxu0 %v14007_v11  ;;  %4898 = vmatprep.subr.bf16.mxu1 %v14012_v12 }
 0x4c4   :  { %4939 = vmatprep.subr.bf16.mxu0 %v14015_v9 }
 0x4c6   :  { %4899 = vmatpush2.bf16.msra.mxu1 %v14010_v57 }
 0x4c7   :  { %4940 = vmatpush2.bf16.msra.mxu0 %v14013_v10  ;;  %4900 = vmatprep.subr.bf16.mxu1 %v14018_v15 }
 0x4c8   :  { %4941 = vmatprep.subr.bf16.mxu0 %v14021_v16 }
 0x4ca   :  { %4901 = vmatpush2.bf16.msra.mxu1 %v14016_v17 }
 0x4cb   :  { %4942 = vmatpush2.bf16.msra.mxu0 %v14019_v19  ;;  %4902 = vmatprep.subr.bf16.mxu1 %v14024_v24 }
 0x4cc   :  { %4943 = vmatprep.subr.bf16.mxu0 %v14027_v26 }
 0x4ce   :  { %4903 = vmatpush2.bf16.msra.mxu1 %v14022_v30 }
 0x4cf   :  { %4944 = vmatpush2.bf16.msra.mxu0 %v14025_v31  ;;  %4904 = vmatprep.subr.bf16.mxu1 %v14030_v32 }
 0x4d0   :  { %4945 = vmatprep.subr.bf16.mxu0 %v14033_v33 }
 0x4d2   :  { %4905 = vmatpush2.bf16.msra.mxu1 %v14028_v34 }
 0x4d3   :  { %4946 = vmatpush2.bf16.msra.mxu0 %v14031_v3  ;;  %4906 = vmatprep.subr.bf16.mxu1 %v14036_v38 }
 0x4d4   :  { %4947 = vmatprep.subr.bf16.mxu0 %v14039_v27 }
 0x4d6   :  { %4907 = vmatpush2.bf16.msra.mxu1 %v14034_v39 }
 0x4d7   :  { %4948 = vmatpush2.bf16.msra.mxu0 %v14037_v40  ;;  %4908 = vmatprep.subr.bf16.mxu1 %v14042_v41 }
 0x4d8   :  { %4949 = vmatprep.subr.bf16.mxu0 %v14045_v56 }
 0x4da   :  { %4909 = vmatpush2.bf16.msra.mxu1 %v14040_v51 }
 0x4db   :  { %4950 = vmatpush2.bf16.msra.mxu0 %v14043_v43  ;;  %4910 = vmatprep.subr.bf16.mxu1 %v14048_v44 }
 0x4dc   :  { %4951 = vmatprep.subr.bf16.mxu0 %v14051_v45 }
 0x4de   :  { %4911 = vmatpush2.bf16.msra.mxu1 %v14046_v46 }
 0x4df   :  { %4952 = vmatpush2.bf16.msra.mxu0 %v14049_v0 }
 0x4e1   :  { %v3883_v37 = vpop.f32.mrf.mxu1  ;;  %4913 = vmatmul.mubr.bf16.vlgmr.msra.gmra.mxu1 %v4150_v18 }
 0x4e2   :  { %v3924_v54 = vpop.f32.mrf.mxu0  ;;  %4954 = vmatmul.mubr.bf16.vlgmr.msra.gmra.mxu0 %v4152_v21 }
 0x4e3   :  { %v3925_v47 = vadd.f32 %v3924_v54, %v3883_v37  ;;  %v3885_v48 = vpop.f32.mrf.mxu1 }
 0x4e4   :  { %v3926_v49 = vpop.f32.mrf.mxu0 }
 0x4e5   :  { %v4013_v50 = vadd.f32 %v3925_v47, %v15840_v63  ;;  %v3927_v52 = vadd.f32 %v3926_v49, %v3885_v48  ;;  %v3887_v53 = vpop.f32.mrf.mxu1 }
 0x4e6   :  { %v3928_v61 = vpop.f32.mrf.mxu0 }
 0x4e7   :  { %v4014_v55 = vadd.f32 %v3927_v52, %v15845_v6  ;;  %v3888_v62 = vpop.f32.mrf.mxu1 }
 0x4e8   :  { %v3929_v59 = vpop.f32.mrf.mxu0 }
 0x521   :  { %v3965_v60 = vpop.f32.mrf.mxu1 }
 0x522   :  { %v4006_v1 = vpop.f32.mrf.mxu0 }
 0x523   :  { %v4007_v22 = vadd.f32 %v4006_v1, %v3965_v60  ;;  %v3967_v18 = vpop.f32.mrf.mxu1 }
 0x524   :  { %v4008_v2 = vpop.f32.mrf.mxu0 }
 0x525   :  { %v15870_v23 = vadd.f32 %v4007_v22, %v15856_v4  ;;  %v4009_v21 = vadd.f32 %v4008_v2, %v3967_v18  ;;  %v3969_v5 = vpop.f32.mrf.mxu1 }
 0x526   :  { %v4010_v13 = vpop.f32.mrf.mxu0 }
 0x527   :  { %v15873_v63 = vadd.f32 %v4009_v21, %v15861_v42  ;;  %v3970_v7 = vpop.f32.mrf.mxu1 }
 0x528   :  { %v4011_v14 = vpop.f32.mrf.mxu0 }
 0x529   :  { %15494 = shalt.err (!%p15491_p3)  }
 0x52a   :  { %195 = dma.hbm_to_vmem [thread:$0]  %s16183_s15, 65536, %s193_s8, [#allocation5] }
 0x52b   :  { %s15503_s12 = scalar_lea.vmem %s205_s11, 32768  ;;  %p15508_p5 = scmp.lt.s32.totalorder %s205_s11, %s205_s11 }
 0x52c   :  { %p15504_p4 = scmp.ne.s32.totalorder %s205_s11, %s15503_s12  ;;  %p15509_p6 = scmp.lt.s32.totalorder %s15503_s12, %s15503_s12 }
 0x52e   :  { %p15510_p7 = por %p15509_p6, %p15508_p5 }
 0x530   :  { %p15511_p8 = pnand %p15510_p7, %p15504_p4 }
 0x532   :  { %15514 = shalt.err (!%p15511_p8)  }
 0x533   :  { %207 = dma.hbm_to_vmem [thread:$0]  %s16184_s16, 32768, %s205_s11, [#allocation5 + $0x1] }
 0x534   :  { %s15569_s1 = smov [#allocation4]  }
 0x535   :  { %s216_s20 = sshll.u32 %s15569_s1, 4  ;;  %s217_s20 = int_to_ptr.vmem [resolvable:$true] %s216_s20 }
 0x536   :  { %s15523_s14 = scalar_lea.vmem %s217_s20, 4096  ;;  %p15528_p10 = scmp.lt.s32.totalorder %s217_s20, %s217_s20 }
 0x537   :  { %p15524_p9 = scmp.ne.s32.totalorder %s217_s20, %s15523_s14  ;;  %p15529_p11 = scmp.lt.s32.totalorder %s15523_s14, %s15523_s14 }
 0x539   :  { %p15530_p12 = por %p15529_p11, %p15528_p10 }
 0x53b   :  { %p15531_p13 = pnand %p15530_p12, %p15524_p9 }
 0x561   :  { %v4832_v6 = vpop.f32.mrf.mxu1 }
 0x562   :  { %15534 = shalt.err (!%p15531_p13)  }
 0x563   :  { %219 = dma.hbm_to_vmem [thread:$0]  %s16185_s17, 4096, %s217_s20, [#allocation5 + $0x2]  ;;  %v4873_v4 = vpop.f32.mrf.mxu0  ;;  %v4834_v8 = vpop.f32.mrf.mxu1 }
 0x564   :  { %v4874_v42 = vadd.f32 %v4873_v4, %v4832_v6 }
 0x565   :  { %v4875_v58 = vpop.f32.mrf.mxu0  ;;  %v4836_v9 = vpop.f32.mrf.mxu1 }
 0x566   :  { %v15884_v11 = vadd.f32 %v4874_v42, %v4013_v50  ;;  %v4876_v12 = vadd.f32 %v4875_v58, %v4834_v8 }
 0x567   :  { %v4877_v57 = vpop.f32.mrf.mxu0  ;;  %v4837_v17 = vpop.f32.mrf.mxu1 }
 0x568   :  { %v4968_v10 = vrot.slane %v15884_v11, 4  ;;  %v4992_v15 = vmul.f32 %v15884_v11, %v15884_v11  ;;  %v15889_v16 = vadd.f32 %v4876_v12, %v4014_v55 }
 0x569   :  { %v4878_v19 = vpop.f32.mrf.mxu0 }
 0x56a   :  { %v4969_v24 = vadd.f32 %v4968_v10, %v15884_v11  ;;  %v4996_v26 = vrot.slane %v4992_v15, 4  ;;  %v4974_v30 = vrot.slane %v15889_v16, 4  ;;  %v4993_v31 = vmul.f32 %v15889_v16, %v15889_v16 }
 0x56c   :  { %v4970_v32 = vrot.slane %v4969_v24, 2  ;;  %v4997_v33 = vadd.f32 %v4996_v26, %v4992_v15  ;;  %v4975_v34 = vadd.f32 %v4974_v30, %v15889_v16  ;;  %v5002_v3 = vrot.slane %v4993_v31, 4 }
 0x56e   :  { %v4971_v38 = vadd.f32 %v4970_v32, %v4969_v24  ;;  %v4998_v27 = vrot.slane %v4997_v33, 2  ;;  %v4976_v39 = vrot.slane %v4975_v34, 2  ;;  %v5003_v40 = vadd.f32 %v5002_v3, %v4993_v31 }
 0x570   :  { %v4972_v41 = vrot.slane %v4971_v38, 1  ;;  %v4999_v56 = vadd.f32 %v4998_v27, %v4997_v33  ;;  %v4977_v51 = vadd.f32 %v4976_v39, %v4975_v34  ;;  %v5004_v43 = vrot.slane %v5003_v40, 2 }
 0x572   :  { %v5000_v44 = vrot.slane %v4999_v56, 1  ;;  %v4978_v45 = vrot.slane %v4977_v51, 1  ;;  %v5005_v46 = vadd.f32 %v5004_v43, %v5003_v40  ;;  %v4973_v0 = vadd.f32 %v4972_v41, %v4971_v38 }
 0x574   :  { %v4979_v37 = vadd.f32 %v4978_v45, %v4977_v51  ;;  %v5006_v54 = vrot.slane %v5005_v46, 1  ;;  %v5001_v47 = vadd.f32 %v5000_v44, %v4999_v56 }
 0x576   :  { %v5007_v48 = vadd.f32 %v5006_v54, %v5005_v46  ;;  %v5020_v49 = vadd.f32 %v4979_v37, %v4973_v0  ;;  %v4966_v46 = vld [vmem:[#allocation13] sm:$0x1]  ;;  %v4967_v54 = vld [vmem:[#allocation14] sm:$0x1] }
 0x578   :  { %v5021_v50 = vadd.f32 %v5007_v48, %v5001_v47 }
 0x5a1   :  { %v4914_v52 = vpop.f32.mrf.mxu1 }
 0x5a2   :  { %v4955_v53 = vpop.f32.mrf.mxu0 }
 0x5a3   :  { %v4956_v61 = vadd.f32 %v4955_v53, %v4914_v52  ;;  %v4916_v55 = vpop.f32.mrf.mxu1 }
 0x5a4   :  { %v4957_v62 = vpop.f32.mrf.mxu0 }
 0x5a5   :  { %v4964_v59 = vadd.f32 %v4956_v61, %v15870_v23  ;;  %v4958_v60 = vadd.f32 %v4957_v62, %v4916_v55  ;;  %v4918_v1 = vpop.f32.mrf.mxu1 }
 0x5a6   :  { %v4959_v22 = vpop.f32.mrf.mxu0 }
 0x5a7   :  { %v4980_v18 = vrot.slane %v4964_v59, 4  ;;  %v4994_v2 = vmul.f32 %v4964_v59, %v4964_v59  ;;  %v4965_v21 = vadd.f32 %v4958_v60, %v15873_v63  ;;  %v4919_v5 = vpop.f32.mrf.mxu1 }
 0x5a8   :  { %v4960_v13 = vpop.f32.mrf.mxu0 }
 0x5a9   :  { %v4981_v7 = vadd.f32 %v4980_v18, %v4964_v59  ;;  %v5008_v14 = vrot.slane %v4994_v2, 4  ;;  %v4986_v6 = vrot.slane %v4965_v21, 4  ;;  %v4995_v4 = vmul.f32 %v4965_v21, %v4965_v21 }
 0x5ab   :  { %v4982_v42 = vrot.slane %v4981_v7, 2  ;;  %v5009_v8 = vadd.f32 %v5008_v14, %v4994_v2  ;;  %v4987_v58 = vadd.f32 %v4986_v6, %v4965_v21  ;;  %v5014_v12 = vrot.slane %v4995_v4, 4 }
 0x5ad   :  { %v4983_v9 = vadd.f32 %v4982_v42, %v4981_v7  ;;  %v5010_v57 = vrot.slane %v5009_v8, 2  ;;  %v4988_v23 = vrot.slane %v4987_v58, 2  ;;  %v5015_v10 = vadd.f32 %v5014_v12, %v4995_v4 }
 0x5af   :  { %v4984_v15 = vrot.slane %v4983_v9, 1  ;;  %v5011_v17 = vadd.f32 %v5010_v57, %v5009_v8  ;;  %v4989_v19 = vadd.f32 %v4988_v23, %v4987_v58  ;;  %v5016_v24 = vrot.slane %v5015_v10, 2 }
 0x5b1   :  { %v4985_v26 = vadd.f32 %v4984_v15, %v4983_v9  ;;  %v5012_v63 = vrot.slane %v5011_v17, 1  ;;  %v4990_v30 = vrot.slane %v4989_v19, 1  ;;  %v5017_v31 = vadd.f32 %v5016_v24, %v5015_v10 }
 0x5b3   :  { %v5013_v32 = vadd.f32 %v5012_v63, %v5011_v17  ;;  %v5022_v33 = vadd.f32 %v5020_v49, %v4985_v26  ;;  %v4991_v34 = vadd.f32 %v4990_v30, %v4989_v19  ;;  %v5018_v3 = vrot.slane %v5017_v31, 1 }
 0x5b5   :  { %v5023_v38 = vadd.f32 %v5021_v50, %v5013_v32  ;;  %v5019_v27 = vadd.f32 %v5018_v3, %v5017_v31  ;;  %v5024_v39 = vadd.f32 %v5022_v33, %v4991_v34 }
 0x5b7   :  { %v5025_v40 = vadd.f32 %v5023_v38, %v5019_v27  ;;  %v5026_v41 = vmul.f32 0.03125, %v5024_v39 }
 0x5b9   :  { %v5027_v56 = vmul.f32 0.03125, %v5025_v40  ;;  %v5028_v51 = vmul.f32 %v5026_v41, %v5026_v41 }
 0x5bb   :  { %v5029_v43 = vsub.f32 %v5027_v56, %v5028_v51 }
 0x5bd   :  { %v5030_v44 = vmax.f32 %v5029_v43, 0.0 }
 0x5bf   :  { %v5031_v45 = vadd.f32 1e-05, %v5030_v44 }
 0x5c1   :  { %14052 = vrsqrt.f32 %v5031_v45 }
 0x5ce   :  { %v14053_v0 = vpop.eup %14052 }
 0x5cf   :  { %v5033_v37 = vmul.f32 %v14053_v0, %v4966_v46 }
 0x5d1   :  { %v5034_v47 = vmul.f32 %v5033_v37, %v5026_v41  ;;  %v5039_v48 = vrot.slane %v5033_v37, %v15748_v28 }
 0x5d3   :  { %v5035_v49 = vsub.f32 %v4967_v54, %v5034_v47  ;;  %v5040_v50 = vmul.f32 %v5039_v48, %v15884_v11  ;;  %v5041_v52 = vmul.f32 %v5039_v48, %v15889_v16  ;;  %v5042_v53 = vmul.f32 %v5039_v48, %v4964_v59 }
 0x5d4   :  { %v5043_v61 = vmul.f32 %v5039_v48, %v4965_v21 }
 0x5d5   :  { %v5047_v55 = vrot.slane %v5035_v49, %v15748_v28 }
 0x5d7   :  { %v5048_v62 = vadd.f32 %v5047_v55, %v5040_v50  ;;  %v5049_v60 = vadd.f32 %v5047_v55, %v5041_v52  ;;  %v5050_v1 = vadd.f32 %v5047_v55, %v5042_v53  ;;  %v5051_v22 = vadd.f32 %v5047_v55, %v5043_v61 }
 0x5d9   :  { %vm5052_vm11 = vcmp.ge.f32.partialorder %v5048_v62, 0.0  ;;  %vm5053_vm12 = vcmp.ge.f32.partialorder %v5049_v60, 0.0  ;;  %vm5054_vm13 = vcmp.ge.f32.partialorder %v5050_v1, 0.0  ;;  %vm5055_vm14 = vcmp.ge.f32.partialorder %v5051_v22, 0.0 }
 0x5da   :  { %v5056_v18 = vmul.f32 0.2, %v5048_v62  ;;  %v5057_v2 = vmul.f32 0.2, %v5049_v60  ;;  %v5058_v5 = vmul.f32 0.2, %v5050_v1 }
 0x5db   :  { %v5059_v13 = vmul.f32 0.2, %v5051_v22 }
 0x5dc   :  { %v5060_v7 = vsel %vm5052_vm11, %v5048_v62, %v5056_v18  ;;  %v5061_v11 = vsel %vm5053_vm12, %v5049_v60, %v5057_v2  ;;  %v5062_v14 = vsel %vm5054_vm13, %v5050_v1, %v5058_v5 }
 0x5dd   :  { %v5063_v16 = vsel %vm5055_vm14, %v5051_v22, %v5059_v13  ;;  %v5064_v59 = vpack.c.bf16 %v5060_v7, %v5060_v7  ;;  %v5065_v21 = vpack.c.bf16 %v5061_v11, %v5061_v11  ;;  %v5066_v6 = vpack.c.bf16 %v5062_v14, %v5062_v14 }
 0x5de   :  { %v5067_v4 = vpack.c.bf16 %v5063_v16, %v5063_v16 }
 0x5df   :  { %15547 = dma.done.wait [#allocation5], 65536 }
 0x5e0   :  { %15548 = vsyncadd [#allocation5], 4294901760  ;;  %vm5084_vm15 = vcmask 1043456   ;;  %5129 = vmatprep.mubr.bf16.mxu1 %v15566_v20  ;;  %vm5080_vm0 = vcmask 64512   ;;  %v14054_v8 = vld [vmem:[%s16171_s3] sm:$0xff]  }
 0x5e1   :  { %12312 = vmatprep.subr.msk.bf16.mxu1 %vm5084_vm15, %v5065_v21  ;;  %v5086_v42 = vsel %vm5084_vm15, %v5064_v59, 0  ;;  %v5092_v58 = vsel %vm5084_vm15, %v5066_v6, 0  ;;  %v14055_v12 = vld [vmem:[#allocation2 + $0x4e4] ss:$16 sps:$4 sm:$0xff]   ;;  %v14057_v9 = vld [vmem:[#allocation2 + $0x4e0] ss:$16 sps:$4 sm:$0xff]  }
 0x5e2   :  { %5112 = vmatpush1.bf16.msra.mxu1 %v5086_v42  ;;  %v14058_v57 = vld [vmem:[#allocation2 + $0x4c4] ss:$16 sps:$4 sm:$0xff]   ;;  %6096 = vmatprep.subr.bf16.mxu0 %v14055_v12  ;;  %v14060_v23 = vld [vmem:[#allocation2 + $0x4c0] ss:$16 sps:$4 sm:$0xff]  }
 0x5e3   :  { %12314 = vmatprep.subr.msk.bf16.mxu1 %vm5084_vm15, %v5067_v4  ;;  %6097 = vmatpush1.bf16.msra.mxu0 %v14057_v9  ;;  %v14065_v10 = vld [vmem:[#allocation2 + $0x6e4] ss:$16 sps:$4 sm:$0xff]   ;;  %v14063_v17 = vld [vmem:[#allocation2 + $0x6e0] ss:$16 sps:$4 sm:$0xff]  }
 0x5e4   :  { %6098 = vmatprep.subr.bf16.mxu0 %v14058_v57  ;;  %v14061_v15 = vld [vmem:[#allocation2 + $0x4a4] ss:$16 sps:$4 sm:$0xff]   ;;  %v14066_v24 = vld [vmem:[#allocation2 + $0x4a0] ss:$16 sps:$4 sm:$0xff]  }
 0x5e5   :  { %12313 = vmatmul.mubr.msk.bf16.vlgmr.msra.gmra.mxu1 %vm5080_vm0, %v14054_v8  ;;  %v14071_v19 = vld [vmem:[#allocation2 + $0x6c4] ss:$16 sps:$4 sm:$0xff]   ;;  %v14069_v63 = vld [vmem:[#allocation2 + $0x6c0] ss:$16 sps:$4 sm:$0xff]  }
 0x5e6   :  { %5155 = vmatpush1.bf16.msra.mxu1 %v5092_v58  ;;  %5172 = vmatprep.mubr.bf16.mxu1 %v15566_v20  ;;  %v14067_v26 = vld [vmem:[#allocation2 + $0x484] ss:$16 sps:$4 sm:$0xff]   ;;  %v14072_v31 = vld [vmem:[#allocation2 + $0x480] ss:$16 sps:$4 sm:$0xff]  }
 0x5e7   :  { %6137 = vmatprep.subr.bf16.mxu1 %v14065_v10  ;;  %6099 = vmatpush1.bf16.msra.mxu0 %v14060_v23  ;;  %v14077_v30 = vld [vmem:[#allocation2 + $0x6a4] ss:$16 sps:$4 sm:$0xff]   ;;  %v14075_v33 = vld [vmem:[#allocation2 + $0x6a0] ss:$16 sps:$4 sm:$0xff]   ;;  %v14150_v23 = vld [vmem:[#allocation2 + $0x4ec] ss:$16 sps:$4 sm:$0xff]  }
 0x5e8   :  { %6100 = vmatprep.subr.bf16.mxu0 %v14061_v15  ;;  %v14073_v32 = vld [vmem:[#allocation2 + $0x464] ss:$16 sps:$4 sm:$0xff]   ;;  %v14078_v3 = vld [vmem:[#allocation2 + $0x460] ss:$16 sps:$4 sm:$0xff]  }
 0x5e9   :  { %v14083_v34 = vld [vmem:[#allocation2 + $0x684] ss:$16 sps:$4 sm:$0xff]   ;;  %v14081_v27 = vld [vmem:[#allocation2 + $0x680] ss:$16 sps:$4 sm:$0xff]  }
 0x5ea   :  { %v14079_v38 = vld [vmem:[#allocation2 + $0x444] ss:$16 sps:$4 sm:$0xff]   ;;  %v14084_v40 = vld [vmem:[#allocation2 + $0x440] ss:$16 sps:$4 sm:$0xff]  }
 0x5eb   :  { %6101 = vmatpush1.bf16.msra.mxu0 %v14066_v24  ;;  %v14089_v39 = vld [vmem:[#allocation2 + $0x664] ss:$16 sps:$4 sm:$0xff]   ;;  %v14087_v56 = vld [vmem:[#allocation2 + $0x660] ss:$16 sps:$4 sm:$0xff]  }
 0x5ec   :  { %6102 = vmatprep.subr.bf16.mxu0 %v14067_v26  ;;  %v14085_v41 = vld [vmem:[#allocation2 + $0x424] ss:$16 sps:$4 sm:$0xff]   ;;  %v14090_v43 = vld [vmem:[#allocation2 + $0x420] ss:$16 sps:$4 sm:$0xff]  }
 0x5ed   :  { %12315 = vmatmul.mubr.msk.bf16.vlgmr.msra.gmra.mxu1 %vm5080_vm0, %v14054_v8  ;;  %v14095_v51 = vld [vmem:[#allocation2 + $0x644] ss:$16 sps:$4 sm:$0xff]   ;;  %v14093_v45 = vld [vmem:[#allocation2 + $0x640] ss:$16 sps:$4 sm:$0xff]  }
 0x5ee   :  { %6138 = vmatpush1.bf16.msra.mxu1 %v14063_v17  ;;  %v14091_v44 = vld [vmem:[#allocation2 + $0x404] ss:$16 sps:$4 sm:$0xff]   ;;  %v14096_v0 = vld [vmem:[#allocation2 + $0x400] ss:$16 sps:$4 sm:$0xff]  }
 0x5ef   :  { %6139 = vmatprep.subr.bf16.mxu1 %v14071_v19  ;;  %6103 = vmatpush1.bf16.msra.mxu0 %v14072_v31  ;;  %v14101_v46 = vld [vmem:[#allocation2 + $0x624] ss:$16 sps:$4 sm:$0xff]   ;;  %v14099_v54 = vld [vmem:[#allocation2 + $0x620] ss:$16 sps:$4 sm:$0xff]   ;;  %v14162_v19 = vld [vmem:[#allocation2 + $0x6ec] ss:$16 sps:$4 sm:$0xff]  }
 0x5f0   :  { %6104 = vmatprep.subr.bf16.mxu0 %v14073_v32  ;;  %v14097_v37 = vld [vmem:[#allocation2 + $0x5e4] ss:$16 sps:$4 sm:$0xff]   ;;  %v14102_v47 = vld [vmem:[#allocation2 + $0x5e0] ss:$16 sps:$4 sm:$0xff]  }
 0x5f1   :  { %v14107_v48 = vld [vmem:[#allocation2 + $0x604] ss:$16 sps:$4 sm:$0xff]   ;;  %v14105_v50 = vld [vmem:[#allocation2 + $0x600] ss:$16 sps:$4 sm:$0xff]  }
 0x5f2   :  { %6140 = vmatpush1.bf16.msra.mxu1 %v14069_v63  ;;  %v14103_v49 = vld [vmem:[#allocation2 + $0x5c4] ss:$16 sps:$4 sm:$0xff]   ;;  %v14108_v52 = vld [vmem:[#allocation2 + $0x5c0] ss:$16 sps:$4 sm:$0xff]  }
 0x5f3   :  { %6141 = vmatprep.subr.bf16.mxu1 %v14077_v30  ;;  %6105 = vmatpush1.bf16.msra.mxu0 %v14078_v3  ;;  %v14113_v53 = vld [vmem:[#allocation2 + $0x7e4] ss:$16 sps:$4 sm:$0xff]   ;;  %v14111_v55 = vld [vmem:[#allocation2 + $0x7e0] ss:$16 sps:$4 sm:$0xff]   ;;  %v14156_v3 = vld [vmem:[#allocation2 + $0x4cc] ss:$16 sps:$4 sm:$0xff]  }
 0x5f4   :  { %6106 = vmatprep.subr.bf16.mxu0 %v14079_v38  ;;  %v14109_v61 = vld [vmem:[#allocation2 + $0x5a4] ss:$16 sps:$4 sm:$0xff]   ;;  %v14114_v60 = vld [vmem:[#allocation2 + $0x5a0] ss:$16 sps:$4 sm:$0xff]  }
 0x5f5   :  { %v14119_v62 = vld [vmem:[#allocation2 + $0x7c4] ss:$16 sps:$4 sm:$0xff]   ;;  %v14117_v22 = vld [vmem:[#allocation2 + $0x7c0] ss:$16 sps:$4 sm:$0xff]  }
 0x5f6   :  { %6142 = vmatpush1.bf16.msra.mxu1 %v14075_v33  ;;  %v14115_v1 = vld [vmem:[#allocation2 + $0x584] ss:$16 sps:$4 sm:$0xff]   ;;  %v14120_v2 = vld [vmem:[#allocation2 + $0x580] ss:$16 sps:$4 sm:$0xff]   ;;  %v14148_v33 = vld [vmem:[#allocation2 + $0x4e8] ss:$16 sps:$4 sm:$0xff]  }
 0x5f7   :  { %6143 = vmatprep.subr.bf16.mxu1 %v14083_v34  ;;  %6107 = vmatpush1.bf16.msra.mxu0 %v14084_v40  ;;  %v14125_v18 = vld [vmem:[#allocation2 + $0x7a4] ss:$16 sps:$4 sm:$0xff]   ;;  %v14123_v13 = vld [vmem:[#allocation2 + $0x7a0] ss:$16 sps:$4 sm:$0xff]  }
 0x5f8   :  { %6108 = vmatprep.subr.bf16.mxu0 %v14085_v41  ;;  %v14121_v5 = vld [vmem:[#allocation2 + $0x564] ss:$16 sps:$4 sm:$0xff]   ;;  %v14126_v11 = vld [vmem:[#allocation2 + $0x560] ss:$16 sps:$4 sm:$0xff]   ;;  %v14154_v41 = vld [vmem:[#allocation2 + $0x4c8] ss:$16 sps:$4 sm:$0xff]  }
 0x5f9   :  { %v14131_v7 = vld [vmem:[#allocation2 + $0x784] ss:$16 sps:$4 sm:$0xff]   ;;  %v14129_v16 = vld [vmem:[#allocation2 + $0x780] ss:$16 sps:$4 sm:$0xff]  }
 0x5fa   :  { %6144 = vmatpush1.bf16.msra.mxu1 %v14081_v27  ;;  %v14127_v14 = vld [vmem:[#allocation2 + $0x544] ss:$16 sps:$4 sm:$0xff]   ;;  %v14132_v59 = vld [vmem:[#allocation2 + $0x540] ss:$16 sps:$4 sm:$0xff]  }
 0x5fb   :  { %6145 = vmatprep.subr.bf16.mxu1 %v14089_v39  ;;  %6109 = vmatpush1.bf16.msra.mxu0 %v14090_v43  ;;  %v14133_v21 = vld [vmem:[#allocation2 + $0x524] ss:$16 sps:$4 sm:$0xff]   ;;  %v14135_v4 = vld [vmem:[#allocation2 + $0x760] ss:$16 sps:$4 sm:$0xff]   ;;  %v14159_v43 = vld [vmem:[#allocation2 + $0x4ac] ss:$16 sps:$4 sm:$0xff]  }
 0x5fc   :  { %6110 = vmatprep.subr.bf16.mxu0 %v14091_v44  ;;  %v14137_v6 = vld [vmem:[#allocation2 + $0x764] ss:$16 sps:$4 sm:$0xff]   ;;  %v14138_v42 = vld [vmem:[#allocation2 + $0x520] ss:$16 sps:$4 sm:$0xff]  }
 0x5fd   :  { %v14139_v8 = vld [vmem:[#allocation2 + $0x504] ss:$16 sps:$4 sm:$0xff]   ;;  %v14141_v12 = vld [vmem:[#allocation2 + $0x740] ss:$16 sps:$4 sm:$0xff]  }
 0x5fe   :  { %6146 = vmatpush1.bf16.msra.mxu1 %v14087_v56  ;;  %v14143_v58 = vld [vmem:[#allocation2 + $0x744] ss:$16 sps:$4 sm:$0xff]   ;;  %v14144_v9 = vld [vmem:[#allocation2 + $0x500] ss:$16 sps:$4 sm:$0xff]  }
 0x5ff   :  { %6147 = vmatprep.subr.bf16.mxu1 %v14095_v51  ;;  %6111 = vmatpush1.bf16.msra.mxu0 %v14096_v0  ;;  %v14147_v57 = vld [vmem:[#allocation2 + $0x724] ss:$16 sps:$4 sm:$0xff]   ;;  %v14145_v10 = vld [vmem:[#allocation2 + $0x720] ss:$16 sps:$4 sm:$0xff]   ;;  %v14165_v0 = vld [vmem:[#allocation2 + $0x48c] ss:$16 sps:$4 sm:$0xff]  }
 0x600   :  { %6112 = vmatprep.subr.bf16.mxu0 %v14097_v37  ;;  %v14153_v15 = vld [vmem:[#allocation2 + $0x704] ss:$16 sps:$4 sm:$0xff]   ;;  %v14151_v17 = vld [vmem:[#allocation2 + $0x700] ss:$16 sps:$4 sm:$0xff]  }
 0x602   :  { %6148 = vmatpush1.bf16.msra.mxu1 %v14093_v45  ;;  %v14157_v45 = vld [vmem:[#allocation2 + $0x4a8] ss:$16 sps:$4 sm:$0xff]  }
 0x603   :  { %6149 = vmatprep.subr.bf16.mxu1 %v14101_v46  ;;  %6113 = vmatpush2.bf16.msra.mxu0 %v14102_v47  ;;  %v14160_v46 = vld [vmem:[#allocation2 + $0x6e8] ss:$16 sps:$4 sm:$0xff]   ;;  %v14168_v47 = vld [vmem:[#allocation2 + $0x6cc] ss:$16 sps:$4 sm:$0xff]  }
 0x604   :  { %6114 = vmatprep.subr.bf16.mxu0 %v14103_v49  ;;  %v14166_v49 = vld [vmem:[#allocation2 + $0x6c8] ss:$16 sps:$4 sm:$0xff]  }
 0x606   :  { %6150 = vmatpush1.bf16.msra.mxu1 %v14099_v54 }
 0x607   :  { %6151 = vmatprep.subr.bf16.mxu1 %v14107_v48  ;;  %6115 = vmatpush2.bf16.msra.mxu0 %v14108_v52  ;;  %v14163_v48 = vld [vmem:[#allocation2 + $0x488] ss:$16 sps:$4 sm:$0xff]   ;;  %v14174_v52 = vld [vmem:[#allocation2 + $0x6ac] ss:$16 sps:$4 sm:$0xff]  }
 0x608   :  { %6116 = vmatprep.subr.bf16.mxu0 %v14109_v61  ;;  %v14172_v61 = vld [vmem:[#allocation2 + $0x6a8] ss:$16 sps:$4 sm:$0xff]  }
 0x60a   :  { %6152 = vmatpush1.bf16.msra.mxu1 %v14105_v50  ;;  %v14171_v50 = vld [vmem:[#allocation2 + $0x46c] ss:$16 sps:$4 sm:$0xff]  }
 0x60b   :  { %6153 = vmatprep.subr.bf16.mxu1 %v14113_v53  ;;  %6117 = vmatpush2.bf16.msra.mxu0 %v14114_v60  ;;  %v14169_v53 = vld [vmem:[#allocation2 + $0x468] ss:$16 sps:$4 sm:$0xff]  }
 0x60c   :  { %6118 = vmatprep.subr.bf16.mxu0 %v14115_v1  ;;  %v14175_v60 = vld [vmem:[#allocation2 + $0x448] ss:$16 sps:$4 sm:$0xff]  }
 0x60d   :  { %v14178_v1 = vld [vmem:[#allocation2 + $0x688] ss:$16 sps:$4 sm:$0xff]  }
 0x60e   :  { %6154 = vmatpush2.bf16.msra.mxu1 %v14111_v55  ;;  %v14177_v55 = vld [vmem:[#allocation2 + $0x44c] ss:$16 sps:$4 sm:$0xff]  }
 0x60f   :  { %6155 = vmatprep.subr.bf16.mxu1 %v14119_v62  ;;  %6119 = vmatpush2.bf16.msra.mxu0 %v14120_v2  ;;  %v14180_v62 = vld [vmem:[#allocation2 + $0x68c] ss:$16 sps:$4 sm:$0xff]   ;;  %v14181_v2 = vld [vmem:[#allocation2 + $0x428] ss:$16 sps:$4 sm:$0xff]  }
 0x610   :  { %6120 = vmatprep.subr.bf16.mxu0 %v14121_v5  ;;  %v14184_v5 = vld [vmem:[#allocation2 + $0x668] ss:$16 sps:$4 sm:$0xff]  }
 0x612   :  { %6156 = vmatpush2.bf16.msra.mxu1 %v14117_v22  ;;  %v14183_v22 = vld [vmem:[#allocation2 + $0x42c] ss:$16 sps:$4 sm:$0xff]  }
 0x613   :  { %6157 = vmatprep.subr.bf16.mxu1 %v14125_v18  ;;  %6121 = vmatpush2.bf16.msra.mxu0 %v14126_v11  ;;  %v14186_v18 = vld [vmem:[#allocation2 + $0x66c] ss:$16 sps:$4 sm:$0xff]   ;;  %v14187_v11 = vld [vmem:[#allocation2 + $0x408] ss:$16 sps:$4 sm:$0xff]  }
 0x614   :  { %6122 = vmatprep.subr.bf16.mxu0 %v14127_v14  ;;  %v14190_v14 = vld [vmem:[#allocation2 + $0x648] ss:$16 sps:$4 sm:$0xff]  }
 0x616   :  { %6158 = vmatpush2.bf16.msra.mxu1 %v14123_v13  ;;  %v14189_v13 = vld [vmem:[#allocation2 + $0x40c] ss:$16 sps:$4 sm:$0xff]  }
 0x617   :  { %6159 = vmatprep.subr.bf16.mxu1 %v14131_v7  ;;  %6123 = vmatpush2.bf16.msra.mxu0 %v14132_v59  ;;  %v14192_v7 = vld [vmem:[#allocation2 + $0x64c] ss:$16 sps:$4 sm:$0xff]  }
 0x618   :  { %6124 = vmatprep.subr.bf16.mxu0 %v14133_v21  ;;  %v14198_v59 = vld [vmem:[#allocation2 + $0x62c] ss:$16 sps:$4 sm:$0xff]   ;;  %v14193_v21 = vld [vmem:[#allocation2 + $0x5e8] ss:$16 sps:$4 sm:$0xff]  }
 0x61a   :  { %6160 = vmatpush2.bf16.msra.mxu1 %v14129_v16  ;;  %v14195_v16 = vld [vmem:[#allocation2 + $0x5ec] ss:$16 sps:$4 sm:$0xff]  }
 0x61b   :  { %6161 = vmatprep.subr.bf16.mxu1 %v14137_v6  ;;  %6125 = vmatpush2.bf16.msra.mxu0 %v14138_v42  ;;  %v14196_v6 = vld [vmem:[#allocation2 + $0x628] ss:$16 sps:$4 sm:$0xff]   ;;  %v14204_v42 = vld [vmem:[#allocation2 + $0x60c] ss:$16 sps:$4 sm:$0xff]  }
 0x61c   :  { %6126 = vmatprep.subr.bf16.mxu0 %v14139_v8  ;;  %v14199_v8 = vld [vmem:[#allocation2 + $0x5c8] ss:$16 sps:$4 sm:$0xff]  }
 0x61e   :  { %6162 = vmatpush2.bf16.msra.mxu1 %v14135_v4  ;;  %v14201_v4 = vld [vmem:[#allocation2 + $0x5cc] ss:$16 sps:$4 sm:$0xff]  }
 0x61f   :  { %6163 = vmatprep.subr.bf16.mxu1 %v14143_v58  ;;  %6127 = vmatpush2.bf16.msra.mxu0 %v14144_v9  ;;  %v14202_v58 = vld [vmem:[#allocation2 + $0x608] ss:$16 sps:$4 sm:$0xff]   ;;  %v14210_v9 = vld [vmem:[#allocation2 + $0x7ec] ss:$16 sps:$4 sm:$0xff]  }
 0x620   :  { %6178 = vmatprep.subr.bf16.mxu0 %v14150_v23  ;;  %v14208_v23 = vld [vmem:[#allocation2 + $0x7e8] ss:$16 sps:$4 sm:$0xff]  }
 0x622   :  { %6164 = vmatpush2.bf16.msra.mxu1 %v14141_v12  ;;  %v14207_v12 = vld [vmem:[#allocation2 + $0x5ac] ss:$16 sps:$4 sm:$0xff]  }
 0x623   :  { %6165 = vmatprep.subr.bf16.mxu1 %v14147_v57  ;;  %v14205_v57 = vld [vmem:[#allocation2 + $0x5a8] ss:$16 sps:$4 sm:$0xff]  }
 0x626   :  { %6166 = vmatpush2.bf16.msra.mxu1 %v14145_v10  ;;  %v14213_v10 = vld [vmem:[#allocation2 + $0x58c] ss:$16 sps:$4 sm:$0xff]  }
 0x627   :  { %6167 = vmatprep.subr.bf16.mxu1 %v14153_v15  ;;  %v14216_v15 = vld [vmem:[#allocation2 + $0x7cc] ss:$16 sps:$4 sm:$0xff]  }
 0x62a   :  { %6168 = vmatpush2.bf16.msra.mxu1 %v14151_v17  ;;  %v14211_v17 = vld [vmem:[#allocation2 + $0x588] ss:$16 sps:$4 sm:$0xff]  }
 0x62b   :  { %6219 = vmatprep.subr.bf16.mxu1 %v14162_v19  ;;  %v14214_v19 = vld [vmem:[#allocation2 + $0x7c8] ss:$16 sps:$4 sm:$0xff]  }
 0x6a5   :  { %v5131_v24 = vpop.f32.mrf.mxu1 }
 0x6a7   :  { %v5133_v26 = vpop.f32.mrf.mxu1 }
 0x6a9   :  { %v5135_v63 = vpop.f32.mrf.mxu1 }
 0x6aa   :  { %v15913_v30 = vpack.c.bf16 %v5135_v63, %v5131_v24  ;;  %v14219_v24 = vld [vmem:[#allocation2 + $0x56c] ss:$16 sps:$4 sm:$0xff]   ;;  %v14217_v63 = vld [vmem:[#allocation2 + $0x568] ss:$16 sps:$4 sm:$0xff]  }
 0x6ab   :  { %v5137_v31 = vpop.f32.mrf.mxu1 }
 0x6ac   :  { %v15915_v32 = vpack.c.bf16 %v5137_v31, %v5133_v26  ;;  %v5448_v39 = vrot.slane %v15913_v30, 2  ;;  %v14222_v26 = vld [vmem:[#allocation2 + $0x7ac] ss:$16 sps:$4 sm:$0xff]   ;;  %v14220_v31 = vld [vmem:[#allocation2 + $0x7a8] ss:$16 sps:$4 sm:$0xff]  }
 0x6ad   :  { %v5174_v34 = vpop.f32.mrf.mxu1 }
 0x6ae   :  { %v5449_v38 = vrot.slane %v15915_v32, 2 }
 0x6af   :  { %v5176_v27 = vpop.f32.mrf.mxu1 }
 0x6b0   :  { %6128 = vmatprep.mubr.bf16.mxu0 %v5449_v38 }
 0x6b1   :  { %v5178_v40 = vpop.f32.mrf.mxu1  ;;  %6129 = vmatmul.mubr.bf16.vlgmr.msra.gmra.mxu0 %v5448_v39 }
 0x6b2   :  { %6179 = vmatpush1.bf16.msra.mxu0 %v14148_v33  ;;  %6210 = vmatprep.mubr.bf16.mxu0 %v5449_v38  ;;  %v15921_v56 = vpack.c.bf16 %v5178_v40, %v5174_v34  ;;  %v14225_v33 = vld [vmem:[#allocation2 + $0x54c] ss:$16 sps:$4 sm:$0xff]   ;;  %v14226_v38 = vld [vmem:[#allocation2 + $0x788] ss:$16 sps:$4 sm:$0xff]  }
 0x6b3   :  { %v5180_v51 = vpop.f32.mrf.mxu1  ;;  %6180 = vmatprep.subr.bf16.mxu0 %v14156_v3  ;;  %v14228_v34 = vld [vmem:[#allocation2 + $0x78c] ss:$16 sps:$4 sm:$0xff]   ;;  %v14223_v3 = vld [vmem:[#allocation2 + $0x548] ss:$16 sps:$4 sm:$0xff]  }
 0x6b4   :  { %v15923_v44 = vpack.c.bf16 %v5180_v51, %v5176_v27  ;;  %v5450_v54 = vrot.slane %v15921_v56, 2  ;;  %v14231_v27 = vld [vmem:[#allocation2 + $0x52c] ss:$16 sps:$4 sm:$0xff]   ;;  %v14232_v51 = vld [vmem:[#allocation2 + $0x768] ss:$16 sps:$4 sm:$0xff]  }
 0x6b5   :  { %v14234_v40 = vld [vmem:[#allocation2 + $0x76c] ss:$16 sps:$4 sm:$0xff]  }
 0x6b6   :  { %6181 = vmatpush1.bf16.msra.mxu0 %v14154_v41  ;;  %v5451_v37 = vrot.slane %v15923_v44, 2  ;;  %v14229_v41 = vld [vmem:[#allocation2 + $0x528] ss:$16 sps:$4 sm:$0xff]  }
 0x6b7   :  { %6182 = vmatprep.subr.bf16.mxu0 %v14159_v43  ;;  %v14237_v43 = vld [vmem:[#allocation2 + $0x50c] ss:$16 sps:$4 sm:$0xff]  }
 0x6b8   :  { %6169 = vmatprep.mubr.bf16.mxu1 %v5451_v37 }
 0x6b9   :  { %6170 = vmatmul.mubr.bf16.vlgmr.msra.gmra.mxu1 %v5450_v54 }
 0x6ba   :  { %6183 = vmatpush1.bf16.msra.mxu0 %v14157_v45  ;;  %6220 = vmatpush1.bf16.msra.mxu1 %v14160_v46  ;;  %v14240_v45 = vld [vmem:[#allocation2 + $0x74c] ss:$16 sps:$4 sm:$0xff]   ;;  %v14235_v46 = vld [vmem:[#allocation2 + $0x508] ss:$16 sps:$4 sm:$0xff]  }
 0x6bb   :  { %6251 = vmatprep.mubr.bf16.mxu1 %v5451_v37  ;;  %6184 = vmatprep.subr.bf16.mxu0 %v14165_v0  ;;  %v14238_v0 = vld [vmem:[#allocation2 + $0x748] ss:$16 sps:$4 sm:$0xff]   ;;  %v14243_v37 = vld [vmem:[#allocation2 + $0x72c] ss:$16 sps:$4 sm:$0xff]  }
 0x6bc   :  { %6221 = vmatprep.subr.bf16.mxu1 %v14168_v47  ;;  %v14246_v47 = vld [vmem:[#allocation2 + $0xe4] ss:$16 sps:$4 sm:$0xff]  }
 0x6be   :  { %6185 = vmatpush1.bf16.msra.mxu0 %v14163_v48  ;;  %6222 = vmatpush1.bf16.msra.mxu1 %v14166_v49  ;;  %v14241_v48 = vld [vmem:[#allocation2 + $0x728] ss:$16 sps:$4 sm:$0xff]   ;;  %v14244_v49 = vld [vmem:[#allocation2 + $0xe0] ss:$16 sps:$4 sm:$0xff]  }
 0x6bf   :  { %6186 = vmatprep.subr.bf16.mxu0 %v14171_v50  ;;  %6223 = vmatprep.subr.bf16.mxu1 %v14174_v52  ;;  %v14249_v50 = vld [vmem:[#allocation2 + $0x70c] ss:$16 sps:$4 sm:$0xff]   ;;  %v14252_v52 = vld [vmem:[#allocation2 + $0xc4] ss:$16 sps:$4 sm:$0xff]  }
 0x6c2   :  { %6187 = vmatpush1.bf16.msra.mxu0 %v14169_v53  ;;  %6224 = vmatpush1.bf16.msra.mxu1 %v14172_v61  ;;  %v14247_v53 = vld [vmem:[#allocation2 + $0x708] ss:$16 sps:$4 sm:$0xff]   ;;  %v14250_v61 = vld [vmem:[#allocation2 + $0xc0] ss:$16 sps:$4 sm:$0xff]  }
 0x6c3   :  { %6188 = vmatprep.subr.bf16.mxu0 %v14177_v55  ;;  %6225 = vmatprep.subr.bf16.mxu1 %v14180_v62  ;;  %v14255_v55 = vld [vmem:[#allocation2 + $0xa4] ss:$16 sps:$4 sm:$0xff]  }
 0x6c4   :  { %v14258_v62 = vld [vmem:[#allocation2 + $0x2e4] ss:$16 sps:$4 sm:$0xff]  }
 0x6c6   :  { %6189 = vmatpush1.bf16.msra.mxu0 %v14175_v60  ;;  %6226 = vmatpush1.bf16.msra.mxu1 %v14178_v1  ;;  %v14253_v60 = vld [vmem:[#allocation2 + $0xa0] ss:$16 sps:$4 sm:$0xff]  }
 0x6c7   :  { %6190 = vmatprep.subr.bf16.mxu0 %v14183_v22  ;;  %6227 = vmatprep.subr.bf16.mxu1 %v14186_v18  ;;  %v14256_v1 = vld [vmem:[#allocation2 + $0x2e0] ss:$16 sps:$4 sm:$0xff]   ;;  %v14261_v22 = vld [vmem:[#allocation2 + $0x84] ss:$16 sps:$4 sm:$0xff]  }
 0x6c8   :  { %v14264_v18 = vld [vmem:[#allocation2 + $0x2c4] ss:$16 sps:$4 sm:$0xff]  }
 0x6ca   :  { %6191 = vmatpush1.bf16.msra.mxu0 %v14181_v2  ;;  %6228 = vmatpush1.bf16.msra.mxu1 %v14184_v5  ;;  %v14262_v2 = vld [vmem:[#allocation2 + $0x2c0] ss:$16 sps:$4 sm:$0xff]   ;;  %v14267_v5 = vld [vmem:[#allocation2 + $0x64] ss:$16 sps:$4 sm:$0xff]  }
 0x6cb   :  { %6192 = vmatprep.subr.bf16.mxu0 %v14189_v13  ;;  %6229 = vmatprep.subr.bf16.mxu1 %v14192_v7  ;;  %v14270_v13 = vld [vmem:[#allocation2 + $0x2a4] ss:$16 sps:$4 sm:$0xff]   ;;  %v14265_v7 = vld [vmem:[#allocation2 + $0x60] ss:$16 sps:$4 sm:$0xff]  }
 0x6ce   :  { %6193 = vmatpush1.bf16.msra.mxu0 %v14187_v11  ;;  %6230 = vmatpush1.bf16.msra.mxu1 %v14190_v14  ;;  %v14268_v11 = vld [vmem:[#allocation2 + $0x2a0] ss:$16 sps:$4 sm:$0xff]   ;;  %v14273_v14 = vld [vmem:[#allocation2 + $0x44] ss:$16 sps:$4 sm:$0xff]  }
 0x6cf   :  { %6194 = vmatprep.subr.bf16.mxu0 %v14195_v16  ;;  %6231 = vmatprep.subr.bf16.mxu1 %v14198_v59  ;;  %v14276_v16 = vld [vmem:[#allocation2 + $0x284] ss:$16 sps:$4 sm:$0xff]   ;;  %v14274_v59 = vld [vmem:[#allocation2 + $0x280] ss:$16 sps:$4 sm:$0xff]  }
 0x6d2   :  { %6195 = vmatpush2.bf16.msra.mxu0 %v14193_v21  ;;  %6232 = vmatpush1.bf16.msra.mxu1 %v14196_v6  ;;  %v14279_v21 = vld [vmem:[#allocation2 + $0x24] ss:$16 sps:$4 sm:$0xff]  }
 0x6d3   :  { %6196 = vmatprep.subr.bf16.mxu0 %v14201_v4  ;;  %6233 = vmatprep.subr.bf16.mxu1 %v14204_v42  ;;  %v14282_v6 = vld [vmem:[#allocation2 + $0x264] ss:$16 sps:$4 sm:$0xff]   ;;  %v14277_v4 = vld [vmem:[#allocation2 + $0x20] ss:$16 sps:$4 sm:$0xff]  }
 0x6d4   :  { %v14280_v42 = vld [vmem:[#allocation2 + $0x260] ss:$16 sps:$4 sm:$0xff]  }
 0x6d6   :  { %6197 = vmatpush2.bf16.msra.mxu0 %v14199_v8  ;;  %6234 = vmatpush1.bf16.msra.mxu1 %v14202_v58  ;;  %v14285_v8 = vld [vmem:[#allocation2 + $0x4] ss:$16 sps:$4 sm:$0xff]  }
 0x6d7   :  { %6198 = vmatprep.subr.bf16.mxu0 %v14207_v12  ;;  %6235 = vmatprep.subr.bf16.mxu1 %v14210_v9  ;;  %v14288_v58 = vld [vmem:[#allocation2 + $0x244] ss:$16 sps:$4 sm:$0xff]   ;;  %v14283_v12 = vld [vmem:[#allocation2] ss:$16 sps:$4 sm:$0xff]  }
 0x6d8   :  { %v14286_v9 = vld [vmem:[#allocation2 + $0x240] ss:$16 sps:$4 sm:$0xff]  }
 0x6da   :  { %6199 = vmatpush2.bf16.msra.mxu0 %v14205_v57  ;;  %6236 = vmatpush2.bf16.msra.mxu1 %v14208_v23  ;;  %v14291_v57 = vld [vmem:[#allocation2 + $0x1e4] ss:$16 sps:$4 sm:$0xff]  }
 0x6db   :  { %6200 = vmatprep.subr.bf16.mxu0 %v14213_v10  ;;  %6237 = vmatprep.subr.bf16.mxu1 %v14216_v15  ;;  %v14294_v23 = vld [vmem:[#allocation2 + $0x224] ss:$16 sps:$4 sm:$0xff]   ;;  %v14289_v10 = vld [vmem:[#allocation2 + $0x1e0] ss:$16 sps:$4 sm:$0xff]  }
 0x6dc   :  { %v14292_v15 = vld [vmem:[#allocation2 + $0x220] ss:$16 sps:$4 sm:$0xff]  }
 0x6de   :  { %6201 = vmatpush2.bf16.msra.mxu0 %v14211_v17  ;;  %6238 = vmatpush2.bf16.msra.mxu1 %v14214_v19  ;;  %v14297_v17 = vld [vmem:[#allocation2 + $0x1c4] ss:$16 sps:$4 sm:$0xff]  }
 0x6df   :  { %6202 = vmatprep.subr.bf16.mxu0 %v14219_v24  ;;  %6239 = vmatprep.subr.bf16.mxu1 %v14222_v26  ;;  %v14300_v19 = vld [vmem:[#allocation2 + $0x204] ss:$16 sps:$4 sm:$0xff]   ;;  %v14295_v24 = vld [vmem:[#allocation2 + $0x1c0] ss:$16 sps:$4 sm:$0xff]  }
 0x6e0   :  { %v14298_v26 = vld [vmem:[#allocation2 + $0x200] ss:$16 sps:$4 sm:$0xff]  }
 0x6e2   :  { %6203 = vmatpush2.bf16.msra.mxu0 %v14217_v63  ;;  %6240 = vmatpush2.bf16.msra.mxu1 %v14220_v31  ;;  %v14303_v63 = vld [vmem:[#allocation2 + $0x1a4] ss:$16 sps:$4 sm:$0xff]  }
 0x6e3   :  { %6204 = vmatprep.subr.bf16.mxu0 %v14225_v33  ;;  %6241 = vmatprep.subr.bf16.mxu1 %v14228_v34  ;;  %v14306_v31 = vld [vmem:[#allocation2 + $0x3e4] ss:$16 sps:$4 sm:$0xff]   ;;  %v14301_v33 = vld [vmem:[#allocation2 + $0x1a0] ss:$16 sps:$4 sm:$0xff]  }
 0x6e4   :  { %v14304_v34 = vld [vmem:[#allocation2 + $0x3e0] ss:$16 sps:$4 sm:$0xff]  }
 0x6e6   :  { %6205 = vmatpush2.bf16.msra.mxu0 %v14223_v3  ;;  %6242 = vmatpush2.bf16.msra.mxu1 %v14226_v38  ;;  %v14309_v3 = vld [vmem:[#allocation2 + $0x184] ss:$16 sps:$4 sm:$0xff]  }
 0x6e7   :  { %6206 = vmatprep.subr.bf16.mxu0 %v14231_v27  ;;  %6243 = vmatprep.subr.bf16.mxu1 %v14234_v40  ;;  %v14312_v38 = vld [vmem:[#allocation2 + $0x3c4] ss:$16 sps:$4 sm:$0xff]   ;;  %v14307_v27 = vld [vmem:[#allocation2 + $0x180] ss:$16 sps:$4 sm:$0xff]  }
 0x6e8   :  { %v14310_v40 = vld [vmem:[#allocation2 + $0x3c0] ss:$16 sps:$4 sm:$0xff]  }
 0x6ea   :  { %6207 = vmatpush2.bf16.msra.mxu0 %v14229_v41  ;;  %6244 = vmatpush2.bf16.msra.mxu1 %v14232_v51  ;;  %v14315_v41 = vld [vmem:[#allocation2 + $0x164] ss:$16 sps:$4 sm:$0xff]  }
 0x6eb   :  { %6208 = vmatprep.subr.bf16.mxu0 %v14237_v43  ;;  %6245 = vmatprep.subr.bf16.mxu1 %v14240_v45  ;;  %v14318_v51 = vld [vmem:[#allocation2 + $0x3a4] ss:$16 sps:$4 sm:$0xff]   ;;  %v14313_v43 = vld [vmem:[#allocation2 + $0x160] ss:$16 sps:$4 sm:$0xff]  }
 0x6ec   :  { %v14316_v45 = vld [vmem:[#allocation2 + $0x3a0] ss:$16 sps:$4 sm:$0xff]  }
 0x6ee   :  { %6209 = vmatpush2.bf16.msra.mxu0 %v14235_v46  ;;  %6246 = vmatpush2.bf16.msra.mxu1 %v14238_v0  ;;  %v14321_v46 = vld [vmem:[#allocation2 + $0x144] ss:$16 sps:$4 sm:$0xff]  }
 0x6ef   :  { %6247 = vmatprep.subr.bf16.mxu1 %v14243_v37  ;;  %6900 = vmatprep.subr.bf16.mxu0 %v14246_v47  ;;  %v14324_v0 = vld [vmem:[#allocation2 + $0x384] ss:$16 sps:$4 sm:$0xff]   ;;  %v14319_v37 = vld [vmem:[#allocation2 + $0x140] ss:$16 sps:$4 sm:$0xff]  }
 0x6f0   :  { %v14322_v47 = vld [vmem:[#allocation2 + $0x380] ss:$16 sps:$4 sm:$0xff]  }
 0x6f1   :  { %6211 = vmatmul.mubr.bf16.vlgmr.msra.gmra.mxu0 %v5448_v39  ;;  %v14259_v39 = vld [vmem:[#allocation2 + $0x80] ss:$16 sps:$4 sm:$0xff]  }
 0x6f2   :  { %6248 = vmatpush2.bf16.msra.mxu1 %v14241_v48  ;;  %6901 = vmatpush1.bf16.msra.mxu0 %v14244_v49  ;;  %v14327_v48 = vld [vmem:[#allocation2 + $0x124] ss:$16 sps:$4 sm:$0xff]  }
 0x6f3   :  { %6932 = vmatprep.mubr.bf16.mxu0 %v15915_v32  ;;  %6249 = vmatprep.subr.bf16.mxu1 %v14249_v50  ;;  %v14330_v49 = vld [vmem:[#allocation2 + $0x364] ss:$16 sps:$4 sm:$0xff]   ;;  %v14325_v50 = vld [vmem:[#allocation2 + $0x120] ss:$16 sps:$4 sm:$0xff]  }
 0x6f4   :  { %6902 = vmatprep.subr.bf16.mxu0 %v14252_v52  ;;  %v14328_v52 = vld [vmem:[#allocation2 + $0x360] ss:$16 sps:$4 sm:$0xff]  }
 0x6f6   :  { %6250 = vmatpush2.bf16.msra.mxu1 %v14247_v53  ;;  %6903 = vmatpush1.bf16.msra.mxu0 %v14250_v61  ;;  %v14333_v53 = vld [vmem:[#allocation2 + $0x104] ss:$16 sps:$4 sm:$0xff]  }
 0x6f7   :  { %6904 = vmatprep.subr.bf16.mxu0 %v14255_v55  ;;  %6941 = vmatprep.subr.bf16.mxu1 %v14258_v62  ;;  %v14336_v61 = vld [vmem:[#allocation2 + $0x344] ss:$16 sps:$4 sm:$0xff]   ;;  %v14331_v55 = vld [vmem:[#allocation2 + $0x100] ss:$16 sps:$4 sm:$0xff]  }
 0x6f8   :  { %v14334_v62 = vld [vmem:[#allocation2 + $0x340] ss:$16 sps:$4 sm:$0xff]  }
 0x6f9   :  { %6252 = vmatmul.mubr.bf16.vlgmr.msra.gmra.mxu1 %v5450_v54  ;;  %v14271_v54 = vld [vmem:[#allocation2 + $0x40] ss:$16 sps:$4 sm:$0xff]  }
 0x6fa   :  { %6905 = vmatpush1.bf16.msra.mxu0 %v14253_v60  ;;  %6942 = vmatpush1.bf16.msra.mxu1 %v14256_v1  ;;  %v14339_v60 = vld [vmem:[#allocation2 + $0x324] ss:$16 sps:$4 sm:$0xff]   ;;  %v14342_v1 = vld [vmem:[#allocation2 + $0xec] ss:$16 sps:$4 sm:$0xff]  }
 0x6fb   :  { %6973 = vmatprep.mubr.bf16.mxu1 %v15923_v44  ;;  %6906 = vmatprep.subr.bf16.mxu0 %v14261_v22  ;;  %v14337_v22 = vld [vmem:[#allocation2 + $0x320] ss:$16 sps:$4 sm:$0xff]  }
 0x6fc   :  { %6943 = vmatprep.subr.bf16.mxu1 %v14264_v18  ;;  %v14340_v18 = vld [vmem:[#allocation2 + $0xe8] ss:$16 sps:$4 sm:$0xff]  }
 0x6fe   :  { %6907 = vmatpush1.bf16.msra.mxu0 %v14259_v39  ;;  %6944 = vmatpush1.bf16.msra.mxu1 %v14262_v2  ;;  %v14345_v39 = vld [vmem:[#allocation2 + $0x304] ss:$16 sps:$4 sm:$0xff]   ;;  %v14348_v2 = vld [vmem:[#allocation2 + $0xcc] ss:$16 sps:$4 sm:$0xff]  }
 0x6ff   :  { %6908 = vmatprep.subr.bf16.mxu0 %v14267_v5  ;;  %6945 = vmatprep.subr.bf16.mxu1 %v14270_v13  ;;  %v14343_v5 = vld [vmem:[#allocation2 + $0x300] ss:$16 sps:$4 sm:$0xff]   ;;  %v14346_v13 = vld [vmem:[#allocation2 + $0xc8] ss:$16 sps:$4 sm:$0xff]  }
 0x702   :  { %6909 = vmatpush1.bf16.msra.mxu0 %v14265_v7  ;;  %6946 = vmatpush1.bf16.msra.mxu1 %v14268_v11  ;;  %v14351_v7 = vld [vmem:[#allocation2 + $0xac] ss:$16 sps:$4 sm:$0xff]  }
 0x703   :  { %6910 = vmatprep.subr.bf16.mxu0 %v14273_v14  ;;  %6947 = vmatprep.subr.bf16.mxu1 %v14276_v16  ;;  %v14354_v11 = vld [vmem:[#allocation2 + $0x2ec] ss:$16 sps:$4 sm:$0xff]   ;;  %v14349_v14 = vld [vmem:[#allocation2 + $0xa8] ss:$16 sps:$4 sm:$0xff]  }
 0x704   :  { %v14352_v16 = vld [vmem:[#allocation2 + $0x2e8] ss:$16 sps:$4 sm:$0xff]  }
 0x706   :  { %6911 = vmatpush1.bf16.msra.mxu0 %v14271_v54  ;;  %6948 = vmatpush1.bf16.msra.mxu1 %v14274_v59  ;;  %v14357_v54 = vld [vmem:[#allocation2 + $0x8c] ss:$16 sps:$4 sm:$0xff]  }
 0x707   :  { %6912 = vmatprep.subr.bf16.mxu0 %v14279_v21  ;;  %6949 = vmatprep.subr.bf16.mxu1 %v14282_v6  ;;  %v14360_v59 = vld [vmem:[#allocation2 + $0x2cc] ss:$16 sps:$4 sm:$0xff]   ;;  %v14355_v21 = vld [vmem:[#allocation2 + $0x88] ss:$16 sps:$4 sm:$0xff]  }
 0x708   :  { %v14358_v6 = vld [vmem:[#allocation2 + $0x2c8] ss:$16 sps:$4 sm:$0xff]  }
 0x70a   :  { %6913 = vmatpush1.bf16.msra.mxu0 %v14277_v4  ;;  %6950 = vmatpush1.bf16.msra.mxu1 %v14280_v42  ;;  %v14363_v4 = vld [vmem:[#allocation2 + $0x6c] ss:$16 sps:$4 sm:$0xff]  }
 0x70b   :  { %6914 = vmatprep.subr.bf16.mxu0 %v14285_v8  ;;  %6951 = vmatprep.subr.bf16.mxu1 %v14288_v58  ;;  %v14366_v42 = vld [vmem:[#allocation2 + $0x2ac] ss:$16 sps:$4 sm:$0xff]   ;;  %v14361_v8 = vld [vmem:[#allocation2 + $0x68] ss:$16 sps:$4 sm:$0xff]  }
 0x70c   :  { %v14364_v58 = vld [vmem:[#allocation2 + $0x2a8] ss:$16 sps:$4 sm:$0xff]  }
 0x70e   :  { %6915 = vmatpush1.bf16.msra.mxu0 %v14283_v12  ;;  %6952 = vmatpush1.bf16.msra.mxu1 %v14286_v9  ;;  %v14369_v12 = vld [vmem:[#allocation2 + $0x4c] ss:$16 sps:$4 sm:$0xff]  }
 0x70f   :  { %6916 = vmatprep.subr.bf16.mxu0 %v14291_v57  ;;  %6953 = vmatprep.subr.bf16.mxu1 %v14294_v23  ;;  %v14372_v9 = vld [vmem:[#allocation2 + $0x28c] ss:$16 sps:$4 sm:$0xff]   ;;  %v14367_v57 = vld [vmem:[#allocation2 + $0x48] ss:$16 sps:$4 sm:$0xff]  }
 0x710   :  { %v14370_v23 = vld [vmem:[#allocation2 + $0x288] ss:$16 sps:$4 sm:$0xff]  }
 0x712   :  { %6917 = vmatpush2.bf16.msra.mxu0 %v14289_v10  ;;  %6954 = vmatpush1.bf16.msra.mxu1 %v14292_v15  ;;  %v14375_v10 = vld [vmem:[#allocation2 + $0x2c] ss:$16 sps:$4 sm:$0xff]  }
 0x713   :  { %6918 = vmatprep.subr.bf16.mxu0 %v14297_v17  ;;  %6955 = vmatprep.subr.bf16.mxu1 %v14300_v19  ;;  %v14378_v15 = vld [vmem:[#allocation2 + $0x26c] ss:$16 sps:$4 sm:$0xff]   ;;  %v14373_v17 = vld [vmem:[#allocation2 + $0x28] ss:$16 sps:$4 sm:$0xff]  }
 0x714   :  { %v14376_v19 = vld [vmem:[#allocation2 + $0x268] ss:$16 sps:$4 sm:$0xff]  }
 0x716   :  { %6919 = vmatpush2.bf16.msra.mxu0 %v14295_v24  ;;  %6956 = vmatpush1.bf16.msra.mxu1 %v14298_v26  ;;  %v14381_v24 = vld [vmem:[#allocation2 + $0xc] ss:$16 sps:$4 sm:$0xff]  }
 0x717   :  { %6920 = vmatprep.subr.bf16.mxu0 %v14303_v63  ;;  %6957 = vmatprep.subr.bf16.mxu1 %v14306_v31  ;;  %v14384_v26 = vld [vmem:[#allocation2 + $0x24c] ss:$16 sps:$4 sm:$0xff]   ;;  %v14379_v63 = vld [vmem:[#allocation2 + $0x8] ss:$16 sps:$4 sm:$0xff]  }
 0x718   :  { %v14382_v31 = vld [vmem:[#allocation2 + $0x248] ss:$16 sps:$4 sm:$0xff]  }
 0x71a   :  { %6921 = vmatpush2.bf16.msra.mxu0 %v14301_v33  ;;  %6958 = vmatpush2.bf16.msra.mxu1 %v14304_v34  ;;  %v14387_v33 = vld [vmem:[#allocation2 + $0x1ec] ss:$16 sps:$4 sm:$0xff]  }
 0x71b   :  { %6922 = vmatprep.subr.bf16.mxu0 %v14309_v3  ;;  %6959 = vmatprep.subr.bf16.mxu1 %v14312_v38  ;;  %v14390_v34 = vld [vmem:[#allocation2 + $0x22c] ss:$16 sps:$4 sm:$0xff]   ;;  %v14385_v3 = vld [vmem:[#allocation2 + $0x1e8] ss:$16 sps:$4 sm:$0xff]  }
 0x71c   :  { %v14388_v38 = vld [vmem:[#allocation2 + $0x228] ss:$16 sps:$4 sm:$0xff]  }
 0x71e   :  { %6923 = vmatpush2.bf16.msra.mxu0 %v14307_v27  ;;  %6960 = vmatpush2.bf16.msra.mxu1 %v14310_v40  ;;  %v14393_v27 = vld [vmem:[#allocation2 + $0x1cc] ss:$16 sps:$4 sm:$0xff]  }
 0x71f   :  { %6924 = vmatprep.subr.bf16.mxu0 %v14315_v41  ;;  %6961 = vmatprep.subr.bf16.mxu1 %v14318_v51  ;;  %v14396_v40 = vld [vmem:[#allocation2 + $0x20c] ss:$16 sps:$4 sm:$0xff]   ;;  %v14391_v41 = vld [vmem:[#allocation2 + $0x1c8] ss:$16 sps:$4 sm:$0xff]  }
 0x720   :  { %v14394_v51 = vld [vmem:[#allocation2 + $0x208] ss:$16 sps:$4 sm:$0xff]  }
 0x722   :  { %6925 = vmatpush2.bf16.msra.mxu0 %v14313_v43  ;;  %6962 = vmatpush2.bf16.msra.mxu1 %v14316_v45  ;;  %v14399_v43 = vld [vmem:[#allocation2 + $0x1ac] ss:$16 sps:$4 sm:$0xff]  }
 0x723   :  { %6926 = vmatprep.subr.bf16.mxu0 %v14321_v46  ;;  %6963 = vmatprep.subr.bf16.mxu1 %v14324_v0  ;;  %v14402_v45 = vld [vmem:[#allocation2 + $0x3ec] ss:$16 sps:$4 sm:$0xff]   ;;  %v14397_v46 = vld [vmem:[#allocation2 + $0x1a8] ss:$16 sps:$4 sm:$0xff]  }
 0x724   :  { %v14400_v0 = vld [vmem:[#allocation2 + $0x3e8] ss:$16 sps:$4 sm:$0xff]  }
 0x726   :  { %6927 = vmatpush2.bf16.msra.mxu0 %v14319_v37  ;;  %6964 = vmatpush2.bf16.msra.mxu1 %v14322_v47  ;;  %v14405_v37 = vld [vmem:[#allocation2 + $0x18c] ss:$16 sps:$4 sm:$0xff]  }
 0x727   :  { %6928 = vmatprep.subr.bf16.mxu0 %v14327_v48  ;;  %6965 = vmatprep.subr.bf16.mxu1 %v14330_v49  ;;  %v14408_v47 = vld [vmem:[#allocation2 + $0x3cc] ss:$16 sps:$4 sm:$0xff]   ;;  %v14403_v48 = vld [vmem:[#allocation2 + $0x188] ss:$16 sps:$4 sm:$0xff]  }
 0x728   :  { %v14406_v49 = vld [vmem:[#allocation2 + $0x3c8] ss:$16 sps:$4 sm:$0xff]  }
 0x72a   :  { %6929 = vmatpush2.bf16.msra.mxu0 %v14325_v50  ;;  %6966 = vmatpush2.bf16.msra.mxu1 %v14328_v52  ;;  %v14411_v50 = vld [vmem:[#allocation2 + $0x16c] ss:$16 sps:$4 sm:$0xff]  }
 0x72b   :  { %6930 = vmatprep.subr.bf16.mxu0 %v14333_v53  ;;  %6967 = vmatprep.subr.bf16.mxu1 %v14336_v61  ;;  %v14414_v52 = vld [vmem:[#allocation2 + $0x3ac] ss:$16 sps:$4 sm:$0xff]   ;;  %v14409_v53 = vld [vmem:[#allocation2 + $0x168] ss:$16 sps:$4 sm:$0xff]  }
 0x72c   :  { %v14412_v61 = vld [vmem:[#allocation2 + $0x3a8] ss:$16 sps:$4 sm:$0xff]  }
 0x72e   :  { %6931 = vmatpush2.bf16.msra.mxu0 %v14331_v55  ;;  %6968 = vmatpush2.bf16.msra.mxu1 %v14334_v62  ;;  %v14417_v55 = vld [vmem:[#allocation2 + $0x14c] ss:$16 sps:$4 sm:$0xff]  }
 0x72f   :  { %6969 = vmatprep.subr.bf16.mxu1 %v14339_v60  ;;  %6982 = vmatprep.subr.bf16.mxu0 %v14342_v1  ;;  %v14420_v62 = vld [vmem:[#allocation2 + $0x38c] ss:$16 sps:$4 sm:$0xff]   ;;  %v14415_v60 = vld [vmem:[#allocation2 + $0x148] ss:$16 sps:$4 sm:$0xff]  }
 0x730   :  { %v14418_v1 = vld [vmem:[#allocation2 + $0x388] ss:$16 sps:$4 sm:$0xff]  }
 0x731   :  { %6933 = vmatmul.mubr.bf16.vlgmr.msra.gmra.mxu0 %v15913_v30 }
 0x732   :  { %6970 = vmatpush2.bf16.msra.mxu1 %v14337_v22  ;;  %6983 = vmatpush1.bf16.msra.mxu0 %v14340_v18  ;;  %v14423_v22 = vld [vmem:[#allocation2 + $0x12c] ss:$16 sps:$4 sm:$0xff]  }
 0x733   :  { %7014 = vmatprep.mubr.bf16.mxu0 %v15915_v32  ;;  %6971 = vmatprep.subr.bf16.mxu1 %v14345_v39  ;;  %v14426_v18 = vld [vmem:[#allocation2 + $0x36c] ss:$16 sps:$4 sm:$0xff]   ;;  %v14421_v39 = vld [vmem:[#allocation2 + $0x128] ss:$16 sps:$4 sm:$0xff]  }
 0x734   :  { %6984 = vmatprep.subr.bf16.mxu0 %v14348_v2  ;;  %v14424_v2 = vld [vmem:[#allocation2 + $0x368] ss:$16 sps:$4 sm:$0xff]  }
 0x736   :  { %6972 = vmatpush2.bf16.msra.mxu1 %v14343_v5  ;;  %6985 = vmatpush1.bf16.msra.mxu0 %v14346_v13  ;;  %v14429_v5 = vld [vmem:[#allocation2 + $0x10c] ss:$16 sps:$4 sm:$0xff]  }
 0x737   :  { %6986 = vmatprep.subr.bf16.mxu0 %v14351_v7  ;;  %7023 = vmatprep.subr.bf16.mxu1 %v14354_v11  ;;  %v14432_v13 = vld [vmem:[#allocation2 + $0x34c] ss:$16 sps:$4 sm:$0xff]   ;;  %v14427_v7 = vld [vmem:[#allocation2 + $0x108] ss:$16 sps:$4 sm:$0xff]  }
 0x738   :  { %v14430_v11 = vld [vmem:[#allocation2 + $0x348] ss:$16 sps:$4 sm:$0xff]  }
 0x739   :  { %6974 = vmatmul.mubr.bf16.vlgmr.msra.gmra.mxu1 %v15921_v56 }
 0x73a   :  { %6987 = vmatpush1.bf16.msra.mxu0 %v14349_v14  ;;  %7024 = vmatpush1.bf16.msra.mxu1 %v14352_v16  ;;  %v14435_v14 = vld [vmem:[#allocation2 + $0x32c] ss:$16 sps:$4 sm:$0xff]   ;;  %v14438_v16 = vld [vmem:[#allocation2 + $0x8e4] ss:$16 sps:$4 sm:$0xff]  }
 0x73b   :  { %7055 = vmatprep.mubr.bf16.mxu1 %v15923_v44  ;;  %6988 = vmatprep.subr.bf16.mxu0 %v14357_v54  ;;  %v14433_v54 = vld [vmem:[#allocation2 + $0x328] ss:$16 sps:$4 sm:$0xff]  }
 0x73c   :  { %7025 = vmatprep.subr.bf16.mxu1 %v14360_v59  ;;  %v14436_v59 = vld [vmem:[#allocation2 + $0x8e0] ss:$16 sps:$4 sm:$0xff]  }
 0x73e   :  { %6989 = vmatpush1.bf16.msra.mxu0 %v14355_v21  ;;  %7026 = vmatpush1.bf16.msra.mxu1 %v14358_v6  ;;  %v14441_v21 = vld [vmem:[#allocation2 + $0x30c] ss:$16 sps:$4 sm:$0xff]   ;;  %v14444_v6 = vld [vmem:[#allocation2 + $0x8c4] ss:$16 sps:$4 sm:$0xff]  }
 0x73f   :  { %6990 = vmatprep.subr.bf16.mxu0 %v14363_v4  ;;  %7027 = vmatprep.subr.bf16.mxu1 %v14366_v42  ;;  %v7194_v42 = vrot.slane %v15915_v32, 4 }
 0x742   :  { %6991 = vmatpush1.bf16.msra.mxu0 %v14361_v8  ;;  %7028 = vmatpush1.bf16.msra.mxu1 %v14364_v58  ;;  %v14439_v8 = vld [vmem:[#allocation2 + $0x308] ss:$16 sps:$4 sm:$0xff]   ;;  %v14442_v58 = vld [vmem:[#allocation2 + $0x8c0] ss:$16 sps:$4 sm:$0xff]  }
 0x743   :  { %6992 = vmatprep.subr.bf16.mxu0 %v14369_v12  ;;  %7029 = vmatprep.subr.bf16.mxu1 %v14372_v9  ;;  %v14447_v9 = vld [vmem:[#allocation2 + $0x8a4] ss:$16 sps:$4 sm:$0xff]  }
 0x746   :  { %6993 = vmatpush1.bf16.msra.mxu0 %v14367_v57  ;;  %7030 = vmatpush1.bf16.msra.mxu1 %v14370_v23  ;;  %v14450_v57 = vld [vmem:[#allocation2 + $0xae4] ss:$16 sps:$4 sm:$0xff]  }
 0x747   :  { %6994 = vmatprep.subr.bf16.mxu0 %v14375_v10  ;;  %7031 = vmatprep.subr.bf16.mxu1 %v14378_v15  ;;  %v14445_v10 = vld [vmem:[#allocation2 + $0x8a0] ss:$16 sps:$4 sm:$0xff]  }
 0x748   :  { %v14448_v15 = vld [vmem:[#allocation2 + $0xae0] ss:$16 sps:$4 sm:$0xff]  }
 0x74a   :  { %6995 = vmatpush1.bf16.msra.mxu0 %v14373_v17  ;;  %7032 = vmatpush1.bf16.msra.mxu1 %v14376_v19  ;;  %v14453_v19 = vld [vmem:[#allocation2 + $0x884] ss:$16 sps:$4 sm:$0xff]  }
 0x74b   :  { %6996 = vmatprep.subr.bf16.mxu0 %v14381_v24  ;;  %7033 = vmatprep.subr.bf16.mxu1 %v14384_v26  ;;  %v14456_v24 = vld [vmem:[#allocation2 + $0xac4] ss:$16 sps:$4 sm:$0xff]  }
 0x74e   :  { %6997 = vmatpush1.bf16.msra.mxu0 %v14379_v63  ;;  %7034 = vmatpush1.bf16.msra.mxu1 %v14382_v31  ;;  %v7196_v63 = vrot.slane %v15923_v44, 4 }
 0x74f   :  { %6998 = vmatprep.subr.bf16.mxu0 %v14387_v33  ;;  %7035 = vmatprep.subr.bf16.mxu1 %v14390_v34  ;;  %v14451_v33 = vld [vmem:[#allocation2 + $0x880] ss:$16 sps:$4 sm:$0xff]  }
 0x750   :  { %v14454_v34 = vld [vmem:[#allocation2 + $0xac0] ss:$16 sps:$4 sm:$0xff]  }
 0x752   :  { %6999 = vmatpush2.bf16.msra.mxu0 %v14385_v3  ;;  %7036 = vmatpush1.bf16.msra.mxu1 %v14388_v38  ;;  %v14459_v38 = vld [vmem:[#allocation2 + $0x864] ss:$16 sps:$4 sm:$0xff]  }
 0x753   :  { %7000 = vmatprep.subr.bf16.mxu0 %v14393_v27  ;;  %7037 = vmatprep.subr.bf16.mxu1 %v14396_v40  ;;  %v14462_v27 = vld [vmem:[#allocation2 + $0xaa4] ss:$16 sps:$4 sm:$0xff]  }
 0x756   :  { %7001 = vmatpush2.bf16.msra.mxu0 %v14391_v41  ;;  %7038 = vmatpush1.bf16.msra.mxu1 %v14394_v51  ;;  %v14457_v51 = vld [vmem:[#allocation2 + $0x860] ss:$16 sps:$4 sm:$0xff]  }
 0x757   :  { %7002 = vmatprep.subr.bf16.mxu0 %v14399_v43  ;;  %7039 = vmatprep.subr.bf16.mxu1 %v14402_v45  ;;  %v14460_v43 = vld [vmem:[#allocation2 + $0xaa0] ss:$16 sps:$4 sm:$0xff]  }
 0x75a   :  { %7003 = vmatpush2.bf16.msra.mxu0 %v14397_v46  ;;  %7040 = vmatpush2.bf16.msra.mxu1 %v14400_v0  ;;  %v14465_v46 = vld [vmem:[#allocation2 + $0x844] ss:$16 sps:$4 sm:$0xff]  }
 0x75b   :  { %7004 = vmatprep.subr.bf16.mxu0 %v14405_v37  ;;  %7041 = vmatprep.subr.bf16.mxu1 %v14408_v47  ;;  %v14468_v0 = vld [vmem:[#allocation2 + $0xa84] ss:$16 sps:$4 sm:$0xff]   ;;  %v14463_v37 = vld [vmem:[#allocation2 + $0x840] ss:$16 sps:$4 sm:$0xff]  }
 0x75c   :  { %v14466_v47 = vld [vmem:[#allocation2 + $0xa80] ss:$16 sps:$4 sm:$0xff]  }
 0x75e   :  { %7005 = vmatpush2.bf16.msra.mxu0 %v14403_v48  ;;  %7042 = vmatpush2.bf16.msra.mxu1 %v14406_v49  ;;  %v14471_v48 = vld [vmem:[#allocation2 + $0x824] ss:$16 sps:$4 sm:$0xff]  }
 0x75f   :  { %7006 = vmatprep.subr.bf16.mxu0 %v14411_v50  ;;  %7043 = vmatprep.subr.bf16.mxu1 %v14414_v52  ;;  %v14474_v49 = vld [vmem:[#allocation2 + $0xa64] ss:$16 sps:$4 sm:$0xff]   ;;  %v14469_v50 = vld [vmem:[#allocation2 + $0x820] ss:$16 sps:$4 sm:$0xff]  }
 0x760   :  { %v14472_v52 = vld [vmem:[#allocation2 + $0xa60] ss:$16 sps:$4 sm:$0xff]  }
 0x762   :  { %7007 = vmatpush2.bf16.msra.mxu0 %v14409_v53  ;;  %7044 = vmatpush2.bf16.msra.mxu1 %v14412_v61  ;;  %v14477_v53 = vld [vmem:[#allocation2 + $0x804] ss:$16 sps:$4 sm:$0xff]  }
 0x763   :  { %7008 = vmatprep.subr.bf16.mxu0 %v14417_v55  ;;  %7045 = vmatprep.subr.bf16.mxu1 %v14420_v62  ;;  %v14480_v61 = vld [vmem:[#allocation2 + $0xa44] ss:$16 sps:$4 sm:$0xff]   ;;  %v14475_v55 = vld [vmem:[#allocation2 + $0x800] ss:$16 sps:$4 sm:$0xff]  }
 0x764   :  { %v14478_v62 = vld [vmem:[#allocation2 + $0xa40] ss:$16 sps:$4 sm:$0xff]  }
 0x766   :  { %7009 = vmatpush2.bf16.msra.mxu0 %v14415_v60  ;;  %7046 = vmatpush2.bf16.msra.mxu1 %v14418_v1  ;;  %v14483_v60 = vld [vmem:[#allocation2 + $0x9e4] ss:$16 sps:$4 sm:$0xff]  }
 0x767   :  { %7010 = vmatprep.subr.bf16.mxu0 %v14423_v22  ;;  %7047 = vmatprep.subr.bf16.mxu1 %v14426_v18  ;;  %v14486_v1 = vld [vmem:[#allocation2 + $0xa24] ss:$16 sps:$4 sm:$0xff]   ;;  %v14481_v22 = vld [vmem:[#allocation2 + $0x9e0] ss:$16 sps:$4 sm:$0xff]  }
 0x768   :  { %v14484_v18 = vld [vmem:[#allocation2 + $0xa20] ss:$16 sps:$4 sm:$0xff]  }
 0x76a   :  { %7011 = vmatpush2.bf16.msra.mxu0 %v14421_v39  ;;  %7048 = vmatpush2.bf16.msra.mxu1 %v14424_v2  ;;  %v14489_v39 = vld [vmem:[#allocation2 + $0x9c4] ss:$16 sps:$4 sm:$0xff]  }
 0x76b   :  { %7012 = vmatprep.subr.bf16.mxu0 %v14429_v5  ;;  %7049 = vmatprep.subr.bf16.mxu1 %v14432_v13  ;;  %v14492_v2 = vld [vmem:[#allocation2 + $0xa04] ss:$16 sps:$4 sm:$0xff]   ;;  %v14487_v5 = vld [vmem:[#allocation2 + $0x9c0] ss:$16 sps:$4 sm:$0xff]  }
 0x76c   :  { %v14490_v13 = vld [vmem:[#allocation2 + $0xa00] ss:$16 sps:$4 sm:$0xff]  }
 0x76e   :  { %7013 = vmatpush2.bf16.msra.mxu0 %v14427_v7  ;;  %7050 = vmatpush2.bf16.msra.mxu1 %v14430_v11  ;;  %v14495_v7 = vld [vmem:[#allocation2 + $0x9a4] ss:$16 sps:$4 sm:$0xff]  }
 0x76f   :  { %7051 = vmatprep.subr.bf16.mxu1 %v14435_v14  ;;  %7841 = vmatprep.subr.bf16.mxu0 %v14438_v16  ;;  %v14498_v11 = vld [vmem:[#allocation2 + $0xbe4] ss:$16 sps:$4 sm:$0xff]   ;;  %v14493_v14 = vld [vmem:[#allocation2 + $0x9a0] ss:$16 sps:$4 sm:$0xff]  }
 0x770   :  { %v14496_v16 = vld [vmem:[#allocation2 + $0xbe0] ss:$16 sps:$4 sm:$0xff]  }
 0x771   :  { %7015 = vmatmul.mubr.bf16.vlgmr.msra.gmra.mxu0 %v15913_v30  ;;  %v6130_v4 = vpop.f32.mrf.mxu0 }
 0x772   :  { %7052 = vmatpush2.bf16.msra.mxu1 %v14433_v54  ;;  %7842 = vmatpush1.bf16.msra.mxu0 %v14436_v59  ;;  %v14501_v54 = vld [vmem:[#allocation2 + $0x984] ss:$16 sps:$4 sm:$0xff]  }
 0x773   :  { %7873 = vmatprep.mubr.bf16.mxu0 %v7194_v42  ;;  %v6132_v12 = vpop.f32.mrf.mxu0  ;;  %7053 = vmatprep.subr.bf16.mxu1 %v14441_v21  ;;  %v14504_v59 = vld [vmem:[#allocation2 + $0xbc4] ss:$16 sps:$4 sm:$0xff]   ;;  %v14499_v21 = vld [vmem:[#allocation2 + $0x980] ss:$16 sps:$4 sm:$0xff]  }
 0x774   :  { %7843 = vmatprep.subr.bf16.mxu0 %v14444_v6  ;;  %v14502_v6 = vld [vmem:[#allocation2 + $0xbc0] ss:$16 sps:$4 sm:$0xff]  }
 0x775   :  { %v6134_v23 = vpop.f32.mrf.mxu0 }
 0x776   :  { %7054 = vmatpush2.bf16.msra.mxu1 %v14439_v8  ;;  %7844 = vmatpush1.bf16.msra.mxu0 %v14442_v58  ;;  %v14510_v8 = vld [vmem:[#allocation2 + $0xba4] ss:$16 sps:$4 sm:$0xff]   ;;  %v14505_v58 = vld [vmem:[#allocation2 + $0x960] ss:$16 sps:$4 sm:$0xff]  }
 0x777   :  { %v6135_v17 = vpop.f32.mrf.mxu0  ;;  %7845 = vmatprep.subr.bf16.mxu0 %v14447_v9  ;;  %7882 = vmatprep.subr.bf16.mxu1 %v14450_v57  ;;  %v14513_v9 = vld [vmem:[#allocation2 + $0x944] ss:$16 sps:$4 sm:$0xff]   ;;  %v14511_v23 = vld [vmem:[#allocation2 + $0x940] ss:$16 sps:$4 sm:$0xff]  }
 0x778   :  { %v14516_v57 = vld [vmem:[#allocation2 + $0xb84] ss:$16 sps:$4 sm:$0xff]  }
 0x779   :  { %7056 = vmatmul.mubr.bf16.vlgmr.msra.gmra.mxu1 %v15921_v56  ;;  %v6171_v26 = vpop.f32.mrf.mxu1  ;;  %v14522_v17 = vld [vmem:[#allocation2 + $0xb64] ss:$16 sps:$4 sm:$0xff]  }
 0x77a   :  { %v15945_v31 = vadd.f32 %v6171_v26, %v6130_v4  ;;  %7846 = vmatpush1.bf16.msra.mxu0 %v14445_v10  ;;  %7883 = vmatpush1.bf16.msra.mxu1 %v14448_v15  ;;  %v14507_v4 = vld [vmem:[#allocation2 + $0x964] ss:$16 sps:$4 sm:$0xff]   ;;  %v14514_v10 = vld [vmem:[#allocation2 + $0xb80] ss:$16 sps:$4 sm:$0xff]  }
 0x77b   :  { %7914 = vmatprep.mubr.bf16.mxu1 %v7196_v63  ;;  %v6173_v3 = vpop.f32.mrf.mxu1  ;;  %7847 = vmatprep.subr.bf16.mxu0 %v14453_v19  ;;  %v14519_v15 = vld [vmem:[#allocation2 + $0x924] ss:$16 sps:$4 sm:$0xff]   ;;  %v14517_v19 = vld [vmem:[#allocation2 + $0x920] ss:$16 sps:$4 sm:$0xff]  }
 0x77c   :  { %v15949_v40 = vadd.f32 %v6173_v3, %v6132_v12  ;;  %7884 = vmatprep.subr.bf16.mxu1 %v14456_v24  ;;  %v14508_v12 = vld [vmem:[#allocation2 + $0xba0] ss:$16 sps:$4 sm:$0xff]   ;;  %v14525_v26 = vld [vmem:[#allocation2 + $0x904] ss:$16 sps:$4 sm:$0xff]  }
 0x77d   :  { %v6175_v41 = vpop.f32.mrf.mxu1  ;;  %v14520_v24 = vld [vmem:[#allocation2 + $0xb60] ss:$16 sps:$4 sm:$0xff]  }
 0x77e   :  { %7848 = vmatpush1.bf16.msra.mxu0 %v14451_v33  ;;  %7885 = vmatpush1.bf16.msra.mxu1 %v14454_v34  ;;  %v14528_v33 = vld [vmem:[#allocation2 + $0xb44] ss:$16 sps:$4 sm:$0xff]   ;;  %v14523_v34 = vld [vmem:[#allocation2 + $0x900] ss:$16 sps:$4 sm:$0xff]  }
 0x77f   :  { %v6176_v45 = vpop.f32.mrf.mxu1  ;;  %7849 = vmatprep.subr.bf16.mxu0 %v14459_v38  ;;  %7886 = vmatprep.subr.bf16.mxu1 %v14462_v27  ;;  %v14526_v3 = vld [vmem:[#allocation2 + $0xb40] ss:$16 sps:$4 sm:$0xff]   ;;  %v14531_v38 = vld [vmem:[#allocation2 + $0xb24] ss:$16 sps:$4 sm:$0xff]   ;;  %v14534_v27 = vld [vmem:[#allocation2 + $0x8ec] ss:$16 sps:$4 sm:$0xff]  }
 0x780   :  { %v14529_v41 = vld [vmem:[#allocation2 + $0xb20] ss:$16 sps:$4 sm:$0xff]   ;;  %v14537_v45 = vld [vmem:[#allocation2 + $0xb04] ss:$16 sps:$4 sm:$0xff]  }
 0x782   :  { %7850 = vmatpush1.bf16.msra.mxu0 %v14457_v51  ;;  %7887 = vmatpush1.bf16.msra.mxu1 %v14460_v43  ;;  %v14532_v51 = vld [vmem:[#allocation2 + $0x8e8] ss:$16 sps:$4 sm:$0xff]   ;;  %v7193_v43 = vrot.slane %v15913_v30, 4 }
 0x783   :  { %7851 = vmatprep.subr.bf16.mxu0 %v14465_v46  ;;  %7888 = vmatprep.subr.bf16.mxu1 %v14468_v0  ;;  %v14540_v46 = vld [vmem:[#allocation2 + $0x8cc] ss:$16 sps:$4 sm:$0xff]  }
 0x786   :  { %7852 = vmatpush1.bf16.msra.mxu0 %v14463_v37  ;;  %7889 = vmatpush1.bf16.msra.mxu1 %v14466_v47  ;;  %v14535_v37 = vld [vmem:[#allocation2 + $0xb00] ss:$16 sps:$4 sm:$0xff]   ;;  %v14538_v47 = vld [vmem:[#allocation2 + $0x8c8] ss:$16 sps:$4 sm:$0xff]  }
 0x787   :  { %7853 = vmatprep.subr.bf16.mxu0 %v14471_v48  ;;  %7890 = vmatprep.subr.bf16.mxu1 %v14474_v49  ;;  %v14543_v49 = vld [vmem:[#allocation2 + $0x8ac] ss:$16 sps:$4 sm:$0xff]  }
 0x78a   :  { %7854 = vmatpush1.bf16.msra.mxu0 %v14469_v50  ;;  %7891 = vmatpush1.bf16.msra.mxu1 %v14472_v52  ;;  %v14546_v50 = vld [vmem:[#allocation2 + $0xaec] ss:$16 sps:$4 sm:$0xff]  }
 0x78b   :  { %7855 = vmatprep.subr.bf16.mxu0 %v14477_v53  ;;  %7892 = vmatprep.subr.bf16.mxu1 %v14480_v61  ;;  %v14541_v53 = vld [vmem:[#allocation2 + $0x8a8] ss:$16 sps:$4 sm:$0xff]  }
 0x78c   :  { %v14544_v61 = vld [vmem:[#allocation2 + $0xae8] ss:$16 sps:$4 sm:$0xff]  }
 0x78e   :  { %7856 = vmatpush1.bf16.msra.mxu0 %v14475_v55  ;;  %7893 = vmatpush1.bf16.msra.mxu1 %v14478_v62  ;;  %v7195_v62 = vrot.slane %v15921_v56, 4 }
 0x78f   :  { %7857 = vmatprep.subr.bf16.mxu0 %v14483_v60  ;;  %7894 = vmatprep.subr.bf16.mxu1 %v14486_v1  ;;  %v14549_v60 = vld [vmem:[#allocation2 + $0x88c] ss:$16 sps:$4 sm:$0xff]  }
 0x790   :  { %v14552_v1 = vld [vmem:[#allocation2 + $0xacc] ss:$16 sps:$4 sm:$0xff]  }
 0x792   :  { %7858 = vmatpush2.bf16.msra.mxu0 %v14481_v22  ;;  %7895 = vmatpush1.bf16.msra.mxu1 %v14484_v18  ;;  %v14547_v18 = vld [vmem:[#allocation2 + $0x888] ss:$16 sps:$4 sm:$0xff]  }
 0x793   :  { %7859 = vmatprep.subr.bf16.mxu0 %v14489_v39  ;;  %7896 = vmatprep.subr.bf16.mxu1 %v14492_v2  ;;  %v14550_v39 = vld [vmem:[#allocation2 + $0xac8] ss:$16 sps:$4 sm:$0xff]  }
 0x796   :  { %7860 = vmatpush2.bf16.msra.mxu0 %v14487_v5  ;;  %7897 = vmatpush1.bf16.msra.mxu1 %v14490_v13  ;;  %v14555_v5 = vld [vmem:[#allocation2 + $0x86c] ss:$16 sps:$4 sm:$0xff]  }
 0x797   :  { %7861 = vmatprep.subr.bf16.mxu0 %v14495_v7  ;;  %7898 = vmatprep.subr.bf16.mxu1 %v14498_v11  ;;  %v14558_v13 = vld [vmem:[#allocation2 + $0xaac] ss:$16 sps:$4 sm:$0xff]  }
 0x79a   :  { %7862 = vmatpush2.bf16.msra.mxu0 %v14493_v14  ;;  %7899 = vmatpush2.bf16.msra.mxu1 %v14496_v16  ;;  %v14553_v14 = vld [vmem:[#allocation2 + $0x868] ss:$16 sps:$4 sm:$0xff]  }
 0x79b   :  { %7863 = vmatprep.subr.bf16.mxu0 %v14501_v54  ;;  %7900 = vmatprep.subr.bf16.mxu1 %v14504_v59  ;;  %v14556_v16 = vld [vmem:[#allocation2 + $0xaa8] ss:$16 sps:$4 sm:$0xff]   ;;  %v14561_v59 = vld [vmem:[#allocation2 + $0x84c] ss:$16 sps:$4 sm:$0xff]  }
 0x79e   :  { %7864 = vmatpush2.bf16.msra.mxu0 %v14499_v21  ;;  %7901 = vmatpush2.bf16.msra.mxu1 %v14502_v6  ;;  %v14564_v21 = vld [vmem:[#allocation2 + $0xa8c] ss:$16 sps:$4 sm:$0xff]   ;;  %v14562_v6 = vld [vmem:[#allocation2 + $0xa88] ss:$16 sps:$4 sm:$0xff]  }
 0x79f   :  { %7865 = vmatprep.subr.bf16.mxu0 %v14507_v4  ;;  %7902 = vmatprep.subr.bf16.mxu1 %v14510_v8  ;;  %v14567_v4 = vld [vmem:[#allocation2 + $0x82c] ss:$16 sps:$4 sm:$0xff]  }
 0x7a0   :  { %v14570_v8 = vld [vmem:[#allocation2 + $0xa6c] ss:$16 sps:$4 sm:$0xff]  }
 0x7a2   :  { %7866 = vmatpush2.bf16.msra.mxu0 %v14505_v58  ;;  %7903 = vmatpush2.bf16.msra.mxu1 %v14508_v12  ;;  %v14565_v58 = vld [vmem:[#allocation2 + $0x828] ss:$16 sps:$4 sm:$0xff]  }
 0x7a3   :  { %7867 = vmatprep.subr.bf16.mxu0 %v14513_v9  ;;  %7904 = vmatprep.subr.bf16.mxu1 %v14516_v57  ;;  %v14568_v12 = vld [vmem:[#allocation2 + $0xa68] ss:$16 sps:$4 sm:$0xff]   ;;  %v14573_v9 = vld [vmem:[#allocation2 + $0x80c] ss:$16 sps:$4 sm:$0xff]  }
 0x7a4   :  { %v14576_v57 = vld [vmem:[#allocation2 + $0xa4c] ss:$16 sps:$4 sm:$0xff]  }
 0x7a6   :  { %7868 = vmatpush2.bf16.msra.mxu0 %v14511_v23  ;;  %7905 = vmatpush2.bf16.msra.mxu1 %v14514_v10  ;;  %v14571_v23 = vld [vmem:[#allocation2 + $0x808] ss:$16 sps:$4 sm:$0xff]  }
 0x7a7   :  { %7869 = vmatprep.subr.bf16.mxu0 %v14519_v15  ;;  %7906 = vmatprep.subr.bf16.mxu1 %v14522_v17  ;;  %v14574_v10 = vld [vmem:[#allocation2 + $0xa48] ss:$16 sps:$4 sm:$0xff]   ;;  %v14579_v15 = vld [vmem:[#allocation2 + $0x9ec] ss:$16 sps:$4 sm:$0xff]  }
 0x7a8   :  { %v14582_v17 = vld [vmem:[#allocation2 + $0xa2c] ss:$16 sps:$4 sm:$0xff]  }
 0x7aa   :  { %7870 = vmatpush2.bf16.msra.mxu0 %v14517_v19  ;;  %7907 = vmatpush2.bf16.msra.mxu1 %v14520_v24  ;;  %v14577_v19 = vld [vmem:[#allocation2 + $0x9e8] ss:$16 sps:$4 sm:$0xff]  }
 0x7ab   :  { %7871 = vmatprep.subr.bf16.mxu0 %v14525_v26  ;;  %7908 = vmatprep.subr.bf16.mxu1 %v14528_v33  ;;  %v14580_v24 = vld [vmem:[#allocation2 + $0xa28] ss:$16 sps:$4 sm:$0xff]   ;;  %v14585_v26 = vld [vmem:[#allocation2 + $0x9cc] ss:$16 sps:$4 sm:$0xff]  }
 0x7ac   :  { %v14588_v33 = vld [vmem:[#allocation2 + $0xa0c] ss:$16 sps:$4 sm:$0xff]  }
 0x7ae   :  { %7872 = vmatpush2.bf16.msra.mxu0 %v14523_v34  ;;  %7909 = vmatpush2.bf16.msra.mxu1 %v14526_v3  ;;  %v14583_v34 = vld [vmem:[#allocation2 + $0x9c8] ss:$16 sps:$4 sm:$0xff]  }
 0x7af   :  { %7910 = vmatprep.subr.bf16.mxu1 %v14531_v38  ;;  %7923 = vmatprep.subr.bf16.mxu0 %v14534_v27  ;;  %v14586_v3 = vld [vmem:[#allocation2 + $0xa08] ss:$16 sps:$4 sm:$0xff]   ;;  %v14591_v38 = vld [vmem:[#allocation2 + $0x9ac] ss:$16 sps:$4 sm:$0xff]  }
 0x7b0   :  { %v14594_v27 = vld [vmem:[#allocation2 + $0xbec] ss:$16 sps:$4 sm:$0xff]  }
 0x7b1   :  { %v6212_v0 = vpop.f32.mrf.mxu0  ;;  %7874 = vmatmul.mubr.bf16.vlgmr.msra.gmra.mxu0 %v7193_v43 }
 0x7b2   :  { %7911 = vmatpush2.bf16.msra.mxu1 %v14529_v41  ;;  %7924 = vmatpush1.bf16.msra.mxu0 %v14532_v51  ;;  %v14589_v41 = vld [vmem:[#allocation2 + $0x9a8] ss:$16 sps:$4 sm:$0xff]  }
 0x7b3   :  { %7955 = vmatprep.mubr.bf16.mxu0 %v7194_v42  ;;  %v6214_v48 = vpop.f32.mrf.mxu0  ;;  %7912 = vmatprep.subr.bf16.mxu1 %v14537_v45  ;;  %v14592_v51 = vld [vmem:[#allocation2 + $0xbe8] ss:$16 sps:$4 sm:$0xff]   ;;  %v14597_v45 = vld [vmem:[#allocation2 + $0x98c] ss:$16 sps:$4 sm:$0xff]  }
 0x7b4   :  { %7925 = vmatprep.subr.bf16.mxu0 %v14540_v46  ;;  %v14600_v46 = vld [vmem:[#allocation2 + $0xbcc] ss:$16 sps:$4 sm:$0xff]  }
 0x7b5   :  { %v6216_v52 = vpop.f32.mrf.mxu0 }
 0x7b6   :  { %7913 = vmatpush2.bf16.msra.mxu1 %v14535_v37  ;;  %7926 = vmatpush1.bf16.msra.mxu0 %v14538_v47  ;;  %v14598_v37 = vld [vmem:[#allocation2 + $0xbc8] ss:$16 sps:$4 sm:$0xff]   ;;  %v14603_v47 = vld [vmem:[#allocation2 + $0x96c] ss:$16 sps:$4 sm:$0xff]  }
 0x7b7   :  { %v6217_v55 = vpop.f32.mrf.mxu0  ;;  %7927 = vmatprep.subr.bf16.mxu0 %v14543_v49  ;;  %7964 = vmatprep.subr.bf16.mxu1 %v14546_v50  ;;  %v14601_v49 = vld [vmem:[#allocation2 + $0x968] ss:$16 sps:$4 sm:$0xff]   ;;  %v14609_v52 = vld [vmem:[#allocation2 + $0x94c] ss:$16 sps:$4 sm:$0xff]  }
 0x7b8   :  { %v14604_v50 = vld [vmem:[#allocation2 + $0xba8] ss:$16 sps:$4 sm:$0xff]  }
 0x7b9   :  { %v6253_v22 = vpop.f32.mrf.mxu1  ;;  %7915 = vmatmul.mubr.bf16.vlgmr.msra.gmra.mxu1 %v7195_v62  ;;  %v14610_v55 = vld [vmem:[#allocation2 + $0xb88] ss:$16 sps:$4 sm:$0xff]  }
 0x7ba   :  { %v15959_v42 = vadd.f32 %v6253_v22, %v6212_v0  ;;  %7928 = vmatpush1.bf16.msra.mxu0 %v14541_v53  ;;  %7965 = vmatpush1.bf16.msra.mxu1 %v14544_v61  ;;  %v14595_v0 = vld [vmem:[#allocation2 + $0x988] ss:$16 sps:$4 sm:$0xff]   ;;  %v14612_v53 = vld [vmem:[#allocation2 + $0xb8c] ss:$16 sps:$4 sm:$0xff]  }
 0x7bb   :  { %7996 = vmatprep.mubr.bf16.mxu1 %v7196_v63  ;;  %v6255_v2 = vpop.f32.mrf.mxu1  ;;  %7929 = vmatprep.subr.bf16.mxu0 %v14549_v60  ;;  %v14559_v63 = vld [vmem:[#allocation2 + $0x848] ss:$16 sps:$4 sm:$0xff]   ;;  %v14615_v60 = vld [vmem:[#allocation2 + $0x92c] ss:$16 sps:$4 sm:$0xff]  }
 0x7bc   :  { %v15963_v7 = vadd.f32 %v6255_v2, %v6214_v48  ;;  %7966 = vmatprep.subr.bf16.mxu1 %v14552_v1  ;;  %v14606_v48 = vld [vmem:[#allocation2 + $0xbac] ss:$16 sps:$4 sm:$0xff]   ;;  %v14607_v61 = vld [vmem:[#allocation2 + $0x948] ss:$16 sps:$4 sm:$0xff]  }
 0x7bd   :  { %v6257_v11 = vpop.f32.mrf.mxu1  ;;  %v14618_v1 = vld [vmem:[#allocation2 + $0xb6c] ss:$16 sps:$4 sm:$0xff]   ;;  %v14613_v22 = vld [vmem:[#allocation2 + $0x928] ss:$16 sps:$4 sm:$0xff]  }
 0x7be   :  { %7930 = vmatpush1.bf16.msra.mxu0 %v14547_v18  ;;  %7967 = vmatpush1.bf16.msra.mxu1 %v14550_v39  ;;  %v14616_v18 = vld [vmem:[#allocation2 + $0xb68] ss:$16 sps:$4 sm:$0xff]   ;;  %v14621_v39 = vld [vmem:[#allocation2 + $0x90c] ss:$16 sps:$4 sm:$0xff]  }
 0x7bf   :  { %v6258_v54 = vpop.f32.mrf.mxu1  ;;  %7931 = vmatprep.subr.bf16.mxu0 %v14555_v5  ;;  %7968 = vmatprep.subr.bf16.mxu1 %v14558_v13  ;;  %v14624_v2 = vld [vmem:[#allocation2 + $0xb4c] ss:$16 sps:$4 sm:$0xff]   ;;  %v14619_v5 = vld [vmem:[#allocation2 + $0x908] ss:$16 sps:$4 sm:$0xff]  }
 0x7c0   :  { %v14622_v13 = vld [vmem:[#allocation2 + $0xb48] ss:$16 sps:$4 sm:$0xff]   ;;  %v14627_v11 = vld [vmem:[#allocation2 + $0xb2c] ss:$16 sps:$4 sm:$0xff]   ;;  %v14628_v54 = vld [vmem:[#allocation2 + $0xce0] ss:$16 sps:$4 sm:$0xff]  }
 0x7c2   :  { %7932 = vmatpush1.bf16.msra.mxu0 %v14553_v14  ;;  %7969 = vmatpush1.bf16.msra.mxu1 %v14556_v16  ;;  %v14630_v14 = vld [vmem:[#allocation2 + $0xce4] ss:$16 sps:$4 sm:$0xff]   ;;  %v14625_v16 = vld [vmem:[#allocation2 + $0xb28] ss:$16 sps:$4 sm:$0xff]  }
 0x7c3   :  { %7933 = vmatprep.subr.bf16.mxu0 %v14561_v59  ;;  %7970 = vmatprep.subr.bf16.mxu1 %v14564_v21  ;;  %v14633_v59 = vld [vmem:[#allocation2 + $0xb0c] ss:$16 sps:$4 sm:$0xff]   ;;  %v14636_v21 = vld [vmem:[#allocation2 + $0xcc4] ss:$16 sps:$4 sm:$0xff]  }
 0x7c6   :  { %7934 = vmatpush1.bf16.msra.mxu0 %v14559_v63  ;;  %7971 = vmatpush1.bf16.msra.mxu1 %v14562_v6  ;;  %v8139_v6 = vrot.slane %v15915_v32, 6  ;;  %v14744_v32 = vld [vmem:[#allocation2 + $0xecc] ss:$16 sps:$4 sm:$0xff]  }
 0x7c7   :  { %7935 = vmatprep.subr.bf16.mxu0 %v14567_v4  ;;  %7972 = vmatprep.subr.bf16.mxu1 %v14570_v8  ;;  %v14631_v8 = vld [vmem:[#allocation2 + $0xb08] ss:$16 sps:$4 sm:$0xff]  }
 0x7ca   :  { %7936 = vmatpush1.bf16.msra.mxu0 %v14565_v58  ;;  %7973 = vmatpush1.bf16.msra.mxu1 %v14568_v12  ;;  %v14634_v58 = vld [vmem:[#allocation2 + $0xcc0] ss:$16 sps:$4 sm:$0xff]  }
 0x7cb   :  { %7937 = vmatprep.subr.bf16.mxu0 %v14573_v9  ;;  %7974 = vmatprep.subr.bf16.mxu1 %v14576_v57  ;;  %v14639_v9 = vld [vmem:[#allocation2 + $0xca4] ss:$16 sps:$4 sm:$0xff]  }
 0x7cc   :  { %v14642_v57 = vld [vmem:[#allocation2 + $0xee4] ss:$16 sps:$4 sm:$0xff]  }
 0x7ce   :  { %7938 = vmatpush1.bf16.msra.mxu0 %v14571_v23  ;;  %7975 = vmatpush1.bf16.msra.mxu1 %v14574_v10 }
 0x7cf   :  { %7939 = vmatprep.subr.bf16.mxu0 %v14579_v15  ;;  %7976 = vmatprep.subr.bf16.mxu1 %v14582_v17  ;;  %v14640_v15 = vld [vmem:[#allocation2 + $0xee0] ss:$16 sps:$4 sm:$0xff]   ;;  %v14645_v17 = vld [vmem:[#allocation2 + $0xc84] ss:$16 sps:$4 sm:$0xff]  }
 0x7d2   :  { %7940 = vmatpush2.bf16.msra.mxu0 %v14577_v19  ;;  %7977 = vmatpush1.bf16.msra.mxu1 %v14580_v24  ;;  %v14648_v19 = vld [vmem:[#allocation2 + $0xec4] ss:$16 sps:$4 sm:$0xff]  }
 0x7d3   :  { %7941 = vmatprep.subr.bf16.mxu0 %v14585_v26  ;;  %7978 = vmatprep.subr.bf16.mxu1 %v14588_v33  ;;  %v8141_v26 = vrot.slane %v15923_v44, 6  ;;  %v14751_v44 = vld [vmem:[#allocation2 + $0xc48] ss:$16 sps:$4 sm:$0xff]  }
 0x7d6   :  { %7942 = vmatpush2.bf16.msra.mxu0 %v14583_v34  ;;  %7979 = vmatpush1.bf16.msra.mxu1 %v14586_v3  ;;  %v14646_v34 = vld [vmem:[#allocation2 + $0xec0] ss:$16 sps:$4 sm:$0xff]  }
 0x7d7   :  { %7943 = vmatprep.subr.bf16.mxu0 %v14591_v38  ;;  %7980 = vmatprep.subr.bf16.mxu1 %v14594_v27  ;;  %v14651_v38 = vld [vmem:[#allocation2 + $0xc64] ss:$16 sps:$4 sm:$0xff]  }
 0x7d8   :  { %v14654_v27 = vld [vmem:[#allocation2 + $0xea4] ss:$16 sps:$4 sm:$0xff]  }
 0x7da   :  { %7944 = vmatpush2.bf16.msra.mxu0 %v14589_v41  ;;  %7981 = vmatpush2.bf16.msra.mxu1 %v14592_v51 }
 0x7db   :  { %7945 = vmatprep.subr.bf16.mxu0 %v14597_v45  ;;  %7982 = vmatprep.subr.bf16.mxu1 %v14600_v46  ;;  %v14652_v45 = vld [vmem:[#allocation2 + $0xea0] ss:$16 sps:$4 sm:$0xff]  }
 0x7de   :  { %7946 = vmatpush2.bf16.msra.mxu0 %v14595_v0  ;;  %7983 = vmatpush2.bf16.msra.mxu1 %v14598_v37  ;;  %v14657_v0 = vld [vmem:[#allocation2 + $0xc44] ss:$16 sps:$4 sm:$0xff]  }
 0x7df   :  { %7947 = vmatprep.subr.bf16.mxu0 %v14603_v47  ;;  %7984 = vmatprep.subr.bf16.mxu1 %v14606_v48  ;;  %v14660_v37 = vld [vmem:[#allocation2 + $0xe84] ss:$16 sps:$4 sm:$0xff]   ;;  %v14655_v47 = vld [vmem:[#allocation2 + $0xc40] ss:$16 sps:$4 sm:$0xff]  }
 0x7e0   :  { %v14658_v48 = vld [vmem:[#allocation2 + $0xe80] ss:$16 sps:$4 sm:$0xff]  }
 0x7e2   :  { %7948 = vmatpush2.bf16.msra.mxu0 %v14601_v49  ;;  %7985 = vmatpush2.bf16.msra.mxu1 %v14604_v50  ;;  %v14663_v49 = vld [vmem:[#allocation2 + $0xc24] ss:$16 sps:$4 sm:$0xff]  }
 0x7e3   :  { %7949 = vmatprep.subr.bf16.mxu0 %v14609_v52  ;;  %7986 = vmatprep.subr.bf16.mxu1 %v14612_v53  ;;  %v14666_v50 = vld [vmem:[#allocation2 + $0xe64] ss:$16 sps:$4 sm:$0xff]   ;;  %v14661_v52 = vld [vmem:[#allocation2 + $0xc20] ss:$16 sps:$4 sm:$0xff]  }
 0x7e4   :  { %v14664_v53 = vld [vmem:[#allocation2 + $0xe60] ss:$16 sps:$4 sm:$0xff]  }
 0x7e6   :  { %7950 = vmatpush2.bf16.msra.mxu0 %v14607_v61  ;;  %7987 = vmatpush2.bf16.msra.mxu1 %v14610_v55  ;;  %v14669_v61 = vld [vmem:[#allocation2 + $0xc04] ss:$16 sps:$4 sm:$0xff]  }
 0x7e7   :  { %7951 = vmatprep.subr.bf16.mxu0 %v14615_v60  ;;  %7988 = vmatprep.subr.bf16.mxu1 %v14618_v1  ;;  %v14672_v55 = vld [vmem:[#allocation2 + $0xe44] ss:$16 sps:$4 sm:$0xff]   ;;  %v14667_v60 = vld [vmem:[#allocation2 + $0xc00] ss:$16 sps:$4 sm:$0xff]  }
 0x7e8   :  { %v14670_v1 = vld [vmem:[#allocation2 + $0xe40] ss:$16 sps:$4 sm:$0xff]  }
 0x7ea   :  { %7952 = vmatpush2.bf16.msra.mxu0 %v14613_v22  ;;  %7989 = vmatpush2.bf16.msra.mxu1 %v14616_v18  ;;  %v14675_v22 = vld [vmem:[#allocation2 + $0xde4] ss:$16 sps:$4 sm:$0xff]  }
 0x7eb   :  { %7953 = vmatprep.subr.bf16.mxu0 %v14621_v39  ;;  %7990 = vmatprep.subr.bf16.mxu1 %v14624_v2  ;;  %v14678_v18 = vld [vmem:[#allocation2 + $0xe24] ss:$16 sps:$4 sm:$0xff]   ;;  %v14673_v39 = vld [vmem:[#allocation2 + $0xde0] ss:$16 sps:$4 sm:$0xff]  }
 0x7ec   :  { %v14676_v2 = vld [vmem:[#allocation2 + $0xe20] ss:$16 sps:$4 sm:$0xff]  }
 0x7ee   :  { %7954 = vmatpush2.bf16.msra.mxu0 %v14619_v5  ;;  %7991 = vmatpush2.bf16.msra.mxu1 %v14622_v13  ;;  %v14681_v5 = vld [vmem:[#allocation2 + $0xdc4] ss:$16 sps:$4 sm:$0xff]  }
 0x7ef   :  { %7992 = vmatprep.subr.bf16.mxu1 %v14627_v11  ;;  %8786 = vmatprep.subr.bf16.mxu0 %v14630_v14  ;;  %v14684_v13 = vld [vmem:[#allocation2 + $0xe04] ss:$16 sps:$4 sm:$0xff]   ;;  %v14679_v11 = vld [vmem:[#allocation2 + $0xdc0] ss:$16 sps:$4 sm:$0xff]  }
 0x7f0   :  { %v14682_v14 = vld [vmem:[#allocation2 + $0xe00] ss:$16 sps:$4 sm:$0xff]  }
 0x7f1   :  { %v6934_v63 = vpop.f32.mrf.mxu0  ;;  %7956 = vmatmul.mubr.bf16.vlgmr.msra.gmra.mxu0 %v7193_v43  ;;  %v14637_v43 = vld [vmem:[#allocation2 + $0xca0] ss:$16 sps:$4 sm:$0xff]  }
 0x7f2   :  { %v6935_v4 = vadd.f32 %v6934_v63, %v15945_v31  ;;  %7993 = vmatpush2.bf16.msra.mxu1 %v14625_v16  ;;  %8787 = vmatpush1.bf16.msra.mxu0 %v14628_v54  ;;  %v14687_v16 = vld [vmem:[#allocation2 + $0xda4] ss:$16 sps:$4 sm:$0xff]  }
 0x7f3   :  { %8818 = vmatprep.mubr.bf16.mxu0 %v8139_v6  ;;  %v6936_v12 = vpop.f32.mrf.mxu0  ;;  %7994 = vmatprep.subr.bf16.mxu1 %v14633_v59  ;;  %v14690_v54 = vld [vmem:[#allocation2 + $0xfe4] ss:$16 sps:$4 sm:$0xff]   ;;  %v14685_v59 = vld [vmem:[#allocation2 + $0xda0] ss:$16 sps:$4 sm:$0xff]  }
 0x7f4   :  { %v6937_v23 = vadd.f32 %v6936_v12, %v15949_v40  ;;  %8788 = vmatprep.subr.bf16.mxu0 %v14636_v21  ;;  %v14643_v40 = vld [vmem:[#allocation2 + $0xc80] ss:$16 sps:$4 sm:$0xff]   ;;  %v14693_v63 = vld [vmem:[#allocation2 + $0xd84] ss:$16 sps:$4 sm:$0xff]  }
 0x7f5   :  { %v6938_v10 = vpop.f32.mrf.mxu0  ;;  %v14688_v21 = vld [vmem:[#allocation2 + $0xfe0] ss:$16 sps:$4 sm:$0xff]   ;;  %v14699_v12 = vld [vmem:[#allocation2 + $0xd64] ss:$16 sps:$4 sm:$0xff]  }
 0x7f6   :  { %7995 = vmatpush2.bf16.msra.mxu1 %v14631_v8  ;;  %8789 = vmatpush1.bf16.msra.mxu0 %v14634_v58  ;;  %v14691_v8 = vld [vmem:[#allocation2 + $0xd80] ss:$16 sps:$4 sm:$0xff]   ;;  %v14705_v10 = vld [vmem:[#allocation2 + $0xd44] ss:$16 sps:$4 sm:$0xff]  }
 0x7f7   :  { %v6939_v31 = vpop.f32.mrf.mxu0  ;;  %8790 = vmatprep.subr.bf16.mxu0 %v14639_v9  ;;  %8827 = vmatprep.subr.bf16.mxu1 %v14642_v57  ;;  %v14694_v58 = vld [vmem:[#allocation2 + $0xfc0] ss:$16 sps:$4 sm:$0xff]   ;;  %v14702_v9 = vld [vmem:[#allocation2 + $0xfa4] ss:$16 sps:$4 sm:$0xff]  }
 0x7f8   :  { %v14697_v57 = vld [vmem:[#allocation2 + $0xd60] ss:$16 sps:$4 sm:$0xff]  }
 0x7f9   :  { %v6975_v24 = vpop.f32.mrf.mxu1  ;;  %7997 = vmatmul.mubr.bf16.vlgmr.msra.gmra.mxu1 %v7195_v62  ;;  %v14649_v62 = vld [vmem:[#allocation2 + $0xc60] ss:$16 sps:$4 sm:$0xff]  }
 0x7fa   :  { %v15975_v33 = vadd.f32 %v6975_v24, %v6935_v4  ;;  %8791 = vmatpush1.bf16.msra.mxu0 %v14637_v43  ;;  %8828 = vmatpush1.bf16.msra.mxu1 %v14640_v15  ;;  %v14696_v4 = vld [vmem:[#allocation2 + $0xfc4] ss:$16 sps:$4 sm:$0xff]   ;;  %v14703_v15 = vld [vmem:[#allocation2 + $0xd40] ss:$16 sps:$4 sm:$0xff]  }
 0x7fb   :  { %8859 = vmatprep.mubr.bf16.mxu1 %v8141_v26  ;;  %v6977_v3 = vpop.f32.mrf.mxu1  ;;  %8792 = vmatprep.subr.bf16.mxu0 %v14645_v17  ;;  %v14708_v43 = vld [vmem:[#allocation2 + $0xf84] ss:$16 sps:$4 sm:$0xff]   ;;  %v14706_v31 = vld [vmem:[#allocation2 + $0xf80] ss:$16 sps:$4 sm:$0xff]  }
 0x7fc   :  { %v15979_v41 = vadd.f32 %v6977_v3, %v6937_v23  ;;  %8829 = vmatprep.subr.bf16.mxu1 %v14648_v19  ;;  %v14700_v23 = vld [vmem:[#allocation2 + $0xfa0] ss:$16 sps:$4 sm:$0xff]   ;;  %v14711_v17 = vld [vmem:[#allocation2 + $0xd24] ss:$16 sps:$4 sm:$0xff]  }
 0x7fd   :  { %v6979_v51 = vpop.f32.mrf.mxu1  ;;  %v14714_v19 = vld [vmem:[#allocation2 + $0xf64] ss:$16 sps:$4 sm:$0xff]   ;;  %v14709_v24 = vld [vmem:[#allocation2 + $0xd20] ss:$16 sps:$4 sm:$0xff]  }
 0x7fe   :  { %8793 = vmatpush1.bf16.msra.mxu0 %v14643_v40  ;;  %8830 = vmatpush1.bf16.msra.mxu1 %v14646_v34  ;;  %v14712_v40 = vld [vmem:[#allocation2 + $0xf60] ss:$16 sps:$4 sm:$0xff]   ;;  %v14717_v34 = vld [vmem:[#allocation2 + $0xd04] ss:$16 sps:$4 sm:$0xff]  }
 0x7ff   :  { %v6980_v46 = vpop.f32.mrf.mxu1  ;;  %8794 = vmatprep.subr.bf16.mxu0 %v14651_v38  ;;  %8831 = vmatprep.subr.bf16.mxu1 %v14654_v27  ;;  %v14720_v3 = vld [vmem:[#allocation2 + $0xf44] ss:$16 sps:$4 sm:$0xff]   ;;  %v14715_v38 = vld [vmem:[#allocation2 + $0xd00] ss:$16 sps:$4 sm:$0xff]  }
 0x800   :  { %v14718_v27 = vld [vmem:[#allocation2 + $0xf40] ss:$16 sps:$4 sm:$0xff]   ;;  %v14723_v51 = vld [vmem:[#allocation2 + $0xf24] ss:$16 sps:$4 sm:$0xff]   ;;  %v14724_v46 = vld [vmem:[#allocation2 + $0xce8] ss:$16 sps:$4 sm:$0xff]  }
 0x802   :  { %8795 = vmatpush1.bf16.msra.mxu0 %v14649_v62  ;;  %8832 = vmatpush1.bf16.msra.mxu1 %v14652_v45  ;;  %v14726_v62 = vld [vmem:[#allocation2 + $0xcec] ss:$16 sps:$4 sm:$0xff]   ;;  %v14721_v45 = vld [vmem:[#allocation2 + $0xf20] ss:$16 sps:$4 sm:$0xff]  }
 0x803   :  { %8796 = vmatprep.subr.bf16.mxu0 %v14657_v0  ;;  %8833 = vmatprep.subr.bf16.mxu1 %v14660_v37  ;;  %v8138_v0 = vrot.slane %v15913_v30, 6  ;;  %v14729_v37 = vld [vmem:[#allocation2 + $0xf04] ss:$16 sps:$4 sm:$0xff]  }
 0x806   :  { %8797 = vmatpush1.bf16.msra.mxu0 %v14655_v47  ;;  %8834 = vmatpush1.bf16.msra.mxu1 %v14658_v48  ;;  %v14732_v47 = vld [vmem:[#allocation2 + $0xccc] ss:$16 sps:$4 sm:$0xff]  }
 0x807   :  { %8798 = vmatprep.subr.bf16.mxu0 %v14663_v49  ;;  %8835 = vmatprep.subr.bf16.mxu1 %v14666_v50  ;;  %v14727_v50 = vld [vmem:[#allocation2 + $0xf00] ss:$16 sps:$4 sm:$0xff]  }
 0x80a   :  { %8799 = vmatpush1.bf16.msra.mxu0 %v14661_v52  ;;  %8836 = vmatpush1.bf16.msra.mxu1 %v14664_v53  ;;  %v14730_v52 = vld [vmem:[#allocation2 + $0xcc8] ss:$16 sps:$4 sm:$0xff]  }
 0x80b   :  { %8800 = vmatprep.subr.bf16.mxu0 %v14669_v61  ;;  %8837 = vmatprep.subr.bf16.mxu1 %v14672_v55  ;;  %v14735_v61 = vld [vmem:[#allocation2 + $0xcac] ss:$16 sps:$4 sm:$0xff]  }
 0x80c   :  { %v14738_v55 = vld [vmem:[#allocation2 + $0xeec] ss:$16 sps:$4 sm:$0xff]  }
 0x80e   :  { %8801 = vmatpush1.bf16.msra.mxu0 %v14667_v60  ;;  %8838 = vmatpush1.bf16.msra.mxu1 %v14670_v1 }
 0x80f   :  { %8802 = vmatprep.subr.bf16.mxu0 %v14675_v22  ;;  %8839 = vmatprep.subr.bf16.mxu1 %v14678_v18  ;;  %v14733_v22 = vld [vmem:[#allocation2 + $0xca8] ss:$16 sps:$4 sm:$0xff]  }
 0x810   :  { %v14736_v18 = vld [vmem:[#allocation2 + $0xee8] ss:$16 sps:$4 sm:$0xff]  }
 0x812   :  { %8803 = vmatpush2.bf16.msra.mxu0 %v14673_v39  ;;  %8840 = vmatpush1.bf16.msra.mxu1 %v14676_v2  ;;  %v8140_v39 = vrot.slane %v15921_v56, 6  ;;  %v14741_v2 = vld [vmem:[#allocation2 + $0xc8c] ss:$16 sps:$4 sm:$0xff]  }
 0x813   :  { %8804 = vmatprep.subr.bf16.mxu0 %v14681_v5  ;;  %8841 = vmatprep.subr.bf16.mxu1 %v14684_v13  ;;  %v14742_v13 = vld [vmem:[#allocation2 + $0xec8] ss:$16 sps:$4 sm:$0xff]  }
 0x816   :  { %8805 = vmatpush2.bf16.msra.mxu0 %v14679_v11  ;;  %8842 = vmatpush1.bf16.msra.mxu1 %v14682_v14  ;;  %v14747_v14 = vld [vmem:[#allocation2 + $0xc6c] ss:$16 sps:$4 sm:$0xff]  }
 0x817   :  { %8806 = vmatprep.subr.bf16.mxu0 %v14687_v16  ;;  %8843 = vmatprep.subr.bf16.mxu1 %v14690_v54  ;;  %v14750_v16 = vld [vmem:[#allocation2 + $0xeac] ss:$16 sps:$4 sm:$0xff]  }
 0x81a   :  { %8807 = vmatpush2.bf16.msra.mxu0 %v14685_v59  ;;  %8844 = vmatpush2.bf16.msra.mxu1 %v14688_v21  ;;  %v14745_v21 = vld [vmem:[#allocation2 + $0xc68] ss:$16 sps:$4 sm:$0xff]  }
 0x81b   :  { %8808 = vmatprep.subr.bf16.mxu0 %v14693_v63  ;;  %8845 = vmatprep.subr.bf16.mxu1 %v14696_v4  ;;  %v14748_v63 = vld [vmem:[#allocation2 + $0xea8] ss:$16 sps:$4 sm:$0xff]  }
 0x81e   :  { %8809 = vmatpush2.bf16.msra.mxu0 %v14691_v8  ;;  %8846 = vmatpush2.bf16.msra.mxu1 %v14694_v58  ;;  %v14753_v8 = vld [vmem:[#allocation2 + $0xc4c] ss:$16 sps:$4 sm:$0xff]  }
 0x81f   :  { %8810 = vmatprep.subr.bf16.mxu0 %v14699_v12  ;;  %8847 = vmatprep.subr.bf16.mxu1 %v14702_v9  ;;  %v14756_v58 = vld [vmem:[#allocation2 + $0xe8c] ss:$16 sps:$4 sm:$0xff]  }
 0x820   :  { %v14759_v12 = vld [vmem:[#allocation2 + $0xc2c] ss:$16 sps:$4 sm:$0xff]  }
 0x821   :  { %v14762_v9 = vld [vmem:[#allocation2 + $0xe6c] ss:$16 sps:$4 sm:$0xff]  }
 0x822   :  { %8811 = vmatpush2.bf16.msra.mxu0 %v14697_v57  ;;  %8848 = vmatpush2.bf16.msra.mxu1 %v14700_v23  ;;  %v14757_v57 = vld [vmem:[#allocation2 + $0xc28] ss:$16 sps:$4 sm:$0xff]  }
 0x823   :  { %8812 = vmatprep.subr.bf16.mxu0 %v14705_v10  ;;  %8849 = vmatprep.subr.bf16.mxu1 %v14708_v43  ;;  %v14760_v23 = vld [vmem:[#allocation2 + $0xe68] ss:$16 sps:$4 sm:$0xff]   ;;  %v14765_v10 = vld [vmem:[#allocation2 + $0xc0c] ss:$16 sps:$4 sm:$0xff]  }
 0x824   :  { %v14768_v43 = vld [vmem:[#allocation2 + $0xe4c] ss:$16 sps:$4 sm:$0xff]  }
 0x826   :  { %8813 = vmatpush2.bf16.msra.mxu0 %v14703_v15  ;;  %8850 = vmatpush2.bf16.msra.mxu1 %v14706_v31  ;;  %v14763_v15 = vld [vmem:[#allocation2 + $0xc08] ss:$16 sps:$4 sm:$0xff]  }
 0x827   :  { %8814 = vmatprep.subr.bf16.mxu0 %v14711_v17  ;;  %8851 = vmatprep.subr.bf16.mxu1 %v14714_v19  ;;  %v14766_v31 = vld [vmem:[#allocation2 + $0xe48] ss:$16 sps:$4 sm:$0xff]   ;;  %v14771_v17 = vld [vmem:[#allocation2 + $0xdec] ss:$16 sps:$4 sm:$0xff]  }
 0x828   :  { %v14774_v19 = vld [vmem:[#allocation2 + $0xe2c] ss:$16 sps:$4 sm:$0xff]  }
 0x82a   :  { %8815 = vmatpush2.bf16.msra.mxu0 %v14709_v24  ;;  %8852 = vmatpush2.bf16.msra.mxu1 %v14712_v40  ;;  %v14769_v24 = vld [vmem:[#allocation2 + $0xde8] ss:$16 sps:$4 sm:$0xff]  }
 0x82b   :  { %8816 = vmatprep.subr.bf16.mxu0 %v14717_v34  ;;  %8853 = vmatprep.subr.bf16.mxu1 %v14720_v3  ;;  %v14772_v40 = vld [vmem:[#allocation2 + $0xe28] ss:$16 sps:$4 sm:$0xff]   ;;  %v14777_v34 = vld [vmem:[#allocation2 + $0xdcc] ss:$16 sps:$4 sm:$0xff]  }
 0x82c   :  { %v14780_v3 = vld [vmem:[#allocation2 + $0xe0c] ss:$16 sps:$4 sm:$0xff]  }
 0x82e   :  { %8817 = vmatpush2.bf16.msra.mxu0 %v14715_v38  ;;  %8854 = vmatpush2.bf16.msra.mxu1 %v14718_v27  ;;  %v14775_v38 = vld [vmem:[#allocation2 + $0xdc8] ss:$16 sps:$4 sm:$0xff]  }
 0x82f   :  { %8855 = vmatprep.subr.bf16.mxu1 %v14723_v51  ;;  %8868 = vmatprep.subr.bf16.mxu0 %v14726_v62  ;;  %v14778_v27 = vld [vmem:[#allocation2 + $0xe08] ss:$16 sps:$4 sm:$0xff]   ;;  %v14783_v51 = vld [vmem:[#allocation2 + $0xdac] ss:$16 sps:$4 sm:$0xff]  }
 0x830   :  { %v14786_v62 = vld [vmem:[#allocation2 + $0xfec] ss:$16 sps:$4 sm:$0xff]  }
 0x831   :  { %v7016_v48 = vpop.f32.mrf.mxu0  ;;  %8819 = vmatmul.mubr.bf16.vlgmr.msra.gmra.mxu0 %v8138_v0 }
 0x832   :  { %v7017_v49 = vadd.f32 %v7016_v48, %v15959_v42  ;;  %8856 = vmatpush2.bf16.msra.mxu1 %v14721_v45  ;;  %8869 = vmatpush1.bf16.msra.mxu0 %v14724_v46  ;;  %v14781_v45 = vld [vmem:[#allocation2 + $0xda8] ss:$16 sps:$4 sm:$0xff]  }
 0x833   :  { %8900 = vmatprep.mubr.bf16.mxu0 %v8139_v6  ;;  %v7018_v53 = vpop.f32.mrf.mxu0  ;;  %8857 = vmatprep.subr.bf16.mxu1 %v14729_v37  ;;  %v14784_v46 = vld [vmem:[#allocation2 + $0xfe8] ss:$16 sps:$4 sm:$0xff]   ;;  %v14789_v37 = vld [vmem:[#allocation2 + $0xd8c] ss:$16 sps:$4 sm:$0xff]  }
 0x834   :  { %v7019_v60 = vadd.f32 %v7018_v53, %v15963_v7  ;;  %8870 = vmatprep.subr.bf16.mxu0 %v14732_v47  ;;  %v14739_v7 = vld [vmem:[#allocation2 + $0xc88] ss:$16 sps:$4 sm:$0xff]   ;;  %v14792_v47 = vld [vmem:[#allocation2 + $0xfcc] ss:$16 sps:$4 sm:$0xff]  }
 0x835   :  { %v7020_v1 = vpop.f32.mrf.mxu0  ;;  %v14787_v48 = vld [vmem:[#allocation2 + $0xd88] ss:$16 sps:$4 sm:$0xff]  }
 0x836   :  { %8858 = vmatpush2.bf16.msra.mxu1 %v14727_v50  ;;  %8871 = vmatpush1.bf16.msra.mxu0 %v14730_v52  ;;  %v14795_v50 = vld [vmem:[#allocation2 + $0xd6c] ss:$16 sps:$4 sm:$0xff]   ;;  %v14793_v53 = vld [vmem:[#allocation2 + $0xd68] ss:$16 sps:$4 sm:$0xff]  }
 0x837   :  { %v7021_v42 = vpop.f32.mrf.mxu0  ;;  %8872 = vmatprep.subr.bf16.mxu0 %v14735_v61  ;;  %8909 = vmatprep.subr.bf16.mxu1 %v14738_v55  ;;  %v14798_v52 = vld [vmem:[#allocation2 + $0xfac] ss:$16 sps:$4 sm:$0xff]   ;;  %v14796_v61 = vld [vmem:[#allocation2 + $0xfa8] ss:$16 sps:$4 sm:$0xff]  }
 0x838   :  { %v14801_v55 = vld [vmem:[#allocation2 + $0xd4c] ss:$16 sps:$4 sm:$0xff]   ;;  %v14799_v1 = vld [vmem:[#allocation2 + $0xd48] ss:$16 sps:$4 sm:$0xff]  }
 0x839   :  { %v7057_v6 = vpop.f32.mrf.mxu1  ;;  %8860 = vmatmul.mubr.bf16.vlgmr.msra.gmra.mxu1 %v8140_v39  ;;  %v14810_v42 = vld [vmem:[#allocation2 + $0xf6c] ss:$16 sps:$4 sm:$0xff]  }
 0x83a   :  { %v15991_v5 = vadd.f32 %v7057_v6, %v7017_v49  ;;  %8873 = vmatpush1.bf16.msra.mxu0 %v14733_v22  ;;  %8910 = vmatpush1.bf16.msra.mxu1 %v14736_v18  ;;  %v14790_v49 = vld [vmem:[#allocation2 + $0xfc8] ss:$16 sps:$4 sm:$0xff]   ;;  %v14807_v18 = vld [vmem:[#allocation2 + $0xd2c] ss:$16 sps:$4 sm:$0xff]  }
 0x83b   :  { %8941 = vmatprep.mubr.bf16.mxu1 %v8141_v26  ;;  %v7059_v11 = vpop.f32.mrf.mxu1  ;;  %8874 = vmatprep.subr.bf16.mxu0 %v14741_v2  ;;  %v14754_v26 = vld [vmem:[#allocation2 + $0xe88] ss:$16 sps:$4 sm:$0xff]   ;;  %v14813_v6 = vld [vmem:[#allocation2 + $0xd0c] ss:$16 sps:$4 sm:$0xff]  }
 0x83c   :  { %v15995_v54 = vadd.f32 %v7059_v11, %v7019_v60  ;;  %8911 = vmatprep.subr.bf16.mxu1 %v14744_v32  ;;  %v14804_v60 = vld [vmem:[#allocation2 + $0xf8c] ss:$16 sps:$4 sm:$0xff]   ;;  %v14802_v22 = vld [vmem:[#allocation2 + $0xf88] ss:$16 sps:$4 sm:$0xff]  }
 0x83d   :  { %v7061_v59 = vpop.f32.mrf.mxu1  ;;  %v14805_v2 = vld [vmem:[#allocation2 + $0xd28] ss:$16 sps:$4 sm:$0xff]  }
 0x83e   :  { %8875 = vmatpush1.bf16.msra.mxu0 %v14739_v7  ;;  %8912 = vmatpush1.bf16.msra.mxu1 %v14742_v13  ;;  %v14808_v32 = vld [vmem:[#allocation2 + $0xf68] ss:$16 sps:$4 sm:$0xff]   ;;  %v14816_v7 = vld [vmem:[#allocation2 + $0xf4c] ss:$16 sps:$4 sm:$0xff]  }
 0x83f   :  { %v7062_v4 = vpop.f32.mrf.mxu1  ;;  %8876 = vmatprep.subr.bf16.mxu0 %v14747_v14  ;;  %8913 = vmatprep.subr.bf16.mxu1 %v14750_v16  ;;  %v14811_v13 = vld [vmem:[#allocation2 + $0xd08] ss:$16 sps:$4 sm:$0xff]   ;;  %v14819_v14 = vld [vmem:[#allocation2 + $0xf2c] ss:$16 sps:$4 sm:$0xff]  }
 0x840   :  { %v14814_v11 = vld [vmem:[#allocation2 + $0xf48] ss:$16 sps:$4 sm:$0xff]   ;;  %v14822_v59 = vld [vmem:[#allocation2 + $0xf0c] ss:$16 sps:$4 sm:$0xff]  }
 0x841   :  { %v14817_v16 = vld [vmem:[#allocation2 + $0xf28] ss:$16 sps:$4 sm:$0xff]  }
 0x842   :  { %8877 = vmatpush1.bf16.msra.mxu0 %v14745_v21  ;;  %8914 = vmatpush1.bf16.msra.mxu1 %v14748_v63  ;;  %v14820_v63 = vld [vmem:[#allocation2 + $0xf08] ss:$16 sps:$4 sm:$0xff]  }
 0x843   :  { %8878 = vmatprep.subr.bf16.mxu0 %v14753_v8  ;;  %8915 = vmatprep.subr.bf16.mxu1 %v14756_v58 }
 0x846   :  { %8879 = vmatpush1.bf16.msra.mxu0 %v14751_v44  ;;  %8916 = vmatpush1.bf16.msra.mxu1 %v14754_v26 }
 0x847   :  { %8880 = vmatprep.subr.bf16.mxu0 %v14759_v12  ;;  %8917 = vmatprep.subr.bf16.mxu1 %v14762_v9 }
 0x84a   :  { %8881 = vmatpush1.bf16.msra.mxu0 %v14757_v57  ;;  %8918 = vmatpush1.bf16.msra.mxu1 %v14760_v23 }
 0x84b   :  { %8882 = vmatprep.subr.bf16.mxu0 %v14765_v10  ;;  %8919 = vmatprep.subr.bf16.mxu1 %v14768_v43 }
 0x84e   :  { %8883 = vmatpush1.bf16.msra.mxu0 %v14763_v15  ;;  %8920 = vmatpush1.bf16.msra.mxu1 %v14766_v31 }
 0x84f   :  { %8884 = vmatprep.subr.bf16.mxu0 %v14771_v17  ;;  %8921 = vmatprep.subr.bf16.mxu1 %v14774_v19 }
 0x852   :  { %8885 = vmatpush2.bf16.msra.mxu0 %v14769_v24  ;;  %8922 = vmatpush1.bf16.msra.mxu1 %v14772_v40 }
 0x853   :  { %8886 = vmatprep.subr.bf16.mxu0 %v14777_v34  ;;  %8923 = vmatprep.subr.bf16.mxu1 %v14780_v3 }
 0x856   :  { %8887 = vmatpush2.bf16.msra.mxu0 %v14775_v38  ;;  %8924 = vmatpush1.bf16.msra.mxu1 %v14778_v27 }
 0x857   :  { %8888 = vmatprep.subr.bf16.mxu0 %v14783_v51  ;;  %8925 = vmatprep.subr.bf16.mxu1 %v14786_v62 }
 0x85a   :  { %8889 = vmatpush2.bf16.msra.mxu0 %v14781_v45  ;;  %8926 = vmatpush2.bf16.msra.mxu1 %v14784_v46 }
 0x85b   :  { %8890 = vmatprep.subr.bf16.mxu0 %v14789_v37  ;;  %8927 = vmatprep.subr.bf16.mxu1 %v14792_v47 }
 0x85e   :  { %8891 = vmatpush2.bf16.msra.mxu0 %v14787_v48  ;;  %8928 = vmatpush2.bf16.msra.mxu1 %v14790_v49 }
 0x85f   :  { %8892 = vmatprep.subr.bf16.mxu0 %v14795_v50  ;;  %8929 = vmatprep.subr.bf16.mxu1 %v14798_v52 }
 0x862   :  { %8893 = vmatpush2.bf16.msra.mxu0 %v14793_v53  ;;  %8930 = vmatpush2.bf16.msra.mxu1 %v14796_v61 }
 0x863   :  { %8894 = vmatprep.subr.bf16.mxu0 %v14801_v55  ;;  %8931 = vmatprep.subr.bf16.mxu1 %v14804_v60 }
 0x866   :  { %8895 = vmatpush2.bf16.msra.mxu0 %v14799_v1  ;;  %8932 = vmatpush2.bf16.msra.mxu1 %v14802_v22 }
 0x867   :  { %8896 = vmatprep.subr.bf16.mxu0 %v14807_v18  ;;  %8933 = vmatprep.subr.bf16.mxu1 %v14810_v42 }
 0x86a   :  { %8897 = vmatpush2.bf16.msra.mxu0 %v14805_v2  ;;  %8934 = vmatpush2.bf16.msra.mxu1 %v14808_v32 }
 0x86b   :  { %8898 = vmatprep.subr.bf16.mxu0 %v14813_v6  ;;  %8935 = vmatprep.subr.bf16.mxu1 %v14816_v7 }
 0x86e   :  { %8899 = vmatpush2.bf16.msra.mxu0 %v14811_v13  ;;  %8936 = vmatpush2.bf16.msra.mxu1 %v14814_v11 }
 0x86f   :  { %8937 = vmatprep.subr.bf16.mxu1 %v14819_v14 }
 0x871   :  { %v7875_v21 = vpop.f32.mrf.mxu0  ;;  %8901 = vmatmul.mubr.bf16.vlgmr.msra.gmra.mxu0 %v8138_v0 }
 0x872   :  { %8938 = vmatpush2.bf16.msra.mxu1 %v14817_v16 }
 0x873   :  { %v7877_v4 = vpop.f32.mrf.mxu0  ;;  %8939 = vmatprep.subr.bf16.mxu1 %v14822_v59 }
 0x875   :  { %v7879_v8 = vpop.f32.mrf.mxu0 }
 0x876   :  { %8940 = vmatpush2.bf16.msra.mxu1 %v14820_v63 }
 0x877   :  { %v7880_v58 = vpop.f32.mrf.mxu0 }
 0x879   :  { %v7916_v44 = vpop.f32.mrf.mxu1  ;;  %8942 = vmatmul.mubr.bf16.vlgmr.msra.gmra.mxu1 %v8140_v39 }
 0x87a   :  { %v7917_v26 = vadd.f32 %v7916_v44, %v7875_v21 }
 0x87b   :  { %v7918_v12 = vpop.f32.mrf.mxu1 }
 0x87c   :  { %v8005_v9 = vadd.f32 %v7917_v26, %v15975_v33  ;;  %v7919_v57 = vadd.f32 %v7918_v12, %v7877_v4 }
 0x87d   :  { %v7920_v23 = vpop.f32.mrf.mxu1 }
 0x87e   :  { %v8006_v30 = vadd.f32 %v7919_v57, %v15979_v41 }
 0x87f   :  { %v7921_v0 = vpop.f32.mrf.mxu1 }
 0x8b1   :  { %v7957_v10 = vpop.f32.mrf.mxu0 }
 0x8b3   :  { %v7959_v43 = vpop.f32.mrf.mxu0 }
 0x8b5   :  { %v7961_v15 = vpop.f32.mrf.mxu0 }
 0x8b7   :  { %v7962_v31 = vpop.f32.mrf.mxu0 }
 0x8b9   :  { %v7998_v17 = vpop.f32.mrf.mxu1 }
 0x8ba   :  { %v7999_v19 = vadd.f32 %v7998_v17, %v7957_v10 }
 0x8bb   :  { %v8000_v24 = vpop.f32.mrf.mxu1 }
 0x8bc   :  { %v8007_v40 = vadd.f32 %v7999_v19, %v15991_v5  ;;  %v8001_v56 = vadd.f32 %v8000_v24, %v7959_v43 }
 0x8bd   :  { %v8002_v39 = vpop.f32.mrf.mxu1 }
 0x8be   :  { %v8008_v34 = vadd.f32 %v8001_v56, %v15995_v54 }
 0x8bf   :  { %v8003_v3 = vpop.f32.mrf.mxu1 }
 0x8f1   :  { %v8820_v33 = vpop.f32.mrf.mxu0 }
 0x8f3   :  { %v8822_v38 = vpop.f32.mrf.mxu0 }
 0x8f5   :  { %v8824_v27 = vpop.f32.mrf.mxu0 }
 0x8f7   :  { %v8825_v51 = vpop.f32.mrf.mxu0 }
 0x8f9   :  { %v8861_v41 = vpop.f32.mrf.mxu1 }
 0x8fa   :  { %v8862_v62 = vadd.f32 %v8861_v41, %v8820_v33 }
 0x8fb   :  { %v8863_v45 = vpop.f32.mrf.mxu1 }
 0x8fc   :  { %v16005_v46 = vadd.f32 %v8862_v62, %v8005_v9  ;;  %v8864_v37 = vadd.f32 %v8863_v45, %v8822_v38 }
 0x8fd   :  { %v8865_v47 = vpop.f32.mrf.mxu1 }
 0x8fe   :  { %v16007_v48 = vadd.f32 %v8864_v37, %v8006_v30  ;;  %v8984_v5 = vmul.f32 %v16005_v46, %v16005_v46  ;;  %v8956_v54 = vsel %vm5084_vm15, %v16005_v46, 0.0 }
 0x8ff   :  { %v8866_v49 = vpop.f32.mrf.mxu1  ;;  %v8957_v61 = vrot.slane %v8956_v54, 4 }
 0x900   :  { %v8985_v50 = vmul.f32 %v16007_v48, %v16007_v48  ;;  %v8988_v53 = vsel %vm5084_vm15, %v8984_v5, 0.0  ;;  %v8963_v55 = vsel %vm5084_vm15, %v16007_v48, 0.0 }
 0x901   :  { %v8989_v1 = vrot.slane %v8988_v53, 4  ;;  %v8964_v42 = vrot.slane %v8963_v55, 4  ;;  %v8958_v2 = vadd.f32 %v8957_v61, %v8956_v54 }
 0x902   :  { %v8995_v22 = vsel %vm5084_vm15, %v8985_v50, 0.0 }
 0x903   :  { %v8996_v6 = vrot.slane %v8995_v22, 4  ;;  %v8990_v7 = vadd.f32 %v8989_v1, %v8988_v53  ;;  %v8965_v11 = vadd.f32 %v8964_v42, %v8963_v55  ;;  %v8959_v16 = vrot.slane %v8958_v2, 2 }
 0x905   :  { %v8997_v21 = vadd.f32 %v8996_v6, %v8995_v22  ;;  %v8991_v8 = vrot.slane %v8990_v7, 2  ;;  %v8966_v44 = vrot.slane %v8965_v11, 2  ;;  %v8960_v57 = vadd.f32 %v8959_v16, %v8958_v2 }
 0x907   :  { %v8998_v0 = vrot.slane %v8997_v21, 2  ;;  %v8992_v24 = vadd.f32 %v8991_v8, %v8990_v7  ;;  %v8961_v38 = vrot.slane %v8960_v57, 1 }
 0x909   :  { %v8999_v27 = vadd.f32 %v8998_v0, %v8997_v21  ;;  %v8993_v37 = vrot.slane %v8992_v24, 1 }
 0x90b   :  { %v9000_v53 = vrot.slane %v8999_v27, 1  ;;  %v8994_v22 = vadd.f32 %v8993_v37, %v8992_v24 }
 0x90d   :  { %v9001_v7 = vadd.f32 %v9000_v53, %v8999_v27 }
 0x931   :  { %v8902_v52 = vpop.f32.mrf.mxu0 }
 0x933   :  { %v8904_v60 = vpop.f32.mrf.mxu0 }
 0x935   :  { %v8906_v18 = vpop.f32.mrf.mxu0 }
 0x937   :  { %v8907_v32 = vpop.f32.mrf.mxu0 }
 0x939   :  { %v8943_v13 = vpop.f32.mrf.mxu1 }
 0x93a   :  { %v8944_v14 = vadd.f32 %v8943_v13, %v8902_v52  ;;  %v8962_v52 = vadd.f32 %v8961_v38, %v8960_v57 }
 0x93b   :  { %v8945_v59 = vpop.f32.mrf.mxu1 }
 0x93c   :  { %v16019_v63 = vadd.f32 %v8944_v14, %v8007_v40  ;;  %v8946_v4 = vadd.f32 %v8945_v59, %v8904_v60  ;;  %v8967_v40 = vadd.f32 %v8966_v44, %v8965_v11 }
 0x93d   :  { %v8947_v58 = vpop.f32.mrf.mxu1 }
 0x93e   :  { %v8970_v26 = vsel %vm5084_vm15, %v16019_v63, 0.0  ;;  %v8986_v12 = vmul.f32 %v16019_v63, %v16019_v63  ;;  %v16025_v9 = vadd.f32 %v8946_v4, %v8008_v34  ;;  %v8968_v47 = vrot.slane %v8967_v40, 1 }
 0x93f   :  { %v8971_v23 = vrot.slane %v8970_v26, 4  ;;  %v8948_v30 = vpop.f32.mrf.mxu1 }
 0x940   :  { %v9002_v10 = vsel %vm5084_vm15, %v8986_v12, 0.0  ;;  %v8977_v43 = vsel %vm5084_vm15, %v16025_v9, 0.0  ;;  %v8987_v15 = vmul.f32 %v16025_v9, %v16025_v9  ;;  %v8969_v18 = vadd.f32 %v8968_v47, %v8967_v40 }
 0x941   :  { %v8972_v31 = vadd.f32 %v8971_v23, %v8970_v26  ;;  %v9003_v17 = vrot.slane %v9002_v10, 4  ;;  %v8978_v19 = vrot.slane %v8977_v43, 4 }
 0x942   :  { %v9009_v56 = vsel %vm5084_vm15, %v8987_v15, 0.0 }
 0x943   :  { %v8973_v39 = vrot.slane %v8972_v31, 2  ;;  %v9004_v34 = vadd.f32 %v9003_v17, %v9002_v10  ;;  %v8979_v3 = vadd.f32 %v8978_v19, %v8977_v43  ;;  %v9010_v33 = vrot.slane %v9009_v56, 4 }
 0x944   :  { %v15570_v10 = vmov 1966171168  }
 0x945   :  { %v8974_v51 = vadd.f32 %v8973_v39, %v8972_v31  ;;  %v9005_v41 = vrot.slane %v9004_v34, 2  ;;  %v8980_v62 = vrot.slane %v8979_v3, 2  ;;  %v9011_v45 = vadd.f32 %v9010_v33, %v9009_v56  ;;  %v8954_v56 = vld [vmem:[#allocation16] sm:$0x3] }
 0x946   :  { %v9038_v43 = vunpack.c.l.s4 %v15570_v10 }
 0x947   :  { %v8975_v49 = vrot.slane %v8974_v51, 1  ;;  %v9006_v5 = vadd.f32 %v9005_v41, %v9004_v34  ;;  %v8981_v54 = vadd.f32 %v8980_v62, %v8979_v3  ;;  %v9012_v50 = vrot.slane %v9011_v45, 2 }
 0x948   :  { %v9039_v15 = vunpack.c.0.s8 %v9038_v43 }
 0x949   :  { %v8976_v61 = vadd.f32 %v8975_v49, %v8974_v51  ;;  %v9007_v55 = vrot.slane %v9006_v5, 1  ;;  %v8982_v60 = vrot.slane %v8981_v54, 1  ;;  %v9013_v1 = vadd.f32 %v9012_v50, %v9011_v45 }
 0x94a   :  { %v16034_v17 = vsub.s32 %v9039_v15, %v15745_v25 }
 0x94b   :  { %v9008_v42 = vadd.f32 %v9007_v55, %v9006_v5  ;;  %v9016_v2 = vadd.f32 %v8976_v61, %v8962_v52  ;;  %v8983_v32 = vadd.f32 %v8982_v60, %v8981_v54  ;;  %v9014_v6 = vrot.slane %v9013_v1, 1  ;;  %v8955_v5 = vld [vmem:[#allocation17] sm:$0x3] }
 0x94d   :  { %v9018_v13 = vadd.f32 %v9008_v42, %v8994_v22  ;;  %v9020_v11 = vmul.f32 0.125, %v9016_v2  ;;  %v9015_v14 = vadd.f32 %v9014_v6, %v9013_v1  ;;  %v9017_v16 = vadd.f32 %v8983_v32, %v8969_v18 }
 0x94f   :  { %v9022_v59 = vmul.f32 0.125, %v9018_v13  ;;  %v9024_v21 = vmul.f32 %v9020_v11, %v9020_v11  ;;  %v9019_v4 = vadd.f32 %v9015_v14, %v9001_v7  ;;  %v9021_v8 = vmul.f32 0.125, %v9017_v16 }
 0x951   :  { %v9026_v58 = vsub.f32 %v9022_v59, %v9024_v21  ;;  %v9023_v44 = vmul.f32 0.125, %v9019_v4  ;;  %v9025_v26 = vmul.f32 %v9021_v8, %v9021_v8 }
 0x953   :  { %v9028_v12 = vmax.f32 %v9026_v58, 0.0  ;;  %v9027_v57 = vsub.f32 %v9023_v44, %v9025_v26 }
 0x955   :  { %v9030_v23 = vadd.f32 1e-05, %v9028_v12  ;;  %v9029_v30 = vmax.f32 %v9027_v57, 0.0 }
 0x957   :  { %v9031_v0 = vadd.f32 1e-05, %v9029_v30  ;;  %14823 = vrsqrt.f32 %v9030_v23 }
 0x959   :  { %14825 = vrsqrt.f32 %v9031_v0 }
 0x964   :  { %v14824_v31 = vpop.eup %14823 }
 0x966   :  { %v14826_v19 = vpop.eup %14825 }
 0x967   :  { %v9036_v24 = vcombine.low %v14824_v31, %v14826_v19 }
 0x969   :  { %v9043_v40 = vrot.slane %v9036_v24, %v16034_v17 }
 0x96b   :  { %v9050_v39 = vrot.slane %v9043_v40, %v16034_v17 }
 0x96d   :  { %v9052_v34 = vmul.f32 %v9050_v39, %v8954_v56 }
 0x96f   :  { %v9057_v3 = vrot.slane %v9052_v34, %v15748_v28  ;;  %v9061_v33 = vrot.slane %v9052_v34, %v15754_v35 }
 0x971   :  { %v9064_v38 = vmul.f32 %v9057_v3, %v9020_v11  ;;  %v9065_v27 = vmul.f32 %v9061_v33, %v9021_v8  ;;  %v9099_v51 = vrot.slane %v9057_v3, %v15748_v28  ;;  %v9103_v41 = vrot.slane %v9061_v33, %v15748_v28 }
 0x973   :  { %v9068_v25 = vcombine.low %v9064_v38, %v9065_v27  ;;  %v9104_v62 = vmul.f32 %v9099_v51, %v16005_v46  ;;  %v9105_v45 = vmul.f32 %v9103_v41, %v16007_v48  ;;  %v9106_v37 = vmul.f32 %v9099_v51, %v16019_v63 }
 0x974   :  { %v9107_v47 = vmul.f32 %v9103_v41, %v16025_v9 }
 0x975   :  { %v9075_v49 = vrot.slane %v9068_v25, %v16034_v17 }
 0x977   :  { %v9082_v54 = vrot.slane %v9075_v49, %v16034_v17 }
 0x979   :  { %v9084_v50 = vsub.f32 %v8955_v5, %v9082_v54 }
 0x97b   :  { %v9089_v52 = vrot.slane %v9084_v50, %v15748_v28  ;;  %v9093_v53 = vrot.slane %v9084_v50, %v15754_v35 }
 0x97d   :  { %v9111_v61 = vrot.slane %v9089_v52, %v15748_v28  ;;  %v9115_v46 = vrot.slane %v9093_v53, %v15748_v28 }
 0x97f   :  { %v9116_v55 = vadd.f32 %v9111_v61, %v9104_v62  ;;  %v9117_v48 = vadd.f32 %v9115_v46, %v9105_v45  ;;  %v9118_v60 = vadd.f32 %v9111_v61, %v9106_v37  ;;  %v9119_v63 = vadd.f32 %v9115_v46, %v9107_v47 }
 0x981   :  { %vm9120_vm1 = vcmp.ge.f32.partialorder %v9116_v55, 0.0  ;;  %vm9121_vm2 = vcmp.ge.f32.partialorder %v9117_v48, 0.0  ;;  %vm9122_vm3 = vcmp.ge.f32.partialorder %v9118_v60, 0.0  ;;  %vm9123_vm4 = vcmp.ge.f32.partialorder %v9119_v63, 0.0 }
 0x982   :  { %v9124_v9 = vmul.f32 0.2, %v9116_v55  ;;  %v9125_v1 = vmul.f32 0.2, %v9117_v48  ;;  %v9126_v22 = vmul.f32 0.2, %v9118_v60 }
 0x983   :  { %v9127_v18 = vmul.f32 0.2, %v9119_v63 }
 0x984   :  { %v9128_v42 = vsel %vm9120_vm1, %v9116_v55, %v9124_v9  ;;  %v9129_v2 = vsel %vm9121_vm2, %v9117_v48, %v9125_v1  ;;  %v9130_v32 = vsel %vm9122_vm3, %v9118_v60, %v9126_v22 }
 0x985   :  { %v9131_v6 = vsel %vm9123_vm4, %v9119_v63, %v9127_v18  ;;  %v9132_v7 = vpack.c.bf16 %v9128_v42, %v9128_v42  ;;  %v9133_v13 = vpack.c.bf16 %v9129_v2, %v9129_v2  ;;  %v9134_v11 = vpack.c.bf16 %v9130_v32, %v9130_v32 }
 0x986   :  { %v9135_v14 = vpack.c.bf16 %v9131_v6, %v9131_v6 }
 0x987   :  { %15549 = dma.done.wait [#allocation5 + $0x1], 32768 }
 0x988   :  { %15550 = vsyncadd [#allocation5 + $0x1], 4294934528  ;;  %vm9146_vm5 = vcmask 1041408   ;;  %9191 = vmatprep.mubr.bf16.mxu0 %v15566_v20  ;;  %9232 = vmatprep.mubr.bf16.mxu1 %v15566_v20  ;;  %vm9142_vm6 = vcmask 31744   ;;  %v9141_v21 = vld [vmem:[#allocation6] sm:$0x3] }
 0x989   :  { %12828 = vmatprep.subr.msk.bf16.mxu0 %vm9146_vm5, %v9133_v13  ;;  %12830 = vmatprep.subr.msk.bf16.mxu1 %vm9146_vm5, %v9135_v14  ;;  %v9148_v16 = vsel %vm9146_vm5, %v9132_v7, 0  ;;  %v9154_v59 = vsel %vm9146_vm5, %v9134_v11, 0  ;;  %v14827_v4 = vld [vmem:[#allocation3 + $0x4e0] ss:$16 sps:$4 sm:$0xff]   ;;  %v14829_v8 = vld [vmem:[#allocation3 + $0x4e4] ss:$16 sps:$4 sm:$0xff]  }
 0x98a   :  { %9174 = vmatpush1.bf16.msra.mxu0 %v9148_v16  ;;  %9215 = vmatpush1.bf16.msra.mxu1 %v9154_v59  ;;  %v14830_v58 = vld [vmem:[#allocation3 + $0x6e0] ss:$16 sps:$4 sm:$0xff]   ;;  %v14832_v44 = vld [vmem:[#allocation3 + $0x6e4] ss:$16 sps:$4 sm:$0xff]  }
 0x98b   :  { %10154 = vmatprep.subr.bf16.mxu0 %v14829_v8  ;;  %v14833_v20 = vld [vmem:[#allocation3 + $0x4c0] ss:$16 sps:$4 sm:$0xff]   ;;  %10195 = vmatprep.subr.bf16.mxu1 %v14832_v44  ;;  %v14835_v26 = vld [vmem:[#allocation3 + $0x4c4] ss:$16 sps:$4 sm:$0xff]  }
 0x98c   :  { %v14836_v12 = vld [vmem:[#allocation3 + $0x6c0] ss:$16 sps:$4 sm:$0xff]   ;;  %v14838_v57 = vld [vmem:[#allocation3 + $0x6c4] ss:$16 sps:$4 sm:$0xff]  }
 0x98d   :  { %12829 = vmatmul.mubr.msk.bf16.vlgmr.msra.gmra.mxu0 %vm9142_vm6, %v9141_v21  ;;  %12831 = vmatmul.mubr.msk.bf16.vlgmr.msra.gmra.mxu1 %vm9142_vm6, %v9141_v21  ;;  %v14841_v23 = vld [vmem:[#allocation3 + $0x4a4] ss:$16 sps:$4 sm:$0xff]   ;;  %v14839_v30 = vld [vmem:[#allocation3 + $0x4a0] ss:$16 sps:$4 sm:$0xff]  }
 0x98e   :  { %10155 = vmatpush1.bf16.msra.mxu0 %v14827_v4  ;;  %10196 = vmatpush1.bf16.msra.mxu1 %v14830_v58  ;;  %v14844_v0 = vld [vmem:[#allocation3 + $0x6a4] ss:$16 sps:$4 sm:$0xff]   ;;  %v14842_v10 = vld [vmem:[#allocation3 + $0x6a0] ss:$16 sps:$4 sm:$0xff]  }
 0x98f   :  { %10156 = vmatprep.subr.bf16.mxu0 %v14835_v26  ;;  %10197 = vmatprep.subr.bf16.mxu1 %v14838_v57  ;;  %v14847_v43 = vld [vmem:[#allocation3 + $0x484] ss:$16 sps:$4 sm:$0xff]   ;;  %v14845_v31 = vld [vmem:[#allocation3 + $0x480] ss:$16 sps:$4 sm:$0xff]   ;;  %v14925_v26 = vld [vmem:[#allocation3 + $0x4ec] ss:$16 sps:$4 sm:$0xff]  }
 0x990   :  { %v14850_v15 = vld [vmem:[#allocation3 + $0x684] ss:$16 sps:$4 sm:$0xff]   ;;  %v14848_v19 = vld [vmem:[#allocation3 + $0x680] ss:$16 sps:$4 sm:$0xff]  }
 0x991   :  { %v14853_v24 = vld [vmem:[#allocation3 + $0x464] ss:$16 sps:$4 sm:$0xff]   ;;  %v14851_v56 = vld [vmem:[#allocation3 + $0x460] ss:$16 sps:$4 sm:$0xff]  }
 0x992   :  { %10157 = vmatpush1.bf16.msra.mxu0 %v14833_v20  ;;  %10198 = vmatpush1.bf16.msra.mxu1 %v14836_v12  ;;  %v14856_v40 = vld [vmem:[#allocation3 + $0x664] ss:$16 sps:$4 sm:$0xff]   ;;  %v14854_v39 = vld [vmem:[#allocation3 + $0x660] ss:$16 sps:$4 sm:$0xff]   ;;  %v14928_v12 = vld [vmem:[#allocation3 + $0x6ec] ss:$16 sps:$4 sm:$0xff]  }
 0x993   :  { %10158 = vmatprep.subr.bf16.mxu0 %v14841_v23  ;;  %10199 = vmatprep.subr.bf16.mxu1 %v14844_v0  ;;  %v14859_v34 = vld [vmem:[#allocation3 + $0x444] ss:$16 sps:$4 sm:$0xff]   ;;  %v14857_v33 = vld [vmem:[#allocation3 + $0x440] ss:$16 sps:$4 sm:$0xff]  }
 0x994   :  { %v14862_v3 = vld [vmem:[#allocation3 + $0x644] ss:$16 sps:$4 sm:$0xff]   ;;  %v14860_v38 = vld [vmem:[#allocation3 + $0x640] ss:$16 sps:$4 sm:$0xff]  }
 0x995   :  { %v14865_v27 = vld [vmem:[#allocation3 + $0x424] ss:$16 sps:$4 sm:$0xff]   ;;  %v14863_v41 = vld [vmem:[#allocation3 + $0x420] ss:$16 sps:$4 sm:$0xff]  }
 0x996   :  { %10159 = vmatpush1.bf16.msra.mxu0 %v14839_v30  ;;  %10200 = vmatpush1.bf16.msra.mxu1 %v14842_v10  ;;  %v14868_v51 = vld [vmem:[#allocation3 + $0x624] ss:$16 sps:$4 sm:$0xff]   ;;  %v14866_v25 = vld [vmem:[#allocation3 + $0x620] ss:$16 sps:$4 sm:$0xff]  }
 0x997   :  { %10160 = vmatprep.subr.bf16.mxu0 %v14847_v43  ;;  %10201 = vmatprep.subr.bf16.mxu1 %v14850_v15  ;;  %v14871_v62 = vld [vmem:[#allocation3 + $0x404] ss:$16 sps:$4 sm:$0xff]   ;;  %v14869_v37 = vld [vmem:[#allocation3 + $0x400] ss:$16 sps:$4 sm:$0xff]  }
 0x998   :  { %v14874_v45 = vld [vmem:[#allocation3 + $0x604] ss:$16 sps:$4 sm:$0xff]   ;;  %v14872_v47 = vld [vmem:[#allocation3 + $0x600] ss:$16 sps:$4 sm:$0xff]  }
 0x999   :  { %v14877_v49 = vld [vmem:[#allocation3 + $0x5e4] ss:$16 sps:$4 sm:$0xff]   ;;  %v14875_v54 = vld [vmem:[#allocation3 + $0x5e0] ss:$16 sps:$4 sm:$0xff]  }
 0x99a   :  { %10161 = vmatpush1.bf16.msra.mxu0 %v14845_v31  ;;  %10202 = vmatpush1.bf16.msra.mxu1 %v14848_v19  ;;  %v14880_v5 = vld [vmem:[#allocation3 + $0x7e4] ss:$16 sps:$4 sm:$0xff]   ;;  %v14878_v50 = vld [vmem:[#allocation3 + $0x7e0] ss:$16 sps:$4 sm:$0xff]  }
 0x99b   :  { %10162 = vmatprep.subr.bf16.mxu0 %v14853_v24  ;;  %10203 = vmatprep.subr.bf16.mxu1 %v14856_v40  ;;  %v14883_v52 = vld [vmem:[#allocation3 + $0x5c4] ss:$16 sps:$4 sm:$0xff]   ;;  %v14881_v61 = vld [vmem:[#allocation3 + $0x5c0] ss:$16 sps:$4 sm:$0xff]  }
 0x99c   :  { %v14886_v53 = vld [vmem:[#allocation3 + $0x7c4] ss:$16 sps:$4 sm:$0xff]   ;;  %v14884_v46 = vld [vmem:[#allocation3 + $0x7c0] ss:$16 sps:$4 sm:$0xff]  }
 0x99d   :  { %v14889_v55 = vld [vmem:[#allocation3 + $0x5a4] ss:$16 sps:$4 sm:$0xff]   ;;  %v14887_v48 = vld [vmem:[#allocation3 + $0x5a0] ss:$16 sps:$4 sm:$0xff]  }
 0x99e   :  { %10163 = vmatpush1.bf16.msra.mxu0 %v14851_v56  ;;  %10204 = vmatpush1.bf16.msra.mxu1 %v14854_v39  ;;  %v14892_v60 = vld [vmem:[#allocation3 + $0x7a4] ss:$16 sps:$4 sm:$0xff]   ;;  %v14890_v63 = vld [vmem:[#allocation3 + $0x7a0] ss:$16 sps:$4 sm:$0xff]  }
 0x99f   :  { %10164 = vmatprep.subr.bf16.mxu0 %v14859_v34  ;;  %10205 = vmatprep.subr.bf16.mxu1 %v14862_v3  ;;  %v14895_v9 = vld [vmem:[#allocation3 + $0x584] ss:$16 sps:$4 sm:$0xff]   ;;  %v14893_v22 = vld [vmem:[#allocation3 + $0x580] ss:$16 sps:$4 sm:$0xff]   ;;  %v14923_v34 = vld [vmem:[#allocation3 + $0x4e8] ss:$16 sps:$4 sm:$0xff]  }
 0x9a0   :  { %v14898_v1 = vld [vmem:[#allocation3 + $0x784] ss:$16 sps:$4 sm:$0xff]   ;;  %v14896_v18 = vld [vmem:[#allocation3 + $0x780] ss:$16 sps:$4 sm:$0xff]   ;;  %v14926_v3 = vld [vmem:[#allocation3 + $0x6e8] ss:$16 sps:$4 sm:$0xff]  }
 0x9a1   :  { %v14901_v42 = vld [vmem:[#allocation3 + $0x564] ss:$16 sps:$4 sm:$0xff]   ;;  %v14899_v32 = vld [vmem:[#allocation3 + $0x560] ss:$16 sps:$4 sm:$0xff]  }
 0x9a2   :  { %10165 = vmatpush1.bf16.msra.mxu0 %v14857_v33  ;;  %10206 = vmatpush1.bf16.msra.mxu1 %v14860_v38  ;;  %v14904_v2 = vld [vmem:[#allocation3 + $0x764] ss:$16 sps:$4 sm:$0xff]   ;;  %v14902_v6 = vld [vmem:[#allocation3 + $0x760] ss:$16 sps:$4 sm:$0xff]  }
 0x9a3   :  { %10166 = vmatprep.subr.bf16.mxu0 %v14865_v27  ;;  %10207 = vmatprep.subr.bf16.mxu1 %v14868_v51  ;;  %v14907_v7 = vld [vmem:[#allocation3 + $0x544] ss:$16 sps:$4 sm:$0xff]   ;;  %v14905_v11 = vld [vmem:[#allocation3 + $0x540] ss:$16 sps:$4 sm:$0xff]   ;;  %v14931_v51 = vld [vmem:[#allocation3 + $0x4cc] ss:$16 sps:$4 sm:$0xff]  }
 0x9a4   :  { %v14910_v13 = vld [vmem:[#allocation3 + $0x744] ss:$16 sps:$4 sm:$0xff]   ;;  %v14908_v14 = vld [vmem:[#allocation3 + $0x740] ss:$16 sps:$4 sm:$0xff]  }
 0x9a5   :  { %v14913_v16 = vld [vmem:[#allocation3 + $0x524] ss:$16 sps:$4 sm:$0xff]   ;;  %v14911_v21 = vld [vmem:[#allocation3 + $0x520] ss:$16 sps:$4 sm:$0xff]  }
 0x9a6   :  { %10167 = vmatpush1.bf16.msra.mxu0 %v14863_v41  ;;  %10208 = vmatpush1.bf16.msra.mxu1 %v14866_v25  ;;  %v14916_v59 = vld [vmem:[#allocation3 + $0x724] ss:$16 sps:$4 sm:$0xff]   ;;  %v14914_v4 = vld [vmem:[#allocation3 + $0x720] ss:$16 sps:$4 sm:$0xff]   ;;  %v14934_v41 = vld [vmem:[#allocation3 + $0x6cc] ss:$16 sps:$4 sm:$0xff]  }
 0x9a7   :  { %10168 = vmatprep.subr.bf16.mxu0 %v14871_v62  ;;  %10209 = vmatprep.subr.bf16.mxu1 %v14874_v45  ;;  %v14919_v8 = vld [vmem:[#allocation3 + $0x504] ss:$16 sps:$4 sm:$0xff]   ;;  %v14917_v44 = vld [vmem:[#allocation3 + $0x500] ss:$16 sps:$4 sm:$0xff]   ;;  %v14929_v25 = vld [vmem:[#allocation3 + $0x4c8] ss:$16 sps:$4 sm:$0xff]  }
 0x9a8   :  { %v14922_v58 = vld [vmem:[#allocation3 + $0x704] ss:$16 sps:$4 sm:$0xff]   ;;  %v14920_v20 = vld [vmem:[#allocation3 + $0x700] ss:$16 sps:$4 sm:$0xff]   ;;  %v14932_v62 = vld [vmem:[#allocation3 + $0x6c8] ss:$16 sps:$4 sm:$0xff]  }
 0x9a9   :  { %v14937_v45 = vld [vmem:[#allocation3 + $0x4ac] ss:$16 sps:$4 sm:$0xff]  }
 0x9aa   :  { %10169 = vmatpush1.bf16.msra.mxu0 %v14869_v37  ;;  %10210 = vmatpush1.bf16.msra.mxu1 %v14872_v47  ;;  %v14940_v37 = vld [vmem:[#allocation3 + $0x6ac] ss:$16 sps:$4 sm:$0xff]   ;;  %v14935_v47 = vld [vmem:[#allocation3 + $0x4a8] ss:$16 sps:$4 sm:$0xff]  }
 0x9ab   :  { %10170 = vmatprep.subr.bf16.mxu0 %v14877_v49  ;;  %10211 = vmatprep.subr.bf16.mxu1 %v14880_v5  ;;  %v14938_v49 = vld [vmem:[#allocation3 + $0x6a8] ss:$16 sps:$4 sm:$0xff]   ;;  %v14943_v5 = vld [vmem:[#allocation3 + $0x48c] ss:$16 sps:$4 sm:$0xff]  }
 0x9ae   :  { %10171 = vmatpush2.bf16.msra.mxu0 %v14875_v54  ;;  %10212 = vmatpush2.bf16.msra.mxu1 %v14878_v50  ;;  %v14946_v54 = vld [vmem:[#allocation3 + $0x68c] ss:$16 sps:$4 sm:$0xff]   ;;  %v14941_v50 = vld [vmem:[#allocation3 + $0x488] ss:$16 sps:$4 sm:$0xff]  }
 0x9af   :  { %10172 = vmatprep.subr.bf16.mxu0 %v14883_v52  ;;  %10213 = vmatprep.subr.bf16.mxu1 %v14886_v53  ;;  %v14944_v52 = vld [vmem:[#allocation3 + $0x688] ss:$16 sps:$4 sm:$0xff]   ;;  %v14949_v53 = vld [vmem:[#allocation3 + $0x46c] ss:$16 sps:$4 sm:$0xff]  }
 0x9b2   :  { %10173 = vmatpush2.bf16.msra.mxu0 %v14881_v61  ;;  %10214 = vmatpush2.bf16.msra.mxu1 %v14884_v46  ;;  %v14952_v61 = vld [vmem:[#allocation3 + $0x66c] ss:$16 sps:$4 sm:$0xff]   ;;  %v14947_v46 = vld [vmem:[#allocation3 + $0x468] ss:$16 sps:$4 sm:$0xff]  }
 0x9b3   :  { %10174 = vmatprep.subr.bf16.mxu0 %v14889_v55  ;;  %10215 = vmatprep.subr.bf16.mxu1 %v14892_v60  ;;  %v14950_v55 = vld [vmem:[#allocation3 + $0x668] ss:$16 sps:$4 sm:$0xff]   ;;  %v14958_v60 = vld [vmem:[#allocation3 + $0x64c] ss:$16 sps:$4 sm:$0xff]  }
 0x9b6   :  { %10175 = vmatpush2.bf16.msra.mxu0 %v14887_v48  ;;  %10216 = vmatpush2.bf16.msra.mxu1 %v14890_v63  ;;  %v14955_v48 = vld [vmem:[#allocation3 + $0x44c] ss:$16 sps:$4 sm:$0xff]   ;;  %v14953_v63 = vld [vmem:[#allocation3 + $0x448] ss:$16 sps:$4 sm:$0xff]  }
 0x9b7   :  { %10176 = vmatprep.subr.bf16.mxu0 %v14895_v9  ;;  %10217 = vmatprep.subr.bf16.mxu1 %v14898_v1  ;;  %v14956_v9 = vld [vmem:[#allocation3 + $0x648] ss:$16 sps:$4 sm:$0xff]   ;;  %v14961_v1 = vld [vmem:[#allocation3 + $0x42c] ss:$16 sps:$4 sm:$0xff]  }
 0x9ba   :  { %10177 = vmatpush2.bf16.msra.mxu0 %v14893_v22  ;;  %10218 = vmatpush2.bf16.msra.mxu1 %v14896_v18  ;;  %v14964_v22 = vld [vmem:[#allocation3 + $0x62c] ss:$16 sps:$4 sm:$0xff]   ;;  %v14959_v18 = vld [vmem:[#allocation3 + $0x428] ss:$16 sps:$4 sm:$0xff]  }
 0x9bb   :  { %10178 = vmatprep.subr.bf16.mxu0 %v14901_v42  ;;  %10219 = vmatprep.subr.bf16.mxu1 %v14904_v2  ;;  %v14962_v42 = vld [vmem:[#allocation3 + $0x628] ss:$16 sps:$4 sm:$0xff]   ;;  %v14967_v2 = vld [vmem:[#allocation3 + $0x40c] ss:$16 sps:$4 sm:$0xff]  }
 0x9be   :  { %10179 = vmatpush2.bf16.msra.mxu0 %v14899_v32  ;;  %10220 = vmatpush2.bf16.msra.mxu1 %v14902_v6  ;;  %v14970_v32 = vld [vmem:[#allocation3 + $0x60c] ss:$16 sps:$4 sm:$0xff]   ;;  %v14965_v6 = vld [vmem:[#allocation3 + $0x408] ss:$16 sps:$4 sm:$0xff]  }
 0x9bf   :  { %10180 = vmatprep.subr.bf16.mxu0 %v14907_v7  ;;  %10221 = vmatprep.subr.bf16.mxu1 %v14910_v13  ;;  %v14968_v7 = vld [vmem:[#allocation3 + $0x608] ss:$16 sps:$4 sm:$0xff]   ;;  %v14973_v13 = vld [vmem:[#allocation3 + $0x5ec] ss:$16 sps:$4 sm:$0xff]  }
 0x9c2   :  { %10181 = vmatpush2.bf16.msra.mxu0 %v14905_v11  ;;  %10222 = vmatpush2.bf16.msra.mxu1 %v14908_v14  ;;  %v14976_v11 = vld [vmem:[#allocation3 + $0x7ec] ss:$16 sps:$4 sm:$0xff]   ;;  %v14971_v14 = vld [vmem:[#allocation3 + $0x5e8] ss:$16 sps:$4 sm:$0xff]  }
 0x9c3   :  { %10182 = vmatprep.subr.bf16.mxu0 %v14913_v16  ;;  %10223 = vmatprep.subr.bf16.mxu1 %v14916_v59  ;;  %v14974_v16 = vld [vmem:[#allocation3 + $0x7e8] ss:$16 sps:$4 sm:$0xff]   ;;  %v14979_v59 = vld [vmem:[#allocation3 + $0x5cc] ss:$16 sps:$4 sm:$0xff]  }
 0x9c6   :  { %10183 = vmatpush2.bf16.msra.mxu0 %v14911_v21  ;;  %10224 = vmatpush2.bf16.msra.mxu1 %v14914_v4  ;;  %v14982_v21 = vld [vmem:[#allocation3 + $0x7cc] ss:$16 sps:$4 sm:$0xff]   ;;  %v14977_v4 = vld [vmem:[#allocation3 + $0x5c8] ss:$16 sps:$4 sm:$0xff]  }
 0x9c7   :  { %10184 = vmatprep.subr.bf16.mxu0 %v14919_v8  ;;  %10225 = vmatprep.subr.bf16.mxu1 %v14922_v58  ;;  %v14980_v8 = vld [vmem:[#allocation3 + $0x7c8] ss:$16 sps:$4 sm:$0xff]   ;;  %v14985_v58 = vld [vmem:[#allocation3 + $0x5ac] ss:$16 sps:$4 sm:$0xff]  }
 0x9ca   :  { %10185 = vmatpush2.bf16.msra.mxu0 %v14917_v44  ;;  %10226 = vmatpush2.bf16.msra.mxu1 %v14920_v20  ;;  %v14988_v44 = vld [vmem:[#allocation3 + $0x7ac] ss:$16 sps:$4 sm:$0xff]   ;;  %v14983_v20 = vld [vmem:[#allocation3 + $0x5a8] ss:$16 sps:$4 sm:$0xff]  }
 0x9cb   :  { %10236 = vmatprep.subr.bf16.mxu0 %v14925_v26  ;;  %10277 = vmatprep.subr.bf16.mxu1 %v14928_v12  ;;  %v14986_v26 = vld [vmem:[#allocation3 + $0x7a8] ss:$16 sps:$4 sm:$0xff]   ;;  %v14991_v12 = vld [vmem:[#allocation3 + $0x58c] ss:$16 sps:$4 sm:$0xff]  }
 0xa4d   :  { %v9193_v57 = vpop.f32.mrf.mxu0  ;;  %v9234_v23 = vpop.f32.mrf.mxu1 }
 0xa4e   :  { %v16058_v30 = vpack.c.bf16 %v9234_v23, %v9234_v23  ;;  %v16060_v0 = vpack.c.bf16 %v9193_v57, %v9193_v57  ;;  %v14994_v57 = vld [vmem:[#allocation3 + $0x78c] ss:$16 sps:$4 sm:$0xff]   ;;  %v14989_v23 = vld [vmem:[#allocation3 + $0x588] ss:$16 sps:$4 sm:$0xff]  }
 0xa4f   :  { %v9195_v10 = vpop.f32.mrf.mxu0  ;;  %v9236_v43 = vpop.f32.mrf.mxu1 }
 0xa50   :  { %v16062_v15 = vpack.c.bf16 %v9195_v10, %v9195_v10  ;;  %v16064_v31 = vpack.c.bf16 %v9236_v43, %v9236_v43  ;;  %v9508_v19 = vrot.slane %v16058_v30, 1  ;;  %v9506_v33 = vrot.slane %v16060_v0, 1  ;;  %v14992_v10 = vld [vmem:[#allocation3 + $0x788] ss:$16 sps:$4 sm:$0xff]   ;;  %v14997_v43 = vld [vmem:[#allocation3 + $0x56c] ss:$16 sps:$4 sm:$0xff]  }
 0xa51   :  { %v9197_v24 = vpop.f32.mrf.mxu0  ;;  %v9238_v40 = vpop.f32.mrf.mxu1 }
 0xa52   :  { %v9507_v56 = vrot.slane %v16062_v15, 1  ;;  %v9509_v39 = vrot.slane %v16064_v31, 1  ;;  %v15000_v24 = vld [vmem:[#allocation3 + $0x76c] ss:$16 sps:$4 sm:$0xff]   ;;  %v14995_v40 = vld [vmem:[#allocation3 + $0x568] ss:$16 sps:$4 sm:$0xff]  }
 0xa53   :  { %v9198_v38 = vpop.f32.mrf.mxu0  ;;  %v9239_v27 = vpop.f32.mrf.mxu1 }
 0xa54   :  { %10186 = vmatprep.mubr.bf16.mxu0 %v9507_v56  ;;  %10227 = vmatprep.mubr.bf16.mxu1 %v9509_v39  ;;  %v15004_v38 = vld [vmem:[#allocation3 + $0x748] ss:$16 sps:$4 sm:$0xff]   ;;  %v15009_v27 = vld [vmem:[#allocation3 + $0x52c] ss:$16 sps:$4 sm:$0xff]  }
 0xa55   :  { %10187 = vmatmul.mubr.bf16.vlgmr.msra.gmra.mxu0 %v9506_v33  ;;  %10228 = vmatmul.mubr.bf16.vlgmr.msra.gmra.mxu1 %v9508_v19 }
 0xa56   :  { %10237 = vmatpush1.bf16.msra.mxu0 %v14923_v34  ;;  %10278 = vmatpush1.bf16.msra.mxu1 %v14926_v3  ;;  %v15006_v34 = vld [vmem:[#allocation3 + $0x74c] ss:$16 sps:$4 sm:$0xff]   ;;  %v15001_v3 = vld [vmem:[#allocation3 + $0x548] ss:$16 sps:$4 sm:$0xff]  }
 0xa57   :  { %10268 = vmatprep.mubr.bf16.mxu0 %v9507_v56  ;;  %10309 = vmatprep.mubr.bf16.mxu1 %v9509_v39  ;;  %v14998_v56 = vld [vmem:[#allocation3 + $0x768] ss:$16 sps:$4 sm:$0xff]   ;;  %v15003_v39 = vld [vmem:[#allocation3 + $0x54c] ss:$16 sps:$4 sm:$0xff]  }
 0xa58   :  { %10238 = vmatprep.subr.bf16.mxu0 %v14931_v51  ;;  %10279 = vmatprep.subr.bf16.mxu1 %v14934_v41  ;;  %v15012_v51 = vld [vmem:[#allocation3 + $0x72c] ss:$16 sps:$4 sm:$0xff]   ;;  %v15007_v41 = vld [vmem:[#allocation3 + $0x528] ss:$16 sps:$4 sm:$0xff]  }
 0xa5a   :  { %10239 = vmatpush1.bf16.msra.mxu0 %v14929_v25  ;;  %10280 = vmatpush1.bf16.msra.mxu1 %v14932_v62  ;;  %v15010_v25 = vld [vmem:[#allocation3 + $0x728] ss:$16 sps:$4 sm:$0xff]   ;;  %v15015_v62 = vld [vmem:[#allocation3 + $0x50c] ss:$16 sps:$4 sm:$0xff]  }
 0xa5b   :  { %10240 = vmatprep.subr.bf16.mxu0 %v14937_v45  ;;  %10281 = vmatprep.subr.bf16.mxu1 %v14940_v37  ;;  %v15018_v45 = vld [vmem:[#allocation3 + $0x70c] ss:$16 sps:$4 sm:$0xff]   ;;  %v15013_v37 = vld [vmem:[#allocation3 + $0x508] ss:$16 sps:$4 sm:$0xff]  }
 0xa5e   :  { %10241 = vmatpush1.bf16.msra.mxu0 %v14935_v47  ;;  %10282 = vmatpush1.bf16.msra.mxu1 %v14938_v49  ;;  %v15016_v47 = vld [vmem:[#allocation3 + $0x708] ss:$16 sps:$4 sm:$0xff]   ;;  %v15021_v49 = vld [vmem:[#allocation3 + $0xe4] ss:$16 sps:$4 sm:$0xff]  }
 0xa5f   :  { %10242 = vmatprep.subr.bf16.mxu0 %v14943_v5  ;;  %10283 = vmatprep.subr.bf16.mxu1 %v14946_v54  ;;  %v15024_v5 = vld [vmem:[#allocation3 + $0x2e4] ss:$16 sps:$4 sm:$0xff]   ;;  %v15019_v54 = vld [vmem:[#allocation3 + $0xe0] ss:$16 sps:$4 sm:$0xff]  }
 0xa62   :  { %10243 = vmatpush1.bf16.msra.mxu0 %v14941_v50  ;;  %10284 = vmatpush1.bf16.msra.mxu1 %v14944_v52  ;;  %v15022_v50 = vld [vmem:[#allocation3 + $0x2e0] ss:$16 sps:$4 sm:$0xff]   ;;  %v15027_v52 = vld [vmem:[#allocation3 + $0xc4] ss:$16 sps:$4 sm:$0xff]  }
 0xa63   :  { %10244 = vmatprep.subr.bf16.mxu0 %v14949_v53  ;;  %10285 = vmatprep.subr.bf16.mxu1 %v14952_v61  ;;  %v15030_v53 = vld [vmem:[#allocation3 + $0x2c4] ss:$16 sps:$4 sm:$0xff]   ;;  %v15025_v61 = vld [vmem:[#allocation3 + $0xc0] ss:$16 sps:$4 sm:$0xff]  }
 0xa66   :  { %10245 = vmatpush1.bf16.msra.mxu0 %v14947_v46  ;;  %10286 = vmatpush1.bf16.msra.mxu1 %v14950_v55  ;;  %v15028_v46 = vld [vmem:[#allocation3 + $0x2c0] ss:$16 sps:$4 sm:$0xff]   ;;  %v15033_v55 = vld [vmem:[#allocation3 + $0xa4] ss:$16 sps:$4 sm:$0xff]  }
 0xa67   :  { %10246 = vmatprep.subr.bf16.mxu0 %v14955_v48  ;;  %10287 = vmatprep.subr.bf16.mxu1 %v14958_v60  ;;  %v15036_v48 = vld [vmem:[#allocation3 + $0x2a4] ss:$16 sps:$4 sm:$0xff]   ;;  %v15031_v60 = vld [vmem:[#allocation3 + $0xa0] ss:$16 sps:$4 sm:$0xff]  }
 0xa6a   :  { %10247 = vmatpush1.bf16.msra.mxu0 %v14953_v63  ;;  %10288 = vmatpush1.bf16.msra.mxu1 %v14956_v9  ;;  %v15039_v63 = vld [vmem:[#allocation3 + $0x84] ss:$16 sps:$4 sm:$0xff]   ;;  %v15037_v9 = vld [vmem:[#allocation3 + $0x80] ss:$16 sps:$4 sm:$0xff]  }
 0xa6b   :  { %10248 = vmatprep.subr.bf16.mxu0 %v14961_v1  ;;  %10289 = vmatprep.subr.bf16.mxu1 %v14964_v22  ;;  %v15040_v1 = vld [vmem:[#allocation3 + $0x280] ss:$16 sps:$4 sm:$0xff]   ;;  %v15045_v22 = vld [vmem:[#allocation3 + $0x64] ss:$16 sps:$4 sm:$0xff]  }
 0xa6e   :  { %10249 = vmatpush1.bf16.msra.mxu0 %v14959_v18  ;;  %10290 = vmatpush1.bf16.msra.mxu1 %v14962_v42  ;;  %v15048_v18 = vld [vmem:[#allocation3 + $0x264] ss:$16 sps:$4 sm:$0xff]   ;;  %v15043_v42 = vld [vmem:[#allocation3 + $0x60] ss:$16 sps:$4 sm:$0xff]  }
 0xa6f   :  { %10250 = vmatprep.subr.bf16.mxu0 %v14967_v2  ;;  %10291 = vmatprep.subr.bf16.mxu1 %v14970_v32  ;;  %v15046_v2 = vld [vmem:[#allocation3 + $0x260] ss:$16 sps:$4 sm:$0xff]   ;;  %v15051_v32 = vld [vmem:[#allocation3 + $0x44] ss:$16 sps:$4 sm:$0xff]  }
 0xa72   :  { %10251 = vmatpush1.bf16.msra.mxu0 %v14965_v6  ;;  %10292 = vmatpush1.bf16.msra.mxu1 %v14968_v7  ;;  %v15054_v6 = vld [vmem:[#allocation3 + $0x244] ss:$16 sps:$4 sm:$0xff]   ;;  %v15049_v7 = vld [vmem:[#allocation3 + $0x40] ss:$16 sps:$4 sm:$0xff]  }
 0xa73   :  { %10252 = vmatprep.subr.bf16.mxu0 %v14973_v13  ;;  %10293 = vmatprep.subr.bf16.mxu1 %v14976_v11  ;;  %v15052_v13 = vld [vmem:[#allocation3 + $0x240] ss:$16 sps:$4 sm:$0xff]   ;;  %v15057_v11 = vld [vmem:[#allocation3 + $0x24] ss:$16 sps:$4 sm:$0xff]  }
 0xa76   :  { %10253 = vmatpush2.bf16.msra.mxu0 %v14971_v14  ;;  %10294 = vmatpush2.bf16.msra.mxu1 %v14974_v16  ;;  %v15060_v14 = vld [vmem:[#allocation3 + $0x224] ss:$16 sps:$4 sm:$0xff]   ;;  %v15055_v16 = vld [vmem:[#allocation3 + $0x20] ss:$16 sps:$4 sm:$0xff]  }
 0xa77   :  { %10254 = vmatprep.subr.bf16.mxu0 %v14979_v59  ;;  %10295 = vmatprep.subr.bf16.mxu1 %v14982_v21  ;;  %v15058_v59 = vld [vmem:[#allocation3 + $0x220] ss:$16 sps:$4 sm:$0xff]   ;;  %v15063_v21 = vld [vmem:[#allocation3 + $0x4] ss:$16 sps:$4 sm:$0xff]  }
 0xa7a   :  { %10255 = vmatpush2.bf16.msra.mxu0 %v14977_v4  ;;  %10296 = vmatpush2.bf16.msra.mxu1 %v14980_v8  ;;  %v15066_v4 = vld [vmem:[#allocation3 + $0x204] ss:$16 sps:$4 sm:$0xff]   ;;  %v15061_v8 = vld [vmem:[#allocation3] ss:$16 sps:$4 sm:$0xff]  }
 0xa7b   :  { %10256 = vmatprep.subr.bf16.mxu0 %v14985_v58  ;;  %10297 = vmatprep.subr.bf16.mxu1 %v14988_v44  ;;  %v15064_v58 = vld [vmem:[#allocation3 + $0x200] ss:$16 sps:$4 sm:$0xff]   ;;  %v15069_v44 = vld [vmem:[#allocation3 + $0x1e4] ss:$16 sps:$4 sm:$0xff]  }
 0xa7e   :  { %10257 = vmatpush2.bf16.msra.mxu0 %v14983_v20  ;;  %10298 = vmatpush2.bf16.msra.mxu1 %v14986_v26  ;;  %v15072_v20 = vld [vmem:[#allocation3 + $0x3e4] ss:$16 sps:$4 sm:$0xff]   ;;  %v15067_v26 = vld [vmem:[#allocation3 + $0x1e0] ss:$16 sps:$4 sm:$0xff]  }
 0xa7f   :  { %10258 = vmatprep.subr.bf16.mxu0 %v14991_v12  ;;  %10299 = vmatprep.subr.bf16.mxu1 %v14994_v57  ;;  %v15070_v12 = vld [vmem:[#allocation3 + $0x3e0] ss:$16 sps:$4 sm:$0xff]   ;;  %v15075_v57 = vld [vmem:[#allocation3 + $0x1c4] ss:$16 sps:$4 sm:$0xff]  }
 0xa82   :  { %10259 = vmatpush2.bf16.msra.mxu0 %v14989_v23  ;;  %10300 = vmatpush2.bf16.msra.mxu1 %v14992_v10  ;;  %v15078_v23 = vld [vmem:[#allocation3 + $0x3c4] ss:$16 sps:$4 sm:$0xff]   ;;  %v15073_v10 = vld [vmem:[#allocation3 + $0x1c0] ss:$16 sps:$4 sm:$0xff]  }
 0xa83   :  { %10260 = vmatprep.subr.bf16.mxu0 %v14997_v43  ;;  %10301 = vmatprep.subr.bf16.mxu1 %v15000_v24  ;;  %v15076_v43 = vld [vmem:[#allocation3 + $0x3c0] ss:$16 sps:$4 sm:$0xff]   ;;  %v15081_v24 = vld [vmem:[#allocation3 + $0x1a4] ss:$16 sps:$4 sm:$0xff]  }
 0xa86   :  { %10261 = vmatpush2.bf16.msra.mxu0 %v14995_v40  ;;  %10302 = vmatpush2.bf16.msra.mxu1 %v14998_v56  ;;  %v15084_v40 = vld [vmem:[#allocation3 + $0x3a4] ss:$16 sps:$4 sm:$0xff]   ;;  %v15079_v56 = vld [vmem:[#allocation3 + $0x1a0] ss:$16 sps:$4 sm:$0xff]  }
 0xa87   :  { %10262 = vmatprep.subr.bf16.mxu0 %v15003_v39  ;;  %10303 = vmatprep.subr.bf16.mxu1 %v15006_v34  ;;  %v15082_v39 = vld [vmem:[#allocation3 + $0x3a0] ss:$16 sps:$4 sm:$0xff]   ;;  %v15087_v34 = vld [vmem:[#allocation3 + $0x184] ss:$16 sps:$4 sm:$0xff]  }
 0xa8a   :  { %10263 = vmatpush2.bf16.msra.mxu0 %v15001_v3  ;;  %10304 = vmatpush2.bf16.msra.mxu1 %v15004_v38  ;;  %v15090_v3 = vld [vmem:[#allocation3 + $0x384] ss:$16 sps:$4 sm:$0xff]   ;;  %v15085_v38 = vld [vmem:[#allocation3 + $0x180] ss:$16 sps:$4 sm:$0xff]  }
 0xa8b   :  { %10264 = vmatprep.subr.bf16.mxu0 %v15009_v27  ;;  %10305 = vmatprep.subr.bf16.mxu1 %v15012_v51  ;;  %v15088_v27 = vld [vmem:[#allocation3 + $0x380] ss:$16 sps:$4 sm:$0xff]   ;;  %v15093_v51 = vld [vmem:[#allocation3 + $0x164] ss:$16 sps:$4 sm:$0xff]  }
 0xa8e   :  { %10265 = vmatpush2.bf16.msra.mxu0 %v15007_v41  ;;  %10306 = vmatpush2.bf16.msra.mxu1 %v15010_v25  ;;  %v15096_v41 = vld [vmem:[#allocation3 + $0x364] ss:$16 sps:$4 sm:$0xff]   ;;  %v15091_v25 = vld [vmem:[#allocation3 + $0x160] ss:$16 sps:$4 sm:$0xff]  }
 0xa8f   :  { %10266 = vmatprep.subr.bf16.mxu0 %v15015_v62  ;;  %10307 = vmatprep.subr.bf16.mxu1 %v15018_v45  ;;  %v15094_v62 = vld [vmem:[#allocation3 + $0x360] ss:$16 sps:$4 sm:$0xff]   ;;  %v15099_v45 = vld [vmem:[#allocation3 + $0x144] ss:$16 sps:$4 sm:$0xff]  }
 0xa92   :  { %10267 = vmatpush2.bf16.msra.mxu0 %v15013_v37  ;;  %10308 = vmatpush2.bf16.msra.mxu1 %v15016_v47  ;;  %v15102_v37 = vld [vmem:[#allocation3 + $0x344] ss:$16 sps:$4 sm:$0xff]   ;;  %v15097_v47 = vld [vmem:[#allocation3 + $0x140] ss:$16 sps:$4 sm:$0xff]  }
 0xa93   :  { %10958 = vmatprep.subr.bf16.mxu0 %v15021_v49  ;;  %10999 = vmatprep.subr.bf16.mxu1 %v15024_v5  ;;  %v15100_v49 = vld [vmem:[#allocation3 + $0x340] ss:$16 sps:$4 sm:$0xff]   ;;  %v15105_v5 = vld [vmem:[#allocation3 + $0x124] ss:$16 sps:$4 sm:$0xff]  }
 0xa95   :  { %10269 = vmatmul.mubr.bf16.vlgmr.msra.gmra.mxu0 %v9506_v33  ;;  %10310 = vmatmul.mubr.bf16.vlgmr.msra.gmra.mxu1 %v9508_v19  ;;  %v15034_v33 = vld [vmem:[#allocation3 + $0x2a0] ss:$16 sps:$4 sm:$0xff]   ;;  %v15042_v19 = vld [vmem:[#allocation3 + $0x284] ss:$16 sps:$4 sm:$0xff]  }
 0xa96   :  { %10959 = vmatpush1.bf16.msra.mxu0 %v15019_v54  ;;  %10990 = vmatprep.mubr.bf16.mxu0 %v16062_v15  ;;  %v15108_v54 = vld [vmem:[#allocation3 + $0x324] ss:$16 sps:$4 sm:$0xff]  }
 0xa97   :  { %11000 = vmatpush1.bf16.msra.mxu1 %v15022_v50  ;;  %11031 = vmatprep.mubr.bf16.mxu1 %v16064_v31  ;;  %v15103_v50 = vld [vmem:[#allocation3 + $0x120] ss:$16 sps:$4 sm:$0xff]  }
 0xa98   :  { %10960 = vmatprep.subr.bf16.mxu0 %v15027_v52  ;;  %11001 = vmatprep.subr.bf16.mxu1 %v15030_v53  ;;  %v15106_v52 = vld [vmem:[#allocation3 + $0x320] ss:$16 sps:$4 sm:$0xff]   ;;  %v15111_v53 = vld [vmem:[#allocation3 + $0x104] ss:$16 sps:$4 sm:$0xff]  }
 0xa9a   :  { %10961 = vmatpush1.bf16.msra.mxu0 %v15025_v61  ;;  %v15114_v61 = vld [vmem:[#allocation3 + $0x304] ss:$16 sps:$4 sm:$0xff]  }
 0xa9b   :  { %11002 = vmatpush1.bf16.msra.mxu1 %v15028_v46  ;;  %10962 = vmatprep.subr.bf16.mxu0 %v15033_v55  ;;  %v15109_v46 = vld [vmem:[#allocation3 + $0x100] ss:$16 sps:$4 sm:$0xff]  }
 0xa9c   :  { %11003 = vmatprep.subr.bf16.mxu1 %v15036_v48  ;;  %v15112_v55 = vld [vmem:[#allocation3 + $0x300] ss:$16 sps:$4 sm:$0xff]   ;;  %v15117_v48 = vld [vmem:[#allocation3 + $0xec] ss:$16 sps:$4 sm:$0xff]  }
 0xa9e   :  { %10963 = vmatpush1.bf16.msra.mxu0 %v15031_v60  ;;  %v15120_v60 = vld [vmem:[#allocation3 + $0x2ec] ss:$16 sps:$4 sm:$0xff]  }
 0xa9f   :  { %11004 = vmatpush1.bf16.msra.mxu1 %v15034_v33  ;;  %10964 = vmatprep.subr.bf16.mxu0 %v15039_v63  ;;  %v15115_v33 = vld [vmem:[#allocation3 + $0xe8] ss:$16 sps:$4 sm:$0xff]  }
 0xaa0   :  { %11005 = vmatprep.subr.bf16.mxu1 %v15042_v19  ;;  %v15118_v63 = vld [vmem:[#allocation3 + $0x2e8] ss:$16 sps:$4 sm:$0xff]   ;;  %v15123_v19 = vld [vmem:[#allocation3 + $0xcc] ss:$16 sps:$4 sm:$0xff]  }
 0xaa2   :  { %10965 = vmatpush1.bf16.msra.mxu0 %v15037_v9  ;;  %v15126_v9 = vld [vmem:[#allocation3 + $0x2cc] ss:$16 sps:$4 sm:$0xff]  }
 0xaa3   :  { %11006 = vmatpush1.bf16.msra.mxu1 %v15040_v1  ;;  %10966 = vmatprep.subr.bf16.mxu0 %v15045_v22  ;;  %v15121_v1 = vld [vmem:[#allocation3 + $0xc8] ss:$16 sps:$4 sm:$0xff]  }
 0xaa4   :  { %11007 = vmatprep.subr.bf16.mxu1 %v15048_v18  ;;  %v15124_v22 = vld [vmem:[#allocation3 + $0x2c8] ss:$16 sps:$4 sm:$0xff]   ;;  %v15129_v18 = vld [vmem:[#allocation3 + $0xac] ss:$16 sps:$4 sm:$0xff]  }
 0xaa6   :  { %10967 = vmatpush1.bf16.msra.mxu0 %v15043_v42  ;;  %v15132_v42 = vld [vmem:[#allocation3 + $0x2ac] ss:$16 sps:$4 sm:$0xff]  }
 0xaa7   :  { %11008 = vmatpush1.bf16.msra.mxu1 %v15046_v2  ;;  %10968 = vmatprep.subr.bf16.mxu0 %v15051_v32  ;;  %v15127_v2 = vld [vmem:[#allocation3 + $0xa8] ss:$16 sps:$4 sm:$0xff]  }
 0xaa8   :  { %11009 = vmatprep.subr.bf16.mxu1 %v15054_v6  ;;  %v15130_v32 = vld [vmem:[#allocation3 + $0x2a8] ss:$16 sps:$4 sm:$0xff]   ;;  %v15135_v6 = vld [vmem:[#allocation3 + $0x8c] ss:$16 sps:$4 sm:$0xff]  }
 0xaaa   :  { %10969 = vmatpush1.bf16.msra.mxu0 %v15049_v7  ;;  %v15138_v7 = vld [vmem:[#allocation3 + $0x28c] ss:$16 sps:$4 sm:$0xff]  }
 0xaab   :  { %11010 = vmatpush1.bf16.msra.mxu1 %v15052_v13  ;;  %10970 = vmatprep.subr.bf16.mxu0 %v15057_v11  ;;  %v15133_v13 = vld [vmem:[#allocation3 + $0x88] ss:$16 sps:$4 sm:$0xff]   ;;  %v15141_v11 = vld [vmem:[#allocation3 + $0x6c] ss:$16 sps:$4 sm:$0xff]  }
 0xaac   :  { %11011 = vmatprep.subr.bf16.mxu1 %v15060_v14  ;;  %v15144_v14 = vld [vmem:[#allocation3 + $0x26c] ss:$16 sps:$4 sm:$0xff]  }
 0xaae   :  { %10971 = vmatpush1.bf16.msra.mxu0 %v15055_v16  ;;  %v15142_v16 = vld [vmem:[#allocation3 + $0x268] ss:$16 sps:$4 sm:$0xff]  }
 0xaaf   :  { %11012 = vmatpush1.bf16.msra.mxu1 %v15058_v59  ;;  %10972 = vmatprep.subr.bf16.mxu0 %v15063_v21  ;;  %v15147_v59 = vld [vmem:[#allocation3 + $0x4c] ss:$16 sps:$4 sm:$0xff]  }
 0xab0   :  { %11013 = vmatprep.subr.bf16.mxu1 %v15066_v4  ;;  %v15150_v21 = vld [vmem:[#allocation3 + $0x24c] ss:$16 sps:$4 sm:$0xff]   ;;  %v15145_v4 = vld [vmem:[#allocation3 + $0x48] ss:$16 sps:$4 sm:$0xff]  }
 0xab2   :  { %10973 = vmatpush1.bf16.msra.mxu0 %v15061_v8  ;;  %v15148_v8 = vld [vmem:[#allocation3 + $0x248] ss:$16 sps:$4 sm:$0xff]  }
 0xab3   :  { %11014 = vmatpush1.bf16.msra.mxu1 %v15064_v58  ;;  %10974 = vmatprep.subr.bf16.mxu0 %v15069_v44  ;;  %v15153_v58 = vld [vmem:[#allocation3 + $0x2c] ss:$16 sps:$4 sm:$0xff]  }
 0xab4   :  { %11015 = vmatprep.subr.bf16.mxu1 %v15072_v20  ;;  %v15156_v44 = vld [vmem:[#allocation3 + $0x22c] ss:$16 sps:$4 sm:$0xff]   ;;  %v15151_v20 = vld [vmem:[#allocation3 + $0x28] ss:$16 sps:$4 sm:$0xff]  }
 0xab6   :  { %10975 = vmatpush2.bf16.msra.mxu0 %v15067_v26  ;;  %v15154_v26 = vld [vmem:[#allocation3 + $0x228] ss:$16 sps:$4 sm:$0xff]  }
 0xab7   :  { %11016 = vmatpush2.bf16.msra.mxu1 %v15070_v12  ;;  %10976 = vmatprep.subr.bf16.mxu0 %v15075_v57  ;;  %v15159_v12 = vld [vmem:[#allocation3 + $0xc] ss:$16 sps:$4 sm:$0xff]  }
 0xab8   :  { %11017 = vmatprep.subr.bf16.mxu1 %v15078_v23  ;;  %v15162_v57 = vld [vmem:[#allocation3 + $0x20c] ss:$16 sps:$4 sm:$0xff]   ;;  %v15157_v23 = vld [vmem:[#allocation3 + $0x8] ss:$16 sps:$4 sm:$0xff]  }
 0xaba   :  { %10977 = vmatpush2.bf16.msra.mxu0 %v15073_v10  ;;  %v15160_v10 = vld [vmem:[#allocation3 + $0x208] ss:$16 sps:$4 sm:$0xff]  }
 0xabb   :  { %11018 = vmatpush2.bf16.msra.mxu1 %v15076_v43  ;;  %10978 = vmatprep.subr.bf16.mxu0 %v15081_v24  ;;  %v15165_v43 = vld [vmem:[#allocation3 + $0x1ec] ss:$16 sps:$4 sm:$0xff]  }
 0xabc   :  { %11019 = vmatprep.subr.bf16.mxu1 %v15084_v40  ;;  %v15168_v24 = vld [vmem:[#allocation3 + $0x3ec] ss:$16 sps:$4 sm:$0xff]   ;;  %v15163_v40 = vld [vmem:[#allocation3 + $0x1e8] ss:$16 sps:$4 sm:$0xff]  }
 0xabe   :  { %10979 = vmatpush2.bf16.msra.mxu0 %v15079_v56  ;;  %v15166_v56 = vld [vmem:[#allocation3 + $0x3e8] ss:$16 sps:$4 sm:$0xff]  }
 0xabf   :  { %11020 = vmatpush2.bf16.msra.mxu1 %v15082_v39  ;;  %10980 = vmatprep.subr.bf16.mxu0 %v15087_v34  ;;  %v15171_v39 = vld [vmem:[#allocation3 + $0x1cc] ss:$16 sps:$4 sm:$0xff]  }
 0xac0   :  { %11021 = vmatprep.subr.bf16.mxu1 %v15090_v3  ;;  %v15174_v34 = vld [vmem:[#allocation3 + $0x3cc] ss:$16 sps:$4 sm:$0xff]   ;;  %v15169_v3 = vld [vmem:[#allocation3 + $0x1c8] ss:$16 sps:$4 sm:$0xff]  }
 0xac2   :  { %10981 = vmatpush2.bf16.msra.mxu0 %v15085_v38  ;;  %v15172_v38 = vld [vmem:[#allocation3 + $0x3c8] ss:$16 sps:$4 sm:$0xff]  }
 0xac3   :  { %11022 = vmatpush2.bf16.msra.mxu1 %v15088_v27  ;;  %10982 = vmatprep.subr.bf16.mxu0 %v15093_v51  ;;  %v15177_v27 = vld [vmem:[#allocation3 + $0x1ac] ss:$16 sps:$4 sm:$0xff]  }
 0xac4   :  { %11023 = vmatprep.subr.bf16.mxu1 %v15096_v41  ;;  %v15180_v51 = vld [vmem:[#allocation3 + $0x3ac] ss:$16 sps:$4 sm:$0xff]   ;;  %v15175_v41 = vld [vmem:[#allocation3 + $0x1a8] ss:$16 sps:$4 sm:$0xff]  }
 0xac6   :  { %10983 = vmatpush2.bf16.msra.mxu0 %v15091_v25  ;;  %v15178_v25 = vld [vmem:[#allocation3 + $0x3a8] ss:$16 sps:$4 sm:$0xff]  }
 0xac7   :  { %11024 = vmatpush2.bf16.msra.mxu1 %v15094_v62  ;;  %10984 = vmatprep.subr.bf16.mxu0 %v15099_v45  ;;  %v15183_v62 = vld [vmem:[#allocation3 + $0x18c] ss:$16 sps:$4 sm:$0xff]  }
 0xac8   :  { %11025 = vmatprep.subr.bf16.mxu1 %v15102_v37  ;;  %v15186_v45 = vld [vmem:[#allocation3 + $0x38c] ss:$16 sps:$4 sm:$0xff]   ;;  %v15181_v37 = vld [vmem:[#allocation3 + $0x188] ss:$16 sps:$4 sm:$0xff]  }
 0xaca   :  { %10985 = vmatpush2.bf16.msra.mxu0 %v15097_v47  ;;  %v15184_v47 = vld [vmem:[#allocation3 + $0x388] ss:$16 sps:$4 sm:$0xff]  }
 0xacb   :  { %11026 = vmatpush2.bf16.msra.mxu1 %v15100_v49  ;;  %10986 = vmatprep.subr.bf16.mxu0 %v15105_v5  ;;  %v15189_v49 = vld [vmem:[#allocation3 + $0x16c] ss:$16 sps:$4 sm:$0xff]  }
 0xacc   :  { %11027 = vmatprep.subr.bf16.mxu1 %v15108_v54  ;;  %v15192_v5 = vld [vmem:[#allocation3 + $0x36c] ss:$16 sps:$4 sm:$0xff]   ;;  %v15187_v54 = vld [vmem:[#allocation3 + $0x168] ss:$16 sps:$4 sm:$0xff]  }
 0xace   :  { %10987 = vmatpush2.bf16.msra.mxu0 %v15103_v50  ;;  %v15190_v50 = vld [vmem:[#allocation3 + $0x368] ss:$16 sps:$4 sm:$0xff]  }
 0xacf   :  { %11028 = vmatpush2.bf16.msra.mxu1 %v15106_v52  ;;  %10988 = vmatprep.subr.bf16.mxu0 %v15111_v53  ;;  %v15195_v52 = vld [vmem:[#allocation3 + $0x14c] ss:$16 sps:$4 sm:$0xff]  }
 0xad0   :  { %11029 = vmatprep.subr.bf16.mxu1 %v15114_v61  ;;  %v15198_v53 = vld [vmem:[#allocation3 + $0x34c] ss:$16 sps:$4 sm:$0xff]   ;;  %v15193_v61 = vld [vmem:[#allocation3 + $0x148] ss:$16 sps:$4 sm:$0xff]  }
 0xad2   :  { %10989 = vmatpush2.bf16.msra.mxu0 %v15109_v46  ;;  %v15196_v46 = vld [vmem:[#allocation3 + $0x348] ss:$16 sps:$4 sm:$0xff]  }
 0xad3   :  { %11030 = vmatpush2.bf16.msra.mxu1 %v15112_v55  ;;  %11040 = vmatprep.subr.bf16.mxu0 %v15117_v48  ;;  %v15201_v55 = vld [vmem:[#allocation3 + $0x12c] ss:$16 sps:$4 sm:$0xff]  }
 0xad4   :  { %11081 = vmatprep.subr.bf16.mxu1 %v15120_v60  ;;  %v15204_v48 = vld [vmem:[#allocation3 + $0x32c] ss:$16 sps:$4 sm:$0xff]   ;;  %v15199_v60 = vld [vmem:[#allocation3 + $0x128] ss:$16 sps:$4 sm:$0xff]  }
 0xad5   :  { %10991 = vmatmul.mubr.bf16.vlgmr.msra.gmra.mxu0 %v16060_v0 }
 0xad6   :  { %11032 = vmatmul.mubr.bf16.vlgmr.msra.gmra.mxu1 %v16058_v30  ;;  %11041 = vmatpush1.bf16.msra.mxu0 %v15115_v33  ;;  %v15202_v33 = vld [vmem:[#allocation3 + $0x328] ss:$16 sps:$4 sm:$0xff]  }
 0xad7   :  { %11072 = vmatprep.mubr.bf16.mxu0 %v16062_v15  ;;  %11082 = vmatpush1.bf16.msra.mxu1 %v15118_v63  ;;  %v15136_v15 = vld [vmem:[#allocation3 + $0x288] ss:$16 sps:$4 sm:$0xff]   ;;  %v15207_v63 = vld [vmem:[#allocation3 + $0x10c] ss:$16 sps:$4 sm:$0xff]  }
 0xad8   :  { %11113 = vmatprep.mubr.bf16.mxu1 %v16064_v31  ;;  %11042 = vmatprep.subr.bf16.mxu0 %v15123_v19  ;;  %v15139_v31 = vld [vmem:[#allocation3 + $0x68] ss:$16 sps:$4 sm:$0xff]   ;;  %v15210_v19 = vld [vmem:[#allocation3 + $0x30c] ss:$16 sps:$4 sm:$0xff]  }
 0xad9   :  { %11083 = vmatprep.subr.bf16.mxu1 %v15126_v9  ;;  %v15205_v9 = vld [vmem:[#allocation3 + $0x108] ss:$16 sps:$4 sm:$0xff]  }
 0xada   :  { %11043 = vmatpush1.bf16.msra.mxu0 %v15121_v1  ;;  %v15208_v1 = vld [vmem:[#allocation3 + $0x308] ss:$16 sps:$4 sm:$0xff]  }
 0xadb   :  { %11084 = vmatpush1.bf16.msra.mxu1 %v15124_v22  ;;  %11044 = vmatprep.subr.bf16.mxu0 %v15129_v18 }
 0xadc   :  { %11085 = vmatprep.subr.bf16.mxu1 %v15132_v42 }
 0xade   :  { %11045 = vmatpush1.bf16.msra.mxu0 %v15127_v2 }
 0xadf   :  { %11086 = vmatpush1.bf16.msra.mxu1 %v15130_v32  ;;  %11046 = vmatprep.subr.bf16.mxu0 %v15135_v6 }
 0xae0   :  { %11087 = vmatprep.subr.bf16.mxu1 %v15138_v7 }
 0xae2   :  { %11047 = vmatpush1.bf16.msra.mxu0 %v15133_v13 }
 0xae3   :  { %11088 = vmatpush1.bf16.msra.mxu1 %v15136_v15  ;;  %11048 = vmatprep.subr.bf16.mxu0 %v15141_v11 }
 0xae4   :  { %11089 = vmatprep.subr.bf16.mxu1 %v15144_v14 }
 0xae6   :  { %11049 = vmatpush1.bf16.msra.mxu0 %v15139_v31 }
 0xae7   :  { %11090 = vmatpush1.bf16.msra.mxu1 %v15142_v16  ;;  %11050 = vmatprep.subr.bf16.mxu0 %v15147_v59 }
 0xae8   :  { %11091 = vmatprep.subr.bf16.mxu1 %v15150_v21 }
 0xaea   :  { %11051 = vmatpush1.bf16.msra.mxu0 %v15145_v4 }
 0xaeb   :  { %11092 = vmatpush1.bf16.msra.mxu1 %v15148_v8  ;;  %11052 = vmatprep.subr.bf16.mxu0 %v15153_v58 }
 0xaec   :  { %11093 = vmatprep.subr.bf16.mxu1 %v15156_v44 }
 0xaee   :  { %11053 = vmatpush1.bf16.msra.mxu0 %v15151_v20 }
 0xaef   :  { %11094 = vmatpush1.bf16.msra.mxu1 %v15154_v26  ;;  %11054 = vmatprep.subr.bf16.mxu0 %v15159_v12 }
 0xaf0   :  { %11095 = vmatprep.subr.bf16.mxu1 %v15162_v57 }
 0xaf2   :  { %11055 = vmatpush1.bf16.msra.mxu0 %v15157_v23 }
 0xaf3   :  { %11096 = vmatpush1.bf16.msra.mxu1 %v15160_v10  ;;  %11056 = vmatprep.subr.bf16.mxu0 %v15165_v43 }
 0xaf4   :  { %11097 = vmatprep.subr.bf16.mxu1 %v15168_v24 }
 0xaf6   :  { %11057 = vmatpush2.bf16.msra.mxu0 %v15163_v40 }
 0xaf7   :  { %11098 = vmatpush2.bf16.msra.mxu1 %v15166_v56  ;;  %11058 = vmatprep.subr.bf16.mxu0 %v15171_v39 }
 0xaf8   :  { %11099 = vmatprep.subr.bf16.mxu1 %v15174_v34 }
 0xafa   :  { %11059 = vmatpush2.bf16.msra.mxu0 %v15169_v3 }
 0xafb   :  { %11100 = vmatpush2.bf16.msra.mxu1 %v15172_v38  ;;  %11060 = vmatprep.subr.bf16.mxu0 %v15177_v27 }
 0xafc   :  { %11101 = vmatprep.subr.bf16.mxu1 %v15180_v51 }
 0xafe   :  { %11061 = vmatpush2.bf16.msra.mxu0 %v15175_v41 }
 0xaff   :  { %11102 = vmatpush2.bf16.msra.mxu1 %v15178_v25  ;;  %11062 = vmatprep.subr.bf16.mxu0 %v15183_v62 }
 0xb00   :  { %11103 = vmatprep.subr.bf16.mxu1 %v15186_v45 }
 0xb02   :  { %11063 = vmatpush2.bf16.msra.mxu0 %v15181_v37 }
 0xb03   :  { %11104 = vmatpush2.bf16.msra.mxu1 %v15184_v47  ;;  %11064 = vmatprep.subr.bf16.mxu0 %v15189_v49 }
 0xb04   :  { %11105 = vmatprep.subr.bf16.mxu1 %v15192_v5 }
 0xb06   :  { %11065 = vmatpush2.bf16.msra.mxu0 %v15187_v54 }
 0xb07   :  { %11106 = vmatpush2.bf16.msra.mxu1 %v15190_v50  ;;  %11066 = vmatprep.subr.bf16.mxu0 %v15195_v52 }
 0xb08   :  { %11107 = vmatprep.subr.bf16.mxu1 %v15198_v53 }
 0xb0a   :  { %11067 = vmatpush2.bf16.msra.mxu0 %v15193_v61 }
 0xb0b   :  { %11108 = vmatpush2.bf16.msra.mxu1 %v15196_v46  ;;  %11068 = vmatprep.subr.bf16.mxu0 %v15201_v55 }
 0xb0c   :  { %11109 = vmatprep.subr.bf16.mxu1 %v15204_v48 }
 0xb0e   :  { %11069 = vmatpush2.bf16.msra.mxu0 %v15199_v60 }
 0xb0f   :  { %11110 = vmatpush2.bf16.msra.mxu1 %v15202_v33  ;;  %11070 = vmatprep.subr.bf16.mxu0 %v15207_v63 }
 0xb10   :  { %11111 = vmatprep.subr.bf16.mxu1 %v15210_v19 }
 0xb12   :  { %11071 = vmatpush2.bf16.msra.mxu0 %v15205_v9 }
 0xb13   :  { %11112 = vmatpush2.bf16.msra.mxu1 %v15208_v1 }
 0xb15   :  { %11073 = vmatmul.mubr.bf16.vlgmr.msra.gmra.mxu0 %v16060_v0  ;;  %v10188_v22 = vpop.f32.mrf.mxu0  ;;  %v10229_v18 = vpop.f32.mrf.mxu1 }
 0xb16   :  { %11114 = vmatmul.mubr.bf16.vlgmr.msra.gmra.mxu1 %v16058_v30  ;;  %v10230_v42 = vadd.f32 %v10229_v18, %v10188_v22 }
 0xb17   :  { %v10190_v2 = vpop.f32.mrf.mxu0  ;;  %v10231_v32 = vpop.f32.mrf.mxu1 }
 0xb18   :  { %v10232_v6 = vadd.f32 %v10231_v32, %v10190_v2 }
 0xb19   :  { %v10192_v7 = vpop.f32.mrf.mxu0  ;;  %v10233_v13 = vpop.f32.mrf.mxu1 }
 0xb1b   :  { %v10193_v15 = vpop.f32.mrf.mxu0  ;;  %v10234_v11 = vpop.f32.mrf.mxu1 }
 0xb55   :  { %v10270_v14 = vpop.f32.mrf.mxu0  ;;  %v10311_v31 = vpop.f32.mrf.mxu1 }
 0xb56   :  { %v16086_v16 = vadd.f32 %v10311_v31, %v10270_v14 }
 0xb57   :  { %v10272_v59 = vpop.f32.mrf.mxu0  ;;  %v10313_v21 = vpop.f32.mrf.mxu1 }
 0xb58   :  { %v16088_v4 = vadd.f32 %v10313_v21, %v10272_v59 }
 0xb59   :  { %v10274_v0 = vpop.f32.mrf.mxu0  ;;  %v10315_v8 = vpop.f32.mrf.mxu1 }
 0xb5b   :  { %v10275_v58 = vpop.f32.mrf.mxu0  ;;  %v10316_v30 = vpop.f32.mrf.mxu1 }
 0xb95   :  { %v10992_v44 = vpop.f32.mrf.mxu0 }
 0xb96   :  { %v10993_v20 = vadd.f32 %v10992_v44, %v10230_v42  ;;  %v11033_v26 = vpop.f32.mrf.mxu1 }
 0xb97   :  { %v10994_v12 = vpop.f32.mrf.mxu0 }
 0xb98   :  { %v16090_v57 = vadd.f32 %v11033_v26, %v10993_v20  ;;  %v10995_v23 = vadd.f32 %v10994_v12, %v10232_v6  ;;  %v11035_v10 = vpop.f32.mrf.mxu1 }
 0xb99   :  { %v10996_v43 = vpop.f32.mrf.mxu0 }
 0xb9a   :  { %v11124_v24 = vsel %vm9146_vm5, %v16090_v57, 0.0  ;;  %v11152_v40 = vmul.f32 %v16090_v57, %v16090_v57  ;;  %v16096_v56 = vadd.f32 %v11035_v10, %v10995_v23  ;;  %v11037_v39 = vpop.f32.mrf.mxu1 }
 0xb9b   :  { %v11125_v34 = vrot.slane %v11124_v24, 4  ;;  %v10997_v3 = vpop.f32.mrf.mxu0 }
 0xb9c   :  { %v11156_v38 = vsel %vm9146_vm5, %v11152_v40, 0.0  ;;  %v11131_v27 = vsel %vm9146_vm5, %v16096_v56, 0.0  ;;  %v11153_v51 = vmul.f32 %v16096_v56, %v16096_v56  ;;  %v11038_v41 = vpop.f32.mrf.mxu1 }
 0xb9d   :  { %v11126_v25 = vadd.f32 %v11125_v34, %v11124_v24  ;;  %v11157_v62 = vrot.slane %v11156_v38, 4  ;;  %v11132_v45 = vrot.slane %v11131_v27, 4 }
 0xb9e   :  { %v11163_v37 = vsel %vm9146_vm5, %v11153_v51, 0.0 }
 0xb9f   :  { %v11127_v47 = vrot.slane %v11126_v25, 2  ;;  %v11158_v49 = vadd.f32 %v11157_v62, %v11156_v38  ;;  %v11133_v5 = vadd.f32 %v11132_v45, %v11131_v27  ;;  %v11164_v54 = vrot.slane %v11163_v37, 4 }
 0xba1   :  { %v11128_v50 = vadd.f32 %v11127_v47, %v11126_v25  ;;  %v11159_v52 = vrot.slane %v11158_v49, 2  ;;  %v11134_v53 = vrot.slane %v11133_v5, 2  ;;  %v11165_v61 = vadd.f32 %v11164_v54, %v11163_v37 }
 0xba3   :  { %v11129_v46 = vrot.slane %v11128_v50, 1  ;;  %v11160_v55 = vadd.f32 %v11159_v52, %v11158_v49  ;;  %v11135_v48 = vadd.f32 %v11134_v53, %v11133_v5  ;;  %v11166_v60 = vrot.slane %v11165_v61, 2 }
 0xba5   :  { %v11130_v33 = vadd.f32 %v11129_v46, %v11128_v50  ;;  %v11161_v63 = vrot.slane %v11160_v55, 1  ;;  %v11136_v19 = vrot.slane %v11135_v48, 1  ;;  %v11167_v9 = vadd.f32 %v11166_v60, %v11165_v61 }
 0xba7   :  { %v11162_v1 = vadd.f32 %v11161_v63, %v11160_v55  ;;  %v16104_v22 = vmul.f32 0.5, %v11130_v33  ;;  %v11137_v18 = vadd.f32 %v11136_v19, %v11135_v48  ;;  %v11168_v42 = vrot.slane %v11167_v9, 1 }
 0xba9   :  { %v11188_v2 = vmul.f32 0.5, %v11162_v1  ;;  %v11192_v32 = vmul.f32 %v16104_v22, %v16104_v22  ;;  %v11169_v6 = vadd.f32 %v11168_v42, %v11167_v9  ;;  %v16108_v7 = vmul.f32 0.5, %v11137_v18 }
 0xbab   :  { %v11196_v13 = vsub.f32 %v11188_v2, %v11192_v32  ;;  %v11189_v15 = vmul.f32 0.5, %v11169_v6  ;;  %v11193_v11 = vmul.f32 %v16108_v7, %v16108_v7 }
 0xbad   :  { %v11200_v14 = vmax.f32 %v11196_v13, 0.0  ;;  %v11197_v31 = vsub.f32 %v11189_v15, %v11193_v11 }
 0xbaf   :  { %v11204_v59 = vadd.f32 1e-05, %v11200_v14  ;;  %v11201_v21 = vmax.f32 %v11197_v31, 0.0 }
 0xbb1   :  { %v11205_v0 = vadd.f32 1e-05, %v11201_v21  ;;  %15211 = vrsqrt.f32 %v11204_v59 }
 0xbb3   :  { %15213 = vrsqrt.f32 %v11205_v0 }
 0xbbe   :  { %v16112_v8 = vpop.eup %15211 }
 0xbc0   :  { %v15214_v58 = vpop.eup %15213 }
 0xbc1   :  { %v11216_v30 = vcombine.low %v16112_v8, %v15214_v58 }
 0xbd5   :  { %v11074_v44 = vpop.f32.mrf.mxu0 }
 0xbd6   :  { %v11075_v20 = vadd.f32 %v11074_v44, %v16086_v16  ;;  %v11115_v26 = vpop.f32.mrf.mxu1 }
 0xbd7   :  { %v11076_v12 = vpop.f32.mrf.mxu0 }
 0xbd8   :  { %v16116_v23 = vadd.f32 %v11115_v26, %v11075_v20  ;;  %v11077_v10 = vadd.f32 %v11076_v12, %v16088_v4  ;;  %v11117_v43 = vpop.f32.mrf.mxu1  ;;  %v11224_v12 = vrot.slane %v11216_v30, %v16034_v17 }
 0xbd9   :  { %v11078_v24 = vpop.f32.mrf.mxu0 }
 0xbda   :  { %v11138_v40 = vsel %vm9146_vm5, %v16116_v23, 0.0  ;;  %v11154_v39 = vmul.f32 %v16116_v23, %v16116_v23  ;;  %v16123_v34 = vadd.f32 %v11117_v43, %v11077_v10  ;;  %v11119_v3 = vpop.f32.mrf.mxu1  ;;  %v11122_v24 = vld [vmem:[#allocation19] sm:$0xf] }
 0xbdb   :  { %v11139_v38 = vrot.slane %v11138_v40, 4  ;;  %v11079_v27 = vpop.f32.mrf.mxu0 }
 0xbdc   :  { %v11170_v16 = vsel %vm9146_vm5, %v11154_v39, 0.0  ;;  %v11145_v51 = vsel %vm9146_vm5, %v16123_v34, 0.0  ;;  %v11155_v4 = vmul.f32 %v16123_v34, %v16123_v34  ;;  %v11120_v41 = vpop.f32.mrf.mxu1 }
 0xbdd   :  { %v11140_v25 = vadd.f32 %v11139_v38, %v11138_v40  ;;  %v11171_v62 = vrot.slane %v11170_v16, 4  ;;  %v11146_v45 = vrot.slane %v11145_v51, 4 }
 0xbde   :  { %v11177_v37 = vsel %vm9146_vm5, %v11155_v4, 0.0 }
 0xbdf   :  { %v11141_v47 = vrot.slane %v11140_v25, 2  ;;  %v11172_v49 = vadd.f32 %v11171_v62, %v11170_v16  ;;  %v11147_v5 = vadd.f32 %v11146_v45, %v11145_v51  ;;  %v11178_v54 = vrot.slane %v11177_v37, 4 }
 0xbe1   :  { %v11142_v50 = vadd.f32 %v11141_v47, %v11140_v25  ;;  %v11173_v52 = vrot.slane %v11172_v49, 2  ;;  %v11148_v53 = vrot.slane %v11147_v5, 2  ;;  %v11179_v61 = vadd.f32 %v11178_v54, %v11177_v37 }
 0xbe3   :  { %v11143_v46 = vrot.slane %v11142_v50, 1  ;;  %v11174_v55 = vadd.f32 %v11173_v52, %v11172_v49  ;;  %v11149_v48 = vadd.f32 %v11148_v53, %v11147_v5  ;;  %v11180_v60 = vrot.slane %v11179_v61, 2 }
 0xbe5   :  { %v11144_v33 = vadd.f32 %v11143_v46, %v11142_v50  ;;  %v11175_v63 = vrot.slane %v11174_v55, 1  ;;  %v11150_v19 = vrot.slane %v11149_v48, 1  ;;  %v11181_v9 = vadd.f32 %v11180_v60, %v11179_v61 }
 0xbe7   :  { %v11176_v1 = vadd.f32 %v11175_v63, %v11174_v55  ;;  %v11186_v18 = vmul.f32 0.5, %v11144_v33  ;;  %v11151_v42 = vadd.f32 %v11150_v19, %v11149_v48  ;;  %v11182_v2 = vrot.slane %v11181_v9, 1 }
 0xbe9   :  { %v11190_v32 = vmul.f32 0.5, %v11176_v1  ;;  %v11194_v6 = vmul.f32 %v11186_v18, %v11186_v18  ;;  %v11183_v13 = vadd.f32 %v11182_v2, %v11181_v9  ;;  %v11187_v15 = vmul.f32 0.5, %v11151_v42 }
 0xbeb   :  { %v11198_v11 = vsub.f32 %v11190_v32, %v11194_v6  ;;  %v11191_v14 = vmul.f32 0.5, %v11183_v13  ;;  %v11195_v31 = vmul.f32 %v11187_v15, %v11187_v15 }
 0xbed   :  { %v11202_v59 = vmax.f32 %v11198_v11, 0.0  ;;  %v11199_v21 = vsub.f32 %v11191_v14, %v11195_v31 }
 0xbef   :  { %v11206_v0 = vadd.f32 1e-05, %v11202_v59  ;;  %v11203_v8 = vmax.f32 %v11199_v21, 0.0 }
 0xbf1   :  { %v11207_v58 = vadd.f32 1e-05, %v11203_v8  ;;  %15215 = vrsqrt.f32 %v11206_v0 }
 0xbf3   :  { %15217 = vrsqrt.f32 %v11207_v58 }
 0xbfe   :  { %v15216_v44 = vpop.eup %15215 }
 0xc00   :  { %v15218_v20 = vpop.eup %15217 }
 0xc01   :  { %v11217_v26 = vcombine.low %v15216_v44, %v15218_v20 }
 0xc03   :  { %v11231_v10 = vrot.slane %v11217_v26, %v16034_v17 }
 0xc05   :  { %v11232_v43 = vcombine.low %v11224_v12, %v11231_v10 }
 0xc07   :  { %v11239_v40 = vrot.slane %v11232_v43, %v16034_v17 }
 0xc09   :  { %v11241_v39 = vmul.f32 %v11239_v40, %v11122_v24 }
 0xc0b   :  { %v11246_v3 = vrot.slane %v11241_v39, %v15748_v28  ;;  %v11250_v38 = vrot.slane %v11241_v39, %v15754_v35  ;;  %v11254_v27 = vrot.slane %v11241_v39, %v15751_v29  ;;  %v11258_v16 = vrot.slane %v11241_v39, %v15757_v36 }
 0xc0d   :  { %v11263_v51 = vmul.f32 %v11246_v3, %v16104_v22  ;;  %v11264_v4 = vmul.f32 %v11250_v38, %v16108_v7  ;;  %v11265_v30 = vmul.f32 %v11254_v27, %v11186_v18  ;;  %v11266_v41 = vmul.f32 %v11258_v16, %v11187_v15  ;;  %v11123_v22 = vld [vmem:[#allocation20] sm:$0xf] }
 0xc0e   :  { %v11297_v25 = vmul.f32 %v11246_v3, %v16090_v57  ;;  %v11298_v62 = vmul.f32 %v11250_v38, %v16096_v56  ;;  %v11299_v45 = vmul.f32 %v11254_v27, %v16116_v23  ;;  %v11300_v37 = vmul.f32 %v11258_v16, %v16123_v34 }
 0xc0f   :  { %v11271_v47 = vcombine.low %v11263_v51, %v11264_v4  ;;  %v11272_v49 = vcombine.low %v11265_v30, %v11266_v41 }
 0xc11   :  { %v11279_v5 = vrot.slane %v11271_v47, %v16034_v17  ;;  %v11286_v54 = vrot.slane %v11272_v49, %v16034_v17 }
 0xc13   :  { %v11287_v50 = vcombine.low %v11279_v5, %v11286_v54 }
 0xc15   :  { %v11294_v7 = vrot.slane %v11287_v50, %v16034_v17 }
 0xc17   :  { %v11296_v52 = vsub.f32 %v11123_v22, %v11294_v7 }
 0xc19   :  { %v11305_v53 = vrot.slane %v11296_v52, %v15748_v28  ;;  %v11309_v57 = vrot.slane %v11296_v52, %v15754_v35  ;;  %v11313_v56 = vrot.slane %v11296_v52, %v15751_v29  ;;  %v11317_v23 = vrot.slane %v11296_v52, %v15757_v36 }
 0xc1b   :  { %v11322_v34 = vadd.f32 %v11305_v53, %v11297_v25  ;;  %v11323_v61 = vadd.f32 %v11309_v57, %v11298_v62  ;;  %v11324_v46 = vadd.f32 %v11313_v56, %v11299_v45  ;;  %v11325_v55 = vadd.f32 %v11317_v23, %v11300_v37 }
 0xc1d   :  { %vm11326_vm7 = vcmp.ge.f32.partialorder %v11322_v34, 0.0  ;;  %vm11327_vm8 = vcmp.ge.f32.partialorder %v11323_v61, 0.0  ;;  %vm11328_vm9 = vcmp.ge.f32.partialorder %v11324_v46, 0.0  ;;  %vm11329_vm10 = vcmp.ge.f32.partialorder %v11325_v55, 0.0 }
 0xc1e   :  { %v11330_v48 = vmul.f32 0.2, %v11322_v34  ;;  %v11331_v60 = vmul.f32 0.2, %v11323_v61  ;;  %v11332_v17 = vmul.f32 0.2, %v11324_v46 }
 0xc1f   :  { %v11333_v33 = vmul.f32 0.2, %v11325_v55 }
 0xc20   :  { %v16151_v63 = vsel %vm11326_vm7, %v11322_v34, %v11330_v48  ;;  %v11335_v28 = vsel %vm11327_vm8, %v11323_v61, %v11331_v60  ;;  %v16153_v35 = vsel %vm11328_vm9, %v11324_v46, %v11332_v17 }
 0xc21   :  { %v11337_v29 = vsel %vm11329_vm10, %v11325_v55, %v11333_v33  ;;  %v11338_v36 = vpack.c.bf16 %v16151_v63, %v16151_v63  ;;  %v11339_v19 = vpack.c.bf16 %v11335_v28, %v11335_v28  ;;  %v11340_v9 = vpack.c.bf16 %v16153_v35, %v16153_v35 }
 0xc22   :  { %v11341_v1 = vpack.c.bf16 %v11337_v29, %v11337_v29 }
 0xc23   :  { %15551 = dma.done.wait [#allocation5 + $0x2], 4096 }
 0xc24   :  { %15552 = vsyncadd [#allocation5 + $0x2], 4294963200  ;;  %11641 = vmatprep.mubr.bf16.mxu0 %v11339_v19  ;;  %11681 = vmatprep.mubr.bf16.mxu1 %v11341_v1  ;;  %v15219_v18 = vld [vmem:[#allocation4 + $0x78] sm:$0xff]   ;;  %v15223_v6 = vld [vmem:[#allocation4 + $0x70] sm:$0xff]  }
 0xc25   :  { %v15220_v42 = vld [vmem:[#allocation4 + $0xf8] sm:$0xff]   ;;  %13130 = vmatprep.subr.bf16.mxu0 %v15219_v18  ;;  %v15224_v13 = vld [vmem:[#allocation4 + $0xf0] sm:$0xff]   ;;  %v15227_v14 = vld [vmem:[#allocation4 + $0x68] sm:$0xff]  }
 0xc26   :  { %v15221_v2 = vld [vmem:[#allocation4 + $0x38] sm:$0xff]   ;;  %13152 = vmatprep.subr.bf16.mxu1 %v15220_v42  ;;  %v15225_v15 = vld [vmem:[#allocation4 + $0x30] sm:$0xff]   ;;  %v15228_v31 = vld [vmem:[#allocation4 + $0xe8] sm:$0xff]  }
 0xc27   :  { %v15222_v32 = vld [vmem:[#allocation4 + $0xb8] sm:$0xff]   ;;  %13131 = vmatpush3.bf16.msra.mxu0 %v15221_v2  ;;  %v15226_v11 = vld [vmem:[#allocation4 + $0xb0] sm:$0xff]   ;;  %v15229_v59 = vld [vmem:[#allocation4 + $0x28] sm:$0xff]  }
 0xc28   :  { %13153 = vmatpush3.bf16.msra.mxu1 %v15222_v32  ;;  %13132 = vmatprep.subr.bf16.mxu0 %v15223_v6  ;;  %v15230_v21 = vld [vmem:[#allocation4 + $0xa8] sm:$0xff]   ;;  %v15231_v0 = vld [vmem:[#allocation4 + $0x60] sm:$0xff]   ;;  %v15235_v20 = vld [vmem:[#allocation4 + $0x58] sm:$0xff]  }
 0xc29   :  { %13154 = vmatprep.subr.bf16.mxu1 %v15224_v13  ;;  %v15232_v8 = vld [vmem:[#allocation4 + $0xe0] sm:$0xff]   ;;  %v15236_v26 = vld [vmem:[#allocation4 + $0xd8] sm:$0xff]   ;;  %v15239_v43 = vld [vmem:[#allocation4 + $0x50] sm:$0xff]  }
 0xc2a   :  { %v15233_v58 = vld [vmem:[#allocation4 + $0x20] sm:$0xff]   ;;  %v15237_v12 = vld [vmem:[#allocation4 + $0x18] sm:$0xff]   ;;  %v15240_v24 = vld [vmem:[#allocation4 + $0xd0] sm:$0xff]  }
 0xc2b   :  { %13133 = vmatpush3.bf16.msra.mxu0 %v15225_v15  ;;  %v15234_v44 = vld [vmem:[#allocation4 + $0xa0] sm:$0xff]   ;;  %v15238_v10 = vld [vmem:[#allocation4 + $0x98] sm:$0xff]   ;;  %v15241_v40 = vld [vmem:[#allocation4 + $0x10] sm:$0xff]  }
 0xc2c   :  { %13155 = vmatpush3.bf16.msra.mxu1 %v15226_v11  ;;  %13134 = vmatprep.subr.bf16.mxu0 %v15227_v14  ;;  %v15242_v39 = vld [vmem:[#allocation4 + $0x90] sm:$0xff]   ;;  %v15243_v3 = vld [vmem:[#allocation4 + $0x48] sm:$0xff]   ;;  %v15247_v51 = vld [vmem:[#allocation4 + $0x40] sm:$0xff]  }
 0xc2d   :  { %13156 = vmatprep.subr.bf16.mxu1 %v15228_v31  ;;  %v15244_v38 = vld [vmem:[#allocation4 + $0xc8] sm:$0xff]   ;;  %v15248_v4 = vld [vmem:[#allocation4 + $0xc0] sm:$0xff]   ;;  %v13088_v45 = vld [vmem:[#allocation22] ss:$0 sm:$0xff] }
 0xc2e   :  { %v15245_v27 = vld [vmem:[#allocation4 + $0x8] sm:$0xff]   ;;  %v15249_v30 = vld [vmem:[#allocation4] sm:$0xff]  }
 0xc2f   :  { %13135 = vmatpush3.bf16.msra.mxu0 %v15229_v59  ;;  %v15246_v16 = vld [vmem:[#allocation4 + $0x88] sm:$0xff]   ;;  %v15250_v41 = vld [vmem:[#allocation4 + $0x80] sm:$0xff]  }
 0xc30   :  { %13157 = vmatpush3.bf16.msra.mxu1 %v15230_v21  ;;  %13136 = vmatprep.subr.bf16.mxu0 %v15231_v0 }
 0xc31   :  { %13158 = vmatprep.subr.bf16.mxu1 %v15232_v8 }
 0xc33   :  { %13137 = vmatpush3.bf16.msra.mxu0 %v15233_v58 }
 0xc34   :  { %13159 = vmatpush3.bf16.msra.mxu1 %v15234_v44  ;;  %13138 = vmatprep.subr.bf16.mxu0 %v15235_v20 }
 0xc35   :  { %13160 = vmatprep.subr.bf16.mxu1 %v15236_v26 }
 0xc37   :  { %13139 = vmatpush3.bf16.msra.mxu0 %v15237_v12 }
 0xc38   :  { %13161 = vmatpush3.bf16.msra.mxu1 %v15238_v10  ;;  %13140 = vmatprep.subr.bf16.mxu0 %v15239_v43 }
 0xc39   :  { %13162 = vmatprep.subr.bf16.mxu1 %v15240_v24 }
 0xc3b   :  { %13141 = vmatpush3.bf16.msra.mxu0 %v15241_v40 }
 0xc3c   :  { %13163 = vmatpush3.bf16.msra.mxu1 %v15242_v39  ;;  %13142 = vmatprep.subr.bf16.mxu0 %v15243_v3 }
 0xc3d   :  { %13164 = vmatprep.subr.bf16.mxu1 %v15244_v38 }
 0xc3f   :  { %13143 = vmatpush3.bf16.msra.mxu0 %v15245_v27 }
 0xc40   :  { %13165 = vmatpush3.bf16.msra.mxu1 %v15246_v16  ;;  %13144 = vmatprep.subr.bf16.mxu0 %v15247_v51 }
 0xc41   :  { %13166 = vmatprep.subr.bf16.mxu1 %v15248_v4 }
 0xc43   :  { %13145 = vmatpush3.bf16.msra.mxu0 %v15249_v30 }
 0xc44   :  { %13167 = vmatpush3.bf16.msra.mxu1 %v15250_v41 }
 0xc46   :  { %11642 = vmatmul.mubr.bf16.vlgmr.msra.gmra.mxu0 %v11338_v36 }
 0xc47   :  { %11682 = vmatmul.mubr.bf16.vlgmr.msra.gmra.mxu1 %v11340_v9 }
 0xd06   :  { %v13146_v25 = vpop.f32.mrf.mxu0 }
 0xd07   :  { %v13168_v62 = vpop.f32.mrf.mxu1 }
 0xd08   :  { %v13147_v37 = vpop.f32.mrf.mxu0 }
 0xd09   :  { %v13148_v47 = vadd.f32 %v13147_v37, %v13146_v25  ;;  %v13169_v49 = vpop.f32.mrf.mxu1 }
 0xd0a   :  { %v13149_v5 = vpop.f32.mrf.mxu0  ;;  %v13170_v50 = vadd.f32 %v13169_v49, %v13168_v62 }
 0xd0b   :  { %v11644_v54 = vadd.f32 %v13148_v47, %v13088_v45  ;;  %v13171_v22 = vpop.f32.mrf.mxu1 }
 0xd0c   :  { %v13150_v7 = vpop.f32.mrf.mxu0 }
 0xd0d   :  { %v11684_v52 = vadd.f32 %v13170_v50, %v11644_v54  ;;  %v13172_v53 = vpop.f32.mrf.mxu1 }
 0xd0f   :  { %v11689_v57 = vsub.f32 0.0, %v11684_v52 }
 0xd11   :  { %v11690_v56 = vmul.f32 1.442695, %v11689_v57 }
 0xd13   :  { %15251 = vpow2.f32 %v11690_v56 }
 0xd20   :  { %v15252_v23 = vpop.eup %15251 }
 0xd21   :  { %v11692_v34 = vadd.f32 1.0, %v15252_v23 }
 0xd23   :  { %15253 = vrcp.f32 %v11692_v34 }
 0xd30   :  { %v15254_v61 = vpop.eup %15253 }
 0xd31   :  { %v11694_v46 = vmax.f32 %v15254_v61, 0.0 }
 0xd33   :  { %v11695_v55 = vmin.f32 %v11694_v46, 1.0 }
 0xd35   :  { %11696 = vst [vmem:[%s16186_s18] sm:$0x3] %v11695_v55 }
 0xd36   :  { %11701 = vsyncpa [#allocation7], 1 }
 0xd37   :  { %11702 = vsyncpa [#allocation9], 1 }
 0xd38   :  { %11703 = vsyncpa [#allocation12], 1 }
 0xd39   :  { %11704 = vsyncpa [#allocation15], 1 }
 0xd3a   :  { %11705 = vsyncpa [#allocation18], 1 }
 0xd3b   :  { %11706 = vsyncpa [#allocation21], 1 }
 0xd3c   :  { %11707 = vsyncmov [#allocation5] }
 0xd3f   :  { %s11708_s7 = vpop.sfrf %11707 }
 0xd40   :  { %p13121_p0 = scmp.ne.s32.totalorder %s11708_s7, 0 }
 0xd42   :  { %11712 = shalt.err (%p13121_p0)  }
 0xd43   :  { %11714 = vsyncmov [#allocation5 + $0x1] }
 0xd46   :  { %s11715_s21 = vpop.sfrf %11714 }
 0xd47   :  { %p13122_p1 = scmp.ne.s32.totalorder %s11715_s21, 0 }
 0xd49   :  { %11719 = shalt.err (%p13122_p1)  }
 0xd4a   :  { %11721 = vsyncmov [#allocation5 + $0x2] }
 0xd4d   :  { %s11722_s23 = vpop.sfrf %11721 }
 0xd4e   :  { %p13123_p2 = scmp.ne.s32.totalorder %s11722_s23, 0 }
 0xd50   :  { %11726 = shalt.err (%p13123_p2)  }

</bundles_post_ra>
